<compile_context>
chip_gen: v5e
topology: v5e:2x2
jax: 0.10.0
libtpu: 0.0.40
codegen_flags: <defaults>
</compile_context>

<pallas_src>
import functools

import numpy as np
import jax
import jax.numpy as jnp
from jax.experimental import pallas as pl
from jax.experimental.pallas import tpu as pltpu

BN_EPS = 1e-5


# --------------------------------- kernel -----------------------------------

def _bn_train(h, gamma, beta, count, mask=None):
    """Training-mode BatchNorm2d over a stacked (rows, C) tile.

    `count` is the number of valid rows (N * W_valid).  `mask` (rows, 1) zeroes
    padding / cross-sample garbage rows out of the statistics; the affine
    output on those rows is discarded by the following transition matmul.
    """
    inv_count = 1.0 / float(count)
    hm = h if mask is None else h * mask
    mean = jnp.sum(hm, axis=0, keepdims=True) * inv_count
    cen = (h - mean) if mask is None else (h - mean) * mask
    var = jnp.sum(cen * cen, axis=0, keepdims=True) * inv_count   # biased var
    scale = jax.lax.rsqrt(var + BN_EPS) * gamma
    return h * scale + (beta - mean * scale)


def _conv1xk(a, w_flat, bias, k):
    """Fused-tap 1xK conv on a stacked (rows, Cin) tile.

    Builds the im2col LHS (rows, K*Cin) by lane-concatenating K shifted row
    windows, then issues ONE MXU matmul against the (K*Cin, Cout) weight.
    Rows whose window crosses a sample boundary are garbage; they are masked
    out of the following BatchNorm and discarded by the next transition matrix.
    """
    rows, cin = a.shape
    a_ext = jnp.concatenate([a, jnp.zeros((k - 1, cin), a.dtype)], axis=0)
    lhs = jnp.concatenate([a_ext[kw:kw + rows, :] for kw in range(k)], axis=1)
    return jnp.dot(lhs, w_flat, preferred_element_type=jnp.float32) + bias


def cnn5_kernel(p_ref,
                w1_ref, b1_ref, g1_ref, be1_ref,
                w2_ref, b2_ref, g2_ref, be2_ref,
                w3_ref, b3_ref, g3_ref, be3_ref,
                w4_ref, b4_ref, g4_ref, be4_ref,
                w5_ref, b5_ref, g5_ref, be5_ref,
                fcw_ref, fcb_ref,
                t12_ref, t23_ref, t34_ref, t45_ref, tf_ref,
                m2_ref, m3_ref, m4_ref, m5_ref,
                out_ref, *, n_batch):
    dot = lambda a, b: jnp.dot(a, b, preferred_element_type=jnp.float32)
    relu = lambda v: jnp.maximum(v, 0.0)

    # conv1 (im2col patches built in the wrapper) -> bn1        one MXU push
    h1 = dot(p_ref[...], w1_ref[...]) + b1_ref[...]             # (18N, 32)
    h1 = _bn_train(h1, g1_ref[...], be1_ref[...], 18 * n_batch)
    # relu + conv2 zero-pad(2)  (relu(0)=0, so relu after the 0/1 pad matrix)
    a2 = relu(dot(t12_ref[...], h1))                            # (22N, 32)

    # conv2 -> bn2 -> avg_pool(pad 1) [+ conv3 zero-pad] -> relu
    h2 = _conv1xk(a2, w2_ref[...], b2_ref[...], 5)              # (22N, 64)
    h2 = _bn_train(h2, g2_ref[...], be2_ref[...], 18 * n_batch, m2_ref[...])
    a3 = relu(dot(t23_ref[...], h2))                            # (12N, 64)

    # conv3 -> bn3 -> avg_pool(pad 1) [+ conv4 zero-pad] -> relu
    h3 = _conv1xk(a3, w3_ref[...], b3_ref[...], 3)              # (12N, 128)
    h3 = _bn_train(h3, g3_ref[...], be3_ref[...], 10 * n_batch, m3_ref[...])
    a4 = relu(dot(t34_ref[...], h3))                            # (8N, 128)

    # conv4 -> bn4 -> relu [+ conv5 zero-pad]
    h4 = _conv1xk(a4, w4_ref[...], b4_ref[...], 3)              # (8N, 256)
    h4 = _bn_train(h4, g4_ref[...], be4_ref[...], 6 * n_batch, m4_ref[...])
    a5 = relu(dot(t45_ref[...], h4))                            # (8N, 256)

    # conv5 -> bn5 -> avg_pool(pad 0) -> relu
    h5 = _conv1xk(a5, w5_ref[...], b5_ref[...], 3)              # (8N, 256)
    h5 = _bn_train(h5, g5_ref[...], be5_ref[...], 6 * n_batch, m5_ref[...])
    g = relu(dot(tf_ref[...], h5))                              # (3N, 256), row = w*N + n

    # TODO(synk): F.dropout is treated as identity (opt.dropout = 0.0); use
    # pltpu.prng_seed / pltpu.prng_random_bits for p > 0.

    # fc1: torch .view(-1, 768) channel-major flatten order is baked into the
    # pre-permuted (768, 4) weight; one batched matmul + one store.
    lhs = jnp.concatenate(
        [g[w * n_batch:(w + 1) * n_batch, :] for w in range(3)], axis=1)   # (N, 768)
    out_ref[...] = dot(lhs, fcw_ref[...]) + fcb_ref[...]


# ----------------------------- wrapper / glue --------------------------------

def _pool_pad_block(w_valid, in_pitch, pool_pad, out_pad, out_pitch):
    """Per-sample row transform: select the `w_valid` valid conv-output rows,
    avg_pool2d(k=(1,2), s=(1,2), padding=(0,pool_pad), count_include_pad=True),
    then emit with `out_pad` zero rows each side (the next conv's padding)."""
    m = np.zeros((out_pitch, in_pitch), np.float32)
    w_pool = (w_valid + 2 * pool_pad) // 2
    for j in range(w_pool):
        for tap in (2 * j, 2 * j + 1):
            src = tap - pool_pad
            if 0 <= src < w_valid:
                m[j + out_pad, src] = 0.5
    return m


def _pad_block(w_valid, in_pitch, out_pad, out_pitch):
    """Per-sample row transform: select valid rows and zero-pad each side."""
    m = np.zeros((out_pitch, in_pitch), np.float32)
    for j in range(w_valid):
        m[j + out_pad, j] = 1.0
    return m


def _block_diag(block, n):
    r, c = block.shape
    m = np.zeros((n * r, n * c), np.float32)
    for i in range(n):
        m[i * r:(i + 1) * r, i * c:(i + 1) * c] = block
    return jnp.asarray(m)


def _final_pool_perm(n):
    """(3N, 8N): avg_pool(pad=0) of the 6 valid conv5 rows of every sample,
    emitted in row order w*N + n so the FC LHS is three contiguous row slices
    lane-concatenated into (N, 768)."""
    m = np.zeros((3 * n, 8 * n), np.float32)
    for w in range(3):
        for i in range(n):
            m[w * n + i, i * 8 + 2 * w] = 0.5
            m[w * n + i, i * 8 + 2 * w + 1] = 0.5
    return jnp.asarray(m)


def _valid_mask(w_valid, pitch, n):
    col = np.zeros((pitch, 1), np.float32)
    col[:w_valid, 0] = 1.0
    return jnp.asarray(np.tile(col, (n, 1)))


def _conv_w_flat(w):
    """(Cout, Cin, 1, K) -> (K*Cin, Cout), row index = kw*Cin + cin."""
    cout, cin, _, k = w.shape
    return jnp.transpose(w[:, :, 0, :], (2, 1, 0)).reshape(k * cin, cout)


def cnn5_forward(x_nchw, params):
    n = x_nchw.shape[0]
    (w1, b1, g1, be1, w2, b2, g2, be2, w3, b3, g3, be3,
     w4, b4, g4, be4, w5, b5, g5, be5, fcw, fcb) = params

    # conv1 im2col in the XLA wrapper: (N,1,3,18) -> (N*18, 15) lane-dense
    # patches; column kh*5 + kw holds x[n, 0, kh, w + kw - 2] (zero-padded W).
    xw = jnp.pad(x_nchw[:, 0], ((0, 0), (0, 0), (2, 2)))        # (N, 3, 22)
    patches = jnp.stack([xw[:, kh, kw:kw + 18]
                         for kh in range(3) for kw in range(5)], axis=-1)
    patches = patches.reshape(n * 18, 15)

    row = lambda v: v.reshape(1, -1)
    w1f = jnp.transpose(w1.reshape(32, 15))                     # (15, 32)
    w2f, w3f, w4f, w5f = map(_conv_w_flat, (w2, w3, w4, w5))
    # fc weight permuted so LHS column w*256 + c multiplies fcw[:, c*3 + w].
    fcwk = jnp.transpose(fcw.reshape(4, 256, 3), (2, 1, 0)).reshape(768, 4)

    # Block-diagonal per-stage row transforms (valid-row select + pool + pad).
    t12 = _block_diag(_pad_block(18, 18, 2, 22), n)             # (22N, 18N)
    t23 = _block_diag(_pool_pad_block(18, 22, 1, 1, 12), n)     # (12N, 22N)
    t34 = _block_diag(_pool_pad_block(10, 12, 1, 1, 8), n)      # (8N, 12N)
    t45 = _block_diag(_pad_block(6, 8, 1, 8), n)                # (8N, 8N)
    tf = _final_pool_perm(n)                                    # (3N, 8N)
    m2 = _valid_mask(18, 22, n)
    m3 = _valid_mask(10, 12, n)
    m4 = _valid_mask(6, 8, n)
    m5 = _valid_mask(6, 8, n)

    args = (patches,
            w1f, row(b1), row(g1), row(be1),
            w2f, row(b2), row(g2), row(be2),
            w3f, row(b3), row(g3), row(be3),
            w4f, row(b4), row(g4), row(be4),
            w5f, row(b5), row(g5), row(be5),
            fcwk, row(fcb),
            t12, t23, t34, t45, tf,
            m2, m3, m4, m5)

    vmem = pl.BlockSpec(memory_space=pltpu.MemorySpace.VMEM)
    return pl.pallas_call(
        functools.partial(cnn5_kernel, n_batch=n),
        out_shape=jax.ShapeDtypeStruct((n, 4), jnp.float32),
        in_specs=[vmem] * len(args),
        out_specs=vmem,
    )(*args)


# ------------------------- deterministic parameters --------------------------

def init_params(key):
    keys = iter(jax.random.split(key, 32))

    def nrm(shape, scale):
        return scale * jax.random.normal(next(keys), shape, jnp.float32)

    params = []
    conv_shapes = [(32, 1, 3, 5), (64, 32, 1, 5), (128, 64, 1, 3),
                   (256, 128, 1, 3), (256, 256, 1, 3)]
    for s in conv_shapes:
        fan_in = s[1] * s[2] * s[3]
        params += [nrm(s, 1.0 / np.sqrt(fan_in)),       # conv weight
                   nrm((s[0],), 0.1),                   # conv bias
                   1.0 + nrm((s[0],), 0.05),            # bn gamma
                   nrm((s[0],), 0.05)]                  # bn beta
    params += [nrm((4, 768), 1.0 / np.sqrt(768.0)),     # fc1 weight
               nrm((4,), 0.1)]                          # fc1 bias
    return tuple(params)


# ------------------------- pure-JAX reference check --------------------------

def reference_forward(x, params):
    (w1, b1, g1, be1, w2, b2, g2, be2, w3, b3, g3, be3,
     w4, b4, g4, be4, w5, b5, g5, be5, fcw, fcb) = params

    def conv(x, w, b, ph, pw):
        y = jax.lax.conv_general_dilated(
            x, w, (1, 1), ((ph, ph), (pw, pw)),
            dimension_numbers=('NCHW', 'OIHW', 'NCHW'))
        return y + b.reshape(1, -1, 1, 1)

    def bn(x, g, b):
        m = jnp.mean(x, axis=(0, 2, 3), keepdims=True)
        v = jnp.mean((x - m) ** 2, axis=(0, 2, 3), keepdims=True)
        return ((x - m) / jnp.sqrt(v + BN_EPS) * g.reshape(1, -1, 1, 1)
                + b.reshape(1, -1, 1, 1))

    def pool(x, pad):  # kernel (1,2), stride (1,2), count_include_pad=True
        xp = jnp.pad(x, ((0, 0), (0, 0), (0, 0), (pad, pad)))
        return 0.5 * (xp[..., 0::2] + xp[..., 1::2])

    h = jax.nn.relu(bn(conv(x, w1, b1, 0, 2), g1, be1))
    h = jax.nn.relu(pool(bn(conv(h, w2, b2, 0, 2), g2, be2), 1))
    h = jax.nn.relu(pool(bn(conv(h, w3, b3, 0, 1), g3, be3), 1))
    h = jax.nn.relu(bn(conv(h, w4, b4, 0, 1), g4, be4))
    h = jax.nn.relu(pool(bn(conv(h, w5, b5, 0, 1), g5, be5), 0))
    h = h.reshape(h.shape[0], -1)                       # == torch .view(-1, 768)
    return h @ fcw.T + fcb


if __name__ == "__main__":
    key = jax.random.PRNGKey(0)
    kx, kp = jax.random.split(key)
    # Input shape implied by fc1: 256 channels * final W of 3 == 768 -> (N,1,3,18).
    x = jax.random.normal(kx, (8, 1, 3, 18), jnp.float32)
    params = init_params(kp)

    out = cnn5_forward(x, params)
    out = jax.block_until_ready(out)
    assert out.shape == (8, 4)

    ref = reference_forward(x, params)
    if not jnp.allclose(out, ref, rtol=5e-2, atol=5e-2):
        raise AssertionError("Pallas kernel output does not match JAX reference")
    print("KERNEL_OK")
</pallas_src>

<mosaic_0001>
module attributes {stable_mosaic.version = 11 : i64} {
  func.func @cnn5_kernel(%arg0: memref<144x15xf32, #tpu.memory_space<vmem>>, %arg1: memref<15x32xf32, #tpu.memory_space<vmem>>, %arg2: memref<1x32xf32, #tpu.memory_space<vmem>>, %arg3: memref<1x32xf32, #tpu.memory_space<vmem>>, %arg4: memref<1x32xf32, #tpu.memory_space<vmem>>, %arg5: memref<160x64xf32, #tpu.memory_space<vmem>>, %arg6: memref<1x64xf32, #tpu.memory_space<vmem>>, %arg7: memref<1x64xf32, #tpu.memory_space<vmem>>, %arg8: memref<1x64xf32, #tpu.memory_space<vmem>>, %arg9: memref<192x128xf32, #tpu.memory_space<vmem>>, %arg10: memref<1x128xf32, #tpu.memory_space<vmem>>, %arg11: memref<1x128xf32, #tpu.memory_space<vmem>>, %arg12: memref<1x128xf32, #tpu.memory_space<vmem>>, %arg13: memref<384x256xf32, #tpu.memory_space<vmem>>, %arg14: memref<1x256xf32, #tpu.memory_space<vmem>>, %arg15: memref<1x256xf32, #tpu.memory_space<vmem>>, %arg16: memref<1x256xf32, #tpu.memory_space<vmem>>, %arg17: memref<768x256xf32, #tpu.memory_space<vmem>>, %arg18: memref<1x256xf32, #tpu.memory_space<vmem>>, %arg19: memref<1x256xf32, #tpu.memory_space<vmem>>, %arg20: memref<1x256xf32, #tpu.memory_space<vmem>>, %arg21: memref<768x4xf32, #tpu.memory_space<vmem>>, %arg22: memref<1x4xf32, #tpu.memory_space<vmem>>, %arg23: memref<176x144xf32, #tpu.memory_space<vmem>>, %arg24: memref<96x176xf32, #tpu.memory_space<vmem>>, %arg25: memref<64x96xf32, #tpu.memory_space<vmem>>, %arg26: memref<64x64xf32, #tpu.memory_space<vmem>>, %arg27: memref<24x64xf32, #tpu.memory_space<vmem>>, %arg28: memref<176x1xf32, #tpu.memory_space<vmem>>, %arg29: memref<96x1xf32, #tpu.memory_space<vmem>>, %arg30: memref<64x1xf32, #tpu.memory_space<vmem>>, %arg31: memref<64x1xf32, #tpu.memory_space<vmem>>, %arg32: memref<8x4xf32, #tpu.memory_space<vmem>>) attributes {dimension_semantics = [], scalar_prefetch = 0 : i64, scratch_operands = 0 : i64, tpu.core_type = #tpu.core_type<tc>} {
    %c0 = arith.constant 0 : index
    %c0_0 = arith.constant 0 : index
    %0 = vector.load %arg0[%c0, %c0_0] : memref<144x15xf32, #tpu.memory_space<vmem>>, vector<144x15xf32>
    %c0_1 = arith.constant 0 : index
    %c0_2 = arith.constant 0 : index
    %1 = vector.load %arg1[%c0_1, %c0_2] : memref<15x32xf32, #tpu.memory_space<vmem>>, vector<15x32xf32>
    %cst = arith.constant dense<0.000000e+00> : vector<144x32xf32>
    %2 = tpu.matmul %0, %1, %cst {dimension_numbers = #tpu.dot_dimension_numbers<[1], [0], [0], [1], [0, 0, 1, 1], [], []>} : vector<144x15xf32>, vector<15x32xf32>, vector<144x32xf32> -> vector<144x32xf32>
    %c0_3 = arith.constant 0 : index
    %c0_4 = arith.constant 0 : index
    %3 = vector.load %arg2[%c0_3, %c0_4] : memref<1x32xf32, #tpu.memory_space<vmem>>, vector<1x32xf32>
    %4 = vector.broadcast %3 : vector<1x32xf32> to vector<144x32xf32>
    %5 = arith.addf %2, %4 : vector<144x32xf32>
    %c0_5 = arith.constant 0 : index
    %c0_6 = arith.constant 0 : index
    %6 = vector.load %arg3[%c0_5, %c0_6] : memref<1x32xf32, #tpu.memory_space<vmem>>, vector<1x32xf32>
    %c0_7 = arith.constant 0 : index
    %c0_8 = arith.constant 0 : index
    %7 = vector.load %arg4[%c0_7, %c0_8] : memref<1x32xf32, #tpu.memory_space<vmem>>, vector<1x32xf32>
    %cst_9 = arith.constant dense<0.000000e+00> : vector<32xf32>
    %8 = vector.multi_reduction <add>, %5, %cst_9 [0] : vector<144x32xf32> to vector<32xf32>
    %9 = vector.shape_cast %8 : vector<32xf32> to vector<1x32xf32>
    %cst_10 = arith.constant 0.0069444445 : f32
    %10 = vector.broadcast %cst_10 : f32 to vector<1x32xf32>
    %11 = arith.mulf %9, %10 : vector<1x32xf32>
    %12 = vector.broadcast %11 : vector<1x32xf32> to vector<144x32xf32>
    %13 = arith.subf %5, %12 : vector<144x32xf32>
    %14 = arith.mulf %13, %13 : vector<144x32xf32>
    %cst_11 = arith.constant dense<0.000000e+00> : vector<32xf32>
    %15 = vector.multi_reduction <add>, %14, %cst_11 [0] : vector<144x32xf32> to vector<32xf32>
    %16 = vector.shape_cast %15 : vector<32xf32> to vector<1x32xf32>
    %cst_12 = arith.constant 0.0069444445 : f32
    %17 = vector.broadcast %cst_12 : f32 to vector<1x32xf32>
    %18 = arith.mulf %16, %17 : vector<1x32xf32>
    %cst_13 = arith.constant 9.99999974E-6 : f32
    %19 = vector.broadcast %cst_13 : f32 to vector<1x32xf32>
    %20 = arith.addf %18, %19 : vector<1x32xf32>
    %21 = math.rsqrt %20 : vector<1x32xf32>
    %22 = arith.mulf %21, %6 : vector<1x32xf32>
    %23 = vector.broadcast %22 : vector<1x32xf32> to vector<144x32xf32>
    %24 = arith.mulf %5, %23 : vector<144x32xf32>
    %25 = arith.mulf %11, %22 : vector<1x32xf32>
    %26 = arith.subf %7, %25 : vector<1x32xf32>
    %27 = vector.broadcast %26 : vector<1x32xf32> to vector<144x32xf32>
    %28 = arith.addf %24, %27 : vector<144x32xf32>
    %c0_14 = arith.constant 0 : index
    %c0_15 = arith.constant 0 : index
    %29 = vector.load %arg23[%c0_14, %c0_15] : memref<176x144xf32, #tpu.memory_space<vmem>>, vector<176x144xf32>
    %cst_16 = arith.constant dense<0.000000e+00> : vector<176x32xf32>
    %30 = tpu.matmul %29, %28, %cst_16 {dimension_numbers = #tpu.dot_dimension_numbers<[1], [0], [0], [1], [0, 0, 1, 1], [], []>} : vector<176x144xf32>, vector<144x32xf32>, vector<176x32xf32> -> vector<176x32xf32>
    %cst_17 = arith.constant 0.000000e+00 : f32
    %31 = vector.broadcast %cst_17 : f32 to vector<176x32xf32>
    %32 = arith.maximumf %30, %31 : vector<176x32xf32>
    %c0_18 = arith.constant 0 : index
    %c0_19 = arith.constant 0 : index
    %33 = vector.load %arg5[%c0_18, %c0_19] : memref<160x64xf32, #tpu.memory_space<vmem>>, vector<160x64xf32>
    %c0_20 = arith.constant 0 : index
    %c0_21 = arith.constant 0 : index
    %34 = vector.load %arg6[%c0_20, %c0_21] : memref<1x64xf32, #tpu.memory_space<vmem>>, vector<1x64xf32>
    %cst_22 = arith.constant 0.000000e+00 : f32
    %35 = vector.broadcast %cst_22 : f32 to vector<4x32xf32>
    %36 = tpu.concatenate %32, %35 in 0 : vector<176x32xf32>, vector<4x32xf32> -> vector<180x32xf32>
    %37 = vector.extract_strided_slice %36 {offsets = [0, 0], sizes = [176, 32], strides = [1, 1]} : vector<180x32xf32> to vector<176x32xf32>
    %38 = vector.extract_strided_slice %36 {offsets = [1, 0], sizes = [176, 32], strides = [1, 1]} : vector<180x32xf32> to vector<176x32xf32>
    %39 = vector.extract_strided_slice %36 {offsets = [2, 0], sizes = [176, 32], strides = [1, 1]} : vector<180x32xf32> to vector<176x32xf32>
    %40 = vector.extract_strided_slice %36 {offsets = [3, 0], sizes = [176, 32], strides = [1, 1]} : vector<180x32xf32> to vector<176x32xf32>
    %41 = vector.extract_strided_slice %36 {offsets = [4, 0], sizes = [176, 32], strides = [1, 1]} : vector<180x32xf32> to vector<176x32xf32>
    %42 = tpu.concatenate %37, %38, %39, %40, %41 in 1 : vector<176x32xf32>, vector<176x32xf32>, vector<176x32xf32>, vector<176x32xf32>, vector<176x32xf32> -> vector<176x160xf32>
    %cst_23 = arith.constant dense<0.000000e+00> : vector<176x64xf32>
    %43 = tpu.matmul %42, %33, %cst_23 {dimension_numbers = #tpu.dot_dimension_numbers<[1], [0], [0], [1], [0, 0, 1, 1], [], []>} : vector<176x160xf32>, vector<160x64xf32>, vector<176x64xf32> -> vector<176x64xf32>
    %44 = vector.broadcast %34 : vector<1x64xf32> to vector<176x64xf32>
    %45 = arith.addf %43, %44 : vector<176x64xf32>
    %c0_24 = arith.constant 0 : index
    %c0_25 = arith.constant 0 : index
    %46 = vector.load %arg7[%c0_24, %c0_25] : memref<1x64xf32, #tpu.memory_space<vmem>>, vector<1x64xf32>
    %c0_26 = arith.constant 0 : index
    %c0_27 = arith.constant 0 : index
    %47 = vector.load %arg8[%c0_26, %c0_27] : memref<1x64xf32, #tpu.memory_space<vmem>>, vector<1x64xf32>
    %c0_28 = arith.constant 0 : index
    %c0_29 = arith.constant 0 : index
    %48 = vector.load %arg28[%c0_28, %c0_29] : memref<176x1xf32, #tpu.memory_space<vmem>>, vector<176x1xf32>
    %49 = vector.broadcast %48 : vector<176x1xf32> to vector<176x64xf32>
    %50 = arith.mulf %45, %49 : vector<176x64xf32>
    %cst_30 = arith.constant dense<0.000000e+00> : vector<64xf32>
    %51 = vector.multi_reduction <add>, %50, %cst_30 [0] : vector<176x64xf32> to vector<64xf32>
    %52 = vector.shape_cast %51 : vector<64xf32> to vector<1x64xf32>
    %cst_31 = arith.constant 0.0069444445 : f32
    %53 = vector.broadcast %cst_31 : f32 to vector<1x64xf32>
    %54 = arith.mulf %52, %53 : vector<1x64xf32>
    %55 = vector.broadcast %54 : vector<1x64xf32> to vector<176x64xf32>
    %56 = arith.subf %45, %55 : vector<176x64xf32>
    %57 = vector.broadcast %48 : vector<176x1xf32> to vector<176x64xf32>
    %58 = arith.mulf %56, %57 : vector<176x64xf32>
    %59 = arith.mulf %58, %58 : vector<176x64xf32>
    %cst_32 = arith.constant dense<0.000000e+00> : vector<64xf32>
    %60 = vector.multi_reduction <add>, %59, %cst_32 [0] : vector<176x64xf32> to vector<64xf32>
    %61 = vector.shape_cast %60 : vector<64xf32> to vector<1x64xf32>
    %cst_33 = arith.constant 0.0069444445 : f32
    %62 = vector.broadcast %cst_33 : f32 to vector<1x64xf32>
    %63 = arith.mulf %61, %62 : vector<1x64xf32>
    %cst_34 = arith.constant 9.99999974E-6 : f32
    %64 = vector.broadcast %cst_34 : f32 to vector<1x64xf32>
    %65 = arith.addf %63, %64 : vector<1x64xf32>
    %66 = math.rsqrt %65 : vector<1x64xf32>
    %67 = arith.mulf %66, %46 : vector<1x64xf32>
    %68 = vector.broadcast %67 : vector<1x64xf32> to vector<176x64xf32>
    %69 = arith.mulf %45, %68 : vector<176x64xf32>
    %70 = arith.mulf %54, %67 : vector<1x64xf32>
    %71 = arith.subf %47, %70 : vector<1x64xf32>
    %72 = vector.broadcast %71 : vector<1x64xf32> to vector<176x64xf32>
    %73 = arith.addf %69, %72 : vector<176x64xf32>
    %c0_35 = arith.constant 0 : index
    %c0_36 = arith.constant 0 : index
    %74 = vector.load %arg24[%c0_35, %c0_36] : memref<96x176xf32, #tpu.memory_space<vmem>>, vector<96x176xf32>
    %cst_37 = arith.constant dense<0.000000e+00> : vector<96x64xf32>
    %75 = tpu.matmul %74, %73, %cst_37 {dimension_numbers = #tpu.dot_dimension_numbers<[1], [0], [0], [1], [0, 0, 1, 1], [], []>} : vector<96x176xf32>, vector<176x64xf32>, vector<96x64xf32> -> vector<96x64xf32>
    %cst_38 = arith.constant 0.000000e+00 : f32
    %76 = vector.broadcast %cst_38 : f32 to vector<96x64xf32>
    %77 = arith.maximumf %75, %76 : vector<96x64xf32>
    %c0_39 = arith.constant 0 : index
    %c0_40 = arith.constant 0 : index
    %78 = vector.load %arg9[%c0_39, %c0_40] : memref<192x128xf32, #tpu.memory_space<vmem>>, vector<192x128xf32>
    %c0_41 = arith.constant 0 : index
    %c0_42 = arith.constant 0 : index
    %79 = vector.load %arg10[%c0_41, %c0_42] : memref<1x128xf32, #tpu.memory_space<vmem>>, vector<1x128xf32>
    %cst_43 = arith.constant 0.000000e+00 : f32
    %80 = vector.broadcast %cst_43 : f32 to vector<2x64xf32>
    %81 = tpu.concatenate %77, %80 in 0 : vector<96x64xf32>, vector<2x64xf32> -> vector<98x64xf32>
    %82 = vector.extract_strided_slice %81 {offsets = [0, 0], sizes = [96, 64], strides = [1, 1]} : vector<98x64xf32> to vector<96x64xf32>
    %83 = vector.extract_strided_slice %81 {offsets = [1, 0], sizes = [96, 64], strides = [1, 1]} : vector<98x64xf32> to vector<96x64xf32>
    %84 = vector.extract_strided_slice %81 {offsets = [2, 0], sizes = [96, 64], strides = [1, 1]} : vector<98x64xf32> to vector<96x64xf32>
    %85 = tpu.concatenate %82, %83, %84 in 1 : vector<96x64xf32>, vector<96x64xf32>, vector<96x64xf32> -> vector<96x192xf32>
    %cst_44 = arith.constant dense<0.000000e+00> : vector<96x128xf32>
    %86 = tpu.matmul %85, %78, %cst_44 {dimension_numbers = #tpu.dot_dimension_numbers<[1], [0], [0], [1], [0, 0, 1, 1], [], []>} : vector<96x192xf32>, vector<192x128xf32>, vector<96x128xf32> -> vector<96x128xf32>
    %87 = vector.broadcast %79 : vector<1x128xf32> to vector<96x128xf32>
    %88 = arith.addf %86, %87 : vector<96x128xf32>
    %c0_45 = arith.constant 0 : index
    %c0_46 = arith.constant 0 : index
    %89 = vector.load %arg11[%c0_45, %c0_46] : memref<1x128xf32, #tpu.memory_space<vmem>>, vector<1x128xf32>
    %c0_47 = arith.constant 0 : index
    %c0_48 = arith.constant 0 : index
    %90 = vector.load %arg12[%c0_47, %c0_48] : memref<1x128xf32, #tpu.memory_space<vmem>>, vector<1x128xf32>
    %c0_49 = arith.constant 0 : index
    %c0_50 = arith.constant 0 : index
    %91 = vector.load %arg29[%c0_49, %c0_50] : memref<96x1xf32, #tpu.memory_space<vmem>>, vector<96x1xf32>
    %92 = vector.broadcast %91 : vector<96x1xf32> to vector<96x128xf32>
    %93 = arith.mulf %88, %92 : vector<96x128xf32>
    %cst_51 = arith.constant dense<0.000000e+00> : vector<128xf32>
    %94 = vector.multi_reduction <add>, %93, %cst_51 [0] : vector<96x128xf32> to vector<128xf32>
    %95 = vector.shape_cast %94 : vector<128xf32> to vector<1x128xf32>
    %cst_52 = arith.constant 1.250000e-02 : f32
    %96 = vector.broadcast %cst_52 : f32 to vector<1x128xf32>
    %97 = arith.mulf %95, %96 : vector<1x128xf32>
    %98 = vector.broadcast %97 : vector<1x128xf32> to vector<96x128xf32>
    %99 = arith.subf %88, %98 : vector<96x128xf32>
    %100 = vector.broadcast %91 : vector<96x1xf32> to vector<96x128xf32>
    %101 = arith.mulf %99, %100 : vector<96x128xf32>
    %102 = arith.mulf %101, %101 : vector<96x128xf32>
    %cst_53 = arith.constant dense<0.000000e+00> : vector<128xf32>
    %103 = vector.multi_reduction <add>, %102, %cst_53 [0] : vector<96x128xf32> to vector<128xf32>
    %104 = vector.shape_cast %103 : vector<128xf32> to vector<1x128xf32>
    %cst_54 = arith.constant 1.250000e-02 : f32
    %105 = vector.broadcast %cst_54 : f32 to vector<1x128xf32>
    %106 = arith.mulf %104, %105 : vector<1x128xf32>
    %cst_55 = arith.constant 9.99999974E-6 : f32
    %107 = vector.broadcast %cst_55 : f32 to vector<1x128xf32>
    %108 = arith.addf %106, %107 : vector<1x128xf32>
    %109 = math.rsqrt %108 : vector<1x128xf32>
    %110 = arith.mulf %109, %89 : vector<1x128xf32>
    %111 = vector.broadcast %110 : vector<1x128xf32> to vector<96x128xf32>
    %112 = arith.mulf %88, %111 : vector<96x128xf32>
    %113 = arith.mulf %97, %110 : vector<1x128xf32>
    %114 = arith.subf %90, %113 : vector<1x128xf32>
    %115 = vector.broadcast %114 : vector<1x128xf32> to vector<96x128xf32>
    %116 = arith.addf %112, %115 : vector<96x128xf32>
    %c0_56 = arith.constant 0 : index
    %c0_57 = arith.constant 0 : index
    %117 = vector.load %arg25[%c0_56, %c0_57] : memref<64x96xf32, #tpu.memory_space<vmem>>, vector<64x96xf32>
    %cst_58 = arith.constant dense<0.000000e+00> : vector<64x128xf32>
    %118 = tpu.matmul %117, %116, %cst_58 {dimension_numbers = #tpu.dot_dimension_numbers<[1], [0], [0], [1], [0, 0, 1, 1], [], []>} : vector<64x96xf32>, vector<96x128xf32>, vector<64x128xf32> -> vector<64x128xf32>
    %cst_59 = arith.constant 0.000000e+00 : f32
    %119 = vector.broadcast %cst_59 : f32 to vector<64x128xf32>
    %120 = arith.maximumf %118, %119 : vector<64x128xf32>
    %c0_60 = arith.constant 0 : index
    %c0_61 = arith.constant 0 : index
    %121 = vector.load %arg13[%c0_60, %c0_61] : memref<384x256xf32, #tpu.memory_space<vmem>>, vector<384x256xf32>
    %c0_62 = arith.constant 0 : index
    %c0_63 = arith.constant 0 : index
    %122 = vector.load %arg14[%c0_62, %c0_63] : memref<1x256xf32, #tpu.memory_space<vmem>>, vector<1x256xf32>
    %cst_64 = arith.constant 0.000000e+00 : f32
    %123 = vector.broadcast %cst_64 : f32 to vector<2x128xf32>
    %124 = tpu.concatenate %120, %123 in 0 : vector<64x128xf32>, vector<2x128xf32> -> vector<66x128xf32>
    %125 = vector.extract_strided_slice %124 {offsets = [0, 0], sizes = [64, 128], strides = [1, 1]} : vector<66x128xf32> to vector<64x128xf32>
    %126 = vector.extract_strided_slice %124 {offsets = [1, 0], sizes = [64, 128], strides = [1, 1]} : vector<66x128xf32> to vector<64x128xf32>
    %127 = vector.extract_strided_slice %124 {offsets = [2, 0], sizes = [64, 128], strides = [1, 1]} : vector<66x128xf32> to vector<64x128xf32>
    %128 = tpu.concatenate %125, %126, %127 in 1 : vector<64x128xf32>, vector<64x128xf32>, vector<64x128xf32> -> vector<64x384xf32>
    %cst_65 = arith.constant dense<0.000000e+00> : vector<64x256xf32>
    %129 = tpu.matmul %128, %121, %cst_65 {dimension_numbers = #tpu.dot_dimension_numbers<[1], [0], [0], [1], [0, 0, 1, 1], [], []>} : vector<64x384xf32>, vector<384x256xf32>, vector<64x256xf32> -> vector<64x256xf32>
    %130 = vector.broadcast %122 : vector<1x256xf32> to vector<64x256xf32>
    %131 = arith.addf %129, %130 : vector<64x256xf32>
    %c0_66 = arith.constant 0 : index
    %c0_67 = arith.constant 0 : index
    %132 = vector.load %arg15[%c0_66, %c0_67] : memref<1x256xf32, #tpu.memory_space<vmem>>, vector<1x256xf32>
    %c0_68 = arith.constant 0 : index
    %c0_69 = arith.constant 0 : index
    %133 = vector.load %arg16[%c0_68, %c0_69] : memref<1x256xf32, #tpu.memory_space<vmem>>, vector<1x256xf32>
    %c0_70 = arith.constant 0 : index
    %c0_71 = arith.constant 0 : index
    %134 = vector.load %arg30[%c0_70, %c0_71] : memref<64x1xf32, #tpu.memory_space<vmem>>, vector<64x1xf32>
    %135 = vector.broadcast %134 : vector<64x1xf32> to vector<64x256xf32>
    %136 = arith.mulf %131, %135 : vector<64x256xf32>
    %cst_72 = arith.constant dense<0.000000e+00> : vector<256xf32>
    %137 = vector.multi_reduction <add>, %136, %cst_72 [0] : vector<64x256xf32> to vector<256xf32>
    %138 = vector.shape_cast %137 : vector<256xf32> to vector<1x256xf32>
    %cst_73 = arith.constant 0.020833334 : f32
    %139 = vector.broadcast %cst_73 : f32 to vector<1x256xf32>
    %140 = arith.mulf %138, %139 : vector<1x256xf32>
    %141 = vector.broadcast %140 : vector<1x256xf32> to vector<64x256xf32>
    %142 = arith.subf %131, %141 : vector<64x256xf32>
    %143 = vector.broadcast %134 : vector<64x1xf32> to vector<64x256xf32>
    %144 = arith.mulf %142, %143 : vector<64x256xf32>
    %145 = arith.mulf %144, %144 : vector<64x256xf32>
    %cst_74 = arith.constant dense<0.000000e+00> : vector<256xf32>
    %146 = vector.multi_reduction <add>, %145, %cst_74 [0] : vector<64x256xf32> to vector<256xf32>
    %147 = vector.shape_cast %146 : vector<256xf32> to vector<1x256xf32>
    %cst_75 = arith.constant 0.020833334 : f32
    %148 = vector.broadcast %cst_75 : f32 to vector<1x256xf32>
    %149 = arith.mulf %147, %148 : vector<1x256xf32>
    %cst_76 = arith.constant 9.99999974E-6 : f32
    %150 = vector.broadcast %cst_76 : f32 to vector<1x256xf32>
    %151 = arith.addf %149, %150 : vector<1x256xf32>
    %152 = math.rsqrt %151 : vector<1x256xf32>
    %153 = arith.mulf %152, %132 : vector<1x256xf32>
    %154 = vector.broadcast %153 : vector<1x256xf32> to vector<64x256xf32>
    %155 = arith.mulf %131, %154 : vector<64x256xf32>
    %156 = arith.mulf %140, %153 : vector<1x256xf32>
    %157 = arith.subf %133, %156 : vector<1x256xf32>
    %158 = vector.broadcast %157 : vector<1x256xf32> to vector<64x256xf32>
    %159 = arith.addf %155, %158 : vector<64x256xf32>
    %c0_77 = arith.constant 0 : index
    %c0_78 = arith.constant 0 : index
    %160 = vector.load %arg26[%c0_77, %c0_78] : memref<64x64xf32, #tpu.memory_space<vmem>>, vector<64x64xf32>
    %cst_79 = arith.constant dense<0.000000e+00> : vector<64x256xf32>
    %161 = tpu.matmul %160, %159, %cst_79 {dimension_numbers = #tpu.dot_dimension_numbers<[1], [0], [0], [1], [0, 0, 1, 1], [], []>} : vector<64x64xf32>, vector<64x256xf32>, vector<64x256xf32> -> vector<64x256xf32>
    %cst_80 = arith.constant 0.000000e+00 : f32
    %162 = vector.broadcast %cst_80 : f32 to vector<64x256xf32>
    %163 = arith.maximumf %161, %162 : vector<64x256xf32>
    %c0_81 = arith.constant 0 : index
    %c0_82 = arith.constant 0 : index
    %164 = vector.load %arg17[%c0_81, %c0_82] : memref<768x256xf32, #tpu.memory_space<vmem>>, vector<768x256xf32>
    %c0_83 = arith.constant 0 : index
    %c0_84 = arith.constant 0 : index
    %165 = vector.load %arg18[%c0_83, %c0_84] : memref<1x256xf32, #tpu.memory_space<vmem>>, vector<1x256xf32>
    %cst_85 = arith.constant 0.000000e+00 : f32
    %166 = vector.broadcast %cst_85 : f32 to vector<2x256xf32>
    %167 = tpu.concatenate %163, %166 in 0 : vector<64x256xf32>, vector<2x256xf32> -> vector<66x256xf32>
    %168 = vector.extract_strided_slice %167 {offsets = [0, 0], sizes = [64, 256], strides = [1, 1]} : vector<66x256xf32> to vector<64x256xf32>
    %169 = vector.extract_strided_slice %167 {offsets = [1, 0], sizes = [64, 256], strides = [1, 1]} : vector<66x256xf32> to vector<64x256xf32>
    %170 = vector.extract_strided_slice %167 {offsets = [2, 0], sizes = [64, 256], strides = [1, 1]} : vector<66x256xf32> to vector<64x256xf32>
    %171 = tpu.concatenate %168, %169, %170 in 1 : vector<64x256xf32>, vector<64x256xf32>, vector<64x256xf32> -> vector<64x768xf32>
    %cst_86 = arith.constant dense<0.000000e+00> : vector<64x256xf32>
    %172 = tpu.matmul %171, %164, %cst_86 {dimension_numbers = #tpu.dot_dimension_numbers<[1], [0], [0], [1], [0, 0, 1, 1], [], []>} : vector<64x768xf32>, vector<768x256xf32>, vector<64x256xf32> -> vector<64x256xf32>
    %173 = vector.broadcast %165 : vector<1x256xf32> to vector<64x256xf32>
    %174 = arith.addf %172, %173 : vector<64x256xf32>
    %c0_87 = arith.constant 0 : index
    %c0_88 = arith.constant 0 : index
    %175 = vector.load %arg19[%c0_87, %c0_88] : memref<1x256xf32, #tpu.memory_space<vmem>>, vector<1x256xf32>
    %c0_89 = arith.constant 0 : index
    %c0_90 = arith.constant 0 : index
    %176 = vector.load %arg20[%c0_89, %c0_90] : memref<1x256xf32, #tpu.memory_space<vmem>>, vector<1x256xf32>
    %c0_91 = arith.constant 0 : index
    %c0_92 = arith.constant 0 : index
    %177 = vector.load %arg31[%c0_91, %c0_92] : memref<64x1xf32, #tpu.memory_space<vmem>>, vector<64x1xf32>
    %178 = vector.broadcast %177 : vector<64x1xf32> to vector<64x256xf32>
    %179 = arith.mulf %174, %178 : vector<64x256xf32>
    %cst_93 = arith.constant dense<0.000000e+00> : vector<256xf32>
    %180 = vector.multi_reduction <add>, %179, %cst_93 [0] : vector<64x256xf32> to vector<256xf32>
    %181 = vector.shape_cast %180 : vector<256xf32> to vector<1x256xf32>
    %cst_94 = arith.constant 0.020833334 : f32
    %182 = vector.broadcast %cst_94 : f32 to vector<1x256xf32>
    %183 = arith.mulf %181, %182 : vector<1x256xf32>
    %184 = vector.broadcast %183 : vector<1x256xf32> to vector<64x256xf32>
    %185 = arith.subf %174, %184 : vector<64x256xf32>
    %186 = vector.broadcast %177 : vector<64x1xf32> to vector<64x256xf32>
    %187 = arith.mulf %185, %186 : vector<64x256xf32>
    %188 = arith.mulf %187, %187 : vector<64x256xf32>
    %cst_95 = arith.constant dense<0.000000e+00> : vector<256xf32>
    %189 = vector.multi_reduction <add>, %188, %cst_95 [0] : vector<64x256xf32> to vector<256xf32>
    %190 = vector.shape_cast %189 : vector<256xf32> to vector<1x256xf32>
    %cst_96 = arith.constant 0.020833334 : f32
    %191 = vector.broadcast %cst_96 : f32 to vector<1x256xf32>
    %192 = arith.mulf %190, %191 : vector<1x256xf32>
    %cst_97 = arith.constant 9.99999974E-6 : f32
    %193 = vector.broadcast %cst_97 : f32 to vector<1x256xf32>
    %194 = arith.addf %192, %193 : vector<1x256xf32>
    %195 = math.rsqrt %194 : vector<1x256xf32>
    %196 = arith.mulf %195, %175 : vector<1x256xf32>
    %197 = vector.broadcast %196 : vector<1x256xf32> to vector<64x256xf32>
    %198 = arith.mulf %174, %197 : vector<64x256xf32>
    %199 = arith.mulf %183, %196 : vector<1x256xf32>
    %200 = arith.subf %176, %199 : vector<1x256xf32>
    %201 = vector.broadcast %200 : vector<1x256xf32> to vector<64x256xf32>
    %202 = arith.addf %198, %201 : vector<64x256xf32>
    %c0_98 = arith.constant 0 : index
    %c0_99 = arith.constant 0 : index
    %203 = vector.load %arg27[%c0_98, %c0_99] : memref<24x64xf32, #tpu.memory_space<vmem>>, vector<24x64xf32>
    %cst_100 = arith.constant dense<0.000000e+00> : vector<24x256xf32>
    %204 = tpu.matmul %203, %202, %cst_100 {dimension_numbers = #tpu.dot_dimension_numbers<[1], [0], [0], [1], [0, 0, 1, 1], [], []>} : vector<24x64xf32>, vector<64x256xf32>, vector<24x256xf32> -> vector<24x256xf32>
    %cst_101 = arith.constant 0.000000e+00 : f32
    %205 = vector.broadcast %cst_101 : f32 to vector<24x256xf32>
    %206 = arith.maximumf %204, %205 : vector<24x256xf32>
    %207 = vector.extract_strided_slice %206 {offsets = [0, 0], sizes = [8, 256], strides = [1, 1]} : vector<24x256xf32> to vector<8x256xf32>
    %208 = vector.extract_strided_slice %206 {offsets = [8, 0], sizes = [8, 256], strides = [1, 1]} : vector<24x256xf32> to vector<8x256xf32>
    %209 = vector.extract_strided_slice %206 {offsets = [16, 0], sizes = [8, 256], strides = [1, 1]} : vector<24x256xf32> to vector<8x256xf32>
    %210 = tpu.concatenate %207, %208, %209 in 1 : vector<8x256xf32>, vector<8x256xf32>, vector<8x256xf32> -> vector<8x768xf32>
    %c0_102 = arith.constant 0 : index
    %c0_103 = arith.constant 0 : index
    %211 = vector.load %arg21[%c0_102, %c0_103] : memref<768x4xf32, #tpu.memory_space<vmem>>, vector<768x4xf32>
    %cst_104 = arith.constant dense<0.000000e+00> : vector<8x4xf32>
    %212 = tpu.matmul %210, %211, %cst_104 {dimension_numbers = #tpu.dot_dimension_numbers<[1], [0], [0], [1], [0, 0, 1, 1], [], []>} : vector<8x768xf32>, vector<768x4xf32>, vector<8x4xf32> -> vector<8x4xf32>
    %c0_105 = arith.constant 0 : index
    %c0_106 = arith.constant 0 : index
    %213 = vector.load %arg22[%c0_105, %c0_106] : memref<1x4xf32, #tpu.memory_space<vmem>>, vector<1x4xf32>
    %214 = vector.broadcast %213 : vector<1x4xf32> to vector<8x4xf32>
    %215 = arith.addf %212, %214 : vector<8x4xf32>
    %c0_107 = arith.constant 0 : index
    %c0_108 = arith.constant 0 : index
    %216 = vector.load %arg32[%c0_107, %c0_108] : memref<8x4xf32, #tpu.memory_space<vmem>>, vector<8x4xf32>
    tpu.vector_store %arg32[%c0_107, %c0_108], %215 {strides = array<i32>} : memref<8x4xf32, #tpu.memory_space<vmem>>, vector<8x4xf32>,
    return
  }
}

</mosaic_0001>

<bundles_post_ra>
// kernel: tpu_custom_call.1
= control target key start
LH: loop header
LB: loop body
LE: loop exit
PB: predicated region body
PF: predicated region fallthrough
CT: control target
= control target key end

     0   :  { %s5097_s6 = smov 1   ;;  %s5098_s10 = smov 2   ;;  %s7711_s0 = inlined_call_operand.smem [shape: u32[33], index: -1, kind: input, shape index: {}] }
   0x1   :  { %s5145_s5 = sld [smem:[%s7711_s0]]   ;;  %s5099_s14 = smov 3  }
   0x2   :  { %s5150_s9 = sld [smem:[%s7711_s0 + %s5097_s6]]   ;;  %s5100_s18 = smov 4  }
   0x3   :  { %s5155_s13 = sld [smem:[%s7711_s0 + %s5098_s10]]   ;;  %s5101_s22 = smov 5  }
   0x4   :  { %s5160_s17 = sld [smem:[%s7711_s0 + %s5099_s14]]   ;;  %s5102_s26 = smov 6  }
   0x5   :  { %s5165_s21 = sld [smem:[%s7711_s0 + %s5100_s18]]   ;;  %s5103_s30 = smov 7  }
   0x6   :  { %s5170_s25 = sld [smem:[%s7711_s0 + %s5101_s22]]   ;;  %s5104_s4 = smov 8  }
   0x7   :  { %s5175_s29 = sld [smem:[%s7711_s0 + %s5102_s26]]   ;;  %s5105_s10 = smov 9  }
   0x8   :  { %s5180_s3 = sld [smem:[%s7711_s0 + %s5103_s30]]   ;;  %s5106_s15 = smov 10  }
   0x9   :  { %s5185_s8 = sld [smem:[%s7711_s0 + %s5104_s4]]   ;;  %s5107_s20 = smov 11  }
   0xa   :  { %s5190_s14 = sld [smem:[%s7711_s0 + %s5105_s10]]   ;;  %s5108_s26 = smov 12  }
   0xb   :  { %s5195_s19 = sld [smem:[%s7711_s0 + %s5106_s15]]   ;;  %s5109_s1 = smov 13  }
   0xc   :  { %s5200_s24 = sld [smem:[%s7711_s0 + %s5107_s20]]   ;;  %s5110_s7 = smov 14  }
   0xd   :  { %s5205_s30 = sld [smem:[%s7711_s0 + %s5108_s26]]   ;;  %s5111_s15 = smov 15  }
   0xe   :  { %s5210_s6 = sld [smem:[%s7711_s0 + %s5109_s1]]   ;;  %s5112_s22 = smov 16  }
   0xf   :  { %s5215_s12 = sld [smem:[%s7711_s0 + %s5110_s7]]   ;;  %s5113_s28 = smov 17  }
  0x10   :  { %s5220_s20 = sld [smem:[%s7711_s0 + %s5111_s15]]   ;;  %s5114_s7 = smov 18  }
  0x11   :  { %7718 = sst [smem:[#allocation5_spill]] %s5195_s19  ;;  %s5115_s15 = smov 19  }
  0x12   :  { %7719 = sst [smem:[#allocation6_spill]] %s5200_s24 }
  0x13   :  { %7720 = sst [smem:[#allocation7_spill]] %s5205_s30 }
  0x14   :  { %7721 = sst [smem:[#allocation8_spill]] %s5210_s6 }
  0x15   :  { %7722 = sst [smem:[#allocation9_spill]] %s5215_s12 }
  0x16   :  { %7723 = sst [smem:[#allocation10_spill]] %s5220_s20 }
  0x17   :  { %s5225_s27 = sld [smem:[%s7711_s0 + %s5112_s22]]   ;;  %s5116_s22 = smov 20  }
  0x18   :  { %s5230_s4 = sld [smem:[%s7711_s0 + %s5113_s28]]   ;;  %s5117_s28 = smov 21  }
  0x19   :  { %s5235_s12 = sld [smem:[%s7711_s0 + %s5114_s7]]   ;;  %s5118_s7 = smov 22  }
  0x1a   :  { %s5240_s20 = sld [smem:[%s7711_s0 + %s5115_s15]]   ;;  %s5119_s15 = smov 23  }
  0x1b   :  { %s5250_s6 = sld [smem:[%s7711_s0 + %s5117_s28]]   ;;  %s5121_s28 = smov 25  }
  0x1d   :  { %7724 = sst [smem:[#allocation11_spill]] %s5225_s27 }
  0x1e   :  { %s5245_s27 = sld [smem:[%s7711_s0 + %s5116_s22]]   ;;  %s5120_s22 = smov 24  }
  0x1f   :  { %7725 = sst [smem:[#allocation12_spill]] %s5235_s12 }
  0x20   :  { %7726 = sst [smem:[#allocation13_spill]] %s5240_s20 }
  0x21   :  { %7728 = sst [smem:[#allocation15_spill]] %s5250_s6 }
  0x22   :  { %s5255_s12 = sld [smem:[%s7711_s0 + %s5118_s7]]   ;;  %s5122_s7 = smov 26  }
  0x23   :  { %s5260_s20 = sld [smem:[%s7711_s0 + %s5119_s15]]   ;;  %s5123_s15 = smov 27  }
  0x24   :  { %7727 = sst [smem:[#allocation14_spill]] %s5245_s27 }
  0x25   :  { %s5265_s27 = sld [smem:[%s7711_s0 + %s5120_s22]]   ;;  %s5124_s22 = smov 28  }
  0x26   :  { %s5270_s6 = sld [smem:[%s7711_s0 + %s5121_s28]]   ;;  %s5125_s28 = smov 29  }
  0x27   :  { %s5280_s30 = sld [smem:[%s7711_s0 + %s5123_s15]]   ;;  %s5127_s15 = smov 31  }
  0x28   :  { %7729 = sst [smem:[#allocation16_spill]] %s5255_s12 }
  0x29   :  { %s5275_s12 = sld [smem:[%s7711_s0 + %s5122_s7]]   ;;  %s5126_s7 = smov 30  }
  0x2a   :  { %s5285_s24 = sld [smem:[%s7711_s0 + %s5124_s22]]   ;;  %s5128_s22 = smov 32  }
  0x2b   :  { %s5305_s19 = sld [smem:[%s7711_s0 + %s5128_s22]]  }
  0x2c   :  { %7730 = sst [smem:[#allocation17_spill]] %s5270_s6 }
  0x2d   :  { %7732 = sst [smem:[#allocation19_spill]] %s5280_s30 }
  0x2e   :  { %s5290_s6 = sld [smem:[%s7711_s0 + %s5125_s28]]  }
  0x2f   :  { %7731 = sst [smem:[#allocation18_spill]] %s5275_s12 }
  0x30   :  { %s5295_s12 = sld [smem:[%s7711_s0 + %s5126_s7]]  }
  0x31   :  { %s5300_s30 = sld [smem:[%s7711_s0 + %s5127_s15]]  }
  0x32   :  { %70 = vsyncpa [#allocation3], 0  ;;  %s109_s28 = sshll.u32 %s5230_s4, 4  ;;  %s5129_s1 = smov [#allocation2]   ;;  %s110_s28 = int_to_ptr.hbm [resolvable:$true] %s109_s28 }
  0x33   :  { %s111_s2 = sshll.u32 %s5129_s1, 4  ;;  %s5071_s7 = sshra.s32 %s110_s28, 4  ;;  %s112_s2 = int_to_ptr.vmem [resolvable:$true] %s111_s2  ;;  %s5072_s7 = int_to_ptr.hbm [resolvable:$true] %s5071_s7 }
  0x34   :  { %s5073_s10 = scalar_lea.hbm %s5072_s7, 1536  ;;  %s5075_s11 = scalar_lea.hbm %s5230_s4, 1536 }
  0x35   :  { %p5074_p0 = scmp.ne.s32.totalorder %s5072_s7, %s5073_s10  ;;  %p5076_p1 = scmp.lt.s32.totalorder %s5072_s7, %s5230_s4 }
  0x36   :  { %p5077_p2 = scmp.lt.s32.totalorder %s5075_s11, %s5073_s10 }
  0x38   :  { %p5078_p3 = por %p5077_p2, %p5076_p1 }
  0x3a   :  { %p5079_p4 = pnand %p5078_p3, %p5074_p0 }
  0x3c   :  { %5082 = shalt.err (!%p5079_p4)
}
  0x3d   :  { %s5130_s0 = smov 256   ;;  %s5131_s15 = smov 16  }
  0x3e   :  { %117 = dma.hbm_to_vmem [thread:$0]  %s110_s28, 24576, %s112_s2, [#allocation3], %s5130_s0, %s5130_s0, %s5131_s15  }
  0x3f   :  { %5095 = dma.done.wait [#allocation3], 24576  }
  0x40   :  { %5096 = vsyncadd [#allocation3], 4294942720  ;;  %vm229_vm0 = vcmask 1046528   ;;  %v169_v0 = vld [vmem:[%s5150_s9 + $0x8] sm:$0x7f]  ;;  %v168_v1 = vld [vmem:[%s5150_s9] sm:$0xff] }
  0x41   :  { %4754 = vmatpush.msk.msra.mxu0 %vm229_vm0, %v169_v0  ;;  %v150_v2 = vld [vmem:[%s5145_s5] sm:$0xff]  ;;  %vm174_vm1 = vcmask 121856   ;;  %v151_v3 = vld [vmem:[%s5145_s5 + $0x8] sm:$0xff]  ;;  %v152_v4 = vld [vmem:[%s5145_s5 + $0x10] sm:$0xff]  ;;  %vm306_vm2 = vcmask 261120   ;;  %vm525_vm6 = vcmask 130048  }
  0x42   :  { %v153_v5 = vld [vmem:[%s5145_s5 + $0x18] sm:$0xff]  ;;  %v154_v6 = vld [vmem:[%s5145_s5 + $0x20] sm:$0xff]  ;;  %v155_v7 = vld [vmem:[%s5145_s5 + $0x28] sm:$0xff]  ;;  %vm1159_vm7 = vcmask 1043456   ;;  %vm1047_vm8 = vcmask 1044480   ;;  %s5133_s9 = smov 32  }
  0x43   :  { %248 = vmatpush.msra.mxu0 %v168_v1  ;;  %v156_v8 = vld [vmem:[%s5145_s5 + $0x30] sm:$0xff]  ;;  %v157_v9 = vld [vmem:[%s5145_s5 + $0x38] sm:$0xff]  ;;  %v158_v10 = vld [vmem:[%s5145_s5 + $0x40] sm:$0xff]  ;;  %vm935_vm9 = vcmask 1045504   ;;  %vm1227_vm10 = vcmask 523264   ;;  %vm1250_vm11 = vcmask 785408  }
  0x44   :  { %4755 = vmatmul.msk.f32.vlgmr.msra.gmra.mxu0 %vm174_vm1, %v150_v2  ;;  %v159_v11 = vld [vmem:[%s5145_s5 + $0x48] sm:$0xff]  ;;  %v160_v12 = vld [vmem:[%s5145_s5 + $0x50] sm:$0xff]  ;;  %v161_v13 = vld [vmem:[%s5145_s5 + $0x58] sm:$0xff]  ;;  %vm1894_vm15 = vcmask 392192   ;;  %s7748_s4 = sld [smem:[#allocation19_spill]] }
  0x45   :  { %v162_v14 = vld [vmem:[%s5145_s5 + $0x60] sm:$0xff]  ;;  %v163_v15 = vld [vmem:[%s5145_s5 + $0x68] sm:$0xff]  ;;  %v164_v16 = vld [vmem:[%s5145_s5 + $0x70] sm:$0xff]  ;;  %s7749_s16 = sld [smem:[#allocation16_spill]] }
  0x46   :  { %v165_v17 = vld [vmem:[%s5145_s5 + $0x78] sm:$0xff]  ;;  %v166_v19 = vld [vmem:[%s5145_s5 + $0x80] sm:$0xff]  ;;  %v167_v21 = vld [vmem:[%s5145_s5 + $0x88] sm:$0xff]  ;;  %s5132_s5 = smov 96  }
  0x47   :  { %v5053_v33 = vld [vmem:[%s5155_s13] ss:$0 sm:$0xff]  ;;  %s5134_s13 = smov 64  }
  0x4c   :  { %4756 = vmatmul.msk.f32.gmra.mxu0 %vm174_vm1, %v151_v3 }
  0x54   :  { %4757 = vmatmul.msk.f32.gmra.mxu0 %vm174_vm1, %v152_v4 }
  0x5c   :  { %4758 = vmatmul.msk.f32.gmra.mxu0 %vm174_vm1, %v153_v5 }
  0x64   :  { %4759 = vmatmul.msk.f32.gmra.mxu0 %vm174_vm1, %v154_v6 }
  0x6c   :  { %4760 = vmatmul.msk.f32.gmra.mxu0 %vm174_vm1, %v155_v7 }
  0x74   :  { %4761 = vmatmul.msk.f32.gmra.mxu0 %vm174_vm1, %v156_v8 }
  0x7c   :  { %4762 = vmatmul.msk.f32.gmra.mxu0 %vm174_vm1, %v157_v9 }
  0x84   :  { %4763 = vmatmul.msk.f32.gmra.mxu0 %vm174_vm1, %v158_v10 }
  0x8c   :  { %4764 = vmatmul.msk.f32.gmra.mxu0 %vm174_vm1, %v159_v11 }
  0x94   :  { %4765 = vmatmul.msk.f32.gmra.mxu0 %vm174_vm1, %v160_v12 }
  0x9c   :  { %4766 = vmatmul.msk.f32.gmra.mxu0 %vm174_vm1, %v161_v13 }
  0xa4   :  { %4767 = vmatmul.msk.f32.gmra.mxu0 %vm174_vm1, %v162_v14 }
  0xac   :  { %4768 = vmatmul.msk.f32.gmra.mxu0 %vm174_vm1, %v163_v15 }
  0xb4   :  { %4769 = vmatmul.msk.f32.gmra.mxu0 %vm174_vm1, %v164_v16 }
  0xbc   :  { %4770 = vmatmul.msk.f32.gmra.mxu0 %vm174_vm1, %v165_v17 }
  0xc1   :  { %v250_v18 = vpop.f32.mrf.mxu0 }
  0xc2   :  { %v5352_v35 = vadd.f32 %v5053_v33, %v250_v18 }
  0xc4   :  { %4771 = vmatmul.msk.f32.gmra.mxu0 %vm174_vm1, %v166_v19  ;;  %v307_v40 = vsel %vm306_vm2, %v5352_v35, 0.0 }
  0xc9   :  { %v253_v20 = vpop.f32.mrf.mxu0 }
  0xca   :  { %v5350_v34 = vadd.f32 %v5053_v33, %v253_v20 }
  0xcc   :  { %4772 = vmatmul.msk.f32.gmra.mxu0 %vm174_vm1, %v167_v21  ;;  %v308_v38 = vsel %vm306_vm2, %v5350_v34, 0.0 }
  0xcd   :  { %v309_v43 = vadd.f32 %v308_v38, %v307_v40 }
  0xd1   :  { %v256_v22 = vpop.f32.mrf.mxu0 }
  0xd2   :  { %v5354_v36 = vadd.f32 %v5053_v33, %v256_v22 }
  0xd4   :  { %v310_v41 = vsel %vm306_vm2, %v5354_v36, 0.0 }
  0xd5   :  { %v311_v46 = vadd.f32 %v310_v41, %v309_v43 }
  0xd9   :  { %v259_v23 = vpop.f32.mrf.mxu0 }
  0xda   :  { %v5358_v39 = vadd.f32 %v5053_v33, %v259_v23 }
  0xdc   :  { %v312_v44 = vsel %vm306_vm2, %v5358_v39, 0.0 }
  0xdd   :  { %v313_v49 = vadd.f32 %v312_v44, %v311_v46 }
  0xe1   :  { %v262_v24 = vpop.f32.mrf.mxu0 }
  0xe2   :  { %v5364_v42 = vadd.f32 %v5053_v33, %v262_v24 }
  0xe4   :  { %v314_v47 = vsel %vm306_vm2, %v5364_v42, 0.0 }
  0xe5   :  { %v315_v53 = vadd.f32 %v314_v47, %v313_v49 }
  0xe9   :  { %v265_v25 = vpop.f32.mrf.mxu0 }
  0xea   :  { %v5368_v45 = vadd.f32 %v5053_v33, %v265_v25 }
  0xec   :  { %v316_v51 = vsel %vm306_vm2, %v5368_v45, 0.0 }
  0xed   :  { %v317_v56 = vadd.f32 %v316_v51, %v315_v53 }
  0xf1   :  { %v268_v26 = vpop.f32.mrf.mxu0 }
  0xf2   :  { %v5372_v48 = vadd.f32 %v5053_v33, %v268_v26 }
  0xf4   :  { %v318_v54 = vsel %vm306_vm2, %v5372_v48, 0.0 }
  0xf5   :  { %v319_v59 = vadd.f32 %v318_v54, %v317_v56 }
  0xf9   :  { %v271_v27 = vpop.f32.mrf.mxu0 }
  0xfa   :  { %v5376_v52 = vadd.f32 %v5053_v33, %v271_v27 }
  0xfc   :  { %v320_v57 = vsel %vm306_vm2, %v5376_v52, 0.0 }
  0xfd   :  { %v321_v62 = vadd.f32 %v320_v57, %v319_v59 }
 0x101   :  { %v274_v28 = vpop.f32.mrf.mxu0 }
 0x102   :  { %v5380_v55 = vadd.f32 %v5053_v33, %v274_v28 }
 0x104   :  { %v322_v60 = vsel %vm306_vm2, %v5380_v55, 0.0 }
 0x105   :  { %v323_v2 = vadd.f32 %v322_v60, %v321_v62 }
 0x109   :  { %v277_v29 = vpop.f32.mrf.mxu0 }
 0x10a   :  { %v5384_v58 = vadd.f32 %v5053_v33, %v277_v29 }
 0x10c   :  { %v324_v0 = vsel %vm306_vm2, %v5384_v58, 0.0 }
 0x10d   :  { %v325_v5 = vadd.f32 %v324_v0, %v323_v2 }
 0x111   :  { %v280_v30 = vpop.f32.mrf.mxu0 }
 0x112   :  { %v5388_v61 = vadd.f32 %v5053_v33, %v280_v30 }
 0x114   :  { %v326_v3 = vsel %vm306_vm2, %v5388_v61, 0.0 }
 0x115   :  { %v327_v8 = vadd.f32 %v326_v3, %v325_v5 }
 0x119   :  { %v283_v31 = vpop.f32.mrf.mxu0 }
 0x11a   :  { %v5392_v1 = vadd.f32 %v5053_v33, %v283_v31 }
 0x11c   :  { %v328_v6 = vsel %vm306_vm2, %v5392_v1, 0.0 }
 0x11d   :  { %v329_v11 = vadd.f32 %v328_v6, %v327_v8 }
 0x121   :  { %v286_v32 = vpop.f32.mrf.mxu0 }
 0x122   :  { %v5396_v4 = vadd.f32 %v5053_v33, %v286_v32 }
 0x124   :  { %v330_v9 = vsel %vm306_vm2, %v5396_v4, 0.0 }
 0x125   :  { %v331_v15 = vadd.f32 %v330_v9, %v329_v11 }
 0x129   :  { %v289_v37 = vpop.f32.mrf.mxu0 }
 0x12a   :  { %v5400_v7 = vadd.f32 %v5053_v33, %v289_v37 }
 0x12c   :  { %v332_v13 = vsel %vm306_vm2, %v5400_v7, 0.0 }
 0x12d   :  { %v333_v18 = vadd.f32 %v332_v13, %v331_v15 }
 0x131   :  { %v292_v50 = vpop.f32.mrf.mxu0 }
 0x132   :  { %v5404_v10 = vadd.f32 %v5053_v33, %v292_v50 }
 0x134   :  { %v334_v16 = vsel %vm306_vm2, %v5404_v10, 0.0 }
 0x135   :  { %v335_v20 = vadd.f32 %v334_v16, %v333_v18 }
 0x139   :  { %v295_v63 = vpop.f32.mrf.mxu0 }
 0x13a   :  { %v5408_v14 = vadd.f32 %v5053_v33, %v295_v63 }
 0x13c   :  { %v336_v19 = vsel %vm306_vm2, %v5408_v14, 0.0 }
 0x13d   :  { %v337_v22 = vadd.f32 %v336_v19, %v335_v20 }
 0x141   :  { %v298_v12 = vpop.f32.mrf.mxu0 }
 0x142   :  { %v5412_v17 = vadd.f32 %v5053_v33, %v298_v12 }
 0x144   :  { %v338_v21 = vsel %vm306_vm2, %v5412_v17, 0.0 }
 0x145   :  { %v339_v25 = vadd.f32 %v338_v21, %v337_v22 }
 0x149   :  { %v301_v23 = vpop.f32.mrf.mxu0 }
 0x14a   :  { %v5418_v24 = vadd.f32 %v5053_v33, %v301_v23 }
 0x14c   :  { %v340_v26 = vsel %vm306_vm2, %v5418_v24, 0.0 }
 0x14d   :  { %v341_v27 = vadd.f32 %v340_v26, %v339_v25 }
 0x14f   :  { %v342_v28 = vrot.slane %v341_v27, 4 }
 0x151   :  { %v343_v29 = vadd.f32 %v342_v28, %v341_v27 }
 0x153   :  { %v344_v30 = vrot.slane %v343_v29, 2 }
 0x155   :  { %v345_v31 = vadd.f32 %v344_v30, %v343_v29 }
 0x157   :  { %v346_v32 = vrot.slane %v345_v31, 1 }
 0x159   :  { %v347_v37 = vadd.f32 %v346_v32, %v345_v31 }
 0x15b   :  { %v5422_v38 = vmul.f32 0.0069444445, %v347_v37 }
 0x15d   :  { %v349_v40 = vsub.f32 %v5352_v35, %v5422_v38  ;;  %v350_v33 = vsub.f32 %v5350_v34, %v5422_v38  ;;  %v351_v41 = vsub.f32 %v5354_v36, %v5422_v38  ;;  %v352_v43 = vsub.f32 %v5358_v39, %v5422_v38 }
 0x15e   :  { %v353_v47 = vsub.f32 %v5364_v42, %v5422_v38  ;;  %v354_v50 = vsub.f32 %v5368_v45, %v5422_v38  ;;  %v355_v57 = vsub.f32 %v5372_v48, %v5422_v38  ;;  %v356_v63 = vsub.f32 %v5376_v52, %v5422_v38 }
 0x15f   :  { %v367_v44 = vmul.f32 %v349_v40, %v349_v40  ;;  %v368_v46 = vmul.f32 %v350_v33, %v350_v33  ;;  %v369_v49 = vmul.f32 %v351_v41, %v351_v41  ;;  %v370_v51 = vmul.f32 %v352_v43, %v352_v43 }
 0x160   :  { %v371_v59 = vmul.f32 %v353_v47, %v353_v47  ;;  %v372_v0 = vmul.f32 %v354_v50, %v354_v50  ;;  %v357_v5 = vsub.f32 %v5380_v55, %v5422_v38  ;;  %v373_v6 = vmul.f32 %v355_v57, %v355_v57 }
 0x161   :  { %v385_v53 = vsel %vm306_vm2, %v367_v44, 0.0  ;;  %v386_v54 = vsel %vm306_vm2, %v368_v46, 0.0  ;;  %v388_v60 = vsel %vm306_vm2, %v369_v49, 0.0  ;;  %v390_v2 = vsel %vm306_vm2, %v370_v51, 0.0 }
 0x162   :  { %v387_v56 = vadd.f32 %v386_v54, %v385_v53  ;;  %v392_v8 = vsel %vm306_vm2, %v371_v59, 0.0  ;;  %v358_v11 = vsub.f32 %v5384_v58, %v5422_v38  ;;  %v374_v12 = vmul.f32 %v356_v63, %v356_v63 }
 0x163   :  { %v394_v13 = vsel %vm306_vm2, %v372_v0, 0.0  ;;  %v359_v16 = vsub.f32 %v5388_v61, %v5422_v38  ;;  %v375_v18 = vmul.f32 %v357_v5, %v357_v5  ;;  %v396_v19 = vsel %vm306_vm2, %v373_v6, 0.0 }
 0x164   :  { %v389_v62 = vadd.f32 %v388_v60, %v387_v56  ;;  %v360_v21 = vsub.f32 %v5392_v1, %v5422_v38  ;;  %v376_v22 = vmul.f32 %v358_v11, %v358_v11  ;;  %v398_v23 = vsel %vm306_vm2, %v374_v12, 0.0 }
 0x165   :  { %v361_v26 = vsub.f32 %v5396_v4, %v5422_v38  ;;  %v377_v27 = vmul.f32 %v359_v16, %v359_v16  ;;  %v400_v28 = vsel %vm306_vm2, %v375_v18, 0.0  ;;  %v362_v30 = vsub.f32 %v5400_v7, %v5422_v38 }
 0x166   :  { %v391_v3 = vadd.f32 %v390_v2, %v389_v62  ;;  %v378_v31 = vmul.f32 %v360_v21, %v360_v21  ;;  %v402_v32 = vsel %vm306_vm2, %v376_v22, 0.0  ;;  %v363_v40 = vsub.f32 %v5404_v10, %v5422_v38 }
 0x167   :  { %v379_v33 = vmul.f32 %v361_v26, %v361_v26  ;;  %v404_v41 = vsel %vm306_vm2, %v377_v27, 0.0  ;;  %v364_v44 = vsub.f32 %v5408_v14, %v5422_v38  ;;  %v380_v46 = vmul.f32 %v362_v30, %v362_v30 }
 0x168   :  { %v393_v9 = vadd.f32 %v392_v8, %v391_v3  ;;  %v406_v47 = vsel %vm306_vm2, %v378_v31, 0.0  ;;  %v365_v50 = vsub.f32 %v5412_v17, %v5422_v38  ;;  %v381_v51 = vmul.f32 %v363_v40, %v363_v40 }
 0x169   :  { %v408_v53 = vsel %vm306_vm2, %v379_v33, 0.0  ;;  %v366_v56 = vsub.f32 %v5418_v24, %v5422_v38  ;;  %v382_v57 = vmul.f32 %v364_v44, %v364_v44  ;;  %v410_v59 = vsel %vm306_vm2, %v380_v46, 0.0 }
 0x16a   :  { %v395_v15 = vadd.f32 %v394_v13, %v393_v9  ;;  %v383_v62 = vmul.f32 %v365_v50, %v365_v50  ;;  %v412_v63 = vsel %vm306_vm2, %v381_v51, 0.0 }
 0x16b   :  { %v384_v2 = vmul.f32 %v366_v56, %v366_v56  ;;  %v414_v3 = vsel %vm306_vm2, %v382_v57, 0.0  ;;  %v482_v56 = vld [vmem:[%s5260_s20 + $0x8] sm:$0xff] }
 0x16c   :  { %v397_v20 = vadd.f32 %v396_v19, %v395_v15  ;;  %v416_v6 = vsel %vm306_vm2, %v383_v62, 0.0 }
 0x16d   :  { %v418_v9 = vsel %vm306_vm2, %v384_v2, 0.0 }
 0x16e   :  { %v399_v25 = vadd.f32 %v398_v23, %v397_v20 }
 0x170   :  { %v401_v29 = vadd.f32 %v400_v28, %v399_v25  ;;  %v304_v28 = vld [vmem:[%s5160_s17] sm:$0x1]  ;;  %s7733_s17 = sld [smem:[#allocation5_spill]] }
 0x172   :  { %v403_v37 = vadd.f32 %v402_v32, %v401_v29  ;;  %v305_v32 = vld [vmem:[%s5165_s21] sm:$0x1]  ;;  %s7734_s21 = sld [smem:[#allocation6_spill]] }
 0x174   :  { %v405_v43 = vadd.f32 %v404_v41, %v403_v37 }
 0x176   :  { %v407_v49 = vadd.f32 %v406_v47, %v405_v43 }
 0x178   :  { %v409_v54 = vadd.f32 %v408_v53, %v407_v49 }
 0x17a   :  { %v411_v60 = vadd.f32 %v410_v59, %v409_v54 }
 0x17c   :  { %v413_v0 = vadd.f32 %v412_v63, %v411_v60  ;;  %v484_v60 = vld [vmem:[%s5260_s20 + $0x18] sm:$0xff] }
 0x17e   :  { %v415_v5 = vadd.f32 %v414_v3, %v413_v0  ;;  %v486_v3 = vld [vmem:[%s5260_s20 + $0x28] sm:$0xff] }
 0x180   :  { %v417_v8 = vadd.f32 %v416_v6, %v415_v5 }
 0x182   :  { %v419_v11 = vadd.f32 %v418_v9, %v417_v8 }
 0x184   :  { %v420_v12 = vrot.slane %v419_v11, 4 }
 0x186   :  { %v421_v13 = vadd.f32 %v420_v12, %v419_v11  ;;  %v488_v11 = vld [vmem:[%s5260_s20 + $0x38] sm:$0xff] }
 0x188   :  { %v422_v15 = vrot.slane %v421_v13, 2 }
 0x18a   :  { %v423_v16 = vadd.f32 %v422_v15, %v421_v13  ;;  %v490_v13 = vld [vmem:[%s5260_s20 + $0x48] sm:$0xff]  ;;  %v492_v15 = vld [vmem:[%s5260_s20 + $0x58] sm:$0xff] }
 0x18c   :  { %v424_v18 = vrot.slane %v423_v16, 1 }
 0x18e   :  { %v425_v19 = vadd.f32 %v424_v18, %v423_v16  ;;  %v494_v16 = vld [vmem:[%s5260_s20 + $0x68] sm:$0xff]  ;;  %v487_v18 = vld [vmem:[%s5260_s20 + $0x30] sm:$0xff] }
 0x190   :  { %v426_v20 = vmul.f32 0.0069444445, %v425_v19  ;;  %v496_v19 = vld [vmem:[%s5260_s20 + $0x78] sm:$0xff] }
 0x192   :  { %v427_v21 = vadd.f32 1e-05, %v426_v20  ;;  %v489_v20 = vld [vmem:[%s5260_s20 + $0x40] sm:$0xff] }
 0x194   :  { %5057 = vrsqrt.f32 %v427_v21  ;;  %vm434_vm4 = vweird.f32 %v427_v21 }
 0x19a   :  { %v5058_v22 = vpop.eup %5057 }
 0x19b   :  { %v429_v23 = vmul.f32 %v5058_v22, %v427_v21  ;;  %vm435_vm3 = vweird.f32 %v5058_v22  ;;  %v498_v21 = vld [vmem:[%s5260_s20 + $0x88] sm:$0xff] }
 0x19c   :  { %vm436_vm5 = vmor %vm434_vm4, %vm435_vm3 }
 0x19d   :  { %v430_v25 = vmul.f32 %v5058_v22, %v429_v23  ;;  %v500_v23 = vld [vmem:[%s5260_s20 + $0x98] sm:$0xff] }
 0x19f   :  { %v431_v26 = vmul.f32 0.5, %v430_v25  ;;  %v493_v25 = vld [vmem:[%s5260_s20 + $0x60] sm:$0xff] }
 0x1a1   :  { %v432_v27 = vsub.f32 1.5, %v431_v26  ;;  %v502_v26 = vld [vmem:[%s5260_s20 + $0xa8] sm:$0xff] }
 0x1a3   :  { %v433_v29 = vmul.f32 %v5058_v22, %v432_v27  ;;  %v495_v27 = vld [vmem:[%s5260_s20 + $0x70] sm:$0xff] }
 0x1a5   :  { %v437_v30 = vsel %vm436_vm5, %v5058_v22, %v433_v29  ;;  %v491_v22 = vld [vmem:[%s5260_s20 + $0x50] sm:$0xff]  ;;  %v497_v29 = vld [vmem:[%s5260_s20 + $0x80] sm:$0xff] }
 0x1a6   :  { %v438_v31 = vmul.f32 %v437_v30, %v304_v28  ;;  %v504_v28 = vld [vmem:[%s5260_s20 + $0xb8] sm:$0xff]  ;;  %v506_v30 = vld [vmem:[%s5260_s20 + $0xc8] sm:$0xff] }
 0x1a8   :  { %v439_v37 = vperm.slane %v438_v31, 0  ;;  %v458_v40 = vmul.f32 %v438_v31, %v5422_v38  ;;  %v499_v31 = vld [vmem:[%s5260_s20 + $0x90] sm:$0xff] }
 0x1aa   :  { %v459_v33 = vsub.f32 %v305_v32, %v458_v40  ;;  %v455_v43 = vmul.f32 %v439_v37, %v5408_v14  ;;  %v457_v44 = vmul.f32 %v439_v37, %v5418_v24  ;;  %v454_v49 = vmul.f32 %v439_v37, %v5404_v10  ;;  %v508_v32 = vld [vmem:[%s5260_s20 + $0xd8] sm:$0xff]  ;;  %v510_v40 = vld [vmem:[%s5260_s20 + $0xe8] sm:$0xff] }
 0x1ab   :  { %v456_v50 = vmul.f32 %v439_v37, %v5412_v17  ;;  %v453_v54 = vmul.f32 %v439_v37, %v5400_v7  ;;  %v452_v24 = vmul.f32 %v439_v37, %v5396_v4  ;;  %v451_v17 = vmul.f32 %v439_v37, %v5392_v1 }
 0x1ac   :  { %v461_v41 = vperm.slane %v459_v33, 0  ;;  %v450_v57 = vmul.f32 %v439_v37, %v5388_v61  ;;  %v449_v59 = vmul.f32 %v439_v37, %v5384_v58  ;;  %v448_v4 = vmul.f32 %v439_v37, %v5380_v55  ;;  %v503_v33 = vld [vmem:[%s5260_s20 + $0xb0] sm:$0xff] }
 0x1ad   :  { %v447_v1 = vmul.f32 %v439_v37, %v5376_v52  ;;  %v446_v61 = vmul.f32 %v439_v37, %v5372_v48  ;;  %v445_v58 = vmul.f32 %v439_v37, %v5368_v45  ;;  %v444_v55 = vmul.f32 %v439_v37, %v5364_v42 }
 0x1ae   :  { %v478_v46 = vadd.f32 %v461_v41, %v455_v43  ;;  %v480_v47 = vadd.f32 %v461_v41, %v457_v44  ;;  %v477_v51 = vadd.f32 %v461_v41, %v454_v49  ;;  %v479_v53 = vadd.f32 %v461_v41, %v456_v50  ;;  %v505_v43 = vld [vmem:[%s5260_s20 + $0xc0] sm:$0xff]  ;;  %v514_v44 = vld [vmem:[%s5260_s20 + $0x108] sm:$0xff]  ;;  %v799_v49 = vld [vmem:[%s5170_s25 + $0x98] sm:$0xff] }
 0x1af   :  { %v476_v14 = vadd.f32 %v461_v41, %v453_v54  ;;  %v475_v10 = vadd.f32 %v461_v41, %v452_v24  ;;  %v474_v38 = vadd.f32 %v461_v41, %v451_v17  ;;  %v473_v7 = vadd.f32 %v461_v41, %v450_v57  ;;  %v798_v50 = vld [vmem:[%s5170_s25 + $0x90] sm:$0xff]  ;;  %1415 = vmatpush.msrb.mxu0 %v799_v49  ;;  %v796_v54 = vld [vmem:[%s5170_s25 + $0x80] sm:$0xff]  ;;  %v518_v24 = vld [vmem:[%s5260_s20 + $0x128] sm:$0xff] }
 0x1b0   :  { %592 = vmatpush.msra.mxu1 %v478_v46  ;;  %689 = vmatpush.msra.mxu2 %v480_v47  ;;  %v472_v62 = vadd.f32 %v461_v41, %v449_v59  ;;  %v471_v63 = vadd.f32 %v461_v41, %v448_v4  ;;  %v470_v0 = vadd.f32 %v461_v41, %v447_v1  ;;  %v507_v46 = vld [vmem:[%s5260_s20 + $0xd0] sm:$0xff] }
 0x1b1   :  { %v469_v2 = vadd.f32 %v461_v41, %v446_v61  ;;  %v468_v5 = vadd.f32 %v461_v41, %v445_v58  ;;  %v467_v6 = vadd.f32 %v461_v41, %v444_v55  ;;  %v443_v52 = vmul.f32 %v439_v37, %v5358_v39  ;;  %1416 = vmatpush.msrb.mxu0 %v798_v50  ;;  %v524_v58 = vld [vmem:[%s5260_s20 + $0x158] sm:$0xff] }
 0x1b2   :  { %593 = vmatpush.msra.mxu1 %v477_v51  ;;  %690 = vmatpush.msra.mxu2 %v479_v53  ;;  %v442_v8 = vmul.f32 %v439_v37, %v5354_v36  ;;  %v441_v9 = vmul.f32 %v439_v37, %v5350_v34  ;;  %v440_v12 = vmul.f32 %v439_v37, %v5352_v35  ;;  %v481_v36 = vld [vmem:[%s5260_s20] sm:$0xff]  ;;  %v483_v34 = vld [vmem:[%s5260_s20 + $0x10] sm:$0xff]  ;;  %v516_v51 = vld [vmem:[%s5260_s20 + $0x118] sm:$0xff] }
 0x1b3   :  { %4773 = vmatmul.msk.f32.vlgmr.msra.gmra.mxu2 %vm525_vm6, %v482_v56  ;;  %v466_v48 = vadd.f32 %v461_v41, %v443_v52  ;;  %v485_v35 = vld [vmem:[%s5260_s20 + $0x20] sm:$0xff]  ;;  %v797_v53 = vld [vmem:[%s5170_s25 + $0x88] sm:$0xff] }
 0x1b4   :  { %594 = vmatpush.msra.mxu1 %v476_v14  ;;  %v465_v45 = vadd.f32 %v461_v41, %v442_v8  ;;  %v464_v42 = vadd.f32 %v461_v41, %v441_v9  ;;  %v463_v39 = vadd.f32 %v461_v41, %v440_v12  ;;  %v501_v37 = vld [vmem:[%s5260_s20 + $0xa0] sm:$0xff]  ;;  %v512_v41 = vld [vmem:[%s5260_s20 + $0xf8] sm:$0xff]  ;;  %1417 = vmatpush.msrb.mxu0 %v797_v53 }
 0x1b5   :  { %v509_v56 = vld [vmem:[%s5260_s20 + $0xe0] sm:$0xff] }
 0x1b6   :  { %595 = vmatpush.msra.mxu1 %v475_v10  ;;  %1418 = vmatpush.msrb.mxu0 %v796_v54  ;;  %v511_v10 = vld [vmem:[%s5260_s20 + $0xf0] sm:$0xff]  ;;  %v517_v52 = vld [vmem:[%s5260_s20 + $0x120] sm:$0xff] }
 0x1b8   :  { %596 = vmatpush.msra.mxu1 %v474_v38  ;;  %v520_v38 = vld [vmem:[%s5260_s20 + $0x138] sm:$0xff] }
 0x1ba   :  { %597 = vmatpush.msra.mxu1 %v473_v7  ;;  %v513_v7 = vld [vmem:[%s5260_s20 + $0x100] sm:$0xff] }
 0x1bb   :  { %4774 = vmatmul.msk.f32.gmra.mxu2 %vm525_vm6, %v484_v60  ;;  %v522_v60 = vld [vmem:[%s5260_s20 + $0x148] sm:$0xff] }
 0x1bc   :  { %598 = vmatpush.msra.mxu1 %v472_v62 }
 0x1be   :  { %599 = vmatpush.msra.mxu1 %v471_v63  ;;  %v515_v63 = vld [vmem:[%s5260_s20 + $0x110] sm:$0xff] }
 0x1c0   :  { %600 = vmatpush.msra.mxu1 %v470_v0 }
 0x1c2   :  { %601 = vmatpush.msra.mxu1 %v469_v2 }
 0x1c3   :  { %4775 = vmatmul.msk.f32.gmra.mxu2 %vm525_vm6, %v486_v3 }
 0x1c4   :  { %602 = vmatpush.msra.mxu1 %v468_v5 }
 0x1c6   :  { %603 = vmatpush.msra.mxu1 %v467_v6 }
 0x1c8   :  { %604 = vmatpush.msra.mxu1 %v466_v48 }
 0x1ca   :  { %605 = vmatpush.msra.mxu1 %v465_v45 }
 0x1cb   :  { %4776 = vmatmul.msk.f32.gmra.mxu2 %vm525_vm6, %v488_v11 }
 0x1cc   :  { %606 = vmatpush.msra.mxu1 %v464_v42 }
 0x1ce   :  { %607 = vmatpush.msra.mxu1 %v463_v39 }
 0x1cf   :  { %608 = vmatmul.f32.vlgmr.msra.gmra.mxu1 %v481_v36 }
 0x1d0   :  { %4871 = vmatpush.msrb.mxu1 %v799_v49 }
 0x1d2   :  { %4872 = vmatpush.msrb.mxu1 %v798_v50 }
 0x1d3   :  { %4777 = vmatmul.msk.f32.gmra.mxu2 %vm525_vm6, %v490_v13 }
 0x1d4   :  { %4873 = vmatpush.msrb.mxu1 %v797_v53 }
 0x1d6   :  { %4874 = vmatpush.msrb.mxu1 %v796_v54 }
 0x1d7   :  { %611 = vmatmul.f32.gmra.mxu1 %v483_v34 }
 0x1db   :  { %4778 = vmatmul.msk.f32.gmra.mxu2 %vm525_vm6, %v492_v15 }
 0x1df   :  { %614 = vmatmul.f32.gmra.mxu1 %v485_v35 }
 0x1e3   :  { %4779 = vmatmul.msk.f32.gmra.mxu2 %vm525_vm6, %v494_v16 }
 0x1e7   :  { %617 = vmatmul.f32.gmra.mxu1 %v487_v18 }
 0x1eb   :  { %4780 = vmatmul.msk.f32.gmra.mxu2 %vm525_vm6, %v496_v19 }
 0x1ef   :  { %620 = vmatmul.f32.gmra.mxu1 %v489_v20 }
 0x1f3   :  { %4781 = vmatmul.msk.f32.gmra.mxu2 %vm525_vm6, %v498_v21 }
 0x1f7   :  { %623 = vmatmul.f32.gmra.mxu1 %v491_v22  ;;  %v519_v22 = vld [vmem:[%s5260_s20 + $0x130] sm:$0xff] }
 0x1fb   :  { %4782 = vmatmul.msk.f32.gmra.mxu2 %vm525_vm6, %v500_v23 }
 0x1ff   :  { %626 = vmatmul.f32.gmra.mxu1 %v493_v25 }
 0x203   :  { %4783 = vmatmul.msk.f32.gmra.mxu2 %vm525_vm6, %v502_v26 }
 0x207   :  { %629 = vmatmul.f32.gmra.mxu1 %v495_v27 }
 0x20b   :  { %4784 = vmatmul.msk.f32.gmra.mxu2 %vm525_vm6, %v504_v28 }
 0x20f   :  { %632 = vmatmul.f32.gmra.mxu1 %v497_v29 }
 0x213   :  { %4785 = vmatmul.msk.f32.gmra.mxu2 %vm525_vm6, %v506_v30 }
 0x217   :  { %635 = vmatmul.f32.gmra.mxu1 %v499_v31 }
 0x21b   :  { %4786 = vmatmul.msk.f32.gmra.mxu2 %vm525_vm6, %v508_v32 }
 0x21f   :  { %638 = vmatmul.f32.gmra.mxu1 %v501_v37 }
 0x223   :  { %4787 = vmatmul.msk.f32.gmra.mxu2 %vm525_vm6, %v510_v40 }
 0x227   :  { %641 = vmatmul.f32.gmra.mxu1 %v503_v33 }
 0x22b   :  { %4788 = vmatmul.msk.f32.gmra.mxu2 %vm525_vm6, %v512_v41  ;;  %v521_v41 = vld [vmem:[%s5260_s20 + $0x140] sm:$0xff] }
 0x22f   :  { %644 = vmatmul.f32.gmra.mxu1 %v505_v43 }
 0x233   :  { %4789 = vmatmul.msk.f32.gmra.mxu2 %vm525_vm6, %v514_v44 }
 0x236   :  { %v692_v47 = vpop.f32.mrf.mxu2 }
 0x237   :  { %647 = vmatmul.f32.gmra.mxu1 %v507_v46 }
 0x23b   :  { %4790 = vmatmul.msk.f32.gmra.mxu2 %vm525_vm6, %v516_v51 }
 0x23e   :  { %v695_v14 = vpop.f32.mrf.mxu2 }
 0x23f   :  { %650 = vmatmul.f32.gmra.mxu1 %v509_v56 }
 0x243   :  { %4791 = vmatmul.msk.f32.gmra.mxu2 %vm525_vm6, %v518_v24 }
 0x246   :  { %v698_v17 = vpop.f32.mrf.mxu2 }
 0x247   :  { %653 = vmatmul.f32.gmra.mxu1 %v511_v10 }
 0x24b   :  { %4792 = vmatmul.msk.f32.gmra.mxu2 %vm525_vm6, %v520_v38 }
 0x24c   :  { %v609_v57 = vpop.f32.mrf.mxu1 }
 0x24d   :  { %v693_v62 = vadd.f32 %v692_v47, %v609_v57 }
 0x24e   :  { %v701_v59 = vpop.f32.mrf.mxu2 }
 0x24f   :  { %656 = vmatmul.f32.gmra.mxu1 %v513_v7  ;;  %v5563_v1 = vmax.f32 %v693_v62, 0.0  ;;  %v523_v7 = vld [vmem:[%s5260_s20 + $0x150] sm:$0xff]  ;;  %s7745_s20 = sld [smem:[#allocation14_spill]] }
 0x251   :  { %v1160_v3 = vrot.slane %v5563_v1, 4  ;;  %v1048_v42 = vrot.slane %v5563_v1, 3  ;;  %v824_v36 = vrot.slane %v5563_v1, 1  ;;  %v936_v30 = vrot.slane %v5563_v1, 2 }
 0x253   :  { %4793 = vmatmul.msk.f32.gmra.mxu2 %vm525_vm6, %v522_v60 }
 0x254   :  { %v612_v4 = vpop.f32.mrf.mxu1 }
 0x255   :  { %v696_v0 = vadd.f32 %v695_v14, %v612_v4 }
 0x256   :  { %v704_v61 = vpop.f32.mrf.mxu2 }
 0x257   :  { %v5565_v2 = vmax.f32 %v696_v0, 0.0  ;;  %659 = vmatmul.f32.gmra.mxu1 %v515_v63 }
 0x259   :  { %v1161_v5 = vrot.slane %v5565_v2, 4  ;;  %v1049_v8 = vrot.slane %v5565_v2, 3  ;;  %v825_v11 = vrot.slane %v5565_v2, 1  ;;  %v937_v28 = vrot.slane %v5565_v2, 2 }
 0x25b   :  { %v1162_v55 = vsel %vm1159_vm7, %v1160_v3, %v1161_v5  ;;  %4794 = vmatmul.msk.f32.gmra.mxu2 %vm525_vm6, %v524_v58  ;;  %v1050_v34 = vsel %vm1047_vm8, %v1048_v42, %v1049_v8  ;;  %v826_v16 = vsel %vm229_vm0, %v824_v36, %v825_v11  ;;  %v938_v37 = vsel %vm935_vm9, %v936_v30, %v937_v28 }
 0x25c   :  { %v615_v6 = vpop.f32.mrf.mxu1  ;;  %4795 = vmatmul.msk.f32.vlgmr.msrb.gmra.mxu0 %vm306_vm2, %v1162_v55 }
 0x25d   :  { %v699_v48 = vadd.f32 %v698_v17, %v615_v6 }
 0x25e   :  { %v707_v45 = vpop.f32.mrf.mxu2 }
 0x25f   :  { %v5575_v9 = vmax.f32 %v699_v48, 0.0  ;;  %662 = vmatmul.f32.gmra.mxu1 %v517_v52 }
 0x261   :  { %v1163_v12 = vrot.slane %v5575_v9, 4  ;;  %v1051_v39 = vrot.slane %v5575_v9, 3  ;;  %v827_v13 = vrot.slane %v5575_v9, 1  ;;  %v939_v25 = vrot.slane %v5575_v9, 2 }
 0x263   :  { %v1164_v15 = vsel %vm1159_vm7, %v1161_v5, %v1163_v12  ;;  %v1052_v35 = vsel %vm1047_vm8, %v1049_v8, %v1051_v39  ;;  %v828_v18 = vsel %vm229_vm0, %v825_v11, %v827_v13  ;;  %v940_v31 = vsel %vm935_vm9, %v937_v28, %v939_v25 }
 0x264   :  { %v618_v19 = vpop.f32.mrf.mxu1  ;;  %4796 = vmatmul.msk.f32.gmra.mxu0 %vm306_vm2, %v1164_v15  ;;  %v4925_v20 = vpack.i.bf16 %v1052_v35, %v1050_v34  ;;  %v4915_v21 = vpack.i.bf16 %v828_v18, %v826_v16  ;;  %v4920_v33 = vpack.i.bf16 %v940_v31, %v938_v37 }
 0x265   :  { %v702_v23 = vadd.f32 %v701_v59, %v618_v19 }
 0x266   :  { %4926 = vrot.lane.b32.xlu1 %v4925_v20, %s5132_s5  ;;  %4916 = vrot.lane.b32.xlu0 %v4915_v21, %s5133_s9  ;;  %v710_v26 = vpop.f32.mrf.mxu2 }
 0x267   :  { %v5595_v27 = vmax.f32 %v702_v23, 0.0  ;;  %665 = vmatmul.f32.gmra.mxu1 %v519_v22 }
 0x269   :  { %v1165_v29 = vrot.slane %v5595_v27, 4  ;;  %v941_v44 = vrot.slane %v5595_v27, 2  ;;  %v829_v49 = vrot.slane %v5595_v27, 1  ;;  %v1053_v63 = vrot.slane %v5595_v27, 3 }
 0x26b   :  { %v1166_v32 = vsel %vm1159_vm7, %v1163_v12, %v1165_v29  ;;  %v942_v54 = vsel %vm935_vm9, %v939_v25, %v941_v44  ;;  %v830_v24 = vsel %vm229_vm0, %v827_v13, %v829_v49  ;;  %v1054_v3 = vsel %vm1047_vm8, %v1051_v39, %v1053_v63 }
 0x26c   :  { %v621_v40 = vpop.f32.mrf.mxu1  ;;  %4797 = vmatmul.msk.f32.gmra.mxu0 %vm306_vm2, %v1166_v32 }
 0x26d   :  { %v705_v43 = vadd.f32 %v704_v61, %v621_v40 }
 0x26e   :  { %4921 = vrot.lane.b32.xlu0 %v4920_v33, %s5134_s13  ;;  %v713_v46 = vpop.f32.mrf.mxu2 }
 0x26f   :  { %v5607_v47 = vmax.f32 %v705_v43, 0.0  ;;  %668 = vmatmul.f32.gmra.mxu1 %v521_v41 }
 0x271   :  { %v1167_v50 = vrot.slane %v5607_v47, 4  ;;  %v943_v51 = vrot.slane %v5607_v47, 2  ;;  %v831_v53 = vrot.slane %v5607_v47, 1  ;;  %v1055_v60 = vrot.slane %v5607_v47, 3 }
 0x273   :  { %v1168_v56 = vsel %vm1159_vm7, %v1165_v29, %v1167_v50  ;;  %v944_v14 = vsel %vm935_vm9, %v941_v44, %v943_v51  ;;  %v832_v10 = vsel %vm229_vm0, %v829_v49, %v831_v53  ;;  %v1056_v61 = vsel %vm1047_vm8, %v1053_v63, %v1055_v60 }
 0x274   :  { %v624_v17 = vpop.f32.mrf.mxu1  ;;  %4798 = vmatmul.msk.f32.gmra.mxu0 %vm306_vm2, %v1168_v56  ;;  %v4935_v38 = vpack.i.bf16 %v944_v14, %v942_v54  ;;  %v4930_v57 = vpack.i.bf16 %v832_v10, %v830_v24  ;;  %v4940_v55 = vpack.i.bf16 %v1056_v61, %v1054_v3 }
 0x275   :  { %v708_v59 = vadd.f32 %v707_v45, %v624_v17 }
 0x276   :  { %4936 = vrot.lane.b32.xlu2 %v4935_v38, %s5134_s13  ;;  %4931 = vrot.lane.b32.xlu1 %v4930_v57, %s5133_s9  ;;  %v716_v62 = vpop.f32.mrf.mxu2 }
 0x277   :  { %v5623_v4 = vmax.f32 %v708_v59, 0.0  ;;  %671 = vmatmul.f32.gmra.mxu1 %v523_v7 }
 0x279   :  { %v1169_v0 = vrot.slane %v5623_v4, 4  ;;  %v1057_v52 = vrot.slane %v5623_v4, 3  ;;  %v945_v48 = vrot.slane %v5623_v4, 2  ;;  %v833_v8 = vrot.slane %v5623_v4, 1 }
 0x27b   :  { %v1170_v58 = vsel %vm1159_vm7, %v1167_v50, %v1169_v0  ;;  %v1058_v13 = vsel %vm1047_vm8, %v1055_v60, %v1057_v52  ;;  %v946_v34 = vsel %vm935_vm9, %v943_v51, %v945_v48  ;;  %v834_v15 = vsel %vm229_vm0, %v831_v53, %v833_v8 }
 0x27c   :  { %v627_v5 = vpop.f32.mrf.mxu1  ;;  %4799 = vmatmul.msk.f32.gmra.mxu0 %vm306_vm2, %v1170_v58 }
 0x27d   :  { %v711_v6 = vadd.f32 %v710_v26, %v627_v5 }
 0x27e   :  { %4941 = vrot.lane.b32.xlu2 %v4940_v55, %s5132_s5  ;;  %v719_v45 = vpop.f32.mrf.mxu2 }
 0x27f   :  { %v5637_v11 = vmax.f32 %v711_v6, 0.0 }
 0x281   :  { %v1171_v42 = vrot.slane %v5637_v11, 4  ;;  %v1059_v12 = vrot.slane %v5637_v11, 3  ;;  %v947_v39 = vrot.slane %v5637_v11, 2  ;;  %v835_v36 = vrot.slane %v5637_v11, 1 }
 0x283   :  { %v1172_v35 = vsel %vm1159_vm7, %v1169_v0, %v1171_v42  ;;  %v1060_v16 = vsel %vm1047_vm8, %v1057_v52, %v1059_v12  ;;  %v948_v18 = vsel %vm935_vm9, %v945_v48, %v947_v39  ;;  %v836_v19 = vsel %vm229_vm0, %v833_v8, %v835_v36 }
 0x284   :  { %v630_v20 = vpop.f32.mrf.mxu1  ;;  %4800 = vmatmul.msk.f32.gmra.mxu0 %vm306_vm2, %v1172_v35  ;;  %v4955_v21 = vpack.i.bf16 %v1060_v16, %v1058_v13  ;;  %v4950_v22 = vpack.i.bf16 %v948_v18, %v946_v34  ;;  %v4945_v23 = vpack.i.bf16 %v836_v19, %v834_v15 }
 0x285   :  { %v714_v25 = vadd.f32 %v713_v46, %v630_v20 }
 0x286   :  { %4956 = vrot.lane.b32.xlu2 %v4955_v21, %s5132_s5  ;;  %4951 = vrot.lane.b32.xlu1 %v4950_v22, %s5134_s13  ;;  %v722_v26 = vpop.f32.mrf.mxu2 }
 0x287   :  { %v5653_v28 = vmax.f32 %v714_v25, 0.0  ;;  %4946 = vrot.lane.b32.xlu0 %v4945_v23, %s5133_s9  ;;  %v795_v23 = vld [vmem:[%s5170_s25 + $0x78] sm:$0xff]  ;;  %v794_v25 = vld [vmem:[%s5170_s25 + $0x70] sm:$0xff] }
 0x288   :  { %1320 = vmatpush.msra.mxu3 %v795_v23 }
 0x289   :  { %v1173_v29 = vrot.slane %v5653_v28, 4  ;;  %v1061_v37 = vrot.slane %v5653_v28, 3  ;;  %v949_v40 = vrot.slane %v5653_v28, 2  ;;  %v837_v33 = vrot.slane %v5653_v28, 1 }
 0x28a   :  { %1321 = vmatpush.msra.mxu3 %v794_v25 }
 0x28b   :  { %v1174_v30 = vsel %vm1159_vm7, %v1171_v42, %v1173_v29  ;;  %v1062_v51 = vsel %vm1047_vm8, %v1059_v12, %v1061_v37  ;;  %v950_v53 = vsel %vm935_vm9, %v947_v39, %v949_v40  ;;  %v838_v54 = vsel %vm229_vm0, %v835_v36, %v837_v33 }
 0x28c   :  { %v633_v31 = vpop.f32.mrf.mxu1  ;;  %4801 = vmatmul.msk.f32.gmra.mxu0 %vm306_vm2, %v1174_v30 }
 0x28d   :  { %v717_v32 = vadd.f32 %v716_v62, %v633_v31 }
 0x28e   :  { %v725_v41 = vpop.f32.mrf.mxu2 }
 0x28f   :  { %v5662_v43 = vmax.f32 %v717_v32, 0.0 }
 0x291   :  { %v1175_v44 = vrot.slane %v5662_v43, 4  ;;  %v1063_v46 = vrot.slane %v5662_v43, 3  ;;  %v951_v49 = vrot.slane %v5662_v43, 2  ;;  %v839_v50 = vrot.slane %v5662_v43, 1 }
 0x293   :  { %v1176_v56 = vsel %vm1159_vm7, %v1173_v29, %v1175_v44  ;;  %v1064_v14 = vsel %vm1047_vm8, %v1061_v37, %v1063_v46  ;;  %v952_v24 = vsel %vm935_vm9, %v949_v40, %v951_v49  ;;  %v840_v10 = vsel %vm229_vm0, %v837_v33, %v839_v50  ;;  %v793_v29 = vld [vmem:[%s5170_s25 + $0x68] sm:$0xff] }
 0x294   :  { %v636_v17 = vpop.f32.mrf.mxu1  ;;  %4802 = vmatmul.msk.f32.gmra.mxu0 %vm306_vm2, %v1176_v56  ;;  %v4970_v38 = vpack.i.bf16 %v1064_v14, %v1062_v51  ;;  %v4965_v57 = vpack.i.bf16 %v952_v24, %v950_v53  ;;  %v4960_v7 = vpack.i.bf16 %v840_v10, %v838_v54  ;;  %1322 = vmatpush.msra.mxu3 %v793_v29  ;;  %v790_v56 = vld [vmem:[%s5170_s25 + $0x50] sm:$0xff] }
 0x295   :  { %v720_v59 = vadd.f32 %v719_v45, %v636_v17 }
 0x296   :  { %4971 = vrot.lane.b32.xlu2 %v4970_v38, %s5132_s5  ;;  %4966 = vrot.lane.b32.xlu1 %v4965_v57, %s5134_s13  ;;  %v728_v62 = vpop.f32.mrf.mxu2 }
 0x297   :  { %v5678_v60 = vmax.f32 %v720_v59, 0.0  ;;  %4961 = vrot.lane.b32.xlu0 %v4960_v7, %s5133_s9 }
 0x299   :  { %v1177_v63 = vrot.slane %v5678_v60, 4  ;;  %v1065_v3 = vrot.slane %v5678_v60, 3  ;;  %v953_v5 = vrot.slane %v5678_v60, 2  ;;  %v841_v55 = vrot.slane %v5678_v60, 1 }
 0x29b   :  { %v1178_v0 = vsel %vm1159_vm7, %v1175_v44, %v1177_v63  ;;  %v1066_v42 = vsel %vm1047_vm8, %v1063_v46, %v1065_v3  ;;  %v954_v12 = vsel %vm935_vm9, %v951_v49, %v953_v5  ;;  %v842_v39 = vsel %vm229_vm0, %v839_v50, %v841_v55  ;;  %v792_v46 = vld [vmem:[%s5170_s25 + $0x60] sm:$0xff]  ;;  %v791_v49 = vld [vmem:[%s5170_s25 + $0x58] sm:$0xff] }
 0x29c   :  { %v639_v61 = vpop.f32.mrf.mxu1  ;;  %4803 = vmatmul.msk.f32.gmra.mxu0 %vm306_vm2, %v1178_v0  ;;  %1323 = vmatpush.msra.mxu3 %v792_v46 }
 0x29d   :  { %v723_v58 = vadd.f32 %v722_v26, %v639_v61  ;;  %v789_v61 = vld [vmem:[%s5170_s25 + $0x48] sm:$0xff] }
 0x29e   :  { %v731_v36 = vpop.f32.mrf.mxu2  ;;  %1324 = vmatpush.msra.mxu3 %v791_v49 }
 0x29f   :  { %v5687_v6 = vmax.f32 %v723_v58, 0.0 }
 0x2a0   :  { %1325 = vmatpush.msra.mxu3 %v790_v56 }
 0x2a1   :  { %v1179_v52 = vrot.slane %v5687_v6, 4  ;;  %v1067_v48 = vrot.slane %v5687_v6, 3  ;;  %v955_v8 = vrot.slane %v5687_v6, 2  ;;  %v843_v45 = vrot.slane %v5687_v6, 1 }
 0x2a2   :  { %1326 = vmatpush.msra.mxu3 %v789_v61 }
 0x2a3   :  { %v1180_v13 = vsel %vm1159_vm7, %v1177_v63, %v1179_v52  ;;  %v1068_v34 = vsel %vm1047_vm8, %v1065_v3, %v1067_v48  ;;  %v956_v15 = vsel %vm935_vm9, %v953_v5, %v955_v8  ;;  %v844_v35 = vsel %vm229_vm0, %v841_v55, %v843_v45  ;;  %v788_v55 = vld [vmem:[%s5170_s25 + $0x40] sm:$0xff] }
 0x2a4   :  { %v642_v16 = vpop.f32.mrf.mxu1  ;;  %4804 = vmatmul.msk.f32.gmra.mxu0 %vm306_vm2, %v1180_v13  ;;  %v4985_v18 = vpack.i.bf16 %v1068_v34, %v1066_v42  ;;  %v4980_v19 = vpack.i.bf16 %v956_v15, %v954_v12  ;;  %v4975_v20 = vpack.i.bf16 %v844_v35, %v842_v39  ;;  %1327 = vmatpush.msra.mxu3 %v788_v55  ;;  %v785_v12 = vld [vmem:[%s5170_s25 + $0x28] sm:$0xff]  ;;  %v784_v35 = vld [vmem:[%s5170_s25 + $0x20] sm:$0xff] }
 0x2a5   :  { %v726_v21 = vadd.f32 %v725_v41, %v642_v16 }
 0x2a6   :  { %4986 = vrot.lane.b32.xlu2 %v4985_v18, %s5132_s5  ;;  %4981 = vrot.lane.b32.xlu1 %v4980_v19, %s5134_s13  ;;  %v734_v32 = vpop.f32.mrf.mxu2  ;;  %v783_v18 = vld [vmem:[%s5170_s25 + $0x18] sm:$0xff] }
 0x2a7   :  { %v5703_v22 = vmax.f32 %v726_v21, 0.0  ;;  %4976 = vrot.lane.b32.xlu0 %v4975_v20, %s5133_s9 }
 0x2a9   :  { %v1181_v26 = vrot.slane %v5703_v22, 4  ;;  %v1069_v40 = vrot.slane %v5703_v22, 3  ;;  %v957_v33 = vrot.slane %v5703_v22, 2  ;;  %v845_v41 = vrot.slane %v5703_v22, 1 }
 0x2ab   :  { %v1182_v30 = vsel %vm1159_vm7, %v1179_v52, %v1181_v26  ;;  %v1070_v14 = vsel %vm1047_vm8, %v1067_v48, %v1069_v40  ;;  %v958_v24 = vsel %vm935_vm9, %v955_v8, %v957_v33  ;;  %v846_v10 = vsel %vm229_vm0, %v843_v45, %v845_v41  ;;  %v787_v52 = vld [vmem:[%s5170_s25 + $0x38] sm:$0xff]  ;;  %v786_v8 = vld [vmem:[%s5170_s25 + $0x30] sm:$0xff] }
 0x2ac   :  { %v645_v31 = vpop.f32.mrf.mxu1  ;;  %4805 = vmatmul.msk.f32.gmra.mxu0 %vm306_vm2, %v1182_v30  ;;  %1328 = vmatpush.msra.mxu3 %v787_v52  ;;  %v782_v30 = vld [vmem:[%s5170_s25 + $0x10] sm:$0xff] }
 0x2ad   :  { %v729_v37 = vadd.f32 %v728_v62, %v645_v31 }
 0x2ae   :  { %v737_v3 = vpop.f32.mrf.mxu2  ;;  %1329 = vmatpush.msra.mxu3 %v786_v8 }
 0x2af   :  { %v5715_v44 = vmax.f32 %v729_v37, 0.0 }
 0x2b0   :  { %1330 = vmatpush.msra.mxu3 %v785_v12 }
 0x2b1   :  { %v1183_v50 = vrot.slane %v5715_v44, 4  ;;  %v1071_v51 = vrot.slane %v5715_v44, 3  ;;  %v959_v53 = vrot.slane %v5715_v44, 2  ;;  %v847_v54 = vrot.slane %v5715_v44, 1 }
 0x2b2   :  { %1331 = vmatpush.msra.mxu3 %v784_v35 }
 0x2b3   :  { %v1184_v17 = vsel %vm1159_vm7, %v1181_v26, %v1183_v50  ;;  %v1072_v38 = vsel %vm1047_vm8, %v1069_v40, %v1071_v51  ;;  %v960_v57 = vsel %vm935_vm9, %v957_v33, %v959_v53  ;;  %v848_v7 = vsel %vm229_vm0, %v845_v41, %v847_v54 }
 0x2b4   :  { %v648_v59 = vpop.f32.mrf.mxu1  ;;  %4806 = vmatmul.msk.f32.gmra.mxu0 %vm306_vm2, %v1184_v17  ;;  %v5000_v62 = vpack.i.bf16 %v1072_v38, %v1070_v14  ;;  %v4995_v63 = vpack.i.bf16 %v960_v57, %v958_v24  ;;  %v4990_v0 = vpack.i.bf16 %v848_v7, %v846_v10  ;;  %1332 = vmatpush.msra.mxu3 %v783_v18 }
 0x2b5   :  { %v732_v58 = vadd.f32 %v731_v36, %v648_v59 }
 0x2b6   :  { %5001 = vrot.lane.b32.xlu2 %v5000_v62, %s5132_s5  ;;  %4996 = vrot.lane.b32.xlu1 %v4995_v63, %s5134_s13  ;;  %v740_v16 = vpop.f32.mrf.mxu2 }
 0x2b7   :  { %v5735_v5 = vmax.f32 %v732_v58, 0.0  ;;  %4991 = vrot.lane.b32.xlu0 %v4990_v0, %s5133_s9  ;;  %1333 = vmatpush.msra.mxu3 %v782_v30 }
 0x2b9   :  { %v1185_v48 = vrot.slane %v5735_v5, 4  ;;  %v1073_v36 = vrot.slane %v5735_v5, 3  ;;  %v961_v13 = vrot.slane %v5735_v5, 2  ;;  %v849_v34 = vrot.slane %v5735_v5, 1 }
 0x2bb   :  { %v1186_v45 = vsel %vm1159_vm7, %v1183_v50, %v1185_v48  ;;  %v1074_v25 = vsel %vm1047_vm8, %v1071_v51, %v1073_v36  ;;  %v962_v26 = vsel %vm935_vm9, %v959_v53, %v961_v13  ;;  %v850_v29 = vsel %vm229_vm0, %v847_v54, %v849_v34  ;;  %v781_v50 = vld [vmem:[%s5170_s25 + $0x8] sm:$0xff]  ;;  %v780_v54 = vld [vmem:[%s5170_s25] sm:$0xff]  ;;  %s7735_s25 = sld [smem:[#allocation7_spill]] }
 0x2bc   :  { %v651_v42 = vpop.f32.mrf.mxu1  ;;  %4807 = vmatmul.msk.f32.gmra.mxu0 %vm306_vm2, %v1186_v45  ;;  %1334 = vmatpush.msra.mxu3 %v781_v50 }
 0x2bd   :  { %v735_v39 = vadd.f32 %v734_v32, %v651_v42 }
 0x2be   :  { %1335 = vmatpush.msra.mxu3 %v780_v54  ;;  %v743_v14 = vpop.f32.mrf.mxu2 }
 0x2bf   :  { %v5748_v15 = vmax.f32 %v735_v39, 0.0 }
 0x2c1   :  { %v1187_v19 = vrot.slane %v5748_v15, 4  ;;  %v1075_v20 = vrot.slane %v5748_v15, 3  ;;  %v963_v21 = vrot.slane %v5748_v15, 2  ;;  %v851_v23 = vrot.slane %v5748_v15, 1 }
 0x2c3   :  { %v1188_v31 = vsel %vm1159_vm7, %v1185_v48, %v1187_v19  ;;  %v1076_v32 = vsel %vm1047_vm8, %v1073_v36, %v1075_v20  ;;  %v964_v37 = vsel %vm935_vm9, %v961_v13, %v963_v21  ;;  %v852_v40 = vsel %vm229_vm0, %v849_v34, %v851_v23 }
 0x2c4   :  { %v654_v33 = vpop.f32.mrf.mxu1  ;;  %4808 = vmatmul.msk.f32.gmra.mxu0 %vm306_vm2, %v1188_v31  ;;  %v5015_v41 = vpack.i.bf16 %v1076_v32, %v1074_v25  ;;  %v5010_v46 = vpack.i.bf16 %v964_v37, %v962_v26  ;;  %v5005_v49 = vpack.i.bf16 %v852_v40, %v850_v29 }
 0x2c5   :  { %v738_v51 = vadd.f32 %v737_v3, %v654_v33 }
 0x2c6   :  { %5016 = vrot.lane.b32.xlu2 %v5015_v41, %s5132_s5  ;;  %5011 = vrot.lane.b32.xlu1 %v5010_v46, %s5134_s13  ;;  %v746_v39 = vpop.f32.mrf.mxu2 }
 0x2c7   :  { %v5768_v53 = vmax.f32 %v738_v51, 0.0  ;;  %5006 = vrot.lane.b32.xlu0 %v5005_v49, %s5133_s9 }
 0x2c9   :  { %v1189_v56 = vrot.slane %v5768_v53, 4  ;;  %v1077_v57 = vrot.slane %v5768_v53, 3  ;;  %v965_v7 = vrot.slane %v5768_v53, 2  ;;  %v853_v59 = vrot.slane %v5768_v53, 1 }
 0x2cb   :  { %v1190_v24 = vsel %vm1159_vm7, %v1187_v19, %v1189_v56  ;;  %v1078_v3 = vsel %vm1047_vm8, %v1075_v20, %v1077_v57  ;;  %v966_v52 = vsel %vm935_vm9, %v963_v21, %v965_v7  ;;  %v854_v42 = vsel %vm229_vm0, %v851_v23, %v853_v59 }
 0x2cc   :  { %v657_v10 = vpop.f32.mrf.mxu1  ;;  %4809 = vmatmul.msk.f32.gmra.mxu0 %vm306_vm2, %v1190_v24 }
 0x2cd   :  { %v741_v17 = vadd.f32 %v740_v16, %v657_v10 }
 0x2ce   :  { %v749_v29 = vpop.f32.mrf.mxu2 }
 0x2cf   :  { %v5775_v38 = vmax.f32 %v741_v17, 0.0 }
 0x2d1   :  { %v1191_v62 = vrot.slane %v5775_v38, 4  ;;  %v1079_v63 = vrot.slane %v5775_v38, 3  ;;  %v967_v0 = vrot.slane %v5775_v38, 2  ;;  %v855_v61 = vrot.slane %v5775_v38, 1 }
 0x2d3   :  { %v1192_v58 = vsel %vm1159_vm7, %v1189_v56, %v1191_v62  ;;  %v1080_v55 = vsel %vm1047_vm8, %v1077_v57, %v1079_v63  ;;  %v968_v45 = vsel %vm935_vm9, %v965_v7, %v967_v0  ;;  %v856_v12 = vsel %vm229_vm0, %v853_v59, %v855_v61 }
 0x2d4   :  { %v660_v48 = vpop.f32.mrf.mxu1  ;;  %4810 = vmatmul.msk.f32.gmra.mxu0 %vm306_vm2, %v1192_v58  ;;  %v5030_v8 = vpack.i.bf16 %v1080_v55, %v1078_v3  ;;  %v5025_v13 = vpack.i.bf16 %v968_v45, %v966_v52  ;;  %v5020_v34 = vpack.i.bf16 %v856_v12, %v854_v42 }
 0x2d5   :  { %v744_v36 = vadd.f32 %v743_v14, %v660_v48 }
 0x2d6   :  { %5031 = vrot.lane.b32.xlu2 %v5030_v8, %s5132_s5  ;;  %5026 = vrot.lane.b32.xlu1 %v5025_v13, %s5134_s13  ;;  %v752_v52 = vpop.f32.mrf.mxu2 }
 0x2d7   :  { %v5793_v35 = vmax.f32 %v744_v36, 0.0  ;;  %5021 = vrot.lane.b32.xlu0 %v5020_v34, %s5133_s9  ;;  %v5135_v34 = vmov 0  }
 0x2d8   :  { %v4917_v16 = vpop.permute.xlu0 %4916  ;;  %v4927_v30 = vpop.permute.xlu1 %4926  ;;  %5050 = vset.pattern.permute.xlu0 %v5135_v34  ;;  %5051 = vset.pattern.permute.xlu1 %v5135_v34 }
 0x2d9   :  { %v1193_v18 = vrot.slane %v5793_v35, 4  ;;  %v1081_v19 = vrot.slane %v5793_v35, 3  ;;  %v4918_v26 = vunpack.i.l.bf16 %v4917_v16  ;;  %v969_v32 = vrot.slane %v5793_v35, 2  ;;  %5052 = vset.pattern.permute.xlu2 %v5135_v34 }
 0x2da   :  { %v857_v40 = vrot.slane %v5793_v35, 1  ;;  %v4928_v49 = vunpack.i.l.bf16 %v4927_v30  ;;  %v4919_v50 = vunpack.i.h.bf16 %v4917_v16  ;;  %v4929_v42 = vunpack.i.h.bf16 %v4927_v30 }
 0x2db   :  { %v1194_v21 = vsel %vm1159_vm7, %v1191_v62, %v1193_v18  ;;  %v1082_v25 = vsel %vm1047_vm8, %v1079_v63, %v1081_v19  ;;  %v1205_v51 = vsel %vm306_vm2, %v5563_v1, %v4918_v26  ;;  %v970_v24 = vsel %vm935_vm9, %v967_v0, %v969_v32  ;;  %v5819_v63 = vpop.permute.xlu2 %4936 }
 0x2dc   :  { %v663_v20 = vpop.f32.mrf.mxu1  ;;  %4811 = vmatmul.msk.f32.gmra.mxu0 %vm306_vm2, %v1194_v21  ;;  %v858_v59 = vsel %vm229_vm0, %v855_v61, %v857_v40  ;;  %v1206_v61 = vsel %vm306_vm2, %v5565_v2, %v4919_v50 }
 0x2dd   :  { %v747_v23 = vadd.f32 %v746_v39, %v663_v20 }
 0x2de   :  { %1125 = vrot.lane.b32.xlu2 %v1082_v25, %s5132_s5 }
 0x2df   :  { %v5803_v31 = vmax.f32 %v747_v23, 0.0  ;;  %v4938_v23 = vunpack.i.l.bf16 %v5819_v63 }
 0x2e0   :  { %v4922_v37 = vpop.permute.xlu0 %4921 }
 0x2e1   :  { %v4923_v33 = vunpack.i.l.bf16 %v4922_v37  ;;  %v1195_v41 = vrot.slane %v5803_v31, 4  ;;  %v971_v46 = vrot.slane %v5803_v31, 2  ;;  %v859_v54 = vrot.slane %v5803_v31, 1 }
 0x2e2   :  { %v4924_v1 = vunpack.i.h.bf16 %v4922_v37  ;;  %v1083_v39 = vrot.slane %v5803_v31, 3 }
 0x2e3   :  { %v1196_v56 = vsel %vm1159_vm7, %v1193_v18, %v1195_v41  ;;  %v1228_v14 = vsel %vm1227_vm10, %v1205_v51, %v4923_v33  ;;  %v972_v10 = vsel %vm935_vm9, %v969_v32, %v971_v46  ;;  %v860_v62 = vsel %vm229_vm0, %v857_v40, %v859_v54  ;;  %v4942_v25 = vpop.permute.xlu2 %4941  ;;  %v755_v33 = vpop.f32.mrf.mxu2 }
 0x2e4   :  { %v666_v17 = vpop.f32.mrf.mxu1  ;;  %v1251_v57 = vsel %vm1250_vm11, %v1228_v14, %v4928_v49  ;;  %v5040_v7 = vpack.i.bf16 %v972_v10, %v970_v24  ;;  %4812 = vmatmul.msk.f32.gmra.mxu0 %vm306_vm2, %v1196_v56  ;;  %v5035_v3 = vpack.i.bf16 %v860_v62, %v858_v59  ;;  %v1229_v45 = vsel %vm1227_vm10, %v1206_v61, %v4924_v1 }
 0x2e5   :  { %v750_v58 = vadd.f32 %v749_v29, %v666_v17  ;;  %1336 = vmatmul.f32.vlgmr.msra.gmra.mxu3 %v1251_v57  ;;  %v1252_v16 = vsel %vm1250_vm11, %v1229_v45, %v4929_v42  ;;  %v1084_v20 = vsel %vm1047_vm8, %v1081_v19, %v1083_v39 }
 0x2e6   :  { %5041 = vrot.lane.b32.xlu1 %v5040_v7, %s5134_s13  ;;  %5036 = vrot.lane.b32.xlu0 %v5035_v3, %s5133_s9  ;;  %v4939_v7 = vunpack.i.h.bf16 %v5819_v63 }
 0x2e7   :  { %v5823_v0 = vmax.f32 %v750_v58, 0.0 }
 0x2e8   :  { %v4932_v55 = vpop.permute.xlu1 %4931 }
 0x2e9   :  { %v1197_v48 = vrot.slane %v5823_v0, 4  ;;  %v973_v8 = vrot.slane %v5823_v0, 2  ;;  %v4933_v12 = vunpack.i.l.bf16 %v4932_v55  ;;  %v861_v29 = vrot.slane %v5823_v0, 1 }
 0x2ea   :  { %v1085_v32 = vrot.slane %v5823_v0, 3  ;;  %v4934_v40 = vunpack.i.h.bf16 %v4932_v55 }
 0x2eb   :  { %v1198_v36 = vsel %vm1159_vm7, %v1195_v41, %v1197_v48  ;;  %v974_v13 = vsel %vm935_vm9, %v971_v46, %v973_v8  ;;  %v1207_v21 = vsel %vm306_vm2, %v5575_v9, %v4933_v12  ;;  %v4943_v9 = vunpack.i.l.bf16 %v4942_v25 }
 0x2ec   :  { %1017 = vrot.lane.b32.xlu2 %v974_v13, %s5134_s13  ;;  %v669_v2 = vpop.f32.mrf.mxu1  ;;  %4813 = vmatmul.msk.f32.gmra.mxu0 %vm306_vm2, %v1198_v36  ;;  %v1230_v37 = vsel %vm1227_vm10, %v1207_v21, %v4938_v23  ;;  %v862_v56 = vsel %vm229_vm0, %v859_v54, %v861_v29  ;;  %v1086_v17 = vsel %vm1047_vm8, %v1083_v39, %v1085_v32  ;;  %v5136_v54 = vmov 0.0  }
 0x2ed   :  { %v753_v18 = vadd.f32 %v752_v52, %v669_v2  ;;  %1339 = vmatmul.f32.gmra.mxu3 %v1252_v16  ;;  %v1253_v51 = vsel %vm1250_vm11, %v1230_v37, %v4943_v9  ;;  %v1208_v57 = vsel %vm306_vm2, %v5595_v27, %v4934_v40  ;;  %v1203_v62 = vrot.slane %v5136_v54, 4 }
 0x2ee   :  { %1127 = vrot.lane.b32.xlu0 %v1084_v20, %s5132_s5  ;;  %v1231_v55 = vsel %vm1227_vm10, %v1208_v57, %v4939_v7  ;;  %v4944_v52 = vunpack.i.h.bf16 %v4942_v25  ;;  %v1091_v13 = vrot.slane %v5136_v54, 3  ;;  %v5887_v20 = vrot.slane %v5136_v54, 1  ;;  %v1492_v57 = vld [vmem:[%s5285_s24 + $0x20] sm:$0xff] }
 0x2ef   :  { %v5843_v26 = vmax.f32 %v753_v18, 0.0  ;;  %v4957_v18 = vpop.permute.xlu2 %4956  ;;  %v5901_v9 = vrot.slane %v5136_v54, 2 }
 0x2f0   :  { %v1254_v39 = vsel %vm1250_vm11, %v1231_v55, %v4944_v52 }
 0x2f1   :  { %v1199_v30 = vrot.slane %v5843_v26, 4  ;;  %v1087_v19 = vrot.slane %v5843_v26, 3  ;;  %v863_v41 = vrot.slane %v5843_v26, 1  ;;  %v975_v63 = vrot.slane %v5843_v26, 2 }
 0x2f3   :  { %v1200_v46 = vsel %vm1159_vm7, %v1197_v48, %v1199_v30  ;;  %v1088_v49 = vsel %vm1047_vm8, %v1085_v32, %v1087_v19  ;;  %v864_v14 = vsel %vm229_vm0, %v861_v29, %v863_v41  ;;  %v976_v34 = vsel %vm935_vm9, %v973_v8, %v975_v63 }
 0x2f4   :  { %1131 = vrot.lane.b32.xlu2 %v1088_v49, %s5132_s5  ;;  %v672_v50 = vpop.f32.mrf.mxu1  ;;  %4814 = vmatmul.msk.f32.gmra.mxu0 %vm306_vm2, %v1200_v46  ;;  %v5045_v10 = vpack.i.bf16 %v864_v14, %v862_v56  ;;  %v4958_v8 = vunpack.i.l.bf16 %v4957_v18  ;;  %v4959_v46 = vunpack.i.h.bf16 %v4957_v18  ;;  %v1488_v56 = vld [vmem:[%s5285_s24] sm:$0xff] }
 0x2f5   :  { %v756_v24 = vadd.f32 %v755_v33, %v672_v50  ;;  %1342 = vmatmul.f32.gmra.mxu3 %v1253_v51 }
 0x2f6   :  { %1129 = vrot.lane.b32.xlu0 %v1086_v17, %s5132_s5  ;;  %5046 = vrot.lane.b32.xlu1 %v5045_v10, %s5133_s9 }
 0x2f7   :  { %v5863_v59 = vmax.f32 %v756_v24, 0.0  ;;  %v4972_v10 = vpop.permute.xlu2 %4971 }
 0x2f8   :  { %v4952_v61 = vpop.permute.xlu1 %4951  ;;  %v4973_v7 = vunpack.i.l.bf16 %v4972_v10 }
 0x2f9   :  { %v4947_v1 = vpop.permute.xlu0 %4946  ;;  %v1201_v58 = vrot.slane %v5863_v59, 4  ;;  %v1089_v3 = vrot.slane %v5863_v59, 3  ;;  %v865_v48 = vrot.slane %v5863_v59, 1  ;;  %v4953_v36 = vunpack.i.l.bf16 %v4952_v61 }
 0x2fa   :  { %v4948_v27 = vunpack.i.l.bf16 %v4947_v1  ;;  %v4949_v25 = vunpack.i.h.bf16 %v4947_v1  ;;  %v977_v29 = vrot.slane %v5863_v59, 2  ;;  %v4954_v32 = vunpack.i.h.bf16 %v4952_v61  ;;  %v1489_v1 = vld [vmem:[%s5285_s24 + $0x8] sm:$0xff] }
 0x2fb   :  { %v1202_v45 = vsel %vm1159_vm7, %v1199_v30, %v1201_v58  ;;  %v1090_v42 = vsel %vm1047_vm8, %v1087_v19, %v1089_v3  ;;  %v1204_v12 = vsel %vm1159_vm7, %v1201_v58, %v1203_v62  ;;  %v866_v2 = vsel %vm229_vm0, %v863_v41, %v865_v48  ;;  %v1490_v41 = vld [vmem:[%s5285_s24 + $0x10] sm:$0xff]  ;;  %v1493_v58 = vld [vmem:[%s5285_s24 + $0x28] sm:$0xff] }
 0x2fc   :  { %1133 = vrot.lane.b32.xlu2 %v1090_v42, %s5132_s5  ;;  %4815 = vmatmul.msk.f32.gmra.mxu0 %vm306_vm2, %v1202_v45  ;;  %v1209_v16 = vsel %vm306_vm2, %v5607_v47, %v4948_v27  ;;  %v1092_v23 = vsel %vm1047_vm8, %v1089_v3, %v1091_v13  ;;  %v868_v30 = vsel %vm229_vm0, %v865_v48, %v5887_v20  ;;  %v4974_v61 = vunpack.i.h.bf16 %v4972_v10  ;;  %v1491_v45 = vld [vmem:[%s5285_s24 + $0x18] sm:$0xff]  ;;  %v1496_v42 = vld [vmem:[%s5285_s24 + $0x40] sm:$0xff] }
 0x2fd   :  { %1345 = vmatmul.f32.gmra.mxu3 %v1254_v39  ;;  %4816 = vmatmul.msk.f32.vlgmr.msrb.gmra.mxu1 %vm306_vm2, %v1204_v12  ;;  %v1232_v21 = vsel %vm1227_vm10, %v1209_v16, %v4953_v36  ;;  %v978_v19 = vsel %vm935_vm9, %v975_v63, %v977_v29  ;;  %v1210_v37 = vsel %vm306_vm2, %v5623_v4, %v4949_v25  ;;  %v1494_v16 = vld [vmem:[%s5285_s24 + $0x30] sm:$0xff] }
 0x2fe   :  { %1019 = vrot.lane.b32.xlu1 %v976_v34, %s5134_s13  ;;  %909 = vrot.lane.b32.xlu0 %v866_v2, %s5133_s9  ;;  %v1255_v47 = vsel %vm1250_vm11, %v1232_v21, %v4958_v8  ;;  %v1233_v33 = vsel %vm1227_vm10, %v1210_v37, %v4954_v32  ;;  %v980_v4 = vsel %vm935_vm9, %v977_v29, %v5901_v9  ;;  %v1497_v32 = vld [vmem:[%s5285_s24 + $0x48] sm:$0xff] }
 0x2ff   :  { %v1256_v51 = vsel %vm1250_vm11, %v1233_v33, %v4959_v46  ;;  %v1499_v46 = vld [vmem:[%s5285_s24 + $0x58] sm:$0xff] }
 0x300   :  { %v4987_v36 = vpop.permute.xlu2 %4986 }
 0x301   :  { %v4988_v13 = vunpack.i.l.bf16 %v4987_v36  ;;  %v4989_v8 = vunpack.i.h.bf16 %v4987_v36  ;;  %v1505_v36 = vld [vmem:[%s5285_s24 + $0x88] sm:$0xff] }
 0x304   :  { %1135 = vrot.lane.b32.xlu2 %v1092_v23, %s5132_s5 }
 0x305   :  { %1348 = vmatmul.f32.gmra.mxu3 %v1255_v47  ;;  %v1495_v47 = vld [vmem:[%s5285_s24 + $0x38] sm:$0xff] }
 0x306   :  { %1021 = vrot.lane.b32.xlu1 %v978_v19, %s5134_s13  ;;  %911 = vrot.lane.b32.xlu0 %v868_v30, %s5133_s9 }
 0x308   :  { %v4967_v49 = vpop.permute.xlu1 %4966 }
 0x309   :  { %v4962_v40 = vpop.permute.xlu0 %4961  ;;  %v4968_v14 = vunpack.i.l.bf16 %v4967_v49  ;;  %v4969_v3 = vunpack.i.h.bf16 %v4967_v49 }
 0x30a   :  { %v4963_v50 = vunpack.i.l.bf16 %v4962_v40  ;;  %v4964_v54 = vunpack.i.h.bf16 %v4962_v40 }
 0x30c   :  { %1522 = vperm.xlu2 %5052, %v1490_v41   ;;  %v1211_v24 = vsel %vm306_vm2, %v5637_v11, %v4963_v50  ;;  %v1212_v11 = vsel %vm306_vm2, %v5653_v28, %v4964_v54  ;;  %v1500_v50 = vld [vmem:[%s5285_s24 + $0x60] sm:$0xff] }
 0x30d   :  { %1351 = vmatmul.f32.gmra.mxu3 %v1256_v51  ;;  %v1234_v17 = vsel %vm1227_vm10, %v1211_v24, %v4968_v14  ;;  %v1235_v52 = vsel %vm1227_vm10, %v1212_v11, %v4969_v3 }
 0x30e   :  { %1023 = vrot.lane.b32.xlu1 %v980_v4, %s5134_s13  ;;  %1512 = vperm.xlu0 %5050, %v1488_v56   ;;  %v1257_v62 = vsel %vm1250_vm11, %v1234_v17, %v4973_v7  ;;  %v1258_v48 = vsel %vm1250_vm11, %v1235_v52, %v4974_v61  ;;  %v1506_v61 = vld [vmem:[%s5285_s24 + $0x90] sm:$0xff] }
 0x314   :  { %1532 = vperm.xlu2 %5052, %v1492_v57   ;;  %v1503_v57 = vld [vmem:[%s5285_s24 + $0x78] sm:$0xff] }
 0x315   :  { %1354 = vmatmul.f32.gmra.mxu3 %v1257_v62 }
 0x316   :  { %1517 = vperm.xlu1 %5051, %v1489_v1   ;;  %1537 = vperm.xlu0 %5050, %v1493_v58   ;;  %v1502_v58 = vld [vmem:[%s5285_s24 + $0x70] sm:$0xff] }
 0x318   :  { %v4982_v27 = vpop.permute.xlu1 %4981 }
 0x319   :  { %v4977_v55 = vpop.permute.xlu0 %4976  ;;  %v4983_v12 = vunpack.i.l.bf16 %v4982_v27  ;;  %v4984_v18 = vunpack.i.h.bf16 %v4982_v27 }
 0x31a   :  { %v4978_v63 = vunpack.i.l.bf16 %v4977_v55  ;;  %v4979_v34 = vunpack.i.h.bf16 %v4977_v55  ;;  %v1498_v55 = vld [vmem:[%s5285_s24 + $0x50] sm:$0xff] }
 0x31c   :  { %v1213_v39 = vsel %vm306_vm2, %v5662_v43, %v4978_v63  ;;  %v1214_v21 = vsel %vm306_vm2, %v5678_v60, %v4979_v34  ;;  %1547 = vperm.xlu2 %5052, %v1495_v47   ;;  %v5002_v60 = vpop.permute.xlu2 %5001 }
 0x31d   :  { %1357 = vmatmul.f32.gmra.mxu3 %v1258_v48  ;;  %v1236_v28 = vsel %vm1227_vm10, %v1213_v39, %v4983_v12  ;;  %v1237_v43 = vsel %vm1227_vm10, %v1214_v21, %v4984_v18  ;;  %v5003_v33 = vunpack.i.l.bf16 %v5002_v60  ;;  %v5004_v14 = vunpack.i.h.bf16 %v5002_v60 }
 0x31e   :  { %1527 = vperm.xlu1 %5051, %v1491_v45   ;;  %1552 = vperm.xlu0 %5050, %v1496_v42   ;;  %v1259_v2 = vsel %vm1250_vm11, %v1236_v28, %v4988_v13  ;;  %v1260_v30 = vsel %vm1250_vm11, %v1237_v43, %v4989_v8  ;;  %v1509_v13 = vld [vmem:[%s5285_s24 + $0xa8] sm:$0xff] }
 0x324   :  { %v5017_v62 = vpop.permute.xlu2 %5016  ;;  %1562 = vperm.xlu2 %5052, %v1498_v55  }
 0x325   :  { %1360 = vmatmul.f32.gmra.mxu3 %v1259_v2  ;;  %v5018_v3 = vunpack.i.l.bf16 %v5017_v62  ;;  %v5019_v45 = vunpack.i.h.bf16 %v5017_v62 }
 0x326   :  { %1542 = vperm.xlu1 %5051, %v1494_v16   ;;  %1567 = vperm.xlu0 %5050, %v1499_v46   ;;  %v1504_v46 = vld [vmem:[%s5285_s24 + $0x80] sm:$0xff] }
 0x328   :  { %v4997_v25 = vpop.permute.xlu1 %4996 }
 0x329   :  { %v4992_v23 = vpop.permute.xlu0 %4991  ;;  %v4998_v19 = vunpack.i.l.bf16 %v4997_v25  ;;  %v4999_v51 = vunpack.i.h.bf16 %v4997_v25 }
 0x32a   :  { %v4993_v29 = vunpack.i.l.bf16 %v4992_v23  ;;  %v4994_v41 = vunpack.i.h.bf16 %v4992_v23  ;;  %v1508_v23 = vld [vmem:[%s5285_s24 + $0xa0] sm:$0xff] }
 0x32c   :  { %v1215_v37 = vsel %vm306_vm2, %v5687_v6, %v4993_v29  ;;  %v1216_v4 = vsel %vm306_vm2, %v5703_v22, %v4994_v41  ;;  %v5947_v22 = vpop.f32.mrf.mxu0  ;;  %v1501_v29 = vld [vmem:[%s5285_s24 + $0x68] sm:$0xff] }
 0x32d   :  { %1363 = vmatmul.f32.gmra.mxu3 %v1260_v30  ;;  %v1238_v40 = vsel %vm1227_vm10, %v1215_v37, %v4998_v19  ;;  %v1239_v56 = vsel %vm1227_vm10, %v1216_v4, %v4999_v51  ;;  %1577 = vperm.xlu2 %5052, %v1501_v29   ;;  %v1507_v4 = vld [vmem:[%s5285_s24 + $0x98] sm:$0xff]  ;;  %s7740_s24 = sld [smem:[#allocation11_spill]] }
 0x32e   :  { %1557 = vperm.xlu1 %5051, %v1497_v32   ;;  %v1261_v49 = vsel %vm1250_vm11, %v1238_v40, %v5003_v33  ;;  %v1262_v17 = vsel %vm1250_vm11, %v1239_v56, %v5004_v14  ;;  %1582 = vperm.xlu0 %5050, %v1502_v58  }
 0x330   :  { %v5032_v2 = vpop.permute.xlu2 %5031 }
 0x331   :  { %v5033_v18 = vunpack.i.l.bf16 %v5032_v2  ;;  %v5034_v32 = vunpack.i.h.bf16 %v5032_v2 }
 0x334   :  { %v5957_v39 = vpop.f32.mrf.mxu0 }
 0x335   :  { %1366 = vmatmul.f32.gmra.mxu3 %v1261_v49  ;;  %1592 = vperm.xlu2 %5052, %v1504_v46  }
 0x336   :  { %1572 = vperm.xlu1 %5051, %v1500_v50   ;;  %1597 = vperm.xlu0 %5050, %v1505_v36  }
 0x338   :  { %v5012_v24 = vpop.permute.xlu1 %5011  ;;  %v1126_v49 = vpop.permute.xlu2 %1125 }
 0x339   :  { %v5007_v6 = vpop.permute.xlu0 %5006  ;;  %v5013_v7 = vunpack.i.l.bf16 %v5012_v24  ;;  %v5014_v27 = vunpack.i.h.bf16 %v5012_v24 }
 0x33a   :  { %v5008_v10 = vunpack.i.l.bf16 %v5007_v6  ;;  %v5009_v11 = vunpack.i.h.bf16 %v5007_v6 }
 0x33c   :  { %v1217_v54 = vsel %vm306_vm2, %v5715_v44, %v5008_v10  ;;  %v1218_v44 = vsel %vm306_vm2, %v5735_v5, %v5009_v11  ;;  %v5967_v8 = vpop.f32.mrf.mxu0 }
 0x33d   :  { %1369 = vmatmul.f32.gmra.mxu3 %v1262_v17  ;;  %v1240_v1 = vsel %vm1227_vm10, %v1217_v54, %v5013_v7  ;;  %v1241_v48 = vsel %vm1227_vm10, %v1218_v44, %v5014_v27  ;;  %1607 = vperm.xlu2 %5052, %v1507_v4  }
 0x33e   :  { %1587 = vperm.xlu1 %5051, %v1503_v57   ;;  %v1263_v52 = vsel %vm1250_vm11, %v1240_v1, %v5018_v3  ;;  %v1264_v28 = vsel %vm1250_vm11, %v1241_v48, %v5019_v45  ;;  %1612 = vperm.xlu0 %5050, %v1508_v23  }
 0x344   :  { %v5976_v41 = vpop.f32.mrf.mxu0 }
 0x345   :  { %1372 = vmatmul.f32.gmra.mxu3 %v1263_v52 }
 0x346   :  { %1602 = vperm.xlu1 %5051, %v1506_v61   ;;  %v1018_v62 = vpop.permute.xlu2 %1017 }
 0x348   :  { %v5027_v42 = vpop.permute.xlu1 %5026 }
 0x349   :  { %v5022_v63 = vpop.permute.xlu0 %5021  ;;  %v5028_v34 = vunpack.i.l.bf16 %v5027_v42  ;;  %v5029_v25 = vunpack.i.h.bf16 %v5027_v42 }
 0x34a   :  { %v5023_v12 = vunpack.i.l.bf16 %v5022_v63  ;;  %v5024_v21 = vunpack.i.h.bf16 %v5022_v63 }
 0x34c   :  { %v1219_v5 = vsel %vm306_vm2, %v5748_v15, %v5023_v12  ;;  %v1220_v47 = vsel %vm306_vm2, %v5768_v53, %v5024_v21 }
 0x34d   :  { %1375 = vmatmul.f32.gmra.mxu3 %v1264_v28  ;;  %v1242_v16 = vsel %vm1227_vm10, %v1219_v5, %v5028_v34  ;;  %v1243_v30 = vsel %vm1227_vm10, %v1220_v47, %v5029_v25 }
 0x34e   :  { %1617 = vperm.xlu1 %5051, %v1509_v13   ;;  %v1265_v43 = vsel %vm1250_vm11, %v1242_v16, %v5033_v18  ;;  %v1266_v60 = vsel %vm1250_vm11, %v1243_v30, %v5034_v32  ;;  %v1132_v44 = vpop.permute.xlu2 %1131 }
 0x355   :  { %1378 = vmatmul.f32.gmra.mxu3 %v1265_v43 }
 0x356   :  { %v1134_v13 = vpop.permute.xlu2 %1133 }
 0x358   :  { %v5037_v15 = vpop.permute.xlu0 %5036  ;;  %v5042_v19 = vpop.permute.xlu1 %5041 }
 0x359   :  { %v5038_v37 = vunpack.i.l.bf16 %v5037_v15  ;;  %v5043_v40 = vunpack.i.l.bf16 %v5042_v19  ;;  %v5039_v50 = vunpack.i.h.bf16 %v5037_v15  ;;  %v5044_v6 = vunpack.i.h.bf16 %v5042_v19 }
 0x35b   :  { %v1221_v33 = vsel %vm306_vm2, %v5775_v38, %v5038_v37  ;;  %v1222_v24 = vsel %vm306_vm2, %v5793_v35, %v5039_v50  ;;  %v5986_v38 = vpop.f32.mrf.mxu0 }
 0x35c   :  { %v1244_v53 = vsel %vm1227_vm10, %v1221_v33, %v5043_v40  ;;  %v1245_v57 = vsel %vm1227_vm10, %v1222_v24, %v5044_v6  ;;  %v6043_v24 = vld [vmem:[%s5175_s29] ss:$0 sm:$0xff]  ;;  %s7736_s29 = sld [smem:[#allocation17_spill]] }
 0x35d   :  { %1381 = vmatmul.f32.gmra.mxu3 %v1266_v60  ;;  %v1267_v51 = vsel %vm1250_vm11, %v1244_v53, %v1126_v49 }
 0x35e   :  { %v1136_v23 = vpop.permute.xlu2 %1135 }
 0x360   :  { %v1128_v56 = vpop.permute.xlu0 %1127 }
 0x361   :  { %v1268_v7 = vsel %vm1250_vm11, %v1245_v57, %v1128_v56 }
 0x363   :  { %v5993_v35 = vpop.f32.mrf.mxu0 }
 0x365   :  { %1384 = vmatmul.f32.gmra.mxu3 %v1267_v51 }
 0x366   :  { %v6036_v4 = vpop.permute.xlu2 %1522 }
 0x368   :  { %v5982_v14 = vpop.f32.mrf.mxu3  ;;  %v5047_v10 = vpop.permute.xlu1 %5046 }
 0x369   :  { %v5048_v17 = vunpack.i.l.bf16 %v5047_v10  ;;  %v1130_v58 = vpop.permute.xlu0 %1129  ;;  %v5049_v55 = vunpack.i.h.bf16 %v5047_v10  ;;  %v1338_v57 = vadd.f32 %v6043_v24, %v5982_v14 }
 0x36b   :  { %v1223_v54 = vsel %vm306_vm2, %v5803_v31, %v5048_v17  ;;  %v1224_v61 = vsel %vm306_vm2, %v5823_v0, %v5049_v55  ;;  %v6000_v42 = vpop.f32.mrf.mxu0 }
 0x36c   :  { %v1246_v3 = vsel %vm1227_vm10, %v1223_v54, %v1018_v62 }
 0x36d   :  { %1387 = vmatmul.f32.gmra.mxu3 %v1268_v7  ;;  %v1269_v52 = vsel %vm1250_vm11, %v1246_v3, %v1130_v58 }
 0x36e   :  { %v6050_v7 = vpop.permute.xlu2 %1532 }
 0x370   :  { %v1340_v1 = vpop.f32.mrf.mxu3  ;;  %v1020_v11 = vpop.permute.xlu1 %1019 }
 0x371   :  { %v1247_v63 = vsel %vm1227_vm10, %v1224_v61, %v1020_v11  ;;  %v910_v31 = vpop.permute.xlu0 %909  ;;  %v1341_v10 = vadd.f32 %v6043_v24, %v1340_v1  ;;  %v6063_v1 = vadd.f32 %v5947_v22, %v1338_v57 }
 0x372   :  { %v1270_v45 = vsel %vm1250_vm11, %v1247_v63, %v1132_v44  ;;  %v1225_v12 = vsel %vm306_vm2, %v5843_v26, %v910_v31 }
 0x373   :  { %v6006_v2 = vpop.f32.mrf.mxu0  ;;  %v6057_v58 = vadd.f32 %v5957_v39, %v1341_v10 }
 0x375   :  { %1390 = vmatmul.f32.gmra.mxu3 %v1269_v52 }
 0x376   :  { %v6080_v63 = vpop.permute.xlu2 %1547 }
 0x378   :  { %v1343_v27 = vpop.f32.mrf.mxu3  ;;  %v1022_v48 = vpop.permute.xlu1 %1021 }
 0x379   :  { %v1248_v28 = vsel %vm1227_vm10, %v1225_v12, %v1022_v48  ;;  %v912_v34 = vpop.permute.xlu0 %911  ;;  %v1344_v3 = vadd.f32 %v6043_v24, %v1343_v27 }
 0x37a   :  { %v1271_v0 = vsel %vm1250_vm11, %v1248_v28, %v1134_v13  ;;  %v1226_v16 = vsel %vm306_vm2, %v5863_v59, %v912_v34 }
 0x37b   :  { %v6012_v25 = vpop.f32.mrf.mxu0  ;;  %v6069_v52 = vadd.f32 %v5967_v8, %v1344_v3 }
 0x37d   :  { %1393 = vmatmul.f32.gmra.mxu3 %v1270_v45  ;;  %v1622_v8 = vmul.f32 %v6036_v4, %v6069_v52 }
 0x37e   :  { %v6112_v10 = vpop.permute.xlu2 %1562 }
 0x37f   :  { %v1645_v34 = vsel %vm1227_vm10, %v1622_v8, 0.0 }
 0x380   :  { %v1346_v36 = vpop.f32.mrf.mxu3  ;;  %v1024_v5 = vpop.permute.xlu1 %1023 }
 0x381   :  { %v1249_v21 = vsel %vm1227_vm10, %v1226_v16, %v1024_v5  ;;  %v6040_v56 = vpop.permute.xlu0 %1512  ;;  %v1347_v55 = vadd.f32 %v6043_v24, %v1346_v36 }
 0x382   :  { %v1272_v26 = vsel %vm1250_vm11, %v1249_v21, %v1136_v23  ;;  %v1620_v61 = vmul.f32 %v6040_v56, %v6063_v1 }
 0x383   :  { %v6014_v47 = vpop.f32.mrf.mxu0  ;;  %v6076_v27 = vadd.f32 %v5976_v41, %v1347_v55 }
 0x384   :  { %v1642_v48 = vsel %vm1227_vm10, %v1620_v61, 0.0 }
 0x385   :  { %1396 = vmatmul.f32.gmra.mxu3 %v1271_v0 }
 0x388   :  { %v1349_v18 = vpop.f32.mrf.mxu3  ;;  %v6032_v50 = vpop.permute.xlu1 %1517 }
 0x389   :  { %v6060_v11 = vpop.permute.xlu0 %1537  ;;  %v1621_v14 = vmul.f32 %v6032_v50, %v6057_v58  ;;  %v1350_v44 = vadd.f32 %v6043_v24, %v1349_v18 }
 0x38b   :  { %v6016_v30 = vpop.f32.mrf.mxu0  ;;  %v1643_v22 = vsel %vm1227_vm10, %v1621_v14, 0.0  ;;  %v6095_v13 = vadd.f32 %v5986_v38, %v1350_v44 }
 0x38c   :  { %v1644_v41 = vadd.f32 %v1643_v22, %v1642_v48 }
 0x38d   :  { %1399 = vmatmul.f32.gmra.mxu3 %v1272_v26  ;;  %v1624_v26 = vmul.f32 %v6050_v7, %v6095_v13 }
 0x38e   :  { %v1646_v21 = vadd.f32 %v1645_v34, %v1644_v41  ;;  %v6147_v34 = vpop.permute.xlu2 %1577 }
 0x38f   :  { %v1649_v14 = vsel %vm1227_vm10, %v1624_v26, 0.0 }
 0x390   :  { %v1352_v43 = vpop.f32.mrf.mxu3  ;;  %v6046_v17 = vpop.permute.xlu1 %1527 }
 0x391   :  { %v1353_v45 = vadd.f32 %v6043_v24, %v1352_v43  ;;  %v1623_v12 = vmul.f32 %v6046_v17, %v6076_v27  ;;  %v6090_v36 = vpop.permute.xlu0 %1552 }
 0x393   :  { %v6018_v19 = vpop.f32.mrf.mxu0  ;;  %v6100_v5 = vadd.f32 %v5993_v35, %v1353_v45  ;;  %v1647_v16 = vsel %vm1227_vm10, %v1623_v12, 0.0 }
 0x395   :  { %v1625_v57 = vmul.f32 %v6060_v11, %v6100_v5 }
 0x397   :  { %v1651_v8 = vsel %vm1227_vm10, %v1625_v57, 0.0 }
 0x398   :  { %v1355_v29 = vpop.f32.mrf.mxu3  ;;  %v6073_v39 = vpop.permute.xlu1 %1542 }
 0x399   :  { %v1356_v0 = vadd.f32 %v6043_v24, %v1355_v29  ;;  %v1648_v29 = vadd.f32 %v1647_v16, %v1646_v21  ;;  %v6120_v55 = vpop.permute.xlu0 %1567 }
 0x39b   :  { %v6020_v60 = vpop.f32.mrf.mxu0  ;;  %v6109_v38 = vadd.f32 %v6000_v42, %v1356_v0  ;;  %v1650_v44 = vadd.f32 %v1649_v14, %v1648_v29 }
 0x39d   :  { %v1626_v42 = vmul.f32 %v6073_v39, %v6109_v38  ;;  %v1652_v0 = vadd.f32 %v1651_v8, %v1650_v44 }
 0x3a0   :  { %v1358_v15 = vpop.f32.mrf.mxu3  ;;  %v6104_v23 = vpop.permute.xlu1 %1557 }
 0x3a1   :  { %v1359_v18 = vadd.f32 %v6043_v24, %v1358_v15  ;;  %v6157_v26 = vpop.permute.xlu0 %1582 }
 0x3a3   :  { %v6024_v33 = vpop.f32.mrf.mxu0  ;;  %v6117_v15 = vadd.f32 %v6006_v2, %v1359_v18 }
 0x3a5   :  { %v1627_v2 = vmul.f32 %v6080_v63, %v6117_v15 }
 0x3a7   :  { %v1655_v16 = vsel %vm1227_vm10, %v1627_v2, 0.0 }
 0x3a8   :  { %v1361_v32 = vpop.f32.mrf.mxu3  ;;  %v6137_v45 = vpop.permute.xlu1 %1572 }
 0x3a9   :  { %v1362_v43 = vadd.f32 %v6043_v24, %v1361_v32 }
 0x3ab   :  { %v6028_v53 = vpop.f32.mrf.mxu0  ;;  %v6126_v32 = vadd.f32 %v6012_v25, %v1362_v43  ;;  %v1653_v25 = vsel %vm1227_vm10, %v1626_v42, 0.0 }
 0x3b0   :  { %v1364_v59 = vpop.f32.mrf.mxu3 }
 0x3b1   :  { %v1365_v3 = vadd.f32 %v6043_v24, %v1364_v59 }
 0x3b3   :  { %v6034_v51 = vpop.f32.mrf.mxu0  ;;  %v6133_v59 = vadd.f32 %v6014_v47, %v1365_v3 }
 0x3b8   :  { %v1367_v37 = vpop.f32.mrf.mxu3 }
 0x3b9   :  { %v1368_v61 = vadd.f32 %v6043_v24, %v1367_v37  ;;  %v1628_v37 = vmul.f32 %v6090_v36, %v6126_v32 }
 0x3bb   :  { %v6054_v62 = vpop.f32.mrf.mxu0  ;;  %v6143_v12 = vadd.f32 %v6016_v30, %v1368_v61  ;;  %v1654_v30 = vadd.f32 %v1653_v25, %v1652_v0  ;;  %v6183_v25 = vpop.permute.xlu1 %1587 }
 0x3bd   :  { %v1630_v43 = vmul.f32 %v6112_v10, %v6143_v12  ;;  %v1656_v3 = vadd.f32 %v1655_v16, %v1654_v30 }
 0x3c0   :  { %v6022_v40 = vpop.f32.mrf.mxu3 }
 0x3c1   :  { %v1371_v48 = vadd.f32 %v6043_v24, %v6022_v40  ;;  %v1629_v40 = vmul.f32 %v6104_v23, %v6133_v59 }
 0x3c3   :  { %v6092_v28 = vpop.f32.mrf.mxu0  ;;  %v6153_v18 = vadd.f32 %v6018_v19, %v1371_v48  ;;  %v1659_v19 = vsel %vm1227_vm10, %v1629_v40, 0.0 }
 0x3c8   :  { %v6026_v46 = vpop.f32.mrf.mxu3 }
 0x3c9   :  { %v1374_v41 = vadd.f32 %v6043_v24, %v6026_v46  ;;  %v1657_v46 = vsel %vm1227_vm10, %v1628_v37, 0.0 }
 0x3ca   :  { %v1658_v61 = vadd.f32 %v1657_v46, %v1656_v3 }
 0x3cb   :  { %v1474_v22 = vpop.f32.mrf.mxu0  ;;  %v6163_v29 = vadd.f32 %v6020_v60, %v1374_v41  ;;  %v1661_v60 = vsel %vm1227_vm10, %v1630_v43, 0.0  ;;  %v6201_v43 = vpop.permute.xlu0 %1597 }
 0x3cc   :  { %v1660_v48 = vadd.f32 %v1659_v19, %v1658_v61 }
 0x3cd   :  { %v1632_v8 = vmul.f32 %v6137_v45, %v6163_v29 }
 0x3ce   :  { %v1662_v16 = vadd.f32 %v1661_v60, %v1660_v48 }
 0x3cf   :  { %v1665_v40 = vsel %vm1227_vm10, %v1632_v8, 0.0 }
 0x3d0   :  { %v6030_v49 = vpop.f32.mrf.mxu3 }
 0x3d1   :  { %v1377_v21 = vadd.f32 %v6043_v24, %v6030_v49  ;;  %v1631_v49 = vmul.f32 %v6120_v55, %v6153_v18 }
 0x3d3   :  { %v6171_v14 = vadd.f32 %v6024_v33, %v1377_v21  ;;  %v1477_v44 = vpop.f32.mrf.mxu0  ;;  %v1663_v37 = vsel %vm1227_vm10, %v1631_v49, 0.0 }
 0x3d4   :  { %v1664_v46 = vadd.f32 %v1663_v37, %v1662_v16 }
 0x3d6   :  { %v1666_v19 = vadd.f32 %v1665_v40, %v1664_v46 }
 0x3d8   :  { %v6038_v6 = vpop.f32.mrf.mxu3 }
 0x3d9   :  { %v1380_v57 = vadd.f32 %v6043_v24, %v6038_v6 }
 0x3db   :  { %v6179_v6 = vadd.f32 %v6028_v53, %v1380_v57  ;;  %v6192_v53 = vpop.permute.xlu2 %1592  ;;  %v1480_v48 = vpop.f32.mrf.mxu0 }
 0x3e0   :  { %v6052_v54 = vpop.f32.mrf.mxu3 }
 0x3e1   :  { %v1383_v42 = vadd.f32 %v6043_v24, %v6052_v54  ;;  %v1633_v54 = vmul.f32 %v6147_v34, %v6171_v14 }
 0x3e3   :  { %v6189_v41 = vadd.f32 %v6034_v51, %v1383_v42  ;;  %v1667_v51 = vsel %vm1227_vm10, %v1633_v54, 0.0  ;;  %v6228_v40 = vpop.permute.xlu2 %1607 }
 0x3e4   :  { %v1668_v42 = vadd.f32 %v1667_v51, %v1666_v19 }
 0x3e8   :  { %v6082_v31 = vpop.f32.mrf.mxu3 }
 0x3e9   :  { %v1386_v2 = vadd.f32 %v6043_v24, %v6082_v31  ;;  %v1634_v31 = vmul.f32 %v6157_v26, %v6179_v6 }
 0x3eb   :  { %v6198_v21 = vadd.f32 %v6054_v62, %v1386_v2  ;;  %v1669_v49 = vsel %vm1227_vm10, %v1634_v31, 0.0 }
 0x3ec   :  { %v1670_v37 = vadd.f32 %v1669_v49, %v1668_v42  ;;  %v1483_v42 = vpop.f32.mrf.mxu1 }
 0x3ed   :  { %v1636_v62 = vmul.f32 %v6192_v53, %v6198_v21 }
 0x3ef   :  { %v1673_v54 = vsel %vm1227_vm10, %v1636_v62, 0.0 }
 0x3f0   :  { %v1388_v35 = vpop.f32.mrf.mxu3 }
 0x3f1   :  { %v1389_v0 = vadd.f32 %v6043_v24, %v1388_v35  ;;  %v1635_v35 = vmul.f32 %v6183_v25, %v6189_v41 }
 0x3f3   :  { %v6207_v57 = vadd.f32 %v6092_v28, %v1389_v0  ;;  %v1671_v60 = vsel %vm1227_vm10, %v1635_v35, 0.0 }
 0x3f4   :  { %v1672_v16 = vadd.f32 %v1671_v60, %v1670_v37 }
 0x3f5   :  { %v1637_v8 = vmul.f32 %v6201_v43, %v6207_v57 }
 0x3f6   :  { %v1674_v46 = vadd.f32 %v1673_v54, %v1672_v16 }
 0x3f7   :  { %v1675_v31 = vsel %vm1227_vm10, %v1637_v8, 0.0 }
 0x3f8   :  { %v1391_v47 = vpop.f32.mrf.mxu3 }
 0x3f9   :  { %v1392_v30 = vadd.f32 %v6043_v24, %v1391_v47 }
 0x3fb   :  { %v6213_v47 = vadd.f32 %v1474_v22, %v1392_v30  ;;  %v6233_v30 = vpop.permute.xlu0 %1612 }
 0x400   :  { %v1394_v33 = vpop.f32.mrf.mxu3 }
 0x401   :  { %v1395_v3 = vadd.f32 %v6043_v24, %v1394_v33  ;;  %v6221_v33 = vpop.permute.xlu1 %1602 }
 0x402   :  { %v1638_v22 = vmul.f32 %v6221_v33, %v6213_v47 }
 0x403   :  { %v6218_v2 = vadd.f32 %v1477_v44, %v1395_v3  ;;  %v1676_v3 = vadd.f32 %v1675_v31, %v1674_v46 }
 0x404   :  { %v1677_v51 = vsel %vm1227_vm10, %v1638_v22, 0.0 }
 0x405   :  { %v1639_v44 = vmul.f32 %v6228_v40, %v6218_v2 }
 0x407   :  { %v1679_v49 = vsel %vm1227_vm10, %v1639_v44, 0.0 }
 0x408   :  { %v1397_v61 = vpop.f32.mrf.mxu3 }
 0x409   :  { %v1398_v28 = vadd.f32 %v6043_v24, %v1397_v61  ;;  %v1678_v61 = vadd.f32 %v1677_v51, %v1676_v3 }
 0x40b   :  { %v6226_v0 = vadd.f32 %v1480_v48, %v1398_v28  ;;  %v6243_v28 = vpop.permute.xlu1 %1617  ;;  %v1680_v48 = vadd.f32 %v1679_v49, %v1678_v61 }
 0x40d   :  { %v1640_v35 = vmul.f32 %v6233_v30, %v6226_v0 }
 0x40f   :  { %v1681_v60 = vsel %vm1227_vm10, %v1640_v35, 0.0 }
 0x410   :  { %v1400_v19 = vpop.f32.mrf.mxu3  ;;  %v1682_v54 = vadd.f32 %v1681_v60, %v1680_v48 }
 0x411   :  { %v1401_v62 = vadd.f32 %v6043_v24, %v1400_v19 }
 0x413   :  { %v6241_v8 = vadd.f32 %v1483_v42, %v1401_v62 }
 0x415   :  { %v1641_v37 = vmul.f32 %v6243_v28, %v6241_v8 }
 0x417   :  { %v1683_v22 = vsel %vm1227_vm10, %v1641_v37, 0.0 }
 0x418   :  { %v1684_v16 = vadd.f32 %v1683_v22, %v1682_v54 }
 0x41a   :  { %v1685_v31 = vrot.slane %v1684_v16, 4 }
 0x41c   :  { %v1686_v44 = vadd.f32 %v1685_v31, %v1684_v16 }
 0x41e   :  { %v1687_v46 = vrot.slane %v1686_v44, 2 }
 0x420   :  { %v1688_v24 = vadd.f32 %v1687_v46, %v1686_v44 }
 0x422   :  { %v1689_v19 = vrot.slane %v1688_v24, 1 }
 0x424   :  { %v1690_v51 = vadd.f32 %v1689_v19, %v1688_v24 }
 0x426   :  { %v6248_v3 = vmul.f32 0.0069444445, %v1690_v51 }
 0x428   :  { %v1692_v35 = vsub.f32 %v6063_v1, %v6248_v3  ;;  %v1693_v49 = vsub.f32 %v6057_v58, %v6248_v3  ;;  %v1694_v62 = vsub.f32 %v6069_v52, %v6248_v3  ;;  %v1695_v42 = vsub.f32 %v6076_v27, %v6248_v3 }
 0x429   :  { %v1696_v48 = vsub.f32 %v6095_v13, %v6248_v3  ;;  %v1697_v54 = vsub.f32 %v6100_v5, %v6248_v3  ;;  %v1698_v44 = vsub.f32 %v6109_v38, %v6248_v3 }
 0x42a   :  { %v1714_v61 = vmul.f32 %v1692_v35, %v6040_v56  ;;  %v1715_v60 = vmul.f32 %v1693_v49, %v6032_v50  ;;  %v1716_v37 = vmul.f32 %v1694_v62, %v6036_v4  ;;  %v1717_v22 = vmul.f32 %v1695_v42, %v6046_v17 }
 0x42b   :  { %v1718_v46 = vmul.f32 %v1696_v48, %v6050_v7  ;;  %v1699_v50 = vsub.f32 %v6117_v15, %v6248_v3  ;;  %v1719_v24 = vmul.f32 %v1697_v54, %v6060_v11  ;;  %v1700_v17 = vsub.f32 %v6126_v32, %v6248_v3 }
 0x42c   :  { %v1736_v16 = vmul.f32 %v1714_v61, %v1714_v61  ;;  %v1737_v31 = vmul.f32 %v1715_v60, %v1715_v60  ;;  %v1738_v56 = vmul.f32 %v1716_v37, %v1716_v37  ;;  %v1739_v19 = vmul.f32 %v1717_v22, %v1717_v22 }
 0x42d   :  { %v1720_v49 = vmul.f32 %v1698_v44, %v6073_v39  ;;  %v1740_v62 = vmul.f32 %v1718_v46, %v1718_v46  ;;  %v1701_v61 = vsub.f32 %v6133_v59, %v6248_v3  ;;  %v1721_v11 = vmul.f32 %v1699_v50, %v6080_v63 }
 0x42e   :  { %v1758_v4 = vsel %vm1227_vm10, %v1736_v16, 0.0  ;;  %v1759_v51 = vsel %vm1227_vm10, %v1737_v31, 0.0  ;;  %v1761_v7 = vsel %vm1227_vm10, %v1738_v56, 0.0  ;;  %v1741_v60 = vmul.f32 %v1719_v24, %v1719_v24 }
 0x42f   :  { %v1760_v35 = vadd.f32 %v1759_v51, %v1758_v4  ;;  %v1763_v48 = vsel %vm1227_vm10, %v1739_v19, 0.0  ;;  %v1702_v54 = vsub.f32 %v6143_v12, %v6248_v3  ;;  %v1722_v22 = vmul.f32 %v1700_v17, %v6090_v36 }
 0x430   :  { %v1742_v16 = vmul.f32 %v1720_v49, %v1720_v49  ;;  %v1765_v39 = vsel %vm1227_vm10, %v1740_v62, 0.0  ;;  %v1703_v44 = vsub.f32 %v6153_v18, %v6248_v3  ;;  %v1723_v46 = vmul.f32 %v1701_v61, %v6104_v23 }
 0x431   :  { %v1762_v42 = vadd.f32 %v1761_v7, %v1760_v35  ;;  %v1743_v56 = vmul.f32 %v1721_v11, %v1721_v11  ;;  %v1767_v63 = vsel %vm1227_vm10, %v1741_v60, 0.0  ;;  %v1704_v24 = vsub.f32 %v6163_v29, %v6248_v3 }
 0x432   :  { %v1724_v19 = vmul.f32 %v1702_v54, %v6112_v10  ;;  %v1744_v4 = vmul.f32 %v1722_v22, %v1722_v22  ;;  %v1769_v36 = vsel %vm1227_vm10, %v1742_v16, 0.0  ;;  %v1705_v35 = vsub.f32 %v6171_v14, %v6248_v3 }
 0x433   :  { %v1764_v37 = vadd.f32 %v1763_v48, %v1762_v42  ;;  %v1725_v17 = vmul.f32 %v1703_v44, %v6120_v55  ;;  %v1745_v49 = vmul.f32 %v1723_v46, %v1723_v46  ;;  %v1771_v23 = vsel %vm1227_vm10, %v1743_v56, 0.0 }
 0x434   :  { %v1706_v7 = vsub.f32 %v6179_v6, %v6248_v3  ;;  %v1726_v42 = vmul.f32 %v1704_v24, %v6137_v45  ;;  %v1746_v61 = vmul.f32 %v1724_v19, %v1724_v19  ;;  %v1773_v10 = vsel %vm1227_vm10, %v1744_v4, 0.0 }
 0x435   :  { %v1766_v31 = vadd.f32 %v1765_v39, %v1764_v37  ;;  %v1707_v60 = vsub.f32 %v6189_v41, %v6248_v3  ;;  %v1727_v48 = vmul.f32 %v1705_v35, %v6147_v34  ;;  %v1747_v37 = vmul.f32 %v1725_v17, %v1725_v17 }
 0x436   :  { %v1775_v55 = vsel %vm1227_vm10, %v1745_v49, 0.0  ;;  %v1708_v22 = vsub.f32 %v6198_v21, %v6248_v3  ;;  %v1728_v16 = vmul.f32 %v1706_v7, %v6157_v26  ;;  %v1748_v39 = vmul.f32 %v1726_v42, %v1726_v42 }
 0x437   :  { %v1768_v50 = vadd.f32 %v1767_v63, %v1766_v31  ;;  %v1777_v45 = vsel %vm1227_vm10, %v1746_v61, 0.0  ;;  %v1709_v44 = vsub.f32 %v6207_v57, %v6248_v3  ;;  %v1729_v46 = vmul.f32 %v1707_v60, %v6183_v25 }
 0x438   :  { %v1749_v56 = vmul.f32 %v1727_v48, %v1727_v48  ;;  %v1779_v34 = vsel %vm1227_vm10, %v1747_v37, 0.0  ;;  %v1730_v24 = vmul.f32 %v1708_v22, %v6192_v53  ;;  %v1750_v19 = vmul.f32 %v1728_v16, %v1728_v16 }
 0x439   :  { %v1770_v51 = vadd.f32 %v1769_v36, %v1768_v50  ;;  %v1710_v50 = vsub.f32 %v6213_v47, %v6248_v3  ;;  %v1781_v26 = vsel %vm1227_vm10, %v1748_v39, 0.0  ;;  %v1711_v36 = vsub.f32 %v6218_v2, %v6248_v3 }
 0x43a   :  { %v1751_v35 = vmul.f32 %v1729_v46, %v1729_v46  ;;  %v1783_v25 = vsel %vm1227_vm10, %v1749_v56, 0.0  ;;  %v1712_v49 = vsub.f32 %v6226_v0, %v6248_v3  ;;  %v1785_v53 = vsel %vm1227_vm10, %v1750_v19, 0.0 }
 0x43b   :  { %v1772_v62 = vadd.f32 %v1771_v23, %v1770_v51  ;;  %v1731_v51 = vmul.f32 %v1709_v44, %v6201_v43  ;;  %v1732_v23 = vmul.f32 %v1710_v50, %v6221_v33  ;;  %v1713_v42 = vsub.f32 %v6241_v8, %v6248_v3 }
 0x43c   :  { %v1733_v61 = vmul.f32 %v1711_v36, %v6228_v40  ;;  %v1787_v43 = vsel %vm1227_vm10, %v1751_v35, 0.0  ;;  %v1734_v60 = vmul.f32 %v1712_v49, %v6233_v30 }
 0x43d   :  { %v1774_v11 = vadd.f32 %v1773_v10, %v1772_v62  ;;  %v1752_v62 = vmul.f32 %v1730_v24, %v1730_v24  ;;  %v1753_v10 = vmul.f32 %v1731_v51, %v1731_v51  ;;  %v1754_v48 = vmul.f32 %v1732_v23, %v1732_v23 }
 0x43e   :  { %v1735_v33 = vmul.f32 %v1713_v42, %v6243_v28  ;;  %v1756_v39 = vmul.f32 %v1734_v60, %v1734_v60 }
 0x43f   :  { %v1776_v54 = vadd.f32 %v1775_v55, %v1774_v11  ;;  %v1789_v37 = vsel %vm1227_vm10, %v1752_v62, 0.0  ;;  %v1791_v22 = vsel %vm1227_vm10, %v1753_v10, 0.0  ;;  %v1486_v62 = vld [vmem:[%s5180_s3] sm:$0x1]  ;;  %s7737_s3 = sld [smem:[#allocation8_spill]] }
 0x440   :  { %v1797_v30 = vsel %vm1227_vm10, %v1756_v39, 0.0 }
 0x441   :  { %v1778_v31 = vadd.f32 %v1777_v45, %v1776_v54  ;;  %v1755_v54 = vmul.f32 %v1733_v61, %v1733_v61  ;;  %v1793_v45 = vsel %vm1227_vm10, %v1754_v48, 0.0  ;;  %v1487_v61 = vld [vmem:[%s5185_s8] sm:$0x1]  ;;  %s7738_s8 = sld [smem:[#allocation9_spill]] }
 0x443   :  { %v1780_v63 = vadd.f32 %v1779_v34, %v1778_v31  ;;  %v1757_v31 = vmul.f32 %v1735_v33, %v1735_v33  ;;  %v1795_v44 = vsel %vm1227_vm10, %v1755_v54, 0.0 }
 0x445   :  { %v1782_v4 = vadd.f32 %v1781_v26, %v1780_v63  ;;  %v1799_v34 = vsel %vm1227_vm10, %v1757_v31, 0.0 }
 0x447   :  { %v1784_v17 = vadd.f32 %v1783_v25, %v1782_v4 }
 0x449   :  { %v1786_v7 = vadd.f32 %v1785_v53, %v1784_v17 }
 0x44b   :  { %v1788_v11 = vadd.f32 %v1787_v43, %v1786_v7 }
 0x44d   :  { %v1790_v55 = vadd.f32 %v1789_v37, %v1788_v11 }
 0x44f   :  { %v1792_v16 = vadd.f32 %v1791_v22, %v1790_v55 }
 0x451   :  { %v1794_v40 = vadd.f32 %v1793_v45, %v1792_v16 }
 0x453   :  { %v1796_v46 = vadd.f32 %v1795_v44, %v1794_v40 }
 0x455   :  { %v1798_v56 = vadd.f32 %v1797_v30, %v1796_v46 }
 0x457   :  { %v1800_v63 = vadd.f32 %v1799_v34, %v1798_v56  ;;  %v1871_v56 = vld [vmem:[%s5265_s27 + $0x8] sm:$0xff] }
 0x459   :  { %v1801_v28 = vrot.slane %v1800_v63, 4 }
 0x45b   :  { %v1802_v50 = vadd.f32 %v1801_v28, %v1800_v63 }
 0x45d   :  { %v1803_v24 = vrot.slane %v1802_v50, 2 }
 0x45f   :  { %v1804_v19 = vadd.f32 %v1803_v24, %v1802_v50  ;;  %v1873_v24 = vld [vmem:[%s5265_s27 + $0x18] sm:$0xff] }
 0x461   :  { %v1805_v26 = vrot.slane %v1804_v19, 1 }
 0x463   :  { %v1806_v4 = vadd.f32 %v1805_v26, %v1804_v19 }
 0x465   :  { %v1807_v36 = vmul.f32 0.0069444445, %v1806_v4 }
 0x467   :  { %v1808_v51 = vadd.f32 1e-05, %v1807_v36 }
 0x469   :  { %5059 = vrsqrt.f32 %v1808_v51  ;;  %vm1815_vm13 = vweird.f32 %v1808_v51 }
 0x46f   :  { %v5060_v35 = vpop.eup %5059 }
 0x470   :  { %v1810_v25 = vmul.f32 %v5060_v35, %v1808_v51  ;;  %vm1816_vm12 = vweird.f32 %v5060_v35  ;;  %v1875_v51 = vld [vmem:[%s5265_s27 + $0x28] sm:$0xff] }
 0x471   :  { %vm1817_vm14 = vmor %vm1815_vm13, %vm1816_vm12  ;;  %vm3222_vm12 = vcmask 1040384  }
 0x472   :  { %v1811_v17 = vmul.f32 %v5060_v35, %v1810_v25  ;;  %v1870_v25 = vld [vmem:[%s5265_s27] sm:$0xff] }
 0x474   :  { %v1812_v49 = vmul.f32 0.5, %v1811_v17  ;;  %v1872_v17 = vld [vmem:[%s5265_s27 + $0x10] sm:$0xff] }
 0x476   :  { %v1813_v23 = vsub.f32 1.5, %v1812_v49  ;;  %v1879_v49 = vld [vmem:[%s5265_s27 + $0x48] sm:$0xff] }
 0x478   :  { %v1814_v53 = vmul.f32 %v5060_v35, %v1813_v23  ;;  %v1881_v23 = vld [vmem:[%s5265_s27 + $0x58] sm:$0xff] }
 0x47a   :  { %v1818_v7 = vsel %vm1817_vm14, %v5060_v35, %v1814_v53  ;;  %v1883_v53 = vld [vmem:[%s5265_s27 + $0x68] sm:$0xff] }
 0x47b   :  { %v1819_v42 = vmul.f32 %v1818_v7, %v1486_v62  ;;  %v1876_v62 = vld [vmem:[%s5265_s27 + $0x30] sm:$0xff]  ;;  %v1878_v7 = vld [vmem:[%s5265_s27 + $0x40] sm:$0xff] }
 0x47d   :  { %v6340_v10 = vperm.slane %v1819_v42, 0  ;;  %v1843_v43 = vmul.f32 %v1819_v42, %v6248_v3  ;;  %v1885_v42 = vld [vmem:[%s5265_s27 + $0x78] sm:$0xff] }
 0x47f   :  { %v1844_v11 = vsub.f32 %v1487_v61, %v1843_v43  ;;  %v1842_v60 = vmul.f32 %v6340_v10, %v6241_v8  ;;  %v1836_v37 = vmul.f32 %v6340_v10, %v6189_v41  ;;  %v1835_v54 = vmul.f32 %v6340_v10, %v6179_v6  ;;  %v1880_v61 = vld [vmem:[%s5265_s27 + $0x50] sm:$0xff]  ;;  %v1882_v43 = vld [vmem:[%s5265_s27 + $0x60] sm:$0xff] }
 0x480   :  { %v1841_v22 = vmul.f32 %v6340_v10, %v6226_v0  ;;  %v1834_v3 = vmul.f32 %v6340_v10, %v6171_v14  ;;  %v1840_v41 = vmul.f32 %v6340_v10, %v6218_v2  ;;  %v1833_v39 = vmul.f32 %v6340_v10, %v6163_v29 }
 0x481   :  { %v6345_v48 = vperm.slane %v1844_v11, 0  ;;  %v1839_v14 = vmul.f32 %v6340_v10, %v6213_v47  ;;  %v1832_v45 = vmul.f32 %v6340_v10, %v6153_v18  ;;  %v1838_v29 = vmul.f32 %v6340_v10, %v6207_v57  ;;  %v1889_v11 = vld [vmem:[%s5265_s27 + $0x98] sm:$0xff] }
 0x482   :  { %v1831_v31 = vmul.f32 %v6340_v10, %v6143_v12  ;;  %v1837_v18 = vmul.f32 %v6340_v10, %v6198_v21  ;;  %v1830_v57 = vmul.f32 %v6340_v10, %v6133_v59  ;;  %v1829_v34 = vmul.f32 %v6340_v10, %v6126_v32 }
 0x483   :  { %v1863_v55 = vadd.f32 %v6345_v48, %v1836_v37  ;;  %v1869_v33 = vadd.f32 %v6345_v48, %v1842_v60  ;;  %v1862_v8 = vadd.f32 %v6345_v48, %v1835_v54  ;;  %v1868_v16 = vadd.f32 %v6345_v48, %v1841_v22  ;;  %v1884_v60 = vld [vmem:[%s5265_s27 + $0x70] sm:$0xff]  ;;  %v1886_v37 = vld [vmem:[%s5265_s27 + $0x80] sm:$0xff] }
 0x484   :  { %v1861_v6 = vadd.f32 %v6345_v48, %v1834_v3  ;;  %v1867_v0 = vadd.f32 %v6345_v48, %v1840_v41  ;;  %v1860_v2 = vadd.f32 %v6345_v48, %v1833_v39  ;;  %v1866_v40 = vadd.f32 %v6345_v48, %v1839_v14  ;;  %v1890_v54 = vld [vmem:[%s5265_s27 + $0xa0] sm:$0xff]  ;;  %v1892_v22 = vld [vmem:[%s5265_s27 + $0xb0] sm:$0xff]  ;;  %v2070_v41 = vld [vmem:[%s5190_s14 + $0xa8] sm:$0xff] }
 0x485   :  { %1931 = vmatpush.msrb.mxu2 %v1863_v55  ;;  %1994 = vmatpush.msra.mxu1 %v1869_v33  ;;  %v1859_v47 = vadd.f32 %v6345_v48, %v1832_v45  ;;  %v1865_v44 = vadd.f32 %v6345_v48, %v1838_v29  ;;  %v1858_v46 = vadd.f32 %v6345_v48, %v1831_v31  ;;  %v1893_v55 = vld [vmem:[%s5265_s27 + $0xb8] sm:$0xff]  ;;  %v1888_v33 = vld [vmem:[%s5265_s27 + $0x90] sm:$0xff]  ;;  %v2069_v39 = vld [vmem:[%s5190_s14 + $0xa0] sm:$0xff] }
 0x486   :  { %v1864_v30 = vadd.f32 %v6345_v48, %v1837_v18  ;;  %v1857_v12 = vadd.f32 %v6345_v48, %v1830_v57  ;;  %v1856_v21 = vadd.f32 %v6345_v48, %v1829_v34  ;;  %v1828_v63 = vmul.f32 %v6340_v10, %v6117_v15  ;;  %v2067_v14 = vld [vmem:[%s5190_s14 + $0x90] sm:$0xff]  ;;  %v2066_v45 = vld [vmem:[%s5190_s14 + $0x88] sm:$0xff] }
 0x487   :  { %1932 = vmatpush.msrb.mxu2 %v1862_v8  ;;  %1995 = vmatpush.msra.mxu1 %v1868_v16  ;;  %v1827_v28 = vmul.f32 %v6340_v10, %v6109_v38  ;;  %v1826_v32 = vmul.f32 %v6340_v10, %v6100_v5  ;;  %v1825_v15 = vmul.f32 %v6340_v10, %v6095_v13  ;;  %v2072_v8 = vld [vmem:[%s5190_s14 + $0xb8] sm:$0xff]  ;;  %v2071_v16 = vld [vmem:[%s5190_s14 + $0xb0] sm:$0xff] }
 0x488   :  { %v1855_v59 = vadd.f32 %v6345_v48, %v1828_v63  ;;  %v1824_v26 = vmul.f32 %v6340_v10, %v6076_v27  ;;  %v1823_v4 = vmul.f32 %v6340_v10, %v6069_v52  ;;  %v1822_v36 = vmul.f32 %v6340_v10, %v6057_v58  ;;  %v1877_v58 = vld [vmem:[%s5265_s27 + $0x38] sm:$0xff] }
 0x489   :  { %1933 = vmatpush.msrb.mxu2 %v1861_v6  ;;  %1996 = vmatpush.msra.mxu1 %v1867_v0  ;;  %v1854_v50 = vadd.f32 %v6345_v48, %v1827_v28  ;;  %v1853_v19 = vadd.f32 %v6345_v48, %v1826_v32  ;;  %v1852_v38 = vadd.f32 %v6345_v48, %v1825_v15  ;;  %v2068_v0 = vld [vmem:[%s5190_s14 + $0x98] sm:$0xff] }
 0x48a   :  { %v1851_v5 = vadd.f32 %v6345_v48, %v1824_v26  ;;  %v1850_v13 = vadd.f32 %v6345_v48, %v1823_v4  ;;  %v1849_v27 = vadd.f32 %v6345_v48, %v1822_v36  ;;  %v1821_v35 = vmul.f32 %v6340_v10, %v6063_v1  ;;  %v1874_v1 = vld [vmem:[%s5265_s27 + $0x20] sm:$0xff]  ;;  %v1887_v10 = vld [vmem:[%s5265_s27 + $0x88] sm:$0xff] }
 0x48b   :  { %1934 = vmatpush.msrb.mxu2 %v1860_v2  ;;  %1997 = vmatpush.msra.mxu1 %v1866_v40  ;;  %v2065_v2 = vld [vmem:[%s5190_s14 + $0x80] sm:$0xff] }
 0x48c   :  { %v1848_v52 = vadd.f32 %v6345_v48, %v1821_v35  ;;  %v1891_v48 = vld [vmem:[%s5265_s27 + $0xa8] sm:$0xff]  ;;  %s7746_s27 = sld [smem:[#allocation15_spill]] }
 0x48d   :  { %1935 = vmatpush.msrb.mxu2 %v1859_v47  ;;  %1998 = vmatpush.msra.mxu1 %v1865_v44 }
 0x48f   :  { %1936 = vmatpush.msrb.mxu2 %v1858_v46  ;;  %1999 = vmatpush.msra.mxu1 %v1864_v30 }
 0x490   :  { %4817 = vmatmul.msk.f32.vlgmr.msra.gmra.mxu1 %vm1894_vm15, %v1871_v56 }
 0x491   :  { %1937 = vmatpush.msrb.mxu2 %v1857_v12 }
 0x493   :  { %1938 = vmatpush.msrb.mxu2 %v1856_v21 }
 0x495   :  { %1939 = vmatpush.msrb.mxu2 %v1855_v59 }
 0x497   :  { %1940 = vmatpush.msrb.mxu2 %v1854_v50 }
 0x498   :  { %4818 = vmatmul.msk.f32.gmra.mxu1 %vm1894_vm15, %v1873_v24 }
 0x499   :  { %1941 = vmatpush.msrb.mxu2 %v1853_v19 }
 0x49b   :  { %1942 = vmatpush.msrb.mxu2 %v1852_v38 }
 0x49d   :  { %1943 = vmatpush.msrb.mxu2 %v1851_v5 }
 0x49f   :  { %1944 = vmatpush.msrb.mxu2 %v1850_v13 }
 0x4a0   :  { %4819 = vmatmul.msk.f32.gmra.mxu1 %vm1894_vm15, %v1875_v51 }
 0x4a1   :  { %1945 = vmatpush.msrb.mxu2 %v1849_v27 }
 0x4a3   :  { %1946 = vmatpush.msrb.mxu2 %v1848_v52 }
 0x4a4   :  { %1947 = vmatmul.f32.vlgmr.msrb.gmra.mxu2 %v1870_v25 }
 0x4a5   :  { %2270 = vmatpush.msra.mxu2 %v2072_v8  ;;  %v2062_v8 = vld [vmem:[%s5190_s14 + $0x68] sm:$0xff] }
 0x4a7   :  { %2271 = vmatpush.msra.mxu2 %v2071_v16  ;;  %v2061_v16 = vld [vmem:[%s5190_s14 + $0x60] sm:$0xff] }
 0x4a8   :  { %4820 = vmatmul.msk.f32.gmra.mxu1 %vm1894_vm15, %v1877_v58 }
 0x4a9   :  { %2272 = vmatpush.msra.mxu2 %v2070_v41 }
 0x4ab   :  { %2273 = vmatpush.msra.mxu2 %v2069_v39  ;;  %v2060_v39 = vld [vmem:[%s5190_s14 + $0x58] sm:$0xff] }
 0x4ac   :  { %1950 = vmatmul.f32.gmra.mxu2 %v1872_v17 }
 0x4ad   :  { %2274 = vmatpush.msra.mxu2 %v2068_v0 }
 0x4af   :  { %2275 = vmatpush.msra.mxu2 %v2067_v14 }
 0x4b0   :  { %4821 = vmatmul.msk.f32.gmra.mxu1 %vm1894_vm15, %v1879_v49 }
 0x4b1   :  { %2276 = vmatpush.msra.mxu2 %v2066_v45 }
 0x4b3   :  { %2277 = vmatpush.msra.mxu2 %v2065_v2  ;;  %v2059_v2 = vld [vmem:[%s5190_s14 + $0x50] sm:$0xff] }
 0x4b4   :  { %1953 = vmatmul.f32.gmra.mxu2 %v1874_v1 }
 0x4b8   :  { %4822 = vmatmul.msk.f32.gmra.mxu1 %vm1894_vm15, %v1881_v23 }
 0x4bc   :  { %1956 = vmatmul.f32.gmra.mxu2 %v1876_v62 }
 0x4c0   :  { %4823 = vmatmul.msk.f32.gmra.mxu1 %vm1894_vm15, %v1883_v53 }
 0x4c4   :  { %1959 = vmatmul.f32.gmra.mxu2 %v1878_v7 }
 0x4c8   :  { %4824 = vmatmul.msk.f32.gmra.mxu1 %vm1894_vm15, %v1885_v42 }
 0x4cc   :  { %1962 = vmatmul.f32.gmra.mxu2 %v1880_v61 }
 0x4d0   :  { %4825 = vmatmul.msk.f32.gmra.mxu1 %vm1894_vm15, %v1887_v10 }
 0x4d4   :  { %1965 = vmatmul.f32.gmra.mxu2 %v1882_v43  ;;  %v2064_v43 = vld [vmem:[%s5190_s14 + $0x78] sm:$0xff] }
 0x4d5   :  { %2209 = vmatpush.msrb.mxu3 %v2064_v43 }
 0x4d8   :  { %4826 = vmatmul.msk.f32.gmra.mxu1 %vm1894_vm15, %v1889_v11  ;;  %v2063_v11 = vld [vmem:[%s5190_s14 + $0x70] sm:$0xff] }
 0x4d9   :  { %2210 = vmatpush.msrb.mxu3 %v2063_v11 }
 0x4db   :  { %2211 = vmatpush.msrb.mxu3 %v2062_v8 }
 0x4dc   :  { %1968 = vmatmul.f32.gmra.mxu2 %v1884_v60 }
 0x4dd   :  { %2212 = vmatpush.msrb.mxu3 %v2061_v16 }
 0x4df   :  { %2213 = vmatpush.msrb.mxu3 %v2060_v39  ;;  %v2319_v39 = vld [vmem:[%s5290_s6 + $0x10] sm:$0xff] }
 0x4e0   :  { %4827 = vmatmul.msk.f32.gmra.mxu1 %vm1894_vm15, %v1891_v48 }
 0x4e1   :  { %2214 = vmatpush.msrb.mxu3 %v2059_v2  ;;  %v2323_v2 = vld [vmem:[%s5290_s6 + $0x30] sm:$0xff] }
 0x4e4   :  { %1971 = vmatmul.f32.gmra.mxu2 %v1886_v37 }
 0x4e8   :  { %4828 = vmatmul.msk.f32.gmra.mxu1 %vm1894_vm15, %v1893_v55 }
 0x4ec   :  { %1974 = vmatmul.f32.gmra.mxu2 %v1888_v33 }
 0x4f4   :  { %1977 = vmatmul.f32.gmra.mxu2 %v1890_v54 }
 0x4fc   :  { %1980 = vmatmul.f32.gmra.mxu2 %v1892_v22 }
 0x50d   :  { %v2001_v3 = vpop.f32.mrf.mxu1 }
 0x515   :  { %v2004_v6 = vpop.f32.mrf.mxu1 }
 0x51d   :  { %v2007_v40 = vpop.f32.mrf.mxu1 }
 0x525   :  { %v2010_v47 = vpop.f32.mrf.mxu1 }
 0x527   :  { %v1948_v29 = vpop.f32.mrf.mxu2 }
 0x528   :  { %v2002_v31 = vadd.f32 %v2001_v3, %v1948_v29 }
 0x52a   :  { %v6455_v18 = vmax.f32 %v2002_v31, 0.0 }
 0x52c   :  { %v2146_v57 = vrot.slane %v6455_v18, 2  ;;  %v2086_v12 = vrot.slane %v6455_v18, 1 }
 0x52d   :  { %v2013_v28 = vpop.f32.mrf.mxu1 }
 0x52f   :  { %v1951_v44 = vpop.f32.mrf.mxu2 }
 0x530   :  { %v2005_v46 = vadd.f32 %v2004_v6, %v1951_v44  ;;  %v2057_v44 = vld [vmem:[%s5190_s14 + $0x40] sm:$0xff] }
 0x532   :  { %v6457_v30 = vmax.f32 %v2005_v46, 0.0 }
 0x534   :  { %v2147_v56 = vrot.slane %v6457_v30, 2  ;;  %v2087_v34 = vrot.slane %v6457_v30, 1 }
 0x535   :  { %v2016_v4 = vpop.f32.mrf.mxu1 }
 0x536   :  { %v2088_v21 = vsel %vm229_vm0, %v2086_v12, %v2087_v34  ;;  %v2148_v63 = vsel %vm935_vm9, %v2146_v57, %v2147_v56  ;;  %v2056_v57 = vld [vmem:[%s5190_s14 + $0x38] sm:$0xff] }
 0x537   :  { %2110 = vrot.lane.b32.xlu2 %v2088_v21, %s5134_s13  ;;  %v1954_v59 = vpop.f32.mrf.mxu2  ;;  %4829 = vmatmul.msk.f32.vlgmr.msra.gmra.mxu2 %vm1227_vm10, %v2148_v63  ;;  %v2055_v21 = vld [vmem:[%s5190_s14 + $0x30] sm:$0xff] }
 0x538   :  { %v2008_v50 = vadd.f32 %v2007_v40, %v1954_v59 }
 0x53a   :  { %v6467_v32 = vmax.f32 %v2008_v50, 0.0 }
 0x53c   :  { %v2149_v24 = vrot.slane %v6467_v32, 2  ;;  %v2089_v19 = vrot.slane %v6467_v32, 1 }
 0x53d   :  { %v2019_v17 = vpop.f32.mrf.mxu1 }
 0x53e   :  { %v2090_v15 = vsel %vm229_vm0, %v2087_v34, %v2089_v19  ;;  %v2150_v38 = vsel %vm935_vm9, %v2147_v56, %v2149_v24 }
 0x53f   :  { %2112 = vrot.lane.b32.xlu0 %v2090_v15, %s5134_s13  ;;  %v1957_v26 = vpop.f32.mrf.mxu2  ;;  %4830 = vmatmul.msk.f32.gmra.mxu2 %vm1227_vm10, %v2150_v38  ;;  %v2052_v38 = vld [vmem:[%s5190_s14 + $0x18] sm:$0xff] }
 0x540   :  { %v2011_v5 = vadd.f32 %v2010_v47, %v1957_v26  ;;  %v2058_v47 = vld [vmem:[%s5190_s14 + $0x48] sm:$0xff] }
 0x541   :  { %2215 = vmatpush.msrb.mxu3 %v2058_v47  ;;  %v2326_v47 = vld [vmem:[%s5290_s6 + $0x48] sm:$0xff] }
 0x542   :  { %v6475_v13 = vmax.f32 %v2011_v5, 0.0 }
 0x543   :  { %2216 = vmatpush.msrb.mxu3 %v2057_v44  ;;  %v2325_v44 = vld [vmem:[%s5290_s6 + $0x40] sm:$0xff] }
 0x544   :  { %v2151_v36 = vrot.slane %v6475_v13, 2  ;;  %v2091_v51 = vrot.slane %v6475_v13, 1 }
 0x545   :  { %v2022_v60 = vpop.f32.mrf.mxu1  ;;  %2217 = vmatpush.msrb.mxu3 %v2056_v57  ;;  %v3002_v57 = vld [vmem:[%s5295_s12] sm:$0xff] }
 0x546   :  { %v2092_v27 = vsel %vm229_vm0, %v2089_v19, %v2091_v51  ;;  %v2152_v35 = vsel %vm935_vm9, %v2149_v24, %v2151_v36  ;;  %v2053_v19 = vld [vmem:[%s5190_s14 + $0x20] sm:$0xff] }
 0x547   :  { %2114 = vrot.lane.b32.xlu1 %v2092_v27, %s5134_s13  ;;  %v1960_v52 = vpop.f32.mrf.mxu2  ;;  %4831 = vmatmul.msk.f32.gmra.mxu2 %vm1227_vm10, %v2152_v35  ;;  %v2050_v27 = vld [vmem:[%s5190_s14 + $0x8] sm:$0xff] }
 0x548   :  { %v2014_v25 = vadd.f32 %v2013_v28, %v1960_v52  ;;  %v2054_v28 = vld [vmem:[%s5190_s14 + $0x28] sm:$0xff]  ;;  %2218 = vmatpush.msrb.mxu3 %v2055_v21 }
 0x549   :  { %v3003_v21 = vld [vmem:[%s5295_s12 + $0x8] sm:$0xff] }
 0x54a   :  { %v6483_v58 = vmax.f32 %v2014_v25, 0.0  ;;  %2219 = vmatpush.msrb.mxu3 %v2054_v28 }
 0x54c   :  { %v2153_v49 = vrot.slane %v6483_v58, 2  ;;  %v2093_v1 = vrot.slane %v6483_v58, 1  ;;  %2220 = vmatpush.msrb.mxu3 %v2053_v19  ;;  %v3006_v19 = vld [vmem:[%s5295_s12 + $0x20] sm:$0xff] }
 0x54d   :  { %v2025_v14 = vpop.f32.mrf.mxu1 }
 0x54e   :  { %v2094_v23 = vsel %vm229_vm0, %v2091_v51, %v2093_v1  ;;  %v2154_v62 = vsel %vm935_vm9, %v2151_v36, %v2153_v49  ;;  %v2051_v36 = vld [vmem:[%s5190_s14 + $0x10] sm:$0xff]  ;;  %2221 = vmatpush.msrb.mxu3 %v2052_v38 }
 0x54f   :  { %2116 = vrot.lane.b32.xlu2 %v2094_v23, %s5134_s13  ;;  %v1963_v53 = vpop.f32.mrf.mxu2  ;;  %4832 = vmatmul.msk.f32.gmra.mxu2 %vm1227_vm10, %v2154_v62 }
 0x550   :  { %v2017_v7 = vadd.f32 %v2016_v4, %v1963_v53  ;;  %2222 = vmatpush.msrb.mxu3 %v2051_v36 }
 0x552   :  { %v6491_v42 = vmax.f32 %v2017_v7, 0.0  ;;  %2223 = vmatpush.msrb.mxu3 %v2050_v27  ;;  %v4185_v27 = vld [vmem:[%s5300_s30 + $0x20] sm:$0xff] }
 0x554   :  { %v2155_v61 = vrot.slane %v6491_v42, 2  ;;  %v2095_v10 = vrot.slane %v6491_v42, 1 }
 0x555   :  { %v2028_v63 = vpop.f32.mrf.mxu1 }
 0x556   :  { %v2096_v48 = vsel %vm229_vm0, %v2093_v1, %v2095_v10  ;;  %v2156_v37 = vsel %vm935_vm9, %v2153_v49, %v2155_v61 }
 0x557   :  { %2118 = vrot.lane.b32.xlu0 %v2096_v48, %s5134_s13  ;;  %v1966_v55 = vpop.f32.mrf.mxu2  ;;  %4833 = vmatmul.msk.f32.gmra.mxu2 %vm1227_vm10, %v2156_v37 }
 0x558   :  { %v2020_v33 = vadd.f32 %v2019_v17, %v1966_v55  ;;  %v2049_v17 = vld [vmem:[%s5190_s14] sm:$0xff]  ;;  %s7739_s14 = sld [smem:[#allocation10_spill]] }
 0x559   :  { %2224 = vmatpush.msrb.mxu3 %v2049_v17  ;;  %v4188_v17 = vld [vmem:[%s5300_s30 + $0x38] sm:$0xff] }
 0x55a   :  { %v6501_v54 = vmax.f32 %v2020_v33, 0.0  ;;  %v2317_v33 = vld [vmem:[%s5290_s6] sm:$0xff] }
 0x55c   :  { %v2157_v22 = vrot.slane %v6501_v54, 2  ;;  %v2097_v3 = vrot.slane %v6501_v54, 1 }
 0x55d   :  { %v2031_v35 = vpop.f32.mrf.mxu1 }
 0x55e   :  { %v2098_v41 = vsel %vm229_vm0, %v2095_v10, %v2097_v3  ;;  %v2158_v6 = vsel %vm935_vm9, %v2155_v61, %v2157_v22 }
 0x55f   :  { %2120 = vrot.lane.b32.xlu1 %v2098_v41, %s5134_s13  ;;  %v1969_v0 = vpop.f32.mrf.mxu2  ;;  %4834 = vmatmul.msk.f32.gmra.mxu2 %vm1227_vm10, %v2158_v6  ;;  %v2320_v41 = vld [vmem:[%s5290_s6 + $0x18] sm:$0xff]  ;;  %v2318_v6 = vld [vmem:[%s5290_s6 + $0x8] sm:$0xff] }
 0x560   :  { %v2023_v45 = vadd.f32 %v2022_v60, %v1969_v0 }
 0x562   :  { %v6513_v40 = vmax.f32 %v2023_v45, 0.0 }
 0x564   :  { %v2159_v29 = vrot.slane %v6513_v40, 2  ;;  %v2099_v31 = vrot.slane %v6513_v40, 1 }
 0x565   :  { %v2034_v10 = vpop.f32.mrf.mxu1 }
 0x566   :  { %v2100_v46 = vsel %vm229_vm0, %v2097_v3, %v2099_v31  ;;  %v2160_v56 = vsel %vm935_vm9, %v2157_v22, %v2159_v29 }
 0x567   :  { %2122 = vrot.lane.b32.xlu2 %v2100_v46, %s5134_s13  ;;  %v1972_v12 = vpop.f32.mrf.mxu2  ;;  %4835 = vmatmul.msk.f32.gmra.mxu2 %vm1227_vm10, %v2160_v56  ;;  %v2324_v46 = vld [vmem:[%s5290_s6 + $0x38] sm:$0xff]  ;;  %v2327_v56 = vld [vmem:[%s5290_s6 + $0x50] sm:$0xff] }
 0x568   :  { %v2026_v34 = vadd.f32 %v2025_v14, %v1972_v12  ;;  %v3005_v12 = vld [vmem:[%s5295_s12 + $0x18] sm:$0xff] }
 0x56a   :  { %v6525_v59 = vmax.f32 %v2026_v34, 0.0  ;;  %v3004_v34 = vld [vmem:[%s5295_s12 + $0x10] sm:$0xff] }
 0x56c   :  { %v2161_v50 = vrot.slane %v6525_v59, 2  ;;  %v2101_v24 = vrot.slane %v6525_v59, 1 }
 0x56e   :  { %v2102_v15 = vsel %vm229_vm0, %v2099_v31, %v2101_v24  ;;  %v2162_v26 = vsel %vm935_vm9, %v2159_v29, %v2161_v50  ;;  %v2322_v29 = vld [vmem:[%s5290_s6 + $0x28] sm:$0xff]  ;;  %v2321_v31 = vld [vmem:[%s5290_s6 + $0x20] sm:$0xff] }
 0x56f   :  { %2124 = vrot.lane.b32.xlu0 %v2102_v15, %s5134_s13  ;;  %v1975_v5 = vpop.f32.mrf.mxu2  ;;  %4836 = vmatmul.msk.f32.gmra.mxu2 %vm1227_vm10, %v2162_v26  ;;  %v4182_v26 = vld [vmem:[%s5300_s30 + $0x8] sm:$0xff] }
 0x570   :  { %v2029_v4 = vadd.f32 %v2028_v63, %v1975_v5  ;;  %v4181_v5 = vld [vmem:[%s5300_s30] sm:$0xff] }
 0x572   :  { %v6537_v51 = vmax.f32 %v2029_v4, 0.0  ;;  %v3009_v4 = vld [vmem:[%s5295_s12 + $0x38] sm:$0xff] }
 0x574   :  { %v2163_v52 = vrot.slane %v6537_v51, 2  ;;  %v2103_v25 = vrot.slane %v6537_v51, 1 }
 0x576   :  { %v2104_v49 = vsel %vm229_vm0, %v2101_v24, %v2103_v25  ;;  %v2164_v1 = vsel %vm935_vm9, %v2161_v50, %v2163_v52  ;;  %v3008_v50 = vld [vmem:[%s5295_s12 + $0x30] sm:$0xff]  ;;  %v3007_v24 = vld [vmem:[%s5295_s12 + $0x28] sm:$0xff]  ;;  %s7744_s12 = sld [smem:[#allocation13_spill]] }
 0x577   :  { %2126 = vrot.lane.b32.xlu1 %v2104_v49, %s5134_s13  ;;  %v1978_v23 = vpop.f32.mrf.mxu2  ;;  %4837 = vmatmul.msk.f32.gmra.mxu2 %vm1227_vm10, %v2164_v1  ;;  %v4187_v49 = vld [vmem:[%s5300_s30 + $0x30] sm:$0xff]  ;;  %v4186_v1 = vld [vmem:[%s5300_s30 + $0x28] sm:$0xff] }
 0x578   :  { %v2032_v62 = vadd.f32 %v2031_v35, %v1978_v23  ;;  %v4184_v35 = vld [vmem:[%s5300_s30 + $0x18] sm:$0xff] }
 0x57a   :  { %v6547_v53 = vmax.f32 %v2032_v62, 0.0 }
 0x57c   :  { %v2165_v7 = vrot.slane %v6547_v53, 2  ;;  %v2105_v61 = vrot.slane %v6547_v53, 1 }
 0x57e   :  { %v2106_v43 = vsel %vm229_vm0, %v2103_v25, %v2105_v61  ;;  %v2166_v11 = vsel %vm935_vm9, %v2163_v52, %v2165_v7  ;;  %v4183_v52 = vld [vmem:[%s5300_s30 + $0x10] sm:$0xff]  ;;  %s7741_s30 = sld [smem:[#allocation18_spill]] }
 0x57f   :  { %2128 = vrot.lane.b32.xlu2 %v2106_v43, %s5134_s13  ;;  %v1981_v60 = vpop.f32.mrf.mxu2  ;;  %4838 = vmatmul.msk.f32.gmra.mxu2 %vm1227_vm10, %v2166_v11 }
 0x580   :  { %v2035_v48 = vadd.f32 %v2034_v10, %v1981_v60 }
 0x582   :  { %v6555_v37 = vmax.f32 %v2035_v48, 0.0 }
 0x584   :  { %v2167_v55 = vrot.slane %v6555_v37, 2  ;;  %v2107_v22 = vrot.slane %v6555_v37, 1 }
 0x586   :  { %v2109_v3 = vsel %vm229_vm0, %v2107_v22, %v5887_v20  ;;  %v2108_v8 = vsel %vm229_vm0, %v2105_v61, %v2107_v22  ;;  %v2168_v16 = vsel %vm935_vm9, %v2165_v7, %v2167_v55  ;;  %v2169_v0 = vsel %vm935_vm9, %v2167_v55, %v5901_v9 }
 0x587   :  { %2331 = vperm.xlu2 %5052, %v2317_v33   ;;  %2132 = vrot.lane.b32.xlu1 %v2109_v3, %s5134_s13 }
 0x588   :  { %2130 = vrot.lane.b32.xlu0 %v2108_v8, %s5134_s13  ;;  %4839 = vmatmul.msk.f32.gmra.mxu2 %vm1227_vm10, %v2168_v16 }
 0x58f   :  { %2346 = vperm.xlu2 %5052, %v2320_v41   ;;  %2341 = vperm.xlu1 %5051, %v2319_v39  }
 0x590   :  { %2336 = vperm.xlu0 %5050, %v2318_v6   ;;  %4840 = vmatmul.msk.f32.gmra.mxu2 %vm1227_vm10, %v2169_v0 }
 0x591   :  { %v2111_v14 = vpop.permute.xlu2 %2110 }
 0x592   :  { %v2170_v45 = vsel %vm1227_vm10, %v6455_v18, %v2111_v14  ;;  %v2328_v18 = vld [vmem:[%s5290_s6 + $0x58] sm:$0xff]  ;;  %s7742_s6 = sld [smem:[#allocation12_spill]] }
 0x593   :  { %2225 = vmatmul.f32.vlgmr.msrb.gmra.mxu3 %v2170_v45 }
 0x597   :  { %2361 = vperm.xlu2 %5052, %v2323_v2   ;;  %2356 = vperm.xlu1 %5051, %v2322_v29  }
 0x598   :  { %2351 = vperm.xlu0 %5050, %v2321_v31  }
 0x59f   :  { %2376 = vperm.xlu2 %5052, %v2326_v47   ;;  %2371 = vperm.xlu1 %5051, %v2325_v44   ;;  %v5055_v47 = vld [vmem:[%s7733_s17] ss:$0 sm:$0xff] }
 0x5a0   :  { %2366 = vperm.xlu0 %5050, %v2324_v46  }
 0x5a7   :  { %3012 = vperm.xlu2 %5052, %v3002_v57   ;;  %2386 = vperm.xlu1 %5051, %v2328_v18  }
 0x5a8   :  { %2381 = vperm.xlu0 %5050, %v2327_v56  }
 0x5af   :  { %3027 = vperm.xlu2 %5052, %v3005_v12   ;;  %3022 = vperm.xlu1 %5051, %v3004_v34  }
 0x5b0   :  { %3017 = vperm.xlu0 %5050, %v3003_v21  }
 0x5b1   :  { %v2113_v63 = vpop.permute.xlu0 %2112 }
 0x5b2   :  { %v2171_v28 = vsel %vm1227_vm10, %v6457_v30, %v2113_v63  ;;  %v2117_v30 = vpop.permute.xlu2 %2116 }
 0x5b3   :  { %2228 = vmatmul.f32.gmra.mxu3 %v2171_v28  ;;  %v2173_v36 = vsel %vm1227_vm10, %v6475_v13, %v2117_v30 }
 0x5b7   :  { %3042 = vperm.xlu2 %5052, %v3008_v50   ;;  %3037 = vperm.xlu1 %5051, %v3007_v24  }
 0x5b8   :  { %3032 = vperm.xlu0 %5050, %v3006_v19  }
 0x5b9   :  { %v2115_v15 = vpop.permute.xlu1 %2114 }
 0x5ba   :  { %v2172_v38 = vsel %vm1227_vm10, %v6467_v32, %v2115_v15  ;;  %v2279_v55 = vpop.f32.mrf.mxu2 }
 0x5bb   :  { %2231 = vmatmul.f32.gmra.mxu3 %v2172_v38 }
 0x5bf   :  { %4196 = vperm.xlu2 %5052, %v4182_v26   ;;  %4191 = vperm.xlu1 %5051, %v4181_v5  }
 0x5c0   :  { %3047 = vperm.xlu0 %5050, %v3009_v4  }
 0x5c1   :  { %v2123_v62 = vpop.permute.xlu2 %2122 }
 0x5c2   :  { %v2176_v7 = vsel %vm1227_vm10, %v6501_v54, %v2123_v62  ;;  %v2282_v33 = vpop.f32.mrf.mxu2 }
 0x5c3   :  { %2234 = vmatmul.f32.gmra.mxu3 %v2173_v36 }
 0x5c7   :  { %4211 = vperm.xlu2 %5052, %v4185_v27   ;;  %4206 = vperm.xlu1 %5051, %v4184_v35  }
 0x5c8   :  { %4201 = vperm.xlu0 %5050, %v4183_v52  }
 0x5c9   :  { %v2119_v32 = vpop.permute.xlu0 %2118 }
 0x5ca   :  { %v2174_v25 = vsel %vm1227_vm10, %v6483_v58, %v2119_v32 }
 0x5cb   :  { %2237 = vmatmul.f32.gmra.mxu3 %v2174_v25 }
 0x5cf   :  { %4226 = vperm.xlu2 %5052, %v4188_v17   ;;  %4221 = vperm.xlu1 %5051, %v4187_v49  }
 0x5d0   :  { %4216 = vperm.xlu0 %5050, %v4186_v1  }
 0x5d1   :  { %v2121_v23 = vpop.permute.xlu1 %2120 }
 0x5d2   :  { %v2175_v13 = vsel %vm1227_vm10, %v6491_v42, %v2121_v23 }
 0x5d3   :  { %2240 = vmatmul.f32.gmra.mxu3 %v2175_v13 }
 0x5d9   :  { %v2129_v11 = vpop.permute.xlu2 %2128 }
 0x5da   :  { %v2179_v42 = vsel %vm1227_vm10, %v6537_v51, %v2129_v11 }
 0x5db   :  { %2243 = vmatmul.f32.gmra.mxu3 %v2176_v7 }
 0x5e1   :  { %v2125_v61 = vpop.permute.xlu0 %2124  ;;  %v6621_v29 = vpop.permute.xlu2 %2331 }
 0x5e2   :  { %v2177_v58 = vsel %vm1227_vm10, %v6513_v40, %v2125_v61 }
 0x5e3   :  { %2246 = vmatmul.f32.gmra.mxu3 %v2177_v58 }
 0x5e9   :  { %v2127_v10 = vpop.permute.xlu1 %2126  ;;  %v6628_v12 = vpop.permute.xlu2 %2346 }
 0x5ea   :  { %v2178_v43 = vsel %vm1227_vm10, %v6525_v59, %v2127_v10  ;;  %v2285_v59 = vpop.f32.mrf.mxu2 }
 0x5eb   :  { %2249 = vmatmul.f32.gmra.mxu3 %v2178_v43 }
 0x5f1   :  { %v6654_v49 = vpop.permute.xlu2 %2361 }
 0x5f2   :  { %v2288_v8 = vpop.f32.mrf.mxu2 }
 0x5f3   :  { %2252 = vmatmul.f32.gmra.mxu3 %v2179_v42 }
 0x5f9   :  { %v2133_v48 = vpop.permute.xlu1 %2132 }
 0x5fa   :  { %v2131_v60 = vpop.permute.xlu0 %2130  ;;  %v2181_v40 = vsel %vm1227_vm10, %v6555_v37, %v2133_v48  ;;  %v2291_v51 = vpop.f32.mrf.mxu2 }
 0x5fb   :  { %v2180_v54 = vsel %vm1227_vm10, %v6547_v53, %v2131_v60 }
 0x5fc   :  { %2255 = vmatmul.f32.gmra.mxu3 %v2180_v54 }
 0x601   :  { %v6626_v44 = vpop.permute.xlu1 %2341 }
 0x602   :  { %v2294_v39 = vpop.f32.mrf.mxu2  ;;  %v6623_v37 = vpop.permute.xlu0 %2336 }
 0x604   :  { %2258 = vmatmul.f32.gmra.mxu3 %v2181_v40 }
 0x609   :  { %v6642_v4 = vpop.permute.xlu1 %2356 }
 0x60a   :  { %v2297_v53 = vpop.f32.mrf.mxu2  ;;  %v6632_v63 = vpop.permute.xlu0 %2351 }
 0x612   :  { %v2300_v45 = vpop.f32.mrf.mxu2  ;;  %v6660_v7 = vpop.permute.xlu0 %2366 }
 0x616   :  { %v2226_v22 = vpop.f32.mrf.mxu3 }
 0x617   :  { %v2227_v18 = vadd.f32 %v5055_v47, %v2226_v22 }
 0x619   :  { %v6634_v28 = vadd.f32 %v2279_v55, %v2227_v18  ;;  %v2372_v55 = vpop.permute.xlu1 %2371 }
 0x61a   :  { %v2303_v31 = vpop.f32.mrf.mxu2 }
 0x61b   :  { %v2389_v30 = vmul.f32 %v6621_v29, %v6634_v28 }
 0x622   :  { %v2306_v19 = vpop.f32.mrf.mxu2 }
 0x62a   :  { %v2309_v11 = vpop.f32.mrf.mxu2 }
 0x636   :  { %v2229_v3 = vpop.f32.mrf.mxu3 }
 0x637   :  { %v2230_v46 = vadd.f32 %v5055_v47, %v2229_v3 }
 0x639   :  { %v6630_v34 = vadd.f32 %v2282_v33, %v2230_v46 }
 0x63b   :  { %v2390_v15 = vmul.f32 %v6623_v37, %v6630_v34 }
 0x63d   :  { %v2401_v52 = vadd.f32 %v2390_v15, %v2389_v30 }
 0x63e   :  { %v2232_v16 = vpop.f32.mrf.mxu3 }
 0x63f   :  { %v2233_v56 = vadd.f32 %v5055_v47, %v2232_v16 }
 0x641   :  { %v6636_v50 = vadd.f32 %v2285_v59, %v2233_v56 }
 0x643   :  { %v2391_v36 = vmul.f32 %v6626_v44, %v6636_v50 }
 0x645   :  { %v2402_v1 = vadd.f32 %v2401_v52, %v2391_v36 }
 0x646   :  { %v2235_v41 = vpop.f32.mrf.mxu3 }
 0x647   :  { %v2236_v21 = vadd.f32 %v5055_v47, %v2235_v41 }
 0x649   :  { %v6640_v38 = vadd.f32 %v2288_v8, %v2236_v21 }
 0x64b   :  { %v2392_v32 = vmul.f32 %v6628_v12, %v6640_v38 }
 0x64d   :  { %v2403_v61 = vadd.f32 %v2402_v1, %v2392_v32 }
 0x64e   :  { %v2238_v6 = vpop.f32.mrf.mxu3 }
 0x64f   :  { %v2239_v24 = vadd.f32 %v5055_v47, %v2238_v6  ;;  %v2382_v6 = vpop.permute.xlu0 %2381 }
 0x651   :  { %v6648_v27 = vadd.f32 %v2291_v51, %v2239_v24  ;;  %v2377_v51 = vpop.permute.xlu2 %2376 }
 0x653   :  { %v2393_v23 = vmul.f32 %v6632_v63, %v6648_v27 }
 0x655   :  { %v2404_v60 = vadd.f32 %v2403_v61, %v2393_v23 }
 0x656   :  { %v2241_v0 = vpop.f32.mrf.mxu3 }
 0x657   :  { %v2242_v26 = vadd.f32 %v5055_v47, %v2241_v0 }
 0x659   :  { %v6652_v25 = vadd.f32 %v2294_v39, %v2242_v26 }
 0x65b   :  { %v2394_v58 = vmul.f32 %v6642_v4, %v6652_v25 }
 0x65d   :  { %v2405_v33 = vadd.f32 %v2404_v60, %v2394_v58 }
 0x65e   :  { %v2244_v14 = vpop.f32.mrf.mxu3 }
 0x65f   :  { %v2245_v35 = vadd.f32 %v5055_v47, %v2244_v14 }
 0x661   :  { %v6658_v13 = vadd.f32 %v2297_v53, %v2245_v35 }
 0x663   :  { %v2395_v54 = vmul.f32 %v6654_v49, %v6658_v13 }
 0x665   :  { %v2406_v3 = vadd.f32 %v2405_v33, %v2395_v54 }
 0x666   :  { %v2247_v2 = vpop.f32.mrf.mxu3 }
 0x667   :  { %v2248_v17 = vadd.f32 %v5055_v47, %v2247_v2  ;;  %v2312_v2 = vpop.f32.mrf.mxu2 }
 0x669   :  { %v6664_v10 = vadd.f32 %v2300_v45, %v2248_v17 }
 0x66b   :  { %v2396_v22 = vmul.f32 %v6660_v7, %v6664_v10 }
 0x66d   :  { %v2407_v41 = vadd.f32 %v2406_v3, %v2396_v22 }
 0x66e   :  { %v2250_v57 = vpop.f32.mrf.mxu3 }
 0x66f   :  { %v2251_v62 = vadd.f32 %v5055_v47, %v2250_v57  ;;  %v2387_v57 = vpop.permute.xlu1 %2386 }
 0x671   :  { %v6668_v48 = vadd.f32 %v2303_v31, %v2251_v62 }
 0x673   :  { %v2397_v8 = vmul.f32 %v2372_v55, %v6668_v48 }
 0x675   :  { %v2408_v53 = vadd.f32 %v2407_v41, %v2397_v8 }
 0x676   :  { %v2253_v5 = vpop.f32.mrf.mxu3 }
 0x677   :  { %v2254_v43 = vadd.f32 %v5055_v47, %v2253_v5 }
 0x679   :  { %v6672_v59 = vadd.f32 %v2306_v19, %v2254_v43 }
 0x67b   :  { %v2398_v39 = vmul.f32 %v2377_v51, %v6672_v59 }
 0x67d   :  { %v2409_v31 = vadd.f32 %v2408_v53, %v2398_v39 }
 0x67f   :  { %v2256_v42 = vpop.f32.mrf.mxu3 }
 0x680   :  { %v2257_v40 = vadd.f32 %v5055_v47, %v2256_v42 }
 0x682   :  { %v6675_v16 = vadd.f32 %v2309_v11, %v2257_v40 }
 0x684   :  { %v2399_v14 = vmul.f32 %v2382_v6, %v6675_v16 }
 0x686   :  { %v2410_v18 = vadd.f32 %v2409_v31, %v2399_v14 }
 0x687   :  { %v2259_v0 = vpop.f32.mrf.mxu3 }
 0x688   :  { %v2260_v45 = vadd.f32 %v5055_v47, %v2259_v0 }
 0x68a   :  { %v6679_v46 = vadd.f32 %v2312_v2, %v2260_v45 }
 0x68c   :  { %v2400_v56 = vmul.f32 %v2387_v57, %v6679_v46 }
 0x68e   :  { %v2411_v21 = vadd.f32 %v2410_v18, %v2400_v56 }
 0x690   :  { %v2412_v24 = vrot.slane %v2411_v21, 4 }
 0x692   :  { %v2413_v19 = vadd.f32 %v2412_v24, %v2411_v21 }
 0x694   :  { %v2414_v15 = vrot.slane %v2413_v19, 2 }
 0x696   :  { %v2415_v26 = vadd.f32 %v2414_v15, %v2413_v19 }
 0x698   :  { %v2416_v5 = vrot.slane %v2415_v26, 1 }
 0x69a   :  { %v2417_v30 = vadd.f32 %v2416_v5, %v2415_v26 }
 0x69c   :  { %v6682_v36 = vmul.f32 0.0125, %v2417_v30 }
 0x69e   :  { %v2419_v47 = vsub.f32 %v6634_v28, %v6682_v36  ;;  %v2420_v35 = vsub.f32 %v6630_v34, %v6682_v36  ;;  %v2421_v52 = vsub.f32 %v6636_v50, %v6682_v36  ;;  %v2422_v32 = vsub.f32 %v6640_v38, %v6682_v36 }
 0x69f   :  { %v2423_v23 = vsub.f32 %v6648_v27, %v6682_v36  ;;  %v2424_v43 = vsub.f32 %v6652_v25, %v6682_v36  ;;  %v2425_v42 = vsub.f32 %v6658_v13, %v6682_v36  ;;  %v2427_v22 = vsub.f32 %v6668_v48, %v6682_v36 }
 0x6a0   :  { %v2431_v17 = vmul.f32 %v2419_v47, %v6621_v29  ;;  %v2432_v1 = vmul.f32 %v2420_v35, %v6623_v37  ;;  %v2433_v62 = vmul.f32 %v2421_v52, %v6626_v44  ;;  %v2434_v11 = vmul.f32 %v2422_v32, %v6628_v12 }
 0x6a1   :  { %v2435_v60 = vmul.f32 %v2423_v23, %v6632_v63  ;;  %v2426_v37 = vsub.f32 %v6664_v10, %v6682_v36  ;;  %v2436_v40 = vmul.f32 %v2424_v43, %v6642_v4  ;;  %v2437_v3 = vmul.f32 %v2425_v42, %v6654_v49 }
 0x6a2   :  { %v2443_v61 = vmul.f32 %v2431_v17, %v2431_v17  ;;  %v2444_v58 = vmul.f32 %v2432_v1, %v2432_v1  ;;  %v2445_v29 = vmul.f32 %v2433_v62, %v2433_v62  ;;  %v2446_v44 = vmul.f32 %v2434_v11, %v2434_v11  ;;  %v2315_v11 = vld [vmem:[%s7734_s21] sm:$0x1] }
 0x6a3   :  { %v2447_v12 = vmul.f32 %v2435_v60, %v2435_v60  ;;  %v2428_v41 = vsub.f32 %v6672_v59, %v6682_v36  ;;  %v2438_v63 = vmul.f32 %v2426_v37, %v6660_v7  ;;  %v2448_v39 = vmul.f32 %v2436_v40, %v2436_v40 }
 0x6a4   :  { %v2455_v54 = vadd.f32 %v2444_v58, %v2443_v61  ;;  %v2429_v53 = vsub.f32 %v6675_v16, %v6682_v36  ;;  %v2439_v4 = vmul.f32 %v2427_v22, %v2372_v55  ;;  %v2449_v14 = vmul.f32 %v2437_v3, %v2437_v3 }
 0x6a5   :  { %v2430_v2 = vsub.f32 %v6679_v46, %v6682_v36  ;;  %v2440_v31 = vmul.f32 %v2428_v41, %v2377_v51  ;;  %v2450_v49 = vmul.f32 %v2438_v63, %v2438_v63 }
 0x6a6   :  { %v2456_v33 = vadd.f32 %v2455_v54, %v2445_v29  ;;  %v2441_v56 = vmul.f32 %v2429_v53, %v2382_v6  ;;  %v2451_v21 = vmul.f32 %v2439_v4, %v2439_v4  ;;  %v2316_v54 = vld [vmem:[%s7735_s25] sm:$0x1] }
 0x6a7   :  { %v2442_v19 = vmul.f32 %v2430_v2, %v2387_v57  ;;  %v2452_v15 = vmul.f32 %v2440_v31, %v2440_v31 }
 0x6a8   :  { %v2457_v8 = vadd.f32 %v2456_v33, %v2446_v44  ;;  %v2453_v26 = vmul.f32 %v2441_v56, %v2441_v56  ;;  %v2624_v56 = vld [vmem:[%s7737_s3 + $0xe0] sm:$0xff] }
 0x6a9   :  { %v2454_v30 = vmul.f32 %v2442_v19, %v2442_v19  ;;  %v2656_v19 = vld [vmem:[%s7737_s3 + $0x1e0] sm:$0xff] }
 0x6aa   :  { %v2458_v0 = vadd.f32 %v2457_v8, %v2447_v12 }
 0x6ac   :  { %v2459_v45 = vadd.f32 %v2458_v0, %v2448_v39 }
 0x6ae   :  { %v2460_v18 = vadd.f32 %v2459_v45, %v2449_v14 }
 0x6b0   :  { %v2461_v24 = vadd.f32 %v2460_v18, %v2450_v49  ;;  %v2515_v49 = vld [vmem:[%s7736_s29] sm:$0xff]  ;;  %v2626_v18 = vld [vmem:[%s7737_s3 + $0xf0] sm:$0xff] }
 0x6b1   :  { %2754 = vmatpush.msra.mxu3 %v2626_v18  ;;  %v2662_v18 = vld [vmem:[%s7737_s3 + $0x210] sm:$0xff] }
 0x6b2   :  { %v2462_v7 = vadd.f32 %v2461_v24, %v2451_v21  ;;  %v2622_v21 = vld [vmem:[%s7737_s3 + $0xd0] sm:$0xff] }
 0x6b3   :  { %v2658_v24 = vld [vmem:[%s7737_s3 + $0x1f0] sm:$0xff]  ;;  %2755 = vmatpush.msra.mxu3 %v2624_v56  ;;  %v2635_v56 = vld [vmem:[%s7737_s3 + $0x138] sm:$0xff] }
 0x6b4   :  { %v2463_v5 = vadd.f32 %v2462_v7, %v2452_v15  ;;  %2795 = vmatpush.msra.mxu0 %v2658_v24  ;;  %v2690_v15 = vld [vmem:[%s7737_s3 + $0x2f0] sm:$0xff]  ;;  %v2620_v7 = vld [vmem:[%s7737_s3 + $0xc0] sm:$0xff]  ;;  %v2633_v24 = vld [vmem:[%s7737_s3 + $0x128] sm:$0xff] }
 0x6b5   :  { %2756 = vmatpush.msra.mxu3 %v2622_v21  ;;  %v2660_v21 = vld [vmem:[%s7737_s3 + $0x200] sm:$0xff] }
 0x6b6   :  { %v2464_v47 = vadd.f32 %v2463_v5, %v2453_v26  ;;  %v2654_v26 = vld [vmem:[%s7737_s3 + $0x1d0] sm:$0xff]  ;;  %v2688_v5 = vld [vmem:[%s7737_s3 + $0x2e0] sm:$0xff]  ;;  %2796 = vmatpush.msra.mxu0 %v2656_v19  ;;  %v2631_v19 = vld [vmem:[%s7737_s3 + $0x118] sm:$0xff] }
 0x6b7   :  { %2757 = vmatpush.msra.mxu3 %v2620_v7 }
 0x6b8   :  { %v2465_v35 = vadd.f32 %v2464_v47, %v2454_v30  ;;  %v2519_v30 = vld [vmem:[%s7736_s29 + $0x20] sm:$0xff]  ;;  %v2618_v47 = vld [vmem:[%s7737_s3 + $0xb0] sm:$0xff]  ;;  %2797 = vmatpush.msra.mxu0 %v2654_v26 }
 0x6b9   :  { %2758 = vmatpush.msra.mxu3 %v2618_v47 }
 0x6ba   :  { %v2466_v55 = vrot.slane %v2465_v35, 4 }
 0x6bc   :  { %v2467_v52 = vadd.f32 %v2466_v55, %v2465_v35  ;;  %v2652_v35 = vld [vmem:[%s7737_s3 + $0x1c0] sm:$0xff]  ;;  %v2686_v55 = vld [vmem:[%s7737_s3 + $0x2d0] sm:$0xff] }
 0x6bd   :  { %2798 = vmatpush.msra.mxu0 %v2652_v35 }
 0x6be   :  { %v2468_v32 = vrot.slane %v2467_v52, 2 }
 0x6c0   :  { %v2469_v17 = vadd.f32 %v2468_v32, %v2467_v52  ;;  %v2616_v52 = vld [vmem:[%s7737_s3 + $0xa0] sm:$0xff]  ;;  %v2650_v32 = vld [vmem:[%s7737_s3 + $0x1b0] sm:$0xff] }
 0x6c1   :  { %2759 = vmatpush.msra.mxu3 %v2616_v52  ;;  %2799 = vmatpush.msra.mxu0 %v2650_v32  ;;  %v2621_v52 = vld [vmem:[%s7737_s3 + $0xc8] sm:$0xff] }
 0x6c2   :  { %v2470_v1 = vrot.slane %v2469_v17, 1 }
 0x6c4   :  { %v2471_v51 = vadd.f32 %v2470_v1, %v2469_v17  ;;  %v2684_v17 = vld [vmem:[%s7737_s3 + $0x2c0] sm:$0xff]  ;;  %v2614_v1 = vld [vmem:[%s7737_s3 + $0x90] sm:$0xff] }
 0x6c5   :  { %2760 = vmatpush.msra.mxu3 %v2614_v1 }
 0x6c6   :  { %v2472_v23 = vmul.f32 0.0125, %v2471_v51  ;;  %v2648_v51 = vld [vmem:[%s7737_s3 + $0x1a0] sm:$0xff] }
 0x6c7   :  { %2800 = vmatpush.msra.mxu0 %v2648_v51 }
 0x6c8   :  { %v2473_v6 = vadd.f32 1e-05, %v2472_v23  ;;  %v2682_v23 = vld [vmem:[%s7737_s3 + $0x2b0] sm:$0xff] }
 0x6ca   :  { %5061 = vrsqrt.f32 %v2473_v6  ;;  %vm2480_vm2 = vweird.f32 %v2473_v6 }
 0x6d0   :  { %v5062_v62 = vpop.eup %5061 }
 0x6d1   :  { %v2475_v57 = vmul.f32 %v5062_v62, %v2473_v6  ;;  %vm2481_vm1 = vweird.f32 %v5062_v62  ;;  %v2612_v6 = vld [vmem:[%s7737_s3 + $0x80] sm:$0xff] }
 0x6d2   :  { %vm2482_vm3 = vmor %vm2480_vm2, %vm2481_vm1  ;;  %2761 = vmatpush.msra.mxu3 %v2612_v6 }
 0x6d3   :  { %v2476_v61 = vmul.f32 %v5062_v62, %v2475_v57  ;;  %v2520_v57 = vld [vmem:[%s7736_s29 + $0x28] sm:$0xff] }
 0x6d5   :  { %v2477_v58 = vmul.f32 0.5, %v2476_v61  ;;  %v2610_v61 = vld [vmem:[%s7737_s3 + $0x70] sm:$0xff] }
 0x6d6   :  { %2762 = vmatpush.msra.mxu3 %v2610_v61  ;;  %v2691_v61 = vld [vmem:[%s7737_s3 + $0x2f8] sm:$0xff] }
 0x6d7   :  { %v2478_v43 = vsub.f32 1.5, %v2477_v58  ;;  %v2680_v58 = vld [vmem:[%s7737_s3 + $0x2a0] sm:$0xff] }
 0x6d9   :  { %v2479_v42 = vmul.f32 %v5062_v62, %v2478_v43  ;;  %v2644_v43 = vld [vmem:[%s7737_s3 + $0x180] sm:$0xff] }
 0x6db   :  { %v2483_v60 = vsel %vm2482_vm3, %v5062_v62, %v2479_v42  ;;  %v2646_v62 = vld [vmem:[%s7737_s3 + $0x190] sm:$0xff] }
 0x6dc   :  { %v2484_v29 = vmul.f32 %v2483_v60, %v2315_v11  ;;  %2801 = vmatpush.msra.mxu0 %v2646_v62  ;;  %v2608_v11 = vld [vmem:[%s7737_s3 + $0x60] sm:$0xff]  ;;  %v2678_v42 = vld [vmem:[%s7737_s3 + $0x290] sm:$0xff] }
 0x6dd   :  { %v2642_v60 = vld [vmem:[%s7737_s3 + $0x170] sm:$0xff]  ;;  %2763 = vmatpush.msra.mxu3 %v2608_v11  ;;  %v2615_v11 = vld [vmem:[%s7737_s3 + $0x98] sm:$0xff] }
 0x6de   :  { %v2485_v37 = vperm.slane %v2484_v29, 0  ;;  %v2498_v40 = vmul.f32 %v2484_v29, %v6682_v36  ;;  %v2606_v29 = vld [vmem:[%s7737_s3 + $0x50] sm:$0xff]  ;;  %2802 = vmatpush.msra.mxu0 %v2644_v43 }
 0x6df   :  { %2764 = vmatpush.msra.mxu3 %v2606_v29 }
 0x6e0   :  { %v2499_v44 = vsub.f32 %v2316_v54, %v2498_v40  ;;  %v2497_v33 = vmul.f32 %v2485_v37, %v6679_v46  ;;  %v2496_v12 = vmul.f32 %v2485_v37, %v6675_v16  ;;  %v2495_v41 = vmul.f32 %v2485_v37, %v6672_v59  ;;  %v2676_v54 = vld [vmem:[%s7737_s3 + $0x280] sm:$0xff]  ;;  %2803 = vmatpush.msra.mxu0 %v2642_v60  ;;  %v2521_v40 = vld [vmem:[%s7736_s29 + $0x30] sm:$0xff]  ;;  %v2687_v60 = vld [vmem:[%s7737_s3 + $0x2d8] sm:$0xff] }
 0x6e1   :  { %v2494_v39 = vmul.f32 %v2485_v37, %v6668_v48  ;;  %v2493_v53 = vmul.f32 %v2485_v37, %v6664_v10  ;;  %v2492_v46 = vmul.f32 %v2485_v37, %v6658_v13  ;;  %v2491_v16 = vmul.f32 %v2485_v37, %v6652_v25 }
 0x6e2   :  { %v2501_v22 = vperm.slane %v2499_v44, 0  ;;  %v2490_v59 = vmul.f32 %v2485_v37, %v6648_v27  ;;  %v2489_v48 = vmul.f32 %v2485_v37, %v6640_v38  ;;  %v2488_v2 = vmul.f32 %v2485_v37, %v6636_v50  ;;  %v2516_v50 = vld [vmem:[%s7736_s29 + $0x8] sm:$0xff]  ;;  %v2602_v44 = vld [vmem:[%s7737_s3 + $0x30] sm:$0xff] }
 0x6e3   :  { %v2487_v25 = vmul.f32 %v2485_v37, %v6630_v34  ;;  %v2486_v27 = vmul.f32 %v2485_v37, %v6634_v28  ;;  %v2517_v34 = vld [vmem:[%s7736_s29 + $0x10] sm:$0xff]  ;;  %v2518_v28 = vld [vmem:[%s7736_s29 + $0x18] sm:$0xff]  ;;  %v2604_v37 = vld [vmem:[%s7737_s3 + $0x40] sm:$0xff] }
 0x6e4   :  { %v2514_v3 = vadd.f32 %v2501_v22, %v2497_v33  ;;  %v2513_v8 = vadd.f32 %v2501_v22, %v2496_v12  ;;  %v2512_v63 = vadd.f32 %v2501_v22, %v2495_v41  ;;  %v2511_v0 = vadd.f32 %v2501_v22, %v2494_v39  ;;  %2765 = vmatpush.msra.mxu3 %v2604_v37  ;;  %v2600_v33 = vld [vmem:[%s7737_s3 + $0x20] sm:$0xff]  ;;  %v2657_v12 = vld [vmem:[%s7737_s3 + $0x1e8] sm:$0xff] }
 0x6e5   :  { %v2510_v36 = vadd.f32 %v2501_v22, %v2493_v53  ;;  %v2509_v4 = vadd.f32 %v2501_v22, %v2492_v46  ;;  %v2508_v14 = vadd.f32 %v2501_v22, %v2491_v16  ;;  %v2507_v45 = vadd.f32 %v2501_v22, %v2490_v59  ;;  %v2653_v41 = vld [vmem:[%s7737_s3 + $0x1c8] sm:$0xff]  ;;  %v2598_v53 = vld [vmem:[%s7737_s3 + $0x10] sm:$0xff]  ;;  %v2636_v59 = vld [vmem:[%s7737_s3 + $0x140] sm:$0xff] }
 0x6e6   :  { %2551 = vmatpush.msrb.mxu1 %v2514_v3  ;;  %v2506_v10 = vadd.f32 %v2501_v22, %v2489_v48  ;;  %v2505_v13 = vadd.f32 %v2501_v22, %v2488_v2  ;;  %v2504_v31 = vadd.f32 %v2501_v22, %v2487_v25  ;;  %v2503_v38 = vadd.f32 %v2501_v22, %v2486_v27  ;;  %v2522_v22 = vld [vmem:[%s7736_s29 + $0x38] sm:$0xff]  ;;  %v2649_v39 = vld [vmem:[%s7737_s3 + $0x1a8] sm:$0xff]  ;;  %v2674_v46 = vld [vmem:[%s7737_s3 + $0x270] sm:$0xff] }
 0x6e7   :  { %2766 = vmatpush.msra.mxu3 %v2602_v44  ;;  %v2659_v3 = vld [vmem:[%s7737_s3 + $0x1f8] sm:$0xff]  ;;  %v2638_v16 = vld [vmem:[%s7737_s3 + $0x150] sm:$0xff]  ;;  %v2645_v48 = vld [vmem:[%s7737_s3 + $0x188] sm:$0xff] }
 0x6e8   :  { %2552 = vmatpush.msrb.mxu1 %v2513_v8  ;;  %2918 = vmatpush.msrb.mxu2 %v2659_v3  ;;  %v2655_v8 = vld [vmem:[%s7737_s3 + $0x1d8] sm:$0xff]  ;;  %v2634_v2 = vld [vmem:[%s7737_s3 + $0x130] sm:$0xff]  ;;  %v2641_v25 = vld [vmem:[%s7737_s3 + $0x168] sm:$0xff] }
 0x6e9   :  { %2767 = vmatpush.msra.mxu3 %v2600_v33  ;;  %v2632_v27 = vld [vmem:[%s7737_s3 + $0x120] sm:$0xff]  ;;  %v2613_v37 = vld [vmem:[%s7737_s3 + $0x88] sm:$0xff]  ;;  %v2683_v3 = vld [vmem:[%s7737_s3 + $0x2b8] sm:$0xff] }
 0x6ea   :  { %2553 = vmatpush.msrb.mxu1 %v2512_v63  ;;  %2919 = vmatpush.msrb.mxu2 %v2657_v12  ;;  %v2651_v63 = vld [vmem:[%s7737_s3 + $0x1b8] sm:$0xff] }
 0x6eb   :  { %2768 = vmatpush.msra.mxu3 %v2598_v53 }
 0x6ec   :  { %2554 = vmatpush.msrb.mxu1 %v2511_v0  ;;  %2920 = vmatpush.msrb.mxu2 %v2655_v8  ;;  %v2647_v0 = vld [vmem:[%s7737_s3 + $0x198] sm:$0xff] }
 0x6ee   :  { %2555 = vmatpush.msrb.mxu1 %v2510_v36  ;;  %2921 = vmatpush.msrb.mxu2 %v2653_v41  ;;  %v2640_v36 = vld [vmem:[%s7737_s3 + $0x160] sm:$0xff]  ;;  %v2609_v41 = vld [vmem:[%s7737_s3 + $0x68] sm:$0xff] }
 0x6ef   :  { %2804 = vmatpush.msra.mxu0 %v2640_v36  ;;  %v2607_v36 = vld [vmem:[%s7737_s3 + $0x58] sm:$0xff] }
 0x6f0   :  { %2556 = vmatpush.msrb.mxu1 %v2509_v4  ;;  %2922 = vmatpush.msrb.mxu2 %v2651_v63  ;;  %v2596_v4 = vld [vmem:[%s7737_s3] sm:$0xff]  ;;  %v2681_v63 = vld [vmem:[%s7737_s3 + $0x2a8] sm:$0xff] }
 0x6f1   :  { %2769 = vmatpush.msra.mxu3 %v2596_v4  ;;  %2805 = vmatpush.msra.mxu0 %v2638_v16 }
 0x6f2   :  { %2557 = vmatpush.msrb.mxu1 %v2508_v14  ;;  %2923 = vmatpush.msrb.mxu2 %v2649_v39  ;;  %v2672_v14 = vld [vmem:[%s7737_s3 + $0x260] sm:$0xff]  ;;  %v2679_v39 = vld [vmem:[%s7737_s3 + $0x298] sm:$0xff] }
 0x6f3   :  { %2806 = vmatpush.msra.mxu0 %v2636_v59  ;;  %v2675_v59 = vld [vmem:[%s7737_s3 + $0x278] sm:$0xff] }
 0x6f4   :  { %2558 = vmatpush.msrb.mxu1 %v2507_v45  ;;  %2924 = vmatpush.msrb.mxu2 %v2647_v0  ;;  %v2670_v45 = vld [vmem:[%s7737_s3 + $0x250] sm:$0xff] }
 0x6f5   :  { %2807 = vmatpush.msra.mxu0 %v2634_v2  ;;  %v2603_v2 = vld [vmem:[%s7737_s3 + $0x38] sm:$0xff] }
 0x6f6   :  { %2559 = vmatpush.msrb.mxu1 %v2506_v10  ;;  %v2643_v10 = vld [vmem:[%s7737_s3 + $0x178] sm:$0xff]  ;;  %2925 = vmatpush.msrb.mxu2 %v2645_v48  ;;  %v2673_v48 = vld [vmem:[%s7737_s3 + $0x268] sm:$0xff] }
 0x6f7   :  { %2808 = vmatpush.msra.mxu0 %v2632_v27  ;;  %v2601_v27 = vld [vmem:[%s7737_s3 + $0x28] sm:$0xff] }
 0x6f8   :  { %2560 = vmatpush.msrb.mxu1 %v2505_v13  ;;  %v2668_v13 = vld [vmem:[%s7737_s3 + $0x240] sm:$0xff]  ;;  %2926 = vmatpush.msrb.mxu2 %v2643_v10 }
 0x6fa   :  { %2561 = vmatpush.msrb.mxu1 %v2504_v31  ;;  %v2639_v31 = vld [vmem:[%s7737_s3 + $0x158] sm:$0xff]  ;;  %2927 = vmatpush.msrb.mxu2 %v2641_v25 }
 0x6fc   :  { %2562 = vmatpush.msrb.mxu1 %v2503_v38  ;;  %v2666_v38 = vld [vmem:[%s7737_s3 + $0x230] sm:$0xff]  ;;  %2928 = vmatpush.msrb.mxu2 %v2639_v31 }
 0x6fd   :  { %4841 = vmatmul.msk.f32.vlgmr.msrb.gmra.mxu1 %vm1250_vm11, %v2515_v49  ;;  %v2630_v49 = vld [vmem:[%s7737_s3 + $0x110] sm:$0xff] }
 0x6fe   :  { %2836 = vmatpush.msra.mxu1 %v2690_v15  ;;  %2809 = vmatpush.msra.mxu0 %v2630_v49  ;;  %v2629_v15 = vld [vmem:[%s7737_s3 + $0x108] sm:$0xff] }
 0x700   :  { %2837 = vmatpush.msra.mxu1 %v2688_v5  ;;  %v2627_v5 = vld [vmem:[%s7737_s3 + $0xf8] sm:$0xff] }
 0x701   :  { %2877 = vmatpush.msrb.mxu3 %v2627_v5  ;;  %v2661_v5 = vld [vmem:[%s7737_s3 + $0x208] sm:$0xff] }
 0x702   :  { %2838 = vmatpush.msra.mxu1 %v2686_v55  ;;  %v2623_v55 = vld [vmem:[%s7737_s3 + $0xd8] sm:$0xff] }
 0x704   :  { %2839 = vmatpush.msra.mxu1 %v2684_v17 }
 0x705   :  { %4842 = vmatmul.msk.f32.gmra.mxu1 %vm1250_vm11, %v2516_v50  ;;  %v2664_v50 = vld [vmem:[%s7737_s3 + $0x220] sm:$0xff] }
 0x706   :  { %2840 = vmatpush.msra.mxu1 %v2682_v23  ;;  %v2619_v23 = vld [vmem:[%s7737_s3 + $0xb8] sm:$0xff] }
 0x708   :  { %2841 = vmatpush.msra.mxu1 %v2680_v58 }
 0x70a   :  { %2842 = vmatpush.msra.mxu1 %v2678_v42  ;;  %v2689_v42 = vld [vmem:[%s7737_s3 + $0x2e8] sm:$0xff] }
 0x70c   :  { %2843 = vmatpush.msra.mxu1 %v2676_v54 }
 0x70d   :  { %4843 = vmatmul.msk.f32.gmra.mxu1 %vm1250_vm11, %v2517_v34  ;;  %v2628_v34 = vld [vmem:[%s7737_s3 + $0x100] sm:$0xff] }
 0x70e   :  { %2844 = vmatpush.msra.mxu1 %v2674_v46  ;;  %2810 = vmatpush.msra.mxu0 %v2628_v34  ;;  %v2677_v46 = vld [vmem:[%s7737_s3 + $0x288] sm:$0xff]  ;;  %v2599_v34 = vld [vmem:[%s7737_s3 + $0x18] sm:$0xff] }
 0x710   :  { %2845 = vmatpush.msra.mxu1 %v2672_v14  ;;  %2959 = vmatpush.msrb.mxu0 %v2691_v61  ;;  %v2605_v14 = vld [vmem:[%s7737_s3 + $0x48] sm:$0xff] }
 0x712   :  { %2846 = vmatpush.msra.mxu1 %v2670_v45  ;;  %2960 = vmatpush.msrb.mxu0 %v2689_v42 }
 0x714   :  { %2847 = vmatpush.msra.mxu1 %v2668_v13  ;;  %2961 = vmatpush.msrb.mxu0 %v2687_v60  ;;  %v2671_v13 = vld [vmem:[%s7737_s3 + $0x258] sm:$0xff] }
 0x715   :  { %4844 = vmatmul.msk.f32.gmra.mxu1 %vm1250_vm11, %v2518_v28  ;;  %v2637_v28 = vld [vmem:[%s7737_s3 + $0x148] sm:$0xff] }
 0x716   :  { %2848 = vmatpush.msra.mxu1 %v2666_v38  ;;  %2929 = vmatpush.msrb.mxu2 %v2637_v28  ;;  %v2669_v38 = vld [vmem:[%s7737_s3 + $0x248] sm:$0xff]  ;;  %v2667_v28 = vld [vmem:[%s7737_s3 + $0x238] sm:$0xff] }
 0x718   :  { %2849 = vmatpush.msra.mxu1 %v2664_v50  ;;  %2930 = vmatpush.msrb.mxu2 %v2635_v56  ;;  %v2665_v56 = vld [vmem:[%s7737_s3 + $0x228] sm:$0xff] }
 0x71a   :  { %2850 = vmatpush.msra.mxu1 %v2662_v18  ;;  %2931 = vmatpush.msrb.mxu2 %v2633_v24  ;;  %v2597_v24 = vld [vmem:[%s7737_s3 + $0x8] sm:$0xff] }
 0x71c   :  { %2851 = vmatpush.msra.mxu1 %v2660_v21  ;;  %2932 = vmatpush.msrb.mxu2 %v2631_v19  ;;  %v2663_v19 = vld [vmem:[%s7737_s3 + $0x218] sm:$0xff] }
 0x71d   :  { %4845 = vmatmul.msk.f32.gmra.mxu1 %vm1250_vm11, %v2519_v30  ;;  %v2625_v30 = vld [vmem:[%s7737_s3 + $0xe8] sm:$0xff] }
 0x71e   :  { %2933 = vmatpush.msrb.mxu2 %v2629_v15  ;;  %2878 = vmatpush.msrb.mxu3 %v2625_v30 }
 0x720   :  { %2879 = vmatpush.msrb.mxu3 %v2623_v55 }
 0x722   :  { %2880 = vmatpush.msrb.mxu3 %v2621_v52 }
 0x724   :  { %2881 = vmatpush.msrb.mxu3 %v2619_v23 }
 0x725   :  { %4846 = vmatmul.msk.f32.gmra.mxu1 %vm1250_vm11, %v2520_v57  ;;  %v2617_v57 = vld [vmem:[%s7737_s3 + $0xa8] sm:$0xff] }
 0x726   :  { %2882 = vmatpush.msrb.mxu3 %v2617_v57 }
 0x728   :  { %2883 = vmatpush.msrb.mxu3 %v2615_v11 }
 0x72a   :  { %2884 = vmatpush.msrb.mxu3 %v2613_v37 }
 0x72d   :  { %4847 = vmatmul.msk.f32.gmra.mxu1 %vm1250_vm11, %v2521_v40  ;;  %v2685_v40 = vld [vmem:[%s7737_s3 + $0x2c8] sm:$0xff] }
 0x72e   :  { %2962 = vmatpush.msrb.mxu0 %v2685_v40 }
 0x730   :  { %2963 = vmatpush.msrb.mxu0 %v2683_v3 }
 0x732   :  { %2964 = vmatpush.msrb.mxu0 %v2681_v63 }
 0x734   :  { %2965 = vmatpush.msrb.mxu0 %v2679_v39 }
 0x735   :  { %4848 = vmatmul.msk.f32.gmra.mxu1 %vm1250_vm11, %v2522_v22  ;;  %v2611_v22 = vld [vmem:[%s7737_s3 + $0x78] sm:$0xff] }
 0x736   :  { %2885 = vmatpush.msrb.mxu3 %v2611_v22  ;;  %2966 = vmatpush.msrb.mxu0 %v2677_v46  ;;  %v6909_v46 = vpop.permute.xlu0 %3017 }
 0x738   :  { %2886 = vmatpush.msrb.mxu3 %v2609_v41  ;;  %2967 = vmatpush.msrb.mxu0 %v2675_v59 }
 0x73a   :  { %2887 = vmatpush.msrb.mxu3 %v2607_v36  ;;  %2968 = vmatpush.msrb.mxu0 %v2673_v48 }
 0x73c   :  { %2888 = vmatpush.msrb.mxu3 %v2605_v14  ;;  %2969 = vmatpush.msrb.mxu0 %v2671_v13 }
 0x73e   :  { %2889 = vmatpush.msrb.mxu3 %v2603_v2  ;;  %2970 = vmatpush.msrb.mxu0 %v2669_v38  ;;  %v6913_v38 = vpop.permute.xlu1 %3022 }
 0x740   :  { %2890 = vmatpush.msrb.mxu3 %v2601_v27  ;;  %2971 = vmatpush.msrb.mxu0 %v2667_v28 }
 0x742   :  { %2891 = vmatpush.msrb.mxu3 %v2599_v34  ;;  %2972 = vmatpush.msrb.mxu0 %v2665_v56 }
 0x744   :  { %2892 = vmatpush.msrb.mxu3 %v2597_v24  ;;  %2973 = vmatpush.msrb.mxu0 %v2663_v19 }
 0x746   :  { %2974 = vmatpush.msrb.mxu0 %v2661_v5 }
 0x77a   :  { %v2564_v7 = vpop.f32.mrf.mxu1 }
 0x77b   :  { %v6811_v26 = vmax.f32 %v2564_v7, 0.0 }
 0x77d   :  { %2770 = vmatmul.f32.vlgmr.msra.gmra.mxu3 %v6811_v26  ;;  %v2701_v32 = vrot.slane %v6811_v26, 1  ;;  %v2725_v17 = vrot.slane %v6811_v26, 2 }
 0x782   :  { %v2567_v47 = vpop.f32.mrf.mxu1 }
 0x783   :  { %v6816_v35 = vmax.f32 %v2567_v47, 0.0 }
 0x785   :  { %v2702_v1 = vrot.slane %v6816_v35, 1  ;;  %v2726_v51 = vrot.slane %v6816_v35, 2  ;;  %2773 = vmatmul.f32.gmra.mxu3 %v6816_v35 }
 0x787   :  { %v2703_v6 = vsel %vm229_vm0, %v2701_v32, %v2702_v1  ;;  %v6828_v62 = vsel %vm935_vm9, %v2725_v17, %v2726_v51 }
 0x788   :  { %2811 = vmatmul.f32.vlgmr.msra.gmra.mxu0 %v2703_v6  ;;  %2852 = vmatmul.f32.vlgmr.msra.gmra.mxu1 %v6828_v62 }
 0x789   :  { %2934 = vmatmul.f32.vlgmr.msrb.gmra.mxu2 %v2703_v6 }
 0x78a   :  { %v2570_v58 = vpop.f32.mrf.mxu1 }
 0x78b   :  { %v6833_v43 = vmax.f32 %v2570_v58, 0.0 }
 0x78d   :  { %2776 = vmatmul.f32.gmra.mxu3 %v6833_v43  ;;  %v2704_v29 = vrot.slane %v6833_v43, 1  ;;  %v2728_v54 = vrot.slane %v6833_v43, 2 }
 0x78f   :  { %v2705_v44 = vsel %vm229_vm0, %v2702_v1, %v2704_v29  ;;  %v6845_v33 = vsel %vm935_vm9, %v2726_v51, %v2728_v54 }
 0x790   :  { %2814 = vmatmul.f32.gmra.mxu0 %v2705_v44  ;;  %2855 = vmatmul.f32.gmra.mxu1 %v6845_v33 }
 0x791   :  { %2937 = vmatmul.f32.gmra.mxu2 %v2705_v44 }
 0x792   :  { %v2573_v12 = vpop.f32.mrf.mxu1 }
 0x793   :  { %v6850_v8 = vmax.f32 %v2573_v12, 0.0 }
 0x795   :  { %2779 = vmatmul.f32.gmra.mxu3 %v6850_v8  ;;  %v2706_v0 = vrot.slane %v6850_v8, 1  ;;  %v2730_v53 = vrot.slane %v6850_v8, 2 }
 0x797   :  { %v2707_v4 = vsel %vm229_vm0, %v2704_v29, %v2706_v0  ;;  %v6862_v16 = vsel %vm935_vm9, %v2728_v54, %v2730_v53 }
 0x798   :  { %2817 = vmatmul.f32.gmra.mxu0 %v2707_v4  ;;  %2858 = vmatmul.f32.gmra.mxu1 %v6862_v16 }
 0x799   :  { %2940 = vmatmul.f32.gmra.mxu2 %v2707_v4 }
 0x79a   :  { %v2576_v45 = vpop.f32.mrf.mxu1 }
 0x79b   :  { %v6868_v10 = vmax.f32 %v2576_v45, 0.0 }
 0x79d   :  { %2782 = vmatmul.f32.gmra.mxu3 %v6868_v10  ;;  %v2708_v25 = vrot.slane %v6868_v10, 1  ;;  %v2732_v31 = vrot.slane %v6868_v10, 2 }
 0x79f   :  { %v2709_v49 = vsel %vm229_vm0, %v2706_v0, %v2708_v25  ;;  %v2733_v50 = vsel %vm935_vm9, %v2730_v53, %v2732_v31  ;;  %v6907_v53 = vpop.permute.xlu2 %3012 }
 0x7a0   :  { %2820 = vmatmul.f32.gmra.mxu0 %v2709_v49  ;;  %2861 = vmatmul.f32.gmra.mxu1 %v2733_v50 }
 0x7a1   :  { %2943 = vmatmul.f32.gmra.mxu2 %v2709_v49 }
 0x7a2   :  { %v2579_v18 = vpop.f32.mrf.mxu1 }
 0x7a3   :  { %v2593_v21 = vmax.f32 %v2579_v18, 0.0 }
 0x7a5   :  { %2785 = vmatmul.f32.gmra.mxu3 %v2593_v21  ;;  %v2710_v15 = vrot.slane %v2593_v21, 1  ;;  %v2734_v7 = vrot.slane %v2593_v21, 2 }
 0x7a7   :  { %v2711_v30 = vsel %vm229_vm0, %v2708_v25, %v2710_v15  ;;  %v2735_v47 = vsel %vm935_vm9, %v2732_v31, %v2734_v7  ;;  %v6919_v18 = vpop.permute.xlu2 %3027 }
 0x7a8   :  { %2823 = vmatmul.f32.gmra.mxu0 %v2711_v30  ;;  %2864 = vmatmul.f32.gmra.mxu1 %v2735_v47 }
 0x7a9   :  { %2946 = vmatmul.f32.gmra.mxu2 %v2711_v30 }
 0x7aa   :  { %v2582_v55 = vpop.f32.mrf.mxu1 }
 0x7ab   :  { %v2594_v52 = vmax.f32 %v2582_v55, 0.0 }
 0x7ad   :  { %2788 = vmatmul.f32.gmra.mxu3 %v2594_v52  ;;  %v2712_v32 = vrot.slane %v2594_v52, 1  ;;  %v2736_v17 = vrot.slane %v2594_v52, 2 }
 0x7af   :  { %v2713_v1 = vsel %vm229_vm0, %v2710_v15, %v2712_v32  ;;  %v2737_v51 = vsel %vm935_vm9, %v2734_v7, %v2736_v17 }
 0x7b0   :  { %2826 = vmatmul.f32.gmra.mxu0 %v2713_v1  ;;  %2867 = vmatmul.f32.gmra.mxu1 %v2737_v51 }
 0x7b1   :  { %2949 = vmatmul.f32.gmra.mxu2 %v2713_v1 }
 0x7b2   :  { %v2585_v23 = vpop.f32.mrf.mxu1 }
 0x7b3   :  { %v2595_v6 = vmax.f32 %v2585_v23, 0.0 }
 0x7b5   :  { %2791 = vmatmul.f32.gmra.mxu3 %v2595_v6  ;;  %v2714_v57 = vrot.slane %v2595_v6, 1  ;;  %v2738_v61 = vrot.slane %v2595_v6, 2 }
 0x7b7   :  { %v2715_v58 = vsel %vm229_vm0, %v2712_v32, %v2714_v57  ;;  %v2739_v11 = vsel %vm935_vm9, %v2736_v17, %v2738_v61  ;;  %v2716_v42 = vsel %vm229_vm0, %v2714_v57, %v5887_v20  ;;  %v2740_v60 = vsel %vm935_vm9, %v2738_v61, %v5901_v9  ;;  %v6933_v32 = vpop.permute.xlu0 %3032 }
 0x7b8   :  { %2829 = vmatmul.f32.gmra.mxu0 %v2715_v58  ;;  %2870 = vmatmul.f32.gmra.mxu1 %v2739_v11 }
 0x7b9   :  { %2952 = vmatmul.f32.gmra.mxu2 %v2715_v58  ;;  %v6943_v58 = vpop.permute.xlu1 %3037 }
 0x7bd   :  { %2893 = vmatmul.f32.vlgmr.msrb.gmra.mxu3 %v6811_v26 }
 0x7c0   :  { %2832 = vmatmul.f32.gmra.mxu0 %v2716_v42  ;;  %2873 = vmatmul.f32.gmra.mxu1 %v2740_v60 }
 0x7c1   :  { %2955 = vmatmul.f32.gmra.mxu2 %v2716_v42 }
 0x7c5   :  { %2896 = vmatmul.f32.gmra.mxu3 %v6816_v35 }
 0x7c8   :  { %2975 = vmatmul.f32.vlgmr.msrb.gmra.mxu0 %v6828_v62 }
 0x7cd   :  { %2899 = vmatmul.f32.gmra.mxu3 %v6833_v43 }
 0x7d0   :  { %2978 = vmatmul.f32.gmra.mxu0 %v6845_v33 }
 0x7d5   :  { %2902 = vmatmul.f32.gmra.mxu3 %v6850_v8  ;;  %v6904_v8 = vld [vmem:[%s7738_s8] sm:$0x3] }
 0x7d6   :  { %v2750_v39 = vperm.slane %v6904_v8, 0 }
 0x7d8   :  { %2981 = vmatmul.f32.gmra.mxu0 %v6862_v16 }
 0x7dd   :  { %2905 = vmatmul.f32.gmra.mxu3 %v6868_v10 }
 0x7e0   :  { %2984 = vmatmul.f32.gmra.mxu0 %v2733_v50 }
 0x7e5   :  { %2908 = vmatmul.f32.gmra.mxu3 %v2593_v21 }
 0x7e8   :  { %2987 = vmatmul.f32.gmra.mxu0 %v2735_v47 }
 0x7ed   :  { %2911 = vmatmul.f32.gmra.mxu3 %v2594_v52 }
 0x7f0   :  { %2990 = vmatmul.f32.gmra.mxu0 %v2737_v51 }
 0x7f5   :  { %2914 = vmatmul.f32.gmra.mxu3 %v2595_v6 }
 0x7f8   :  { %2993 = vmatmul.f32.gmra.mxu0 %v2739_v11 }
 0x800   :  { %2996 = vmatmul.f32.gmra.mxu0 %v2740_v60  ;;  %v2771_v26 = vpop.f32.mrf.mxu3 }
 0x801   :  { %v2772_v4 = vadd.f32 %v2771_v26, %v2750_v39  ;;  %v6947_v26 = vpop.permute.xlu2 %3042 }
 0x805   :  { %v2812_v35 = vpop.f32.mrf.mxu0  ;;  %v2853_v62 = vpop.f32.mrf.mxu1 }
 0x806   :  { %v2813_v48 = vadd.f32 %v2812_v35, %v2772_v4 }
 0x808   :  { %v2774_v43 = vpop.f32.mrf.mxu3  ;;  %v6915_v49 = vadd.f32 %v2853_v62, %v2813_v48 }
 0x809   :  { %v2775_v36 = vadd.f32 %v2774_v43, %v2750_v39 }
 0x80a   :  { %v3050_v30 = vmul.f32 %v6907_v53, %v6915_v49 }
 0x80c   :  { %v6925_v15 = vpop.f32.mrf.mxu2 }
 0x80d   :  { %v2815_v29 = vpop.f32.mrf.mxu0  ;;  %v2856_v54 = vpop.f32.mrf.mxu1 }
 0x80e   :  { %v2816_v16 = vadd.f32 %v2815_v29, %v2775_v36 }
 0x810   :  { %v2777_v37 = vpop.f32.mrf.mxu3  ;;  %v6911_v13 = vadd.f32 %v2856_v54, %v2816_v16 }
 0x811   :  { %v2778_v14 = vadd.f32 %v2777_v37, %v2750_v39 }
 0x812   :  { %v3052_v56 = vmul.f32 %v6909_v46, %v6911_v13 }
 0x814   :  { %v3066_v17 = vadd.f32 %v3052_v56, %v3050_v30  ;;  %v2938_v54 = vpop.f32.mrf.mxu2  ;;  %v2751_v30 = vperm.slane %v6904_v8, 1 }
 0x815   :  { %v2818_v40 = vpop.f32.mrf.mxu0  ;;  %v2859_v44 = vpop.f32.mrf.mxu1 }
 0x816   :  { %v2819_v10 = vadd.f32 %v2818_v40, %v2778_v14 }
 0x818   :  { %v2780_v33 = vpop.f32.mrf.mxu3  ;;  %v6917_v50 = vadd.f32 %v2859_v44, %v2819_v10 }
 0x819   :  { %v2781_v2 = vadd.f32 %v2780_v33, %v2750_v39 }
 0x81a   :  { %v3054_v47 = vmul.f32 %v6913_v38, %v6917_v50 }
 0x81c   :  { %v3067_v6 = vadd.f32 %v3066_v17, %v3054_v47  ;;  %v2941_v4 = vpop.f32.mrf.mxu2 }
 0x81d   :  { %v2821_v22 = vpop.f32.mrf.mxu0  ;;  %v2862_v3 = vpop.f32.mrf.mxu1 }
 0x81e   :  { %v2822_v25 = vadd.f32 %v2821_v22, %v2781_v2  ;;  %v6953_v22 = vpop.permute.xlu0 %3047 }
 0x820   :  { %v2783_v12 = vpop.f32.mrf.mxu3  ;;  %v6923_v21 = vadd.f32 %v2862_v3, %v2822_v25 }
 0x821   :  { %v2784_v31 = vadd.f32 %v2783_v12, %v2750_v39 }
 0x822   :  { %v3056_v1 = vmul.f32 %v6919_v18, %v6923_v21 }
 0x824   :  { %v3068_v11 = vadd.f32 %v3067_v6, %v3056_v1  ;;  %v2944_v48 = vpop.f32.mrf.mxu2 }
 0x825   :  { %v2824_v41 = vpop.f32.mrf.mxu0  ;;  %v2865_v63 = vpop.f32.mrf.mxu1 }
 0x826   :  { %v2825_v34 = vadd.f32 %v2824_v41, %v2784_v31 }
 0x828   :  { %v2786_v0 = vpop.f32.mrf.mxu3  ;;  %v6931_v55 = vadd.f32 %v2865_v63, %v2825_v34 }
 0x829   :  { %v2787_v28 = vadd.f32 %v2786_v0, %v2750_v39 }
 0x82a   :  { %v3058_v57 = vmul.f32 %v6933_v32, %v6931_v55 }
 0x82c   :  { %v3069_v62 = vadd.f32 %v3068_v11, %v3058_v57  ;;  %v2947_v34 = vpop.f32.mrf.mxu2 }
 0x82d   :  { %v2827_v59 = vpop.f32.mrf.mxu0  ;;  %v2868_v45 = vpop.f32.mrf.mxu1 }
 0x82e   :  { %v2828_v24 = vadd.f32 %v2827_v59, %v2787_v28 }
 0x830   :  { %v2789_v27 = vpop.f32.mrf.mxu3  ;;  %v6937_v51 = vadd.f32 %v2868_v45, %v2828_v24 }
 0x831   :  { %v2790_v19 = vadd.f32 %v2789_v27, %v2750_v39 }
 0x832   :  { %v3060_v42 = vmul.f32 %v6943_v58, %v6937_v51 }
 0x834   :  { %v3070_v40 = vadd.f32 %v3069_v62, %v3060_v42  ;;  %v2950_v1 = vpop.f32.mrf.mxu2 }
 0x835   :  { %v2830_v7 = vpop.f32.mrf.mxu0  ;;  %v2871_v5 = vpop.f32.mrf.mxu1 }
 0x836   :  { %v2831_v52 = vadd.f32 %v2830_v7, %v2790_v19 }
 0x838   :  { %v2792_v23 = vpop.f32.mrf.mxu3  ;;  %v6941_v61 = vadd.f32 %v2871_v5, %v2831_v52 }
 0x839   :  { %v2793_v60 = vadd.f32 %v2792_v23, %v2750_v39 }
 0x83a   :  { %v3062_v43 = vmul.f32 %v6947_v26, %v6941_v61 }
 0x83c   :  { %v3071_v3 = vadd.f32 %v3070_v40, %v3062_v43 }
 0x83d   :  { %v2833_v35 = vpop.f32.mrf.mxu0  ;;  %v2874_v37 = vpop.f32.mrf.mxu1 }
 0x83e   :  { %v2834_v29 = vadd.f32 %v2833_v35, %v2793_v60 }
 0x840   :  { %v6951_v44 = vadd.f32 %v2874_v37, %v2834_v29  ;;  %v2894_v33 = vpop.f32.mrf.mxu3 }
 0x841   :  { %v2895_v57 = vadd.f32 %v2894_v33, %v2751_v30 }
 0x842   :  { %v3064_v12 = vmul.f32 %v6953_v22, %v6951_v44 }
 0x843   :  { %v2936_v8 = vadd.f32 %v6925_v15, %v2895_v57 }
 0x844   :  { %v3072_v41 = vadd.f32 %v3071_v3, %v3064_v12 }
 0x845   :  { %v2976_v63 = vpop.f32.mrf.mxu0 }
 0x846   :  { %v3073_v39 = vrot.slane %v3072_v41, 4 }
 0x848   :  { %v3074_v0 = vadd.f32 %v3073_v39, %v3072_v41  ;;  %v2897_v36 = vpop.f32.mrf.mxu3 }
 0x849   :  { %v2898_v17 = vadd.f32 %v2897_v36, %v2751_v30 }
 0x84a   :  { %v3075_v16 = vrot.slane %v3074_v0, 2 }
 0x84b   :  { %v2939_v62 = vadd.f32 %v2938_v54, %v2898_v17 }
 0x84c   :  { %v3076_v59 = vadd.f32 %v3075_v16, %v3074_v0 }
 0x84d   :  { %v2979_v14 = vpop.f32.mrf.mxu0 }
 0x84e   :  { %v3077_v10 = vrot.slane %v3076_v59, 1  ;;  %v6975_v39 = vadd.f32 %v2979_v14, %v2939_v62 }
 0x850   :  { %v2900_v45 = vpop.f32.mrf.mxu3  ;;  %v3078_v25 = vadd.f32 %v3077_v10, %v3076_v59  ;;  %v6977_v59 = vadd.f32 %v2976_v63, %v2936_v8  ;;  %v3053_v14 = vmul.f32 %v6909_v46, %v6975_v39 }
 0x851   :  { %v2901_v11 = vadd.f32 %v2900_v45, %v2751_v30 }
 0x852   :  { %v6957_v27 = vmul.f32 0.020833334, %v3078_v25 }
 0x853   :  { %v2942_v37 = vadd.f32 %v2941_v4, %v2901_v11  ;;  %v2953_v4 = vpop.f32.mrf.mxu2 }
 0x854   :  { %v3094_v56 = vsub.f32 %v6915_v49, %v6957_v27  ;;  %v3096_v24 = vsub.f32 %v6911_v13, %v6957_v27  ;;  %v3098_v47 = vsub.f32 %v6917_v50, %v6957_v27  ;;  %v3100_v60 = vsub.f32 %v6923_v21, %v6957_v27 }
 0x855   :  { %v2982_v2 = vpop.f32.mrf.mxu0  ;;  %v3102_v3 = vsub.f32 %v6931_v55, %v6957_v27  ;;  %v3104_v10 = vsub.f32 %v6937_v51, %v6957_v27 }
 0x856   :  { %v3110_v7 = vmul.f32 %v3094_v56, %v6907_v53  ;;  %v3112_v5 = vmul.f32 %v3096_v24, %v6909_v46  ;;  %v3114_v35 = vmul.f32 %v3098_v47, %v6913_v38  ;;  %v3116_v12 = vmul.f32 %v3100_v60, %v6919_v18 }
 0x857   :  { %v6979_v54 = vadd.f32 %v2982_v2, %v2942_v37  ;;  %v3118_v25 = vmul.f32 %v3102_v3, %v6933_v32  ;;  %v3051_v2 = vmul.f32 %v6907_v53, %v6977_v59  ;;  %v3120_v47 = vmul.f32 %v3104_v10, %v6943_v58 }
 0x858   :  { %v2903_v31 = vpop.f32.mrf.mxu3  ;;  %v3126_v23 = vmul.f32 %v3110_v7, %v3110_v7  ;;  %v3128_v6 = vmul.f32 %v3112_v5, %v3112_v5  ;;  %v3130_v33 = vmul.f32 %v3114_v35, %v3114_v35  ;;  %v3106_v5 = vsub.f32 %v6941_v61, %v6957_v27 }
 0x859   :  { %v2904_v43 = vadd.f32 %v2903_v31, %v2751_v30  ;;  %v3132_v31 = vmul.f32 %v3116_v12, %v3116_v12  ;;  %v3134_v17 = vmul.f32 %v3118_v25, %v3118_v25  ;;  %v3108_v35 = vsub.f32 %v6951_v44, %v6957_v27 }
 0x85a   :  { %v3142_v29 = vadd.f32 %v3128_v6, %v3126_v23  ;;  %v3122_v62 = vmul.f32 %v3106_v5, %v6947_v26 }
 0x85b   :  { %v2945_v0 = vadd.f32 %v2944_v48, %v2904_v43  ;;  %v3136_v43 = vmul.f32 %v3120_v47, %v3120_v47 }
 0x85c   :  { %v3143_v16 = vadd.f32 %v3142_v29, %v3130_v33 }
 0x85d   :  { %v2985_v28 = vpop.f32.mrf.mxu0 }
 0x85e   :  { %v6986_v48 = vadd.f32 %v2985_v28, %v2945_v0  ;;  %v3144_v63 = vadd.f32 %v3143_v16, %v3132_v31  ;;  %v3079_v28 = vadd.f32 %v3053_v14, %v3051_v2  ;;  %v3124_v0 = vmul.f32 %v3108_v35, %v6953_v22 }
 0x860   :  { %v2906_v19 = vpop.f32.mrf.mxu3  ;;  %v3145_v57 = vadd.f32 %v3144_v63, %v3134_v17  ;;  %v3140_v25 = vmul.f32 %v3124_v0, %v3124_v0 }
 0x861   :  { %v2907_v40 = vadd.f32 %v2906_v19, %v2751_v30 }
 0x862   :  { %v3146_v3 = vadd.f32 %v3145_v57, %v3136_v43 }
 0x863   :  { %v2948_v45 = vadd.f32 %v2947_v34, %v2907_v40  ;;  %v3055_v34 = vmul.f32 %v6913_v38, %v6979_v54  ;;  %v2956_v40 = vpop.f32.mrf.mxu2 }
 0x865   :  { %v2988_v52 = vpop.f32.mrf.mxu0  ;;  %v3080_v11 = vadd.f32 %v3079_v28, %v3055_v34 }
 0x866   :  { %v6992_v19 = vadd.f32 %v2988_v52, %v2948_v45 }
 0x868   :  { %v2909_v42 = vpop.f32.mrf.mxu3  ;;  %v3059_v52 = vmul.f32 %v6933_v32, %v6992_v19 }
 0x869   :  { %v2910_v36 = vadd.f32 %v2909_v42, %v2751_v30 }
 0x86b   :  { %v2951_v24 = vadd.f32 %v2950_v1, %v2910_v36  ;;  %v3057_v1 = vmul.f32 %v6919_v18, %v6986_v48  ;;  %v3138_v36 = vmul.f32 %v3122_v62, %v3122_v62 }
 0x86d   :  { %v2991_v41 = vpop.f32.mrf.mxu0  ;;  %v3081_v8 = vadd.f32 %v3080_v11, %v3057_v1 }
 0x86e   :  { %v6999_v6 = vadd.f32 %v2991_v41, %v2951_v24 }
 0x86f   :  { %v3082_v33 = vadd.f32 %v3081_v8, %v3059_v52 }
 0x870   :  { %v2912_v15 = vpop.f32.mrf.mxu3  ;;  %v3061_v37 = vmul.f32 %v6943_v58, %v6999_v6 }
 0x871   :  { %v2913_v56 = vadd.f32 %v2912_v15, %v2751_v30 }
 0x872   :  { %v3083_v45 = vadd.f32 %v3082_v33, %v3061_v37 }
 0x873   :  { %v2954_v7 = vadd.f32 %v2953_v4, %v2913_v56  ;;  %v3147_v4 = vadd.f32 %v3146_v3, %v3138_v36 }
 0x875   :  { %v2994_v23 = vpop.f32.mrf.mxu0  ;;  %v3148_v56 = vadd.f32 %v3147_v4, %v3140_v25 }
 0x876   :  { %v7003_v42 = vadd.f32 %v2994_v23, %v2954_v7 }
 0x877   :  { %v3149_v63 = vrot.slane %v3148_v56, 4 }
 0x878   :  { %v2915_v60 = vpop.f32.mrf.mxu3  ;;  %v3063_v41 = vmul.f32 %v6947_v26, %v7003_v42 }
 0x879   :  { %v2916_v29 = vadd.f32 %v2915_v60, %v2751_v30  ;;  %v3150_v7 = vadd.f32 %v3149_v63, %v3148_v56 }
 0x87a   :  { %v3084_v30 = vadd.f32 %v3083_v45, %v3063_v41 }
 0x87b   :  { %v2957_v12 = vadd.f32 %v2956_v40, %v2916_v29  ;;  %v3151_v17 = vrot.slane %v3150_v7, 2 }
 0x87d   :  { %v2997_v16 = vpop.f32.mrf.mxu0  ;;  %v3152_v52 = vadd.f32 %v3151_v17, %v3150_v7 }
 0x87e   :  { %v7013_v15 = vadd.f32 %v2997_v16, %v2957_v12 }
 0x87f   :  { %v3153_v3 = vrot.slane %v3152_v52, 1 }
 0x880   :  { %v3065_v10 = vmul.f32 %v6953_v22, %v7013_v15 }
 0x881   :  { %v3154_v16 = vadd.f32 %v3153_v3, %v3152_v52 }
 0x882   :  { %v3085_v31 = vadd.f32 %v3084_v30, %v3065_v10 }
 0x884   :  { %v3086_v14 = vrot.slane %v3085_v31, 4 }
 0x886   :  { %v3087_v24 = vadd.f32 %v3086_v14, %v3085_v31  ;;  %v3168_v31 = vmul.f32 0.020833334, %v3154_v16 }
 0x888   :  { %v3088_v2 = vrot.slane %v3087_v24, 2  ;;  %v3170_v63 = vadd.f32 1e-05, %v3168_v31 }
 0x88a   :  { %v3089_v34 = vadd.f32 %v3088_v2, %v3087_v24  ;;  %5063 = vrsqrt.f32 %v3170_v63  ;;  %vm3178_vm5 = vweird.f32 %v3170_v63 }
 0x88c   :  { %v3090_v5 = vrot.slane %v3089_v34, 1 }
 0x88e   :  { %v3091_v47 = vadd.f32 %v3090_v5, %v3089_v34 }
 0x890   :  { %v7017_v23 = vmul.f32 0.020833334, %v3091_v47 }
 0x892   :  { %v3095_v28 = vsub.f32 %v6977_v59, %v7017_v23  ;;  %v3097_v1 = vsub.f32 %v6975_v39, %v7017_v23  ;;  %v3099_v57 = vsub.f32 %v6979_v54, %v7017_v23  ;;  %v3101_v11 = vsub.f32 %v6986_v48, %v7017_v23 }
 0x893   :  { %v3103_v60 = vsub.f32 %v6992_v19, %v7017_v23  ;;  %v3105_v29 = vsub.f32 %v6999_v6, %v7017_v23  ;;  %v3107_v12 = vsub.f32 %v7003_v42, %v7017_v23 }
 0x894   :  { %v3111_v35 = vmul.f32 %v3095_v28, %v6907_v53  ;;  %v3113_v62 = vmul.f32 %v3097_v1, %v6909_v46  ;;  %v3115_v43 = vmul.f32 %v3099_v57, %v6913_v38  ;;  %v3117_v8 = vmul.f32 %v3101_v11, %v6919_v18 }
 0x895   :  { %v3119_v33 = vmul.f32 %v3103_v60, %v6933_v32  ;;  %v3109_v53 = vsub.f32 %v7013_v15, %v7017_v23  ;;  %v3121_v46 = vmul.f32 %v3105_v29, %v6943_v58  ;;  %v3123_v18 = vmul.f32 %v3107_v12, %v6947_v26  ;;  %v5064_v26 = vpop.eup %5063 }
 0x896   :  { %v3127_v37 = vmul.f32 %v3111_v35, %v3111_v35  ;;  %v3129_v40 = vmul.f32 %v3113_v62, %v3113_v62  ;;  %v3131_v41 = vmul.f32 %v3115_v43, %v3115_v43  ;;  %v3133_v38 = vmul.f32 %v3117_v8, %v3117_v8  ;;  %v3000_v43 = vld [vmem:[%s7739_s14] sm:$0x3] }
 0x897   :  { %v3135_v45 = vmul.f32 %v3119_v33, %v3119_v33  ;;  %v3125_v30 = vmul.f32 %v3109_v53, %v6953_v22  ;;  %v3137_v10 = vmul.f32 %v3121_v46, %v3121_v46  ;;  %v3139_v32 = vmul.f32 %v3123_v18, %v3123_v18 }
 0x898   :  { %v3155_v0 = vadd.f32 %v3129_v40, %v3127_v37  ;;  %v3173_v28 = vmul.f32 %v5064_v26, %v3170_v63  ;;  %vm3179_vm4 = vweird.f32 %v5064_v26  ;;  %v3193_v40 = vperm.slane %v3000_v43, 0 }
 0x899   :  { %v3141_v14 = vmul.f32 %v3125_v30, %v3125_v30  ;;  %vm3180_vm7 = vmor %vm3178_vm5, %vm3179_vm4  ;;  %v3194_v3 = vperm.slane %v3000_v43, 1  ;;  %v3435_v43 = vld [vmem:[#allocation2 + $0x1d0] sm:$0xff] }
 0x89a   :  { %v3156_v36 = vadd.f32 %v3155_v0, %v3131_v41  ;;  %v3174_v57 = vmul.f32 %v5064_v26, %v3173_v28 }
 0x89c   :  { %v3157_v4 = vadd.f32 %v3156_v36, %v3133_v38  ;;  %v3175_v11 = vmul.f32 0.5, %v3174_v57  ;;  %v3001_v36 = vld [vmem:[%s7740_s24] sm:$0x3] }
 0x89d   :  { %v3247_v57 = vld [vmem:[%s7741_s30] sm:$0xff] }
 0x89e   :  { %v3158_v25 = vadd.f32 %v3157_v4, %v3135_v45  ;;  %v3176_v60 = vsub.f32 1.5, %v3175_v11  ;;  %v3407_v11 = vld [vmem:[#allocation2 + $0xf0] sm:$0xff] }
 0x89f   :  { %3687 = vmatpush.msra.mxu2 %v3407_v11  ;;  %v3481_v11 = vld [vmem:[#allocation2 + $0x340] sm:$0xff] }
 0x8a0   :  { %v3159_v56 = vadd.f32 %v3158_v25, %v3137_v10  ;;  %v3177_v29 = vmul.f32 %v5064_v26, %v3176_v60  ;;  %v3439_v60 = vld [vmem:[#allocation2 + $0x1f0] sm:$0xff] }
 0x8a1   :  { %3728 = vmatpush.msra.mxu0 %v3439_v60  ;;  %v3479_v60 = vld [vmem:[#allocation2 + $0x330] sm:$0xff] }
 0x8a2   :  { %v3160_v24 = vadd.f32 %v3159_v56, %v3139_v32  ;;  %v3181_v12 = vsel %vm3180_vm7, %v5064_v26, %v3177_v29  ;;  %v3471_v29 = vld [vmem:[#allocation2 + $0x2f0] sm:$0xff] }
 0x8a3   :  { %v3197_v0 = vmul.f32 %v3193_v40, %v3181_v12  ;;  %v3251_v40 = vld [vmem:[%s7741_s30 + $0x20] sm:$0xff] }
 0x8a4   :  { %v3161_v2 = vadd.f32 %v3160_v24, %v3141_v14  ;;  %v3433_v12 = vld [vmem:[#allocation2 + $0x1c0] sm:$0xff] }
 0x8a5   :  { %v3217_v38 = vmul.f32 %v3197_v0, %v6957_v27  ;;  %v3199_v18 = vperm.slane %v3197_v0, 0  ;;  %v3501_v0 = vld [vmem:[#allocation2 + $0x3e0] sm:$0xff] }
 0x8a6   :  { %v3162_v34 = vrot.slane %v3161_v2, 4 }
 0x8a7   :  { %v3215_v10 = vmul.f32 %v3199_v18, %v6951_v44  ;;  %v3211_v27 = vmul.f32 %v3199_v18, %v6937_v51  ;;  %v3209_v44 = vmul.f32 %v3199_v18, %v6931_v55  ;;  %v3205_v26 = vmul.f32 %v3199_v18, %v6917_v50 }
 0x8a8   :  { %v3163_v58 = vadd.f32 %v3162_v34, %v3161_v2 }
 0x8aa   :  { %v3164_v7 = vrot.slane %v3163_v58, 2 }
 0x8ac   :  { %v3165_v5 = vadd.f32 %v3164_v7, %v3163_v58 }
 0x8ae   :  { %v3166_v47 = vrot.slane %v3165_v5, 1 }
 0x8b0   :  { %v3167_v17 = vadd.f32 %v3166_v47, %v3165_v5 }
 0x8b2   :  { %v3169_v22 = vmul.f32 0.020833334, %v3167_v17  ;;  %v3203_v17 = vmul.f32 %v3199_v18, %v6911_v13 }
 0x8b4   :  { %v3171_v1 = vadd.f32 1e-05, %v3169_v22 }
 0x8b6   :  { %5065 = vrsqrt.f32 %v3171_v1  ;;  %vm3188_vm8 = vweird.f32 %v3171_v1 }
 0x8bc   :  { %v5066_v52 = vpop.eup %5065 }
 0x8bd   :  { %v3183_v35 = vmul.f32 %v5066_v52, %v3171_v1  ;;  %vm3189_vm6 = vweird.f32 %v5066_v52 }
 0x8be   :  { %vm3190_vm11 = vmor %vm3188_vm8, %vm3189_vm6 }
 0x8bf   :  { %v3184_v62 = vmul.f32 %v5066_v52, %v3183_v35  ;;  %v3403_v35 = vld [vmem:[#allocation2 + $0xd0] sm:$0xff] }
 0x8c1   :  { %v3185_v8 = vmul.f32 0.5, %v3184_v62  ;;  %v3437_v62 = vld [vmem:[#allocation2 + $0x1e0] sm:$0xff] }
 0x8c2   :  { %3729 = vmatpush.msra.mxu0 %v3437_v62  ;;  %v3475_v62 = vld [vmem:[#allocation2 + $0x310] sm:$0xff] }
 0x8c3   :  { %v3186_v37 = vsub.f32 1.5, %v3185_v8  ;;  %v3401_v8 = vld [vmem:[#allocation2 + $0xc0] sm:$0xff] }
 0x8c4   :  { %3730 = vmatpush.msra.mxu0 %v3435_v43  ;;  %v3473_v43 = vld [vmem:[#allocation2 + $0x300] sm:$0xff] }
 0x8c5   :  { %v3187_v33 = vmul.f32 %v5066_v52, %v3186_v37  ;;  %v3469_v37 = vld [vmem:[#allocation2 + $0x2e0] sm:$0xff] }
 0x8c6   :  { %3731 = vmatpush.msra.mxu0 %v3433_v12  ;;  %v3533_v12 = vld [vmem:[#allocation2 + $0x4e0] sm:$0xff] }
 0x8c7   :  { %v3191_v41 = vsel %vm3190_vm11, %v5066_v52, %v3187_v33  ;;  %v3405_v52 = vld [vmem:[#allocation2 + $0xe0] sm:$0xff]  ;;  %v3503_v33 = vld [vmem:[#allocation2 + $0x3f0] sm:$0xff] }
 0x8c8   :  { %v3198_v53 = vmul.f32 %v3194_v3, %v3191_v41  ;;  %3688 = vmatpush.msra.mxu2 %v3405_v52  ;;  %v3399_v3 = vld [vmem:[#allocation2 + $0xb0] sm:$0xff]  ;;  %v3441_v52 = vld [vmem:[#allocation2 + $0x200] sm:$0xff] }
 0x8c9   :  { %v3467_v41 = vld [vmem:[#allocation2 + $0x2d0] sm:$0xff] }
 0x8ca   :  { %v3218_v46 = vmul.f32 %v3198_v53, %v7017_v23  ;;  %v3200_v45 = vperm.slane %v3198_v53, 0  ;;  %v3213_v23 = vmul.f32 %v3199_v18, %v6941_v61  ;;  %v3207_v61 = vmul.f32 %v3199_v18, %v6923_v21  ;;  %3689 = vmatpush.msra.mxu2 %v3403_v35  ;;  %v3397_v53 = vld [vmem:[#allocation2 + $0xa0] sm:$0xff] }
 0x8cb   :  { %v3477_v35 = vld [vmem:[#allocation2 + $0x320] sm:$0xff] }
 0x8cc   :  { %v3221_v16 = vrot.slane %v3218_v46, 7  ;;  %v3216_v25 = vmul.f32 %v3200_v45, %v7013_v15  ;;  %v3214_v24 = vmul.f32 %v3200_v45, %v7003_v42  ;;  %v3212_v34 = vmul.f32 %v3200_v45, %v6999_v6  ;;  %3690 = vmatpush.msra.mxu2 %v3401_v8  ;;  %v3431_v46 = vld [vmem:[#allocation2 + $0x1b0] sm:$0xff] }
 0x8cd   :  { %v3210_v7 = vmul.f32 %v3200_v45, %v6992_v19  ;;  %v3208_v5 = vmul.f32 %v3200_v45, %v6986_v48  ;;  %v3206_v47 = vmul.f32 %v3200_v45, %v6979_v54  ;;  %v3204_v28 = vmul.f32 %v3200_v45, %v6975_v39  ;;  %v3249_v39 = vld [vmem:[%s7741_s30 + $0x10] sm:$0xff]  ;;  %3732 = vmatpush.msra.mxu0 %v3431_v46  ;;  %v3529_v46 = vld [vmem:[#allocation2 + $0x4c0] sm:$0xff] }
 0x8ce   :  { %v3223_v4 = vsel %vm3222_vm12, %v3217_v38, %v3221_v16  ;;  %v3201_v48 = vmul.f32 %v3199_v18, %v6915_v49  ;;  %v3202_v1 = vmul.f32 %v3200_v45, %v6977_v59  ;;  %v3248_v49 = vld [vmem:[%s7741_s30 + $0x8] sm:$0xff]  ;;  %v3250_v59 = vld [vmem:[%s7741_s30 + $0x18] sm:$0xff]  ;;  %3691 = vmatpush.msra.mxu2 %v3399_v3  ;;  %v3465_v38 = vld [vmem:[#allocation2 + $0x2c0] sm:$0xff] }
 0x8cf   :  { %v3225_v30 = vsub.f32 %v3001_v36, %v3223_v4  ;;  %v3499_v36 = vld [vmem:[#allocation2 + $0x3d0] sm:$0xff]  ;;  %v3429_v18 = vld [vmem:[#allocation2 + $0x1a0] sm:$0xff] }
 0x8d0   :  { %v3395_v16 = vld [vmem:[#allocation2 + $0x90] sm:$0xff]  ;;  %3692 = vmatpush.msra.mxu2 %v3397_v53  ;;  %v3497_v4 = vld [vmem:[#allocation2 + $0x3c0] sm:$0xff]  ;;  %3733 = vmatpush.msra.mxu0 %v3429_v18 }
 0x8d1   :  { %v3227_v31 = vperm.slane %v3225_v30, 0  ;;  %v3228_v32 = vperm.slane %v3225_v30, 1  ;;  %v3463_v45 = vld [vmem:[#allocation2 + $0x2b0] sm:$0xff]  ;;  %v3393_v30 = vld [vmem:[#allocation2 + $0x80] sm:$0xff] }
 0x8d2   :  { %3693 = vmatpush.msra.mxu2 %v3395_v16  ;;  %v3531_v53 = vld [vmem:[#allocation2 + $0x4d0] sm:$0xff]  ;;  %v3565_v18 = vld [vmem:[#allocation2 + $0x5e0] sm:$0xff] }
 0x8d3   :  { %v3245_v56 = vadd.f32 %v3227_v31, %v3215_v10  ;;  %v3246_v14 = vadd.f32 %v3228_v32, %v3216_v25  ;;  %v3243_v63 = vadd.f32 %v3227_v31, %v3213_v23  ;;  %v3244_v2 = vadd.f32 %v3228_v32, %v3214_v24  ;;  %v3427_v10 = vld [vmem:[#allocation2 + $0x190] sm:$0xff]  ;;  %v3252_v25 = vld [vmem:[%s7741_s30 + $0x28] sm:$0xff]  ;;  %v3389_v23 = vld [vmem:[#allocation2 + $0x60] sm:$0xff] }
 0x8d4   :  { %v3241_v15 = vadd.f32 %v3227_v31, %v3211_v27  ;;  %v3242_v58 = vadd.f32 %v3228_v32, %v3212_v34  ;;  %v3239_v42 = vadd.f32 %v3227_v31, %v3209_v44  ;;  %v3240_v51 = vadd.f32 %v3228_v32, %v3210_v7  ;;  %3694 = vmatpush.msra.mxu2 %v3393_v30  ;;  %v3423_v24 = vld [vmem:[#allocation2 + $0x170] sm:$0xff]  ;;  %v3421_v34 = vld [vmem:[#allocation2 + $0x160] sm:$0xff] }
 0x8d5   :  { %3287 = vmatpush.msrb.mxu1 %v3245_v56  ;;  %3328 = vmatpush.msra.mxu3 %v3246_v14  ;;  %v3237_v6 = vadd.f32 %v3227_v31, %v3207_v61  ;;  %v3238_v55 = vadd.f32 %v3228_v32, %v3208_v5  ;;  %v3235_v21 = vadd.f32 %v3227_v31, %v3205_v26  ;;  %v3461_v56 = vld [vmem:[#allocation2 + $0x2a0] sm:$0xff]  ;;  %v3495_v14 = vld [vmem:[#allocation2 + $0x3b0] sm:$0xff]  ;;  %v3254_v5 = vld [vmem:[%s7741_s30 + $0x38] sm:$0xff] }
 0x8d6   :  { %v3236_v19 = vadd.f32 %v3228_v32, %v3206_v47  ;;  %v3233_v50 = vadd.f32 %v3227_v31, %v3203_v17  ;;  %v3234_v22 = vadd.f32 %v3228_v32, %v3204_v28  ;;  %v3231_v13 = vadd.f32 %v3227_v31, %v3201_v48  ;;  %v3391_v31 = vld [vmem:[#allocation2 + $0x70] sm:$0xff]  ;;  %3734 = vmatpush.msra.mxu0 %v3427_v10  ;;  %v3457_v44 = vld [vmem:[#allocation2 + $0x280] sm:$0xff] }
 0x8d7   :  { %3288 = vmatpush.msrb.mxu1 %v3243_v63  ;;  %3329 = vmatpush.msra.mxu3 %v3244_v2  ;;  %v3232_v54 = vadd.f32 %v3228_v32, %v3202_v1  ;;  %v3425_v32 = vld [vmem:[#allocation2 + $0x180] sm:$0xff]  ;;  %v3459_v27 = vld [vmem:[#allocation2 + $0x290] sm:$0xff] }
 0x8d8   :  { %3695 = vmatpush.msra.mxu2 %v3391_v31  ;;  %3735 = vmatpush.msra.mxu0 %v3425_v32  ;;  %v3493_v63 = vld [vmem:[#allocation2 + $0x3a0] sm:$0xff]  ;;  %v3387_v2 = vld [vmem:[#allocation2 + $0x50] sm:$0xff]  ;;  %v3408_v31 = vld [vmem:[#allocation2 + $0xf8] sm:$0xff] }
 0x8d9   :  { %3289 = vmatpush.msrb.mxu1 %v3241_v15  ;;  %3330 = vmatpush.msra.mxu3 %v3242_v58  ;;  %v3385_v15 = vld [vmem:[#allocation2 + $0x40] sm:$0xff]  ;;  %v3419_v58 = vld [vmem:[#allocation2 + $0x150] sm:$0xff] }
 0x8da   :  { %3696 = vmatpush.msra.mxu2 %v3389_v23  ;;  %3736 = vmatpush.msra.mxu0 %v3423_v24  ;;  %v3253_v7 = vld [vmem:[%s7741_s30 + $0x30] sm:$0xff]  ;;  %v3377_v17 = vld [vmem:[#allocation2] sm:$0xff] }
 0x8db   :  { %3290 = vmatpush.msrb.mxu1 %v3239_v42  ;;  %3331 = vmatpush.msra.mxu3 %v3240_v51  ;;  %v3383_v61 = vld [vmem:[#allocation2 + $0x30] sm:$0xff]  ;;  %v3381_v51 = vld [vmem:[#allocation2 + $0x20] sm:$0xff] }
 0x8dc   :  { %3697 = vmatpush.msra.mxu2 %v3387_v2  ;;  %3737 = vmatpush.msra.mxu0 %v3421_v34  ;;  %v3455_v42 = vld [vmem:[#allocation2 + $0x270] sm:$0xff]  ;;  %v3489_v28 = vld [vmem:[#allocation2 + $0x380] sm:$0xff] }
 0x8dd   :  { %3291 = vmatpush.msrb.mxu1 %v3237_v6  ;;  %3332 = vmatpush.msra.mxu3 %v3238_v55  ;;  %v3379_v26 = vld [vmem:[#allocation2 + $0x10] sm:$0xff]  ;;  %v3417_v6 = vld [vmem:[#allocation2 + $0x140] sm:$0xff] }
 0x8de   :  { %3698 = vmatpush.msra.mxu2 %v3385_v15  ;;  %3738 = vmatpush.msra.mxu0 %v3419_v58  ;;  %v3453_v55 = vld [vmem:[#allocation2 + $0x260] sm:$0xff]  ;;  %v3491_v47 = vld [vmem:[#allocation2 + $0x390] sm:$0xff]  ;;  %v3404_v58 = vld [vmem:[#allocation2 + $0xd8] sm:$0xff] }
 0x8df   :  { %3292 = vmatpush.msrb.mxu1 %v3235_v21  ;;  %3333 = vmatpush.msra.mxu3 %v3236_v19  ;;  %v3415_v21 = vld [vmem:[#allocation2 + $0x130] sm:$0xff]  ;;  %v3413_v48 = vld [vmem:[#allocation2 + $0x120] sm:$0xff] }
 0x8e0   :  { %3699 = vmatpush.msra.mxu2 %v3383_v61  ;;  %3739 = vmatpush.msra.mxu0 %v3417_v6  ;;  %v3451_v19 = vld [vmem:[#allocation2 + $0x250] sm:$0xff]  ;;  %v3525_v10 = vld [vmem:[#allocation2 + $0x4a0] sm:$0xff] }
 0x8e1   :  { %3293 = vmatpush.msrb.mxu1 %v3233_v50  ;;  %3334 = vmatpush.msra.mxu3 %v3234_v22  ;;  %v3449_v50 = vld [vmem:[#allocation2 + $0x240] sm:$0xff]  ;;  %v3487_v22 = vld [vmem:[#allocation2 + $0x370] sm:$0xff] }
 0x8e2   :  { %3700 = vmatpush.msra.mxu2 %v3381_v51  ;;  %3740 = vmatpush.msra.mxu0 %v3415_v21  ;;  %v3411_v1 = vld [vmem:[#allocation2 + $0x110] sm:$0xff]  ;;  %v3521_v2 = vld [vmem:[#allocation2 + $0x480] sm:$0xff] }
 0x8e3   :  { %3294 = vmatpush.msrb.mxu1 %v3231_v13  ;;  %3335 = vmatpush.msra.mxu3 %v3232_v54  ;;  %v3447_v13 = vld [vmem:[#allocation2 + $0x230] sm:$0xff]  ;;  %v3485_v54 = vld [vmem:[#allocation2 + $0x360] sm:$0xff] }
 0x8e4   :  { %4849 = vmatmul.msk.f32.vlgmr.msrb.gmra.mxu1 %vm1227_vm10, %v3247_v57  ;;  %4857 = vmatmul.msk.f32.vlgmr.msra.gmra.mxu3 %vm1227_vm10, %v3247_v57  ;;  %v3409_v57 = vld [vmem:[#allocation2 + $0x100] sm:$0xff]  ;;  %v3527_v16 = vld [vmem:[#allocation2 + $0x4b0] sm:$0xff] }
 0x8e5   :  { %3769 = vmatpush.msra.mxu1 %v3471_v29  ;;  %3810 = vmatpush.msrb.mxu3 %v3503_v33  ;;  %v3523_v24 = vld [vmem:[#allocation2 + $0x490] sm:$0xff]  ;;  %v3557_v61 = vld [vmem:[#allocation2 + $0x5a0] sm:$0xff] }
 0x8e6   :  { %3701 = vmatpush.msra.mxu2 %v3379_v26  ;;  %3741 = vmatpush.msra.mxu0 %v3413_v48  ;;  %v3559_v34 = vld [vmem:[#allocation2 + $0x5b0] sm:$0xff] }
 0x8e7   :  { %3770 = vmatpush.msra.mxu1 %v3469_v37  ;;  %3811 = vmatpush.msrb.mxu3 %v3501_v0  ;;  %v3535_v37 = vld [vmem:[#allocation2 + $0x4f0] sm:$0xff] }
 0x8e8   :  { %3702 = vmatpush.msra.mxu2 %v3377_v17  ;;  %3742 = vmatpush.msra.mxu0 %v3411_v1  ;;  %v3400_v17 = vld [vmem:[#allocation2 + $0xb8] sm:$0xff]  ;;  %v3553_v1 = vld [vmem:[#allocation2 + $0x580] sm:$0xff] }
 0x8e9   :  { %3771 = vmatpush.msra.mxu1 %v3467_v41  ;;  %3812 = vmatpush.msrb.mxu3 %v3499_v36 }
 0x8ea   :  { %3743 = vmatpush.msra.mxu0 %v3409_v57  ;;  %3851 = vmatpush.msrb.mxu2 %v3535_v37  ;;  %v3432_v37 = vld [vmem:[#allocation2 + $0x1b8] sm:$0xff] }
 0x8eb   :  { %3772 = vmatpush.msra.mxu1 %v3465_v38  ;;  %3813 = vmatpush.msrb.mxu3 %v3497_v4  ;;  %v3567_v38 = vld [vmem:[#allocation2 + $0x5f0] sm:$0xff] }
 0x8ec   :  { %4850 = vmatmul.msk.f32.gmra.mxu1 %vm1227_vm10, %v3248_v49  ;;  %4858 = vmatmul.msk.f32.gmra.mxu3 %vm1227_vm10, %v3248_v49  ;;  %v3445_v49 = vld [vmem:[#allocation2 + $0x220] sm:$0xff] }
 0x8ed   :  { %3773 = vmatpush.msra.mxu1 %v3463_v45  ;;  %3814 = vmatpush.msrb.mxu3 %v3495_v14 }
 0x8ee   :  { %3852 = vmatpush.msrb.mxu2 %v3533_v12  ;;  %3892 = vmatpush.msrb.mxu0 %v3567_v38  ;;  %v3392_v12 = vld [vmem:[#allocation2 + $0x78] sm:$0xff]  ;;  %v3430_v38 = vld [vmem:[#allocation2 + $0x1a8] sm:$0xff] }
 0x8ef   :  { %3774 = vmatpush.msra.mxu1 %v3461_v56  ;;  %3815 = vmatpush.msrb.mxu3 %v3493_v63  ;;  %v3406_v63 = vld [vmem:[#allocation2 + $0xe8] sm:$0xff] }
 0x8f0   :  { %3853 = vmatpush.msrb.mxu2 %v3531_v53  ;;  %3893 = vmatpush.msrb.mxu0 %v3565_v18  ;;  %v3509_v53 = vld [vmem:[#allocation2 + $0x420] sm:$0xff]  ;;  %v3507_v18 = vld [vmem:[#allocation2 + $0x410] sm:$0xff] }
 0x8f1   :  { %3775 = vmatpush.msra.mxu1 %v3459_v27  ;;  %3816 = vmatpush.msrb.mxu3 %v3491_v47  ;;  %v3561_v27 = vld [vmem:[#allocation2 + $0x5c0] sm:$0xff]  ;;  %v3555_v47 = vld [vmem:[#allocation2 + $0x590] sm:$0xff] }
 0x8f2   :  { %3854 = vmatpush.msrb.mxu2 %v3529_v46  ;;  %v3547_v46 = vld [vmem:[#allocation2 + $0x550] sm:$0xff] }
 0x8f3   :  { %3776 = vmatpush.msra.mxu1 %v3457_v44  ;;  %3817 = vmatpush.msrb.mxu3 %v3489_v28 }
 0x8f4   :  { %4851 = vmatmul.msk.f32.gmra.mxu1 %vm1227_vm10, %v3249_v39  ;;  %4859 = vmatmul.msk.f32.gmra.mxu3 %vm1227_vm10, %v3249_v39  ;;  %v3483_v39 = vld [vmem:[#allocation2 + $0x350] sm:$0xff] }
 0x8f5   :  { %3777 = vmatpush.msra.mxu1 %v3455_v42  ;;  %3818 = vmatpush.msrb.mxu3 %v3487_v22  ;;  %v3402_v42 = vld [vmem:[#allocation2 + $0xc8] sm:$0xff] }
 0x8f6   :  { %3855 = vmatpush.msrb.mxu2 %v3527_v16  ;;  %v3398_v22 = vld [vmem:[#allocation2 + $0xa8] sm:$0xff] }
 0x8f7   :  { %3778 = vmatpush.msra.mxu1 %v3453_v55  ;;  %3819 = vmatpush.msrb.mxu3 %v3485_v54  ;;  %v3517_v55 = vld [vmem:[#allocation2 + $0x460] sm:$0xff] }
 0x8f8   :  { %3856 = vmatpush.msrb.mxu2 %v3525_v10  ;;  %v3390_v10 = vld [vmem:[#allocation2 + $0x68] sm:$0xff] }
 0x8f9   :  { %3779 = vmatpush.msra.mxu1 %v3451_v19  ;;  %3820 = vmatpush.msrb.mxu3 %v3483_v39  ;;  %v3438_v19 = vld [vmem:[#allocation2 + $0x1e8] sm:$0xff]  ;;  %v3551_v39 = vld [vmem:[#allocation2 + $0x570] sm:$0xff] }
 0x8fa   :  { %3857 = vmatpush.msrb.mxu2 %v3523_v24 }
 0x8fb   :  { %3780 = vmatpush.msra.mxu1 %v3449_v50  ;;  %3821 = vmatpush.msrb.mxu3 %v3481_v11  ;;  %v3515_v50 = vld [vmem:[#allocation2 + $0x450] sm:$0xff] }
 0x8fc   :  { %4852 = vmatmul.msk.f32.gmra.mxu1 %vm1227_vm10, %v3250_v59  ;;  %4860 = vmatmul.msk.f32.gmra.mxu3 %vm1227_vm10, %v3250_v59  ;;  %v3443_v59 = vld [vmem:[#allocation2 + $0x210] sm:$0xff] }
 0x8fd   :  { %3781 = vmatpush.msra.mxu1 %v3447_v13  ;;  %3822 = vmatpush.msrb.mxu3 %v3479_v60  ;;  %v3436_v13 = vld [vmem:[#allocation2 + $0x1d8] sm:$0xff]  ;;  %v3511_v60 = vld [vmem:[#allocation2 + $0x430] sm:$0xff] }
 0x8fe   :  { %3858 = vmatpush.msrb.mxu2 %v3521_v2 }
 0x8ff   :  { %3782 = vmatpush.msra.mxu1 %v3445_v49  ;;  %3823 = vmatpush.msrb.mxu3 %v3477_v35  ;;  %v3513_v49 = vld [vmem:[#allocation2 + $0x440] sm:$0xff] }
 0x901   :  { %3783 = vmatpush.msra.mxu1 %v3443_v59  ;;  %3824 = vmatpush.msrb.mxu3 %v3475_v62  ;;  %v3396_v59 = vld [vmem:[#allocation2 + $0x98] sm:$0xff]  ;;  %v3394_v62 = vld [vmem:[#allocation2 + $0x88] sm:$0xff] }
 0x903   :  { %3784 = vmatpush.msra.mxu1 %v3441_v52  ;;  %3825 = vmatpush.msrb.mxu3 %v3473_v43  ;;  %v3434_v52 = vld [vmem:[#allocation2 + $0x1c8] sm:$0xff] }
 0x904   :  { %4853 = vmatmul.msk.f32.gmra.mxu1 %vm1227_vm10, %v3251_v40  ;;  %4861 = vmatmul.msk.f32.gmra.mxu3 %vm1227_vm10, %v3251_v40 }
 0x905   :  { %3933 = vmatpush.msrb.mxu1 %v3408_v31  ;;  %v3428_v31 = vld [vmem:[#allocation2 + $0x198] sm:$0xff] }
 0x907   :  { %3934 = vmatpush.msrb.mxu1 %v3406_v63  ;;  %v3426_v63 = vld [vmem:[#allocation2 + $0x188] sm:$0xff] }
 0x909   :  { %3935 = vmatpush.msrb.mxu1 %v3404_v58 }
 0x90b   :  { %3936 = vmatpush.msrb.mxu1 %v3402_v42  ;;  %v3384_v42 = vld [vmem:[#allocation2 + $0x38] sm:$0xff] }
 0x90c   :  { %4854 = vmatmul.msk.f32.gmra.mxu1 %vm1227_vm10, %v3252_v25  ;;  %4862 = vmatmul.msk.f32.gmra.mxu3 %vm1227_vm10, %v3252_v25  ;;  %v3563_v25 = vld [vmem:[#allocation2 + $0x5d0] sm:$0xff] }
 0x90d   :  { %3894 = vmatpush.msrb.mxu0 %v3563_v25  ;;  %3937 = vmatpush.msrb.mxu1 %v3400_v17  ;;  %v3382_v17 = vld [vmem:[#allocation2 + $0x28] sm:$0xff] }
 0x90f   :  { %3895 = vmatpush.msrb.mxu0 %v3561_v27  ;;  %3938 = vmatpush.msrb.mxu1 %v3398_v22  ;;  %v3543_v27 = vld [vmem:[#allocation2 + $0x530] sm:$0xff] }
 0x911   :  { %3896 = vmatpush.msrb.mxu0 %v3559_v34  ;;  %3939 = vmatpush.msrb.mxu1 %v3396_v59  ;;  %v3386_v34 = vld [vmem:[#allocation2 + $0x48] sm:$0xff] }
 0x912   :  { %v3378_v59 = vld [vmem:[#allocation2 + $0x8] sm:$0xff] }
 0x913   :  { %3897 = vmatpush.msrb.mxu0 %v3557_v61  ;;  %3940 = vmatpush.msrb.mxu1 %v3394_v62  ;;  %v3424_v61 = vld [vmem:[#allocation2 + $0x178] sm:$0xff]  ;;  %v3414_v62 = vld [vmem:[#allocation2 + $0x128] sm:$0xff] }
 0x914   :  { %4855 = vmatmul.msk.f32.gmra.mxu1 %vm1227_vm10, %v3253_v7  ;;  %4863 = vmatmul.msk.f32.gmra.mxu3 %vm1227_vm10, %v3253_v7  ;;  %v3519_v7 = vld [vmem:[#allocation2 + $0x470] sm:$0xff] }
 0x915   :  { %3859 = vmatpush.msrb.mxu2 %v3519_v7  ;;  %3898 = vmatpush.msrb.mxu0 %v3555_v47  ;;  %v3541_v7 = vld [vmem:[#allocation2 + $0x520] sm:$0xff]  ;;  %v3422_v47 = vld [vmem:[#allocation2 + $0x168] sm:$0xff] }
 0x916   :  { %3941 = vmatpush.msrb.mxu1 %v3392_v12 }
 0x917   :  { %3860 = vmatpush.msrb.mxu2 %v3517_v55  ;;  %3899 = vmatpush.msrb.mxu0 %v3553_v1  ;;  %v3539_v55 = vld [vmem:[#allocation2 + $0x510] sm:$0xff]  ;;  %v3380_v1 = vld [vmem:[#allocation2 + $0x18] sm:$0xff] }
 0x918   :  { %3942 = vmatpush.msrb.mxu1 %v3390_v10 }
 0x919   :  { %3861 = vmatpush.msrb.mxu2 %v3515_v50  ;;  %3900 = vmatpush.msrb.mxu0 %v3551_v39  ;;  %v3420_v50 = vld [vmem:[#allocation2 + $0x158] sm:$0xff] }
 0x91b   :  { %3862 = vmatpush.msrb.mxu2 %v3513_v49 }
 0x91c   :  { %4856 = vmatmul.msk.f32.gmra.mxu1 %vm1227_vm10, %v3254_v5  ;;  %4864 = vmatmul.msk.f32.gmra.mxu3 %vm1227_vm10, %v3254_v5  ;;  %v3440_v5 = vld [vmem:[#allocation2 + $0x1f8] sm:$0xff] }
 0x91d   :  { %3974 = vmatpush.msra.mxu3 %v3440_v5  ;;  %3863 = vmatpush.msrb.mxu2 %v3511_v60 }
 0x91f   :  { %3975 = vmatpush.msra.mxu3 %v3438_v19  ;;  %3864 = vmatpush.msrb.mxu2 %v3509_v53  ;;  %v3537_v19 = vld [vmem:[#allocation2 + $0x500] sm:$0xff]  ;;  %v3410_v53 = vld [vmem:[#allocation2 + $0x108] sm:$0xff] }
 0x921   :  { %3976 = vmatpush.msra.mxu3 %v3436_v13  ;;  %3865 = vmatpush.msrb.mxu2 %v3507_v18 }
 0x923   :  { %3977 = vmatpush.msra.mxu3 %v3434_v52  ;;  %v3416_v52 = vld [vmem:[#allocation2 + $0x138] sm:$0xff] }
 0x925   :  { %3978 = vmatpush.msra.mxu3 %v3432_v37 }
 0x927   :  { %3979 = vmatpush.msra.mxu3 %v3430_v38 }
 0x929   :  { %3980 = vmatpush.msra.mxu3 %v3428_v31 }
 0x92b   :  { %3981 = vmatpush.msra.mxu3 %v3426_v63 }
 0x92d   :  { %3982 = vmatpush.msra.mxu3 %v3424_v61 }
 0x92f   :  { %3983 = vmatpush.msra.mxu3 %v3422_v47  ;;  %v3466_v47 = vld [vmem:[#allocation2 + $0x2c8] sm:$0xff] }
 0x931   :  { %3984 = vmatpush.msra.mxu3 %v3420_v50 }
 0x961   :  { %v3296_v29 = vpop.f32.mrf.mxu1 }
 0x962   :  { %v7088_v8 = vmax.f32 %v3296_v29, 0.0  ;;  %v3549_v29 = vld [vmem:[#allocation2 + $0x560] sm:$0xff] }
 0x963   :  { %3901 = vmatpush.msrb.mxu0 %v3549_v29 }
 0x964   :  { %3703 = vmatmul.f32.vlgmr.msra.gmra.mxu2 %v7088_v8  ;;  %v3586_v41 = vrot.slane %v7088_v8, 1  ;;  %v3634_v10 = vrot.slane %v7088_v8, 2 }
 0x965   :  { %3902 = vmatpush.msrb.mxu0 %v3547_v46 }
 0x967   :  { %v3337_v40 = vpop.f32.mrf.mxu3 }
 0x968   :  { %v7091_v3 = vmax.f32 %v3337_v40, 0.0 }
 0x969   :  { %v3299_v33 = vpop.f32.mrf.mxu1 }
 0x96a   :  { %v7094_v0 = vmax.f32 %v3299_v33, 0.0  ;;  %3744 = vmatmul.f32.vlgmr.msra.gmra.mxu0 %v7091_v3  ;;  %v3589_v56 = vrot.slane %v7091_v3, 1 }
 0x96c   :  { %v3587_v36 = vrot.slane %v7094_v0, 1  ;;  %3706 = vmatmul.f32.gmra.mxu2 %v7094_v0  ;;  %v3635_v31 = vrot.slane %v7094_v0, 2 }
 0x96e   :  { %v7100_v45 = vsel %vm229_vm0, %v3586_v41, %v3587_v36 }
 0x96f   :  { %v3340_v4 = vpop.f32.mrf.mxu3  ;;  %3785 = vmatmul.f32.vlgmr.msra.gmra.mxu1 %v7100_v45 }
 0x970   :  { %v7103_v30 = vmax.f32 %v3340_v4, 0.0  ;;  %v3545_v4 = vld [vmem:[#allocation2 + $0x540] sm:$0xff] }
 0x971   :  { %v3302_v32 = vpop.f32.mrf.mxu1  ;;  %3903 = vmatpush.msrb.mxu0 %v3545_v4 }
 0x972   :  { %v3590_v14 = vrot.slane %v7103_v30, 1  ;;  %v7107_v23 = vmax.f32 %v3302_v32, 0.0  ;;  %3747 = vmatmul.f32.gmra.mxu0 %v7103_v30  ;;  %v3505_v32 = vld [vmem:[#allocation2 + $0x400] sm:$0xff] }
 0x973   :  { %3866 = vmatpush.msrb.mxu2 %v3505_v32  ;;  %3904 = vmatpush.msrb.mxu0 %v3543_v27  ;;  %v7207_v27 = vsel %vm935_vm9, %v3634_v10, %v3635_v31  ;;  %v3494_v10 = vld [vmem:[#allocation2 + $0x3a8] sm:$0xff] }
 0x974   :  { %3709 = vmatmul.f32.gmra.mxu2 %v7107_v23  ;;  %v7112_v44 = vsel %vm229_vm0, %v3589_v56, %v3590_v14  ;;  %v3592_v15 = vrot.slane %v7107_v23, 1  ;;  %v3640_v61 = vrot.slane %v7107_v23, 2 }
 0x975   :  { %3826 = vmatmul.f32.vlgmr.msrb.gmra.mxu3 %v7112_v44  ;;  %3905 = vmatpush.msrb.mxu0 %v3541_v7  ;;  %v3637_v7 = vrot.slane %v7091_v3, 2 }
 0x976   :  { %v7117_v51 = vsel %vm229_vm0, %v3587_v36, %v3592_v15 }
 0x977   :  { %v3343_v26 = vpop.f32.mrf.mxu3  ;;  %3788 = vmatmul.f32.gmra.mxu1 %v7117_v51  ;;  %3906 = vmatpush.msrb.mxu0 %v3539_v55 }
 0x978   :  { %v7120_v6 = vmax.f32 %v3343_v26, 0.0 }
 0x979   :  { %v3305_v21 = vpop.f32.mrf.mxu1  ;;  %3907 = vmatpush.msrb.mxu0 %v3537_v19  ;;  %v7227_v19 = vsel %vm935_vm9, %v3635_v31, %v3640_v61  ;;  %v3530_v31 = vld [vmem:[#allocation2 + $0x4c8] sm:$0xff] }
 0x97a   :  { %v7122_v28 = vmax.f32 %v3305_v21, 0.0  ;;  %3750 = vmatmul.f32.gmra.mxu0 %v7120_v6  ;;  %v3594_v48 = vrot.slane %v7120_v6, 1  ;;  %v3642_v50 = vrot.slane %v7120_v6, 2 }
 0x97c   :  { %3712 = vmatmul.f32.gmra.mxu2 %v7122_v28  ;;  %v7128_v54 = vsel %vm229_vm0, %v3590_v14, %v3594_v48  ;;  %v3596_v57 = vrot.slane %v7122_v28, 1  ;;  %v3388_v14 = vld [vmem:[#allocation2 + $0x58] sm:$0xff] }
 0x97d   :  { %3829 = vmatmul.f32.gmra.mxu3 %v7128_v54  ;;  %3943 = vmatpush.msrb.mxu1 %v3388_v14 }
 0x97e   :  { %v7133_v11 = vsel %vm229_vm0, %v3592_v15, %v3596_v57 }
 0x97f   :  { %v3346_v35 = vpop.f32.mrf.mxu3  ;;  %3791 = vmatmul.f32.gmra.mxu1 %v7133_v11 }
 0x980   :  { %v7136_v43 = vmax.f32 %v3346_v35, 0.0  ;;  %3944 = vmatpush.msrb.mxu1 %v3386_v34  ;;  %v3638_v34 = vrot.slane %v7103_v30, 2 }
 0x981   :  { %v3308_v40 = vpop.f32.mrf.mxu1 }
 0x982   :  { %v7138_v33 = vmax.f32 %v3308_v40, 0.0  ;;  %3753 = vmatmul.f32.gmra.mxu0 %v7136_v43  ;;  %v3598_v41 = vrot.slane %v7136_v43, 1  ;;  %3945 = vmatpush.msrb.mxu1 %v3384_v42  ;;  %v3412_v40 = vld [vmem:[#allocation2 + $0x118] sm:$0xff]  ;;  %v3470_v42 = vld [vmem:[#allocation2 + $0x2e8] sm:$0xff]  ;;  %v7223_v55 = vsel %vm935_vm9, %v3637_v7, %v3638_v34 }
 0x983   :  { %v3492_v7 = vld [vmem:[#allocation2 + $0x398] sm:$0xff] }
 0x984   :  { %3715 = vmatmul.f32.gmra.mxu2 %v7138_v33  ;;  %v7144_v36 = vsel %vm229_vm0, %v3594_v48, %v3598_v41  ;;  %v3600_v16 = vrot.slane %v7138_v33, 1  ;;  %3946 = vmatpush.msrb.mxu1 %v3382_v17  ;;  %v3504_v17 = vld [vmem:[#allocation2 + $0x3f8] sm:$0xff] }
 0x985   :  { %3832 = vmatmul.f32.gmra.mxu3 %v7144_v36  ;;  %4056 = vmatpush.msra.mxu0 %v3504_v17  ;;  %v3564_v17 = vld [vmem:[#allocation2 + $0x5d8] sm:$0xff] }
 0x986   :  { %v7149_v25 = vsel %vm229_vm0, %v3596_v57, %v3600_v16  ;;  %v3418_v57 = vld [vmem:[#allocation2 + $0x148] sm:$0xff]  ;;  %3947 = vmatpush.msrb.mxu1 %v3380_v1  ;;  %v3464_v1 = vld [vmem:[#allocation2 + $0x2b8] sm:$0xff] }
 0x987   :  { %v3349_v56 = vpop.f32.mrf.mxu3  ;;  %3794 = vmatmul.f32.gmra.mxu1 %v7149_v25  ;;  %3985 = vmatpush.msra.mxu3 %v3418_v57  ;;  %v3644_v57 = vrot.slane %v7122_v28, 2 }
 0x988   :  { %v7152_v24 = vmax.f32 %v3349_v56, 0.0  ;;  %3948 = vmatpush.msrb.mxu1 %v3378_v59  ;;  %v3500_v59 = vld [vmem:[#allocation2 + $0x3d8] sm:$0xff] }
 0x989   :  { %v3311_v2 = vpop.f32.mrf.mxu1  ;;  %3986 = vmatpush.msra.mxu3 %v3416_v52  ;;  %v3536_v52 = vld [vmem:[#allocation2 + $0x4f8] sm:$0xff] }
 0x98a   :  { %v7154_v15 = vmax.f32 %v3311_v2, 0.0  ;;  %3756 = vmatmul.f32.gmra.mxu0 %v7152_v24  ;;  %v3602_v58 = vrot.slane %v7152_v24, 1  ;;  %4097 = vmatpush.msra.mxu1 %v3536_v52 }
 0x98b   :  { %3987 = vmatpush.msra.mxu3 %v3414_v62  ;;  %v7239_v62 = vsel %vm935_vm9, %v3638_v34, %v3642_v50  ;;  %v3454_v34 = vld [vmem:[#allocation2 + $0x268] sm:$0xff] }
 0x98c   :  { %3718 = vmatmul.f32.gmra.mxu2 %v7154_v15  ;;  %v7160_v5 = vsel %vm229_vm0, %v3598_v41, %v3602_v58  ;;  %v3604_v26 = vrot.slane %v7154_v15, 1  ;;  %v3652_v52 = vrot.slane %v7154_v15, 2 }
 0x98d   :  { %3835 = vmatmul.f32.gmra.mxu3 %v7160_v5 }
 0x98e   :  { %v7165_v21 = vsel %vm229_vm0, %v3600_v16, %v3604_v26  ;;  %3988 = vmatpush.msra.mxu3 %v3412_v40  ;;  %v3458_v40 = vld [vmem:[#allocation2 + $0x288] sm:$0xff] }
 0x98f   :  { %v3352_v48 = vpop.f32.mrf.mxu3  ;;  %3797 = vmatmul.f32.gmra.mxu1 %v7165_v21 }
 0x990   :  { %v7168_v22 = vmax.f32 %v3352_v48, 0.0  ;;  %3989 = vmatpush.msra.mxu3 %v3410_v53  ;;  %v3532_v53 = vld [vmem:[#allocation2 + $0x4d8] sm:$0xff] }
 0x991   :  { %v3314_v13 = vpop.f32.mrf.mxu1 }
 0x992   :  { %v7170_v49 = vmax.f32 %v3314_v13, 0.0  ;;  %3759 = vmatmul.f32.gmra.mxu0 %v7168_v22  ;;  %v3606_v39 = vrot.slane %v7168_v22, 1  ;;  %v3502_v13 = vld [vmem:[#allocation2 + $0x3e8] sm:$0xff] }
 0x993   :  { %4057 = vmatpush.msra.mxu0 %v3502_v13  ;;  %v3488_v13 = vld [vmem:[#allocation2 + $0x378] sm:$0xff] }
 0x994   :  { %3721 = vmatmul.f32.gmra.mxu2 %v7170_v49  ;;  %v7176_v60 = vsel %vm229_vm0, %v3602_v58, %v3606_v39  ;;  %v3608_v35 = vrot.slane %v7170_v49, 1  ;;  %v3472_v58 = vld [vmem:[#allocation2 + $0x2f8] sm:$0xff] }
 0x995   :  { %3838 = vmatmul.f32.gmra.mxu3 %v7176_v60  ;;  %4015 = vmatpush.msra.mxu2 %v3472_v58  ;;  %v3528_v58 = vld [vmem:[#allocation2 + $0x4b8] sm:$0xff] }
 0x996   :  { %v7181_v29 = vsel %vm229_vm0, %v3604_v26, %v3608_v35  ;;  %v3468_v26 = vld [vmem:[#allocation2 + $0x2d8] sm:$0xff]  ;;  %4058 = vmatpush.msra.mxu0 %v3500_v59  ;;  %v3562_v59 = vld [vmem:[#allocation2 + $0x5c8] sm:$0xff] }
 0x997   :  { %v3355_v37 = vpop.f32.mrf.mxu3  ;;  %3800 = vmatmul.f32.gmra.mxu1 %v7181_v29  ;;  %4016 = vmatpush.msra.mxu2 %v3470_v42  ;;  %v3452_v42 = vld [vmem:[#allocation2 + $0x258] sm:$0xff] }
 0x998   :  { %v7184_v12 = vmax.f32 %v3355_v37, 0.0  ;;  %v3534_v37 = vld [vmem:[#allocation2 + $0x4e8] sm:$0xff] }
 0x999   :  { %v3317_v41 = vpop.f32.mrf.mxu1  ;;  %4017 = vmatpush.msra.mxu2 %v3468_v26  ;;  %4098 = vmatpush.msra.mxu1 %v3534_v37  ;;  %v3526_v26 = vld [vmem:[#allocation2 + $0x4a8] sm:$0xff]  ;;  %v3560_v37 = vld [vmem:[#allocation2 + $0x5b8] sm:$0xff] }
 0x99a   :  { %v7186_v46 = vmax.f32 %v3317_v41, 0.0  ;;  %3762 = vmatmul.f32.gmra.mxu0 %v7184_v12  ;;  %v3610_v38 = vrot.slane %v7184_v12, 1  ;;  %v3496_v41 = vld [vmem:[#allocation2 + $0x3b8] sm:$0xff] }
 0x99b   :  { %4018 = vmatpush.msra.mxu2 %v3466_v47  ;;  %4099 = vmatpush.msra.mxu1 %v3532_v53  ;;  %v3490_v47 = vld [vmem:[#allocation2 + $0x388] sm:$0xff]  ;;  %v3484_v53 = vld [vmem:[#allocation2 + $0x358] sm:$0xff] }
 0x99c   :  { %3724 = vmatmul.f32.gmra.mxu2 %v7186_v46  ;;  %v7192_v16 = vsel %vm229_vm0, %v3606_v39, %v3610_v38  ;;  %v3612_v18 = vrot.slane %v7186_v46, 1  ;;  %v3462_v39 = vld [vmem:[#allocation2 + $0x2a8] sm:$0xff] }
 0x99d   :  { %3841 = vmatmul.f32.gmra.mxu3 %v7192_v16  ;;  %4019 = vmatpush.msra.mxu2 %v3464_v1  ;;  %v3450_v1 = vld [vmem:[#allocation2 + $0x248] sm:$0xff] }
 0x99e   :  { %v7197_v4 = vsel %vm229_vm0, %v3608_v35, %v3612_v18  ;;  %v7215_v2 = vsel %vm229_vm0, %v3612_v18, %v5887_v20  ;;  %v3498_v35 = vld [vmem:[#allocation2 + $0x3c8] sm:$0xff]  ;;  %v3456_v18 = vld [vmem:[#allocation2 + $0x278] sm:$0xff]  ;;  %4100 = vmatpush.msra.mxu1 %v3530_v31 }
 0x99f   :  { %v3358_v32 = vpop.f32.mrf.mxu3  ;;  %3803 = vmatmul.f32.gmra.mxu1 %v7197_v4  ;;  %4020 = vmatpush.msra.mxu2 %v3462_v39  ;;  %v3524_v39 = vld [vmem:[#allocation2 + $0x498] sm:$0xff]  ;;  %v3482_v31 = vld [vmem:[#allocation2 + $0x348] sm:$0xff] }
 0x9a0   :  { %v7202_v56 = vmax.f32 %v3358_v32, 0.0  ;;  %4059 = vmatpush.msra.mxu0 %v3498_v35  ;;  %v3568_v32 = vld [vmem:[#allocation2 + $0x5f8] sm:$0xff]  ;;  %4101 = vmatpush.msra.mxu1 %v3528_v58  ;;  %v3486_v35 = vld [vmem:[#allocation2 + $0x368] sm:$0xff]  ;;  %v3656_v58 = vrot.slane %v7170_v49, 2 }
 0x9a1   :  { %4138 = vmatpush.msrb.mxu3 %v3568_v32  ;;  %v3518_v32 = vld [vmem:[#allocation2 + $0x468] sm:$0xff] }
 0x9a2   :  { %3765 = vmatmul.f32.gmra.mxu0 %v7202_v56  ;;  %v3614_v14 = vrot.slane %v7202_v56, 1  ;;  %4102 = vmatpush.msra.mxu1 %v3526_v26  ;;  %v3514_v26 = vld [vmem:[#allocation2 + $0x448] sm:$0xff] }
 0x9a3   :  { %4060 = vmatpush.msra.mxu0 %v3496_v41  ;;  %v3446_v41 = vld [vmem:[#allocation2 + $0x228] sm:$0xff] }
 0x9a4   :  { %3867 = vmatmul.f32.vlgmr.msrb.gmra.mxu2 %v7207_v27  ;;  %v7211_v63 = vsel %vm229_vm0, %v3610_v38, %v3614_v14  ;;  %v7232_v48 = vsel %vm229_vm0, %v3614_v14, %v5887_v20  ;;  %v3460_v20 = vld [vmem:[#allocation2 + $0x298] sm:$0xff]  ;;  %v3646_v38 = vrot.slane %v7136_v43, 2  ;;  %v3648_v14 = vrot.slane %v7138_v33, 2  ;;  %4103 = vmatpush.msra.mxu1 %v3524_v39  ;;  %v3550_v39 = vld [vmem:[#allocation2 + $0x568] sm:$0xff] }
 0x9a5   :  { %3844 = vmatmul.f32.gmra.mxu3 %v7211_v63  ;;  %4021 = vmatpush.msra.mxu2 %v3460_v20  ;;  %v3522_v20 = vld [vmem:[#allocation2 + $0x488] sm:$0xff] }
 0x9a6   :  { %4061 = vmatpush.msra.mxu0 %v3494_v10  ;;  %4104 = vmatpush.msra.mxu1 %v3522_v20  ;;  %v3444_v10 = vld [vmem:[#allocation2 + $0x218] sm:$0xff] }
 0x9a7   :  { %3806 = vmatmul.f32.gmra.mxu1 %v7215_v2  ;;  %4022 = vmatpush.msra.mxu2 %v3458_v40  ;;  %v3520_v40 = vld [vmem:[#allocation2 + $0x478] sm:$0xff] }
 0x9a8   :  { %4062 = vmatpush.msra.mxu0 %v3492_v7  ;;  %4105 = vmatpush.msra.mxu1 %v3520_v40  ;;  %v3516_v7 = vld [vmem:[#allocation2 + $0x458] sm:$0xff]  ;;  %v3506_v40 = vld [vmem:[#allocation2 + $0x408] sm:$0xff] }
 0x9a9   :  { %4023 = vmatpush.msra.mxu2 %v3456_v18  ;;  %v3558_v18 = vld [vmem:[#allocation2 + $0x5a8] sm:$0xff]  ;;  %v3548_v20 = vld [vmem:[#allocation2 + $0x558] sm:$0xff] }
 0x9aa   :  { %3908 = vmatmul.f32.vlgmr.msrb.gmra.mxu0 %v7223_v55  ;;  %4106 = vmatpush.msra.mxu1 %v3518_v32 }
 0x9ab   :  { %4024 = vmatpush.msra.mxu2 %v3454_v34  ;;  %4063 = vmatpush.msra.mxu0 %v3490_v47  ;;  %v3556_v34 = vld [vmem:[#allocation2 + $0x598] sm:$0xff]  ;;  %v3478_v47 = vld [vmem:[#allocation2 + $0x328] sm:$0xff] }
 0x9ac   :  { %3870 = vmatmul.f32.gmra.mxu2 %v7227_v19  ;;  %4107 = vmatpush.msra.mxu1 %v3516_v7 }
 0x9ad   :  { %3847 = vmatmul.f32.gmra.mxu3 %v7232_v48  ;;  %4025 = vmatpush.msra.mxu2 %v3452_v42  ;;  %v3554_v42 = vld [vmem:[#allocation2 + $0x588] sm:$0xff] }
 0x9ae   :  { %4064 = vmatpush.msra.mxu0 %v3488_v13  ;;  %4108 = vmatpush.msra.mxu1 %v3514_v26  ;;  %v3476_v13 = vld [vmem:[#allocation2 + $0x318] sm:$0xff] }
 0x9af   :  { %3949 = vmatmul.f32.vlgmr.msrb.gmra.mxu1 %v7088_v8  ;;  %v7243_v8 = vsel %vm935_vm9, %v3640_v61, %v3644_v57  ;;  %v7251_v61 = vsel %vm935_vm9, %v3642_v50, %v3646_v38  ;;  %v3650_v50 = vrot.slane %v7152_v24, 2  ;;  %4026 = vmatpush.msra.mxu2 %v3450_v1  ;;  %v3512_v1 = vld [vmem:[#allocation2 + $0x438] sm:$0xff] }
 0x9b0   :  { %4065 = vmatpush.msra.mxu0 %v3486_v35  ;;  %4109 = vmatpush.msra.mxu1 %v3512_v1  ;;  %v3508_v35 = vld [vmem:[#allocation2 + $0x418] sm:$0xff] }
 0x9b2   :  { %3911 = vmatmul.f32.gmra.mxu0 %v7239_v62 }
 0x9b3   :  { %4066 = vmatpush.msra.mxu0 %v3484_v53  ;;  %v3662_v53 = vrot.slane %v7202_v56, 2 }
 0x9b4   :  { %3873 = vmatmul.f32.gmra.mxu2 %v7243_v8 }
 0x9b5   :  { %3990 = vmatmul.f32.vlgmr.msra.gmra.mxu3 %v7091_v3  ;;  %v3566_v3 = vld [vmem:[#allocation2 + $0x5e8] sm:$0xff]  ;;  %4067 = vmatpush.msra.mxu0 %v3482_v31 }
 0x9b6   :  { %4139 = vmatpush.msrb.mxu3 %v3566_v3  ;;  %v3480_v3 = vld [vmem:[#allocation2 + $0x338] sm:$0xff]  ;;  %v3538_v31 = vld [vmem:[#allocation2 + $0x508] sm:$0xff] }
 0x9b7   :  { %3952 = vmatmul.f32.gmra.mxu1 %v7094_v0  ;;  %v7255_v0 = vsel %vm935_vm9, %v3644_v57, %v3648_v14  ;;  %v3448_v57 = vld [vmem:[#allocation2 + $0x238] sm:$0xff]  ;;  %4068 = vmatpush.msra.mxu0 %v3480_v3 }
 0x9b8   :  { %4140 = vmatpush.msrb.mxu3 %v3564_v17  ;;  %4027 = vmatpush.msra.mxu2 %v3448_v57  ;;  %v3552_v17 = vld [vmem:[#allocation2 + $0x578] sm:$0xff]  ;;  %v3474_v57 = vld [vmem:[#allocation2 + $0x308] sm:$0xff] }
 0x9b9   :  { %4069 = vmatpush.msra.mxu0 %v3478_v47 }
 0x9ba   :  { %3914 = vmatmul.f32.gmra.mxu0 %v7251_v61  ;;  %4141 = vmatpush.msrb.mxu3 %v3562_v59  ;;  %v3510_v59 = vld [vmem:[#allocation2 + $0x428] sm:$0xff] }
 0x9bb   :  { %4028 = vmatpush.msra.mxu2 %v3446_v41  ;;  %4070 = vmatpush.msra.mxu0 %v3476_v13 }
 0x9bc   :  { %3876 = vmatmul.f32.gmra.mxu2 %v7255_v0  ;;  %4142 = vmatpush.msrb.mxu3 %v3560_v37 }
 0x9bd   :  { %3993 = vmatmul.f32.gmra.mxu3 %v7103_v30  ;;  %v7263_v30 = vsel %vm935_vm9, %v3646_v38, %v3650_v50  ;;  %v3654_v38 = vrot.slane %v7168_v22, 2  ;;  %4029 = vmatpush.msra.mxu2 %v3444_v10  ;;  %v3540_v10 = vld [vmem:[#allocation2 + $0x518] sm:$0xff] }
 0x9be   :  { %4143 = vmatpush.msrb.mxu3 %v3558_v18  ;;  %4110 = vmatpush.msra.mxu1 %v3510_v59  ;;  %v3542_v18 = vld [vmem:[#allocation2 + $0x528] sm:$0xff] }
 0x9bf   :  { %3955 = vmatmul.f32.gmra.mxu1 %v7107_v23  ;;  %v7267_v23 = vsel %vm935_vm9, %v3648_v14, %v3652_v52  ;;  %v3442_v14 = vld [vmem:[#allocation2 + $0x208] sm:$0xff]  ;;  %4071 = vmatpush.msra.mxu0 %v3474_v57 }
 0x9c0   :  { %4144 = vmatpush.msrb.mxu3 %v3556_v34  ;;  %4030 = vmatpush.msra.mxu2 %v3442_v14 }
 0x9c1   :  { %4111 = vmatpush.msra.mxu1 %v3508_v35 }
 0x9c2   :  { %3917 = vmatmul.f32.gmra.mxu0 %v7263_v30  ;;  %4145 = vmatpush.msrb.mxu3 %v3554_v42 }
 0x9c3   :  { %4112 = vmatpush.msra.mxu1 %v3506_v40 }
 0x9c4   :  { %3879 = vmatmul.f32.gmra.mxu2 %v7267_v23  ;;  %4146 = vmatpush.msrb.mxu3 %v3552_v17 }
 0x9c5   :  { %3996 = vmatmul.f32.gmra.mxu3 %v7120_v6  ;;  %v7275_v6 = vsel %vm935_vm9, %v3650_v50, %v3654_v38  ;;  %v3658_v50 = vrot.slane %v7184_v12, 2 }
 0x9c6   :  { %4147 = vmatpush.msrb.mxu3 %v3550_v39 }
 0x9c7   :  { %3958 = vmatmul.f32.gmra.mxu1 %v7122_v28  ;;  %v7279_v28 = vsel %vm935_vm9, %v3652_v52, %v3656_v58  ;;  %v3660_v52 = vrot.slane %v7186_v46, 2  ;;  %v7287_v37 = vsel %vm935_vm9, %v3654_v38, %v3658_v50  ;;  %v7298_v38 = vsel %vm935_vm9, %v3658_v50, %v3662_v53 }
 0x9c8   :  { %4148 = vmatpush.msrb.mxu3 %v3548_v20 }
 0x9c9   :  { %v7291_v41 = vsel %vm935_vm9, %v3656_v58, %v3660_v52  ;;  %v7303_v32 = vsel %vm935_vm9, %v3660_v52, %v5901_v9 }
 0x9ca   :  { %3920 = vmatmul.f32.gmra.mxu0 %v7275_v6 }
 0x9cc   :  { %3882 = vmatmul.f32.gmra.mxu2 %v7279_v28 }
 0x9cd   :  { %3999 = vmatmul.f32.gmra.mxu3 %v7136_v43  ;;  %v3546_v43 = vld [vmem:[#allocation2 + $0x548] sm:$0xff] }
 0x9ce   :  { %4149 = vmatpush.msrb.mxu3 %v3546_v43 }
 0x9cf   :  { %3961 = vmatmul.f32.gmra.mxu1 %v7138_v33  ;;  %v3544_v33 = vld [vmem:[#allocation2 + $0x538] sm:$0xff] }
 0x9d0   :  { %4150 = vmatpush.msrb.mxu3 %v3544_v33 }
 0x9d2   :  { %3923 = vmatmul.f32.gmra.mxu0 %v7287_v37  ;;  %4151 = vmatpush.msrb.mxu3 %v3542_v18 }
 0x9d4   :  { %3885 = vmatmul.f32.gmra.mxu2 %v7291_v41  ;;  %4152 = vmatpush.msrb.mxu3 %v3540_v10 }
 0x9d5   :  { %4002 = vmatmul.f32.gmra.mxu3 %v7152_v24  ;;  %v7310_v24 = vsel %vm935_vm9, %v3662_v53, %v5901_v9 }
 0x9d6   :  { %4153 = vmatpush.msrb.mxu3 %v3538_v31 }
 0x9d7   :  { %3964 = vmatmul.f32.gmra.mxu1 %v7154_v15 }
 0x9da   :  { %3926 = vmatmul.f32.gmra.mxu0 %v7298_v38 }
 0x9dc   :  { %3888 = vmatmul.f32.gmra.mxu2 %v7303_v32 }
 0x9dd   :  { %4005 = vmatmul.f32.gmra.mxu3 %v7168_v22 }
 0x9df   :  { %3967 = vmatmul.f32.gmra.mxu1 %v7170_v49 }
 0x9e2   :  { %3929 = vmatmul.f32.gmra.mxu0 %v7310_v24 }
 0x9e4   :  { %4031 = vmatmul.f32.vlgmr.msra.gmra.mxu2 %v7100_v45  ;;  %v7327_v45 = vld [vmem:[%s7742_s6] sm:$0x3] }
 0x9e5   :  { %4008 = vmatmul.f32.gmra.mxu3 %v7184_v12 }
 0x9e7   :  { %v7315_v15 = vpop.f32.mrf.mxu2  ;;  %v7317_v34 = vpop.f32.mrf.mxu0  ;;  %3970 = vmatmul.f32.gmra.mxu1 %v7186_v46  ;;  %v7332_v46 = vperm.slane %v7327_v45, 0 }
 0x9ea   :  { %4072 = vmatmul.f32.vlgmr.msra.gmra.mxu0 %v7112_v44 }
 0x9ec   :  { %v7321_v22 = vpop.f32.mrf.mxu1  ;;  %4034 = vmatmul.f32.gmra.mxu2 %v7117_v51 }
 0x9ed   :  { %4011 = vmatmul.f32.gmra.mxu3 %v7202_v56 }
 0x9ef   :  { %v3707_v9 = vpop.f32.mrf.mxu2  ;;  %v3748_v49 = vpop.f32.mrf.mxu0  ;;  %4113 = vmatmul.f32.vlgmr.msra.gmra.mxu1 %v7207_v27 }
 0x9f0   :  { %v3708_v44 = vadd.f32 %v3707_v9, %v7332_v46 }
 0x9f2   :  { %4075 = vmatmul.f32.gmra.mxu0 %v7128_v54  ;;  %v3749_v27 = vadd.f32 %v3748_v49, %v3708_v44 }
 0x9f4   :  { %v3789_v12 = vpop.f32.mrf.mxu1  ;;  %4037 = vmatmul.f32.gmra.mxu2 %v7133_v11 }
 0x9f5   :  { %4154 = vmatmul.f32.vlgmr.msrb.gmra.mxu3 %v7223_v55  ;;  %v3790_v11 = vadd.f32 %v3789_v12, %v3749_v27 }
 0x9f7   :  { %v3710_v51 = vpop.f32.mrf.mxu2  ;;  %v3751_v56 = vpop.f32.mrf.mxu0  ;;  %4116 = vmatmul.f32.gmra.mxu1 %v7227_v19 }
 0x9f8   :  { %v7337_v14 = vpop.f32.mrf.mxu3  ;;  %v3711_v58 = vadd.f32 %v3710_v51, %v7332_v46 }
 0x9fa   :  { %4078 = vmatmul.f32.gmra.mxu0 %v7144_v36  ;;  %v3752_v19 = vadd.f32 %v3751_v56, %v3711_v58 }
 0x9fc   :  { %v3792_v54 = vpop.f32.mrf.mxu1  ;;  %4040 = vmatmul.f32.gmra.mxu2 %v7149_v25 }
 0x9fd   :  { %4157 = vmatmul.f32.gmra.mxu3 %v7239_v62  ;;  %v3793_v25 = vadd.f32 %v3792_v54, %v3752_v19 }
 0x9ff   :  { %v3713_v55 = vpop.f32.mrf.mxu2  ;;  %v3754_v7 = vpop.f32.mrf.mxu0  ;;  %4119 = vmatmul.f32.gmra.mxu1 %v7243_v8 }
 0xa00   :  { %v3830_v3 = vpop.f32.mrf.mxu3  ;;  %v3714_v62 = vadd.f32 %v3713_v55, %v7332_v46 }
 0xa01   :  { %v7344_v42 = vadd.f32 %v3830_v3, %v3790_v11 }
 0xa02   :  { %4081 = vmatmul.f32.gmra.mxu0 %v7160_v5  ;;  %v3755_v1 = vadd.f32 %v3754_v7, %v3714_v62 }
 0xa04   :  { %v3795_v36 = vpop.f32.mrf.mxu1  ;;  %4043 = vmatmul.f32.gmra.mxu2 %v7165_v21 }
 0xa05   :  { %4160 = vmatmul.f32.gmra.mxu3 %v7251_v61  ;;  %v3796_v21 = vadd.f32 %v3795_v36, %v3755_v1 }
 0xa07   :  { %v3716_v26 = vpop.f32.mrf.mxu2  ;;  %v3757_v47 = vpop.f32.mrf.mxu0  ;;  %4122 = vmatmul.f32.gmra.mxu1 %v7255_v0 }
 0xa08   :  { %v3833_v17 = vpop.f32.mrf.mxu3  ;;  %v3717_v61 = vadd.f32 %v3716_v26, %v7332_v46 }
 0xa09   :  { %v7351_v8 = vadd.f32 %v3833_v17, %v3793_v25 }
 0xa0a   :  { %4084 = vmatmul.f32.gmra.mxu0 %v7176_v60  ;;  %v3758_v60 = vadd.f32 %v3757_v47, %v3717_v61 }
 0xa0c   :  { %v3798_v5 = vpop.f32.mrf.mxu1  ;;  %4046 = vmatmul.f32.gmra.mxu2 %v7181_v29 }
 0xa0d   :  { %4163 = vmatmul.f32.gmra.mxu3 %v7263_v30  ;;  %v3799_v30 = vadd.f32 %v3798_v5, %v3758_v60 }
 0xa0f   :  { %v3719_v13 = vpop.f32.mrf.mxu2  ;;  %v3760_v50 = vpop.f32.mrf.mxu0  ;;  %4125 = vmatmul.f32.gmra.mxu1 %v7267_v23 }
 0xa10   :  { %v3720_v0 = vadd.f32 %v3719_v13, %v7332_v46  ;;  %v3836_v39 = vpop.f32.mrf.mxu3 }
 0xa11   :  { %v7359_v59 = vadd.f32 %v3836_v39, %v3796_v21 }
 0xa12   :  { %v3761_v57 = vadd.f32 %v3760_v50, %v3720_v0  ;;  %4087 = vmatmul.f32.gmra.mxu0 %v7192_v16  ;;  %v3705_v16 = vadd.f32 %v7315_v15, %v7332_v46 }
 0xa14   :  { %v3801_v52 = vpop.f32.mrf.mxu1  ;;  %4049 = vmatmul.f32.gmra.mxu2 %v7197_v4 }
 0xa15   :  { %v3802_v29 = vadd.f32 %v3801_v52, %v3761_v57  ;;  %4166 = vmatmul.f32.gmra.mxu3 %v7275_v6 }
 0xa17   :  { %v3722_v20 = vpop.f32.mrf.mxu2  ;;  %v3763_v35 = vpop.f32.mrf.mxu0  ;;  %4128 = vmatmul.f32.gmra.mxu1 %v7279_v28  ;;  %v3746_v28 = vadd.f32 %v7317_v34, %v3705_v16 }
 0xa18   :  { %v3723_v23 = vadd.f32 %v3722_v20, %v7332_v46  ;;  %v3839_v43 = vpop.f32.mrf.mxu3 }
 0xa19   :  { %v3840_v40 = vadd.f32 %v3839_v43, %v3799_v30  ;;  %v3787_v15 = vadd.f32 %v7321_v22, %v3746_v28  ;;  %v7410_v43 = vpop.permute.xlu1 %4191 }
 0xa1a   :  { %v3764_v33 = vadd.f32 %v3763_v35, %v3723_v23  ;;  %4090 = vmatmul.f32.gmra.mxu0 %v7211_v63 }
 0xa1c   :  { %v3804_v53 = vpop.f32.mrf.mxu1  ;;  %4052 = vmatmul.f32.gmra.mxu2 %v7215_v2 }
 0xa1d   :  { %v3805_v4 = vadd.f32 %v3804_v53, %v3764_v33  ;;  %4169 = vmatmul.f32.gmra.mxu3 %v7287_v37  ;;  %v3828_v37 = vadd.f32 %v7337_v14, %v3787_v15  ;;  %v7386_v14 = vperm.slane %v7327_v45, 1 }
 0xa1f   :  { %v3725_v6 = vpop.f32.mrf.mxu2  ;;  %v3766_v18 = vpop.f32.mrf.mxu0  ;;  %4131 = vmatmul.f32.gmra.mxu1 %v7291_v41 }
 0xa20   :  { %v3726_v10 = vadd.f32 %v3725_v6, %v7332_v46  ;;  %v3842_v31 = vpop.f32.mrf.mxu3  ;;  %v7413_v6 = vpop.permute.xlu2 %4196 }
 0xa21   :  { %v3843_v9 = vadd.f32 %v3842_v31, %v3802_v29  ;;  %v7421_v31 = vpop.permute.xlu0 %4201 }
 0xa22   :  { %v3767_v63 = vadd.f32 %v3766_v18, %v3726_v10  ;;  %4093 = vmatmul.f32.gmra.mxu0 %v7232_v48 }
 0xa24   :  { %v3807_v49 = vpop.f32.mrf.mxu1 }
 0xa25   :  { %v3808_v2 = vadd.f32 %v3807_v49, %v3767_v63  ;;  %4172 = vmatmul.f32.gmra.mxu3 %v7298_v38 }
 0xa27   :  { %v3868_v12 = vpop.f32.mrf.mxu2  ;;  %v3909_v44 = vpop.f32.mrf.mxu0  ;;  %4134 = vmatmul.f32.gmra.mxu1 %v7303_v32 }
 0xa28   :  { %v3869_v41 = vadd.f32 %v3868_v12, %v3828_v37  ;;  %v3845_v34 = vpop.f32.mrf.mxu3  ;;  %v7424_v37 = vpop.permute.xlu1 %4206 }
 0xa29   :  { %v3846_v46 = vadd.f32 %v3845_v34, %v3805_v4  ;;  %v7432_v34 = vpop.permute.xlu2 %4211 }
 0xa2a   :  { %v7379_v51 = vadd.f32 %v3909_v44, %v3869_v41 }
 0xa2c   :  { %7743 = vst [vmem:[#allocation20_spill] sm:$0xff] %v7379_v51  ;;  %v3950_v56 = vpop.f32.mrf.mxu1 }
 0xa2d   :  { %4175 = vmatmul.f32.gmra.mxu3 %v7310_v24  ;;  %v3951_v58 = vadd.f32 %v3950_v56, %v7386_v14 }
 0xa2f   :  { %v3871_v48 = vpop.f32.mrf.mxu2  ;;  %v3912_v22 = vpop.f32.mrf.mxu0 }
 0xa30   :  { %v3872_v27 = vadd.f32 %v3871_v48, %v7344_v42  ;;  %v3848_v54 = vpop.f32.mrf.mxu3 }
 0xa31   :  { %v3849_v38 = vadd.f32 %v3848_v54, %v3808_v2 }
 0xa32   :  { %v7383_v11 = vadd.f32 %v3912_v22, %v3872_v27 }
 0xa34   :  { %v3953_v32 = vpop.f32.mrf.mxu1  ;;  %v4231_v44 = vmul.f32 %v7413_v6, %v7383_v11 }
 0xa35   :  { %v3954_v25 = vadd.f32 %v3953_v32, %v7386_v14 }
 0xa37   :  { %v3874_v55 = vpop.f32.mrf.mxu2  ;;  %v3915_v7 = vpop.f32.mrf.mxu0 }
 0xa38   :  { %v3875_v3 = vadd.f32 %v3874_v55, %v7351_v8  ;;  %v3991_v19 = vpop.f32.mrf.mxu3 }
 0xa39   :  { %v7390_v24 = vadd.f32 %v3991_v19, %v3951_v58 }
 0xa3a   :  { %v7392_v36 = vadd.f32 %v3915_v7, %v3875_v3  ;;  %v7444_v7 = vpop.permute.xlu0 %4216 }
 0xa3c   :  { %v3956_v42 = vpop.f32.mrf.mxu1  ;;  %v4233_v56 = vmul.f32 %v7421_v31, %v7392_v36 }
 0xa3d   :  { %v3957_v8 = vadd.f32 %v3956_v42, %v7386_v14  ;;  %v7448_v42 = vpop.permute.xlu1 %4221 }
 0xa3f   :  { %v3877_v62 = vpop.f32.mrf.mxu2  ;;  %v3918_v26 = vpop.f32.mrf.mxu0 }
 0xa40   :  { %v3878_v45 = vadd.f32 %v3877_v62, %v7359_v59  ;;  %v3994_v47 = vpop.f32.mrf.mxu3 }
 0xa41   :  { %v7396_v17 = vadd.f32 %v3994_v47, %v3954_v25 }
 0xa42   :  { %v7398_v1 = vadd.f32 %v3918_v26, %v3878_v45  ;;  %v7452_v45 = vpop.permute.xlu2 %4226 }
 0xa44   :  { %v3959_v5 = vpop.f32.mrf.mxu1  ;;  %v4235_v27 = vmul.f32 %v7424_v37, %v7398_v1 }
 0xa45   :  { %v3960_v60 = vadd.f32 %v3959_v5, %v7386_v14 }
 0xa47   :  { %v3880_v21 = vpop.f32.mrf.mxu2  ;;  %v3921_v61 = vpop.f32.mrf.mxu0 }
 0xa48   :  { %v3881_v13 = vadd.f32 %v3880_v21, %v3840_v40  ;;  %v3997_v50 = vpop.f32.mrf.mxu3 }
 0xa49   :  { %v7401_v0 = vadd.f32 %v3997_v50, %v3957_v8 }
 0xa4a   :  { %v7403_v39 = vadd.f32 %v3921_v61, %v3881_v13 }
 0xa4c   :  { %v3962_v57 = vpop.f32.mrf.mxu1  ;;  %v4237_v58 = vmul.f32 %v7432_v34, %v7403_v39 }
 0xa4d   :  { %v3963_v40 = vadd.f32 %v3962_v57, %v7386_v14 }
 0xa4f   :  { %v3883_v59 = vpop.f32.mrf.mxu2  ;;  %v3924_v52 = vpop.f32.mrf.mxu0 }
 0xa50   :  { %v3884_v29 = vadd.f32 %v3883_v59, %v3843_v9  ;;  %v4000_v30 = vpop.f32.mrf.mxu3 }
 0xa51   :  { %v7406_v20 = vadd.f32 %v4000_v30, %v3960_v60 }
 0xa52   :  { %v7408_v35 = vadd.f32 %v3924_v52, %v3884_v29 }
 0xa54   :  { %v3965_v23 = vpop.f32.mrf.mxu1  ;;  %v4239_v19 = vmul.f32 %v7444_v7, %v7408_v35 }
 0xa55   :  { %v3966_v9 = vadd.f32 %v3965_v23, %v7386_v14 }
 0xa57   :  { %v3886_v33 = vpop.f32.mrf.mxu2  ;;  %v3927_v16 = vpop.f32.mrf.mxu0 }
 0xa58   :  { %v3887_v53 = vadd.f32 %v3886_v33, %v3846_v46  ;;  %v4003_v4 = vpop.f32.mrf.mxu3  ;;  %v4229_v46 = vmul.f32 %v7410_v43, %v7379_v51 }
 0xa59   :  { %v7415_v18 = vadd.f32 %v4003_v4, %v3963_v40 }
 0xa5a   :  { %v7417_v28 = vadd.f32 %v3927_v16, %v3887_v53  ;;  %v4245_v22 = vadd.f32 %v4231_v44, %v4229_v46 }
 0xa5c   :  { %v7419_v10 = vpop.f32.mrf.mxu1  ;;  %v4246_v32 = vadd.f32 %v4245_v22, %v4233_v56  ;;  %v4241_v62 = vmul.f32 %v7448_v42, %v7417_v28 }
 0xa5e   :  { %v4247_v3 = vadd.f32 %v4246_v32, %v4235_v27 }
 0xa5f   :  { %v3889_v63 = vpop.f32.mrf.mxu2  ;;  %v3930_v15 = vpop.f32.mrf.mxu0 }
 0xa60   :  { %v3890_v49 = vadd.f32 %v3889_v63, %v3849_v38  ;;  %v4006_v2 = vpop.f32.mrf.mxu3  ;;  %v4248_v25 = vadd.f32 %v4247_v3, %v4237_v58 }
 0xa61   :  { %v7426_v12 = vadd.f32 %v4006_v2, %v3966_v9 }
 0xa62   :  { %v7430_v41 = vadd.f32 %v3930_v15, %v3890_v49  ;;  %v4249_v47 = vadd.f32 %v4248_v25, %v4239_v19 }
 0xa64   :  { %v7438_v48 = vpop.f32.mrf.mxu1  ;;  %v4243_v5 = vmul.f32 %v7452_v45, %v7430_v41  ;;  %v4250_v61 = vadd.f32 %v4249_v47, %v4241_v62 }
 0xa66   :  { %v4251_v50 = vadd.f32 %v4250_v61, %v4243_v5 }
 0xa67   :  { %v4032_v54 = vpop.f32.mrf.mxu2  ;;  %v4073_v38 = vpop.f32.mrf.mxu0 }
 0xa68   :  { %v4009_v55 = vpop.f32.mrf.mxu3  ;;  %v4252_v60 = vrot.slane %v4251_v50, 4  ;;  %v4033_v5 = vadd.f32 %v4032_v54, %v7390_v24 }
 0xa6a   :  { %v4253_v30 = vadd.f32 %v4252_v60, %v4251_v50 }
 0xa6c   :  { %v4114_v26 = vpop.f32.mrf.mxu1  ;;  %v4254_v40 = vrot.slane %v4253_v30, 2 }
 0xa6e   :  { %v4255_v53 = vadd.f32 %v4254_v40, %v4253_v30 }
 0xa6f   :  { %v4035_v8 = vpop.f32.mrf.mxu2  ;;  %v4076_v21 = vpop.f32.mrf.mxu0 }
 0xa70   :  { %v7456_v13 = vpop.f32.mrf.mxu3  ;;  %v4256_v63 = vrot.slane %v4255_v53, 1  ;;  %v4036_v62 = vadd.f32 %v4035_v8, %v7396_v17  ;;  %v4074_v8 = vadd.f32 %v4073_v38, %v4033_v5 }
 0xa72   :  { %v4257_v2 = vadd.f32 %v4256_v63, %v4255_v53  ;;  %v4077_v63 = vadd.f32 %v4076_v21, %v4036_v62  ;;  %v4115_v62 = vadd.f32 %v4114_v26, %v4074_v8 }
 0xa74   :  { %v4117_v57 = vpop.f32.mrf.mxu1  ;;  %v7458_v46 = vmul.f32 0.020833334, %v4257_v2 }
 0xa76   :  { %v4273_v32 = vsub.f32 %v7379_v51, %v7458_v46  ;;  %v4275_v58 = vsub.f32 %v7383_v11, %v7458_v46  ;;  %v4277_v47 = vsub.f32 %v7392_v36, %v7458_v46  ;;  %v4283_v26 = vsub.f32 %v7408_v35, %v7458_v46 }
 0xa77   :  { %v4038_v59 = vpop.f32.mrf.mxu2  ;;  %v4079_v52 = vpop.f32.mrf.mxu0 }
 0xa78   :  { %v4155_v29 = vpop.f32.mrf.mxu3  ;;  %v4289_v3 = vmul.f32 %v4273_v32, %v7410_v43  ;;  %v4291_v19 = vmul.f32 %v4275_v58, %v7413_v6  ;;  %v4039_v60 = vadd.f32 %v4038_v59, %v7401_v0  ;;  %v4279_v32 = vsub.f32 %v7398_v1, %v7458_v46 }
 0xa79   :  { %v4293_v17 = vmul.f32 %v4277_v47, %v7421_v31  ;;  %v3969_v58 = vadd.f32 %v7419_v10, %v7386_v14  ;;  %v4118_v59 = vadd.f32 %v4117_v57, %v4077_v63  ;;  %v7486_v57 = vadd.f32 %v4155_v29, %v4115_v62 }
 0xa7a   :  { %v4305_v30 = vmul.f32 %v4289_v3, %v4289_v3  ;;  %v4307_v40 = vmul.f32 %v4291_v19, %v4291_v19  ;;  %v4080_v24 = vadd.f32 %v4079_v52, %v4039_v60 }
 0xa7b   :  { %v4010_v0 = vadd.f32 %v4009_v55, %v3969_v58  ;;  %v4309_v19 = vmul.f32 %v4293_v17, %v4293_v17  ;;  %v3972_v55 = vadd.f32 %v7438_v48, %v7386_v14 }
 0xa7c   :  { %v4120_v23 = vpop.f32.mrf.mxu1  ;;  %v4321_v51 = vadd.f32 %v4307_v40, %v4305_v30 }
 0xa7d   :  { %v4121_v5 = vadd.f32 %v4120_v23, %v4080_v24 }
 0xa7f   :  { %v4041_v33 = vpop.f32.mrf.mxu2  ;;  %v4082_v4 = vpop.f32.mrf.mxu0 }
 0xa80   :  { %v4158_v16 = vpop.f32.mrf.mxu3  ;;  %v4042_v2 = vadd.f32 %v4041_v33, %v7406_v20  ;;  %v4281_v20 = vsub.f32 %v7403_v39, %v7458_v46  ;;  %v4295_v33 = vmul.f32 %v4279_v32, %v7424_v37 }
 0xa81   :  { %v7482_v10 = vadd.f32 %v4158_v16, %v4118_v59 }
 0xa82   :  { %v4083_v3 = vadd.f32 %v4082_v4, %v4042_v2  ;;  %v4297_v23 = vmul.f32 %v4281_v20, %v7432_v34  ;;  %v4311_v16 = vmul.f32 %v4295_v33, %v4295_v33  ;;  %v4299_v2 = vmul.f32 %v4283_v26, %v7444_v7 }
 0xa84   :  { %v4123_v9 = vpop.f32.mrf.mxu1  ;;  %v4315_v20 = vmul.f32 %v4299_v2, %v4299_v2 }
 0xa85   :  { %v4124_v4 = vadd.f32 %v4123_v9, %v4083_v3  ;;  %v4287_v3 = vsub.f32 %v7430_v41, %v7458_v46 }
 0xa87   :  { %v4044_v15 = vpop.f32.mrf.mxu2  ;;  %v4085_v44 = vpop.f32.mrf.mxu0 }
 0xa88   :  { %v4161_v49 = vpop.f32.mrf.mxu3  ;;  %v4045_v54 = vadd.f32 %v4044_v15, %v7415_v18  ;;  %v4322_v15 = vadd.f32 %v4321_v51, %v4309_v19  ;;  %v4232_v51 = vmul.f32 %v7413_v6, %v7482_v10 }
 0xa8a   :  { %v4086_v52 = vadd.f32 %v4085_v44, %v4045_v54  ;;  %v4013_v44 = vadd.f32 %v7456_v13, %v3972_v55  ;;  %v4323_v9 = vadd.f32 %v4322_v15, %v4311_v16  ;;  %v4285_v13 = vsub.f32 %v7417_v28, %v7458_v46 }
 0xa8c   :  { %v4126_v56 = vpop.f32.mrf.mxu1 }
 0xa8d   :  { %v4127_v14 = vadd.f32 %v4126_v56, %v4086_v52  ;;  %v4313_v56 = vmul.f32 %v4297_v23, %v4297_v23 }
 0xa8f   :  { %v4047_v22 = vpop.f32.mrf.mxu2  ;;  %v4088_v25 = vpop.f32.mrf.mxu0  ;;  %v4324_v24 = vadd.f32 %v4323_v9, %v4313_v56 }
 0xa90   :  { %v4164_v27 = vpop.f32.mrf.mxu3  ;;  %v4048_v21 = vadd.f32 %v4047_v22, %v7426_v12  ;;  %v7488_v22 = vadd.f32 %v4161_v49, %v4121_v5  ;;  %v4230_v49 = vmul.f32 %v7410_v43, %v7486_v57 }
 0xa91   :  { %v7496_v48 = vadd.f32 %v4164_v27, %v4124_v4 }
 0xa92   :  { %v4089_v60 = vadd.f32 %v4088_v25, %v4048_v21  ;;  %v4234_v25 = vmul.f32 %v7421_v31, %v7488_v22  ;;  %v4258_v32 = vadd.f32 %v4232_v51, %v4230_v49  ;;  %v4301_v21 = vmul.f32 %v4285_v13, %v7448_v42 }
 0xa93   :  { %v4236_v17 = vmul.f32 %v7424_v37, %v7496_v48 }
 0xa94   :  { %v4129_v61 = vpop.f32.mrf.mxu1  ;;  %v4317_v15 = vmul.f32 %v4301_v21, %v4301_v21 }
 0xa95   :  { %v4130_v40 = vadd.f32 %v4129_v61, %v4089_v60  ;;  %v4259_v61 = vadd.f32 %v4258_v32, %v4234_v25 }
 0xa97   :  { %v4050_v53 = vpop.f32.mrf.mxu2  ;;  %v4091_v38 = vpop.f32.mrf.mxu0  ;;  %v4260_v19 = vadd.f32 %v4259_v61, %v4236_v17 }
 0xa98   :  { %v4167_v50 = vpop.f32.mrf.mxu3  ;;  %v4051_v18 = vadd.f32 %v4050_v53, %v4010_v0 }
 0xa99   :  { %v7502_v53 = vadd.f32 %v4167_v50, %v4127_v14 }
 0xa9a   :  { %v4092_v29 = vadd.f32 %v4091_v38, %v4051_v18  ;;  %v4325_v38 = vadd.f32 %v4324_v24, %v4315_v20  ;;  %v4303_v18 = vmul.f32 %v4287_v3, %v7452_v45 }
 0xa9b   :  { %v4238_v50 = vmul.f32 %v7432_v34, %v7502_v53 }
 0xa9c   :  { %v4132_v12 = vpop.f32.mrf.mxu1  ;;  %v4326_v60 = vadd.f32 %v4325_v38, %v4317_v15  ;;  %v4319_v16 = vmul.f32 %v4303_v18, %v4303_v18 }
 0xa9d   :  { %v4133_v8 = vadd.f32 %v4132_v12, %v4092_v29 }
 0xa9f   :  { %v4053_v30 = vpop.f32.mrf.mxu2  ;;  %v4094_v54 = vpop.f32.mrf.mxu0 }
 0xaa0   :  { %v4170_v47 = vpop.f32.mrf.mxu3  ;;  %v4054_v63 = vadd.f32 %v4053_v30, %v4013_v44  ;;  %v4327_v30 = vadd.f32 %v4326_v60, %v4319_v16 }
 0xaa1   :  { %v7509_v58 = vadd.f32 %v4170_v47, %v4130_v40  ;;  %v4261_v47 = vadd.f32 %v4260_v19, %v4238_v50 }
 0xaa2   :  { %v4095_v0 = vadd.f32 %v4094_v54, %v4054_v63  ;;  %v4328_v29 = vrot.slane %v4327_v30, 4 }
 0xaa3   :  { %v4240_v62 = vmul.f32 %v7444_v7, %v7509_v58 }
 0xaa4   :  { %v4135_v33 = vpop.f32.mrf.mxu1  ;;  %v4329_v25 = vadd.f32 %v4328_v29, %v4327_v30 }
 0xaa5   :  { %v4136_v5 = vadd.f32 %v4135_v33, %v4095_v0  ;;  %v4262_v12 = vadd.f32 %v4261_v47, %v4240_v62 }
 0xaa6   :  { %v4330_v13 = vrot.slane %v4329_v25, 2 }
 0xaa8   :  { %v4173_v27 = vpop.f32.mrf.mxu3 }
 0xaa9   :  { %v7513_v59 = vadd.f32 %v4173_v27, %v4133_v8  ;;  %v4331_v8 = vadd.f32 %v4330_v13, %v4329_v25 }
 0xaab   :  { %v4242_v52 = vmul.f32 %v7448_v42, %v7513_v59  ;;  %v4332_v33 = vrot.slane %v4331_v8, 1 }
 0xaad   :  { %v4263_v26 = vadd.f32 %v4262_v12, %v4242_v52  ;;  %v4333_v52 = vadd.f32 %v4332_v33, %v4331_v8 }
 0xab0   :  { %v4176_v55 = vpop.f32.mrf.mxu3 }
 0xab1   :  { %v7523_v4 = vadd.f32 %v4176_v55, %v4136_v5 }
 0xab3   :  { %v4244_v23 = vmul.f32 %v7452_v45, %v7523_v4 }
 0xab5   :  { %v4264_v44 = vadd.f32 %v4263_v26, %v4244_v23  ;;  %v4347_v26 = vmul.f32 0.020833334, %v4333_v52 }
 0xab7   :  { %v4265_v51 = vrot.slane %v4264_v44, 4  ;;  %v4349_v30 = vadd.f32 1e-05, %v4347_v26 }
 0xab9   :  { %v4266_v14 = vadd.f32 %v4265_v51, %v4264_v44  ;;  %5067 = vrsqrt.f32 %v4349_v30  ;;  %vm4357_vm9 = vweird.f32 %v4349_v30 }
 0xabb   :  { %v4267_v9 = vrot.slane %v4266_v14, 2 }
 0xabd   :  { %v4268_v49 = vadd.f32 %v4267_v9, %v4266_v14 }
 0xabf   :  { %v4269_v40 = vrot.slane %v4268_v49, 1 }
 0xac1   :  { %v4270_v63 = vadd.f32 %v4269_v40, %v4268_v49 }
 0xac3   :  { %v7527_v2 = vmul.f32 0.020833334, %v4270_v63 }
 0xac5   :  { %v4274_v56 = vsub.f32 %v7486_v57, %v7527_v2  ;;  %v4276_v27 = vsub.f32 %v7482_v10, %v7527_v2  ;;  %v4278_v32 = vsub.f32 %v7488_v22, %v7527_v2  ;;  %v4280_v17 = vsub.f32 %v7496_v48, %v7527_v2 }
 0xac6   :  { %v4282_v24 = vsub.f32 %v7502_v53, %v7527_v2  ;;  %v4284_v0 = vsub.f32 %v7509_v58, %v7527_v2  ;;  %v4286_v19 = vsub.f32 %v7513_v59, %v7527_v2 }
 0xac7   :  { %v4290_v54 = vmul.f32 %v4274_v56, %v7410_v43  ;;  %v4292_v61 = vmul.f32 %v4276_v27, %v7413_v6  ;;  %v4294_v50 = vmul.f32 %v4278_v32, %v7421_v31  ;;  %v4296_v3 = vmul.f32 %v4280_v17, %v7424_v37 }
 0xac8   :  { %v4298_v62 = vmul.f32 %v4282_v24, %v7432_v34  ;;  %v4288_v43 = vsub.f32 %v7523_v4, %v7527_v2  ;;  %v4300_v6 = vmul.f32 %v4284_v0, %v7444_v7  ;;  %v4302_v37 = vmul.f32 %v4286_v19, %v7448_v42  ;;  %v5068_v42 = vpop.eup %5067  ;;  %v4179_v24 = vld [vmem:[%s7744_s12] sm:$0x3] }
 0xac9   :  { %v4306_v21 = vmul.f32 %v4290_v54, %v4290_v54  ;;  %v4308_v20 = vmul.f32 %v4292_v61, %v4292_v61  ;;  %v4310_v38 = vmul.f32 %v4294_v50, %v4294_v50  ;;  %v4312_v31 = vmul.f32 %v4296_v3, %v4296_v3 }
 0xaca   :  { %v4314_v18 = vmul.f32 %v4298_v62, %v4298_v62  ;;  %v4304_v55 = vmul.f32 %v4288_v43, %v7452_v45  ;;  %v4316_v12 = vmul.f32 %v4300_v6, %v4300_v6  ;;  %v4318_v34 = vmul.f32 %v4302_v37, %v4302_v37  ;;  %v4180_v43 = vld [vmem:[%s7745_s20] sm:$0x3] }
 0xacb   :  { %v4334_v47 = vadd.f32 %v4308_v20, %v4306_v21  ;;  %v4352_v40 = vmul.f32 %v5068_v42, %v4349_v30  ;;  %vm4358_vm0 = vweird.f32 %v5068_v42  ;;  %v4372_v0 = vperm.slane %v4179_v24, 0  ;;  %v4542_v30 = vld [vmem:[%s7746_s27 + $0x178] sm:$0xff] }
 0xacc   :  { %v4320_v16 = vmul.f32 %v4304_v55, %v4304_v55  ;;  %vm4359_vm14 = vmor %vm4357_vm9, %vm4358_vm0  ;;  %v4373_v3 = vperm.slane %v4179_v24, 1  ;;  %4635 = vmatpush.msrb.mxu1 %v4542_v30  ;;  %v4498_v30 = vld [vmem:[%s7746_s27 + $0x18] sm:$0xff] }
 0xacd   :  { %v4335_v5 = vadd.f32 %v4334_v47, %v4310_v38  ;;  %v4353_v13 = vmul.f32 %v5068_v42, %v4352_v40  ;;  %v4555_v40 = vld [vmem:[%s7746_s27 + $0x1e0] sm:$0xff] }
 0xacf   :  { %v4336_v15 = vadd.f32 %v4335_v5, %v4312_v31  ;;  %v4354_v56 = vmul.f32 0.5, %v4353_v13  ;;  %v4539_v13 = vld [vmem:[%s7746_s27 + $0x160] sm:$0xff] }
 0xad1   :  { %v4337_v60 = vadd.f32 %v4336_v15, %v4314_v18  ;;  %v4355_v32 = vsub.f32 1.5, %v4354_v56  ;;  %v4554_v56 = vld [vmem:[%s7746_s27 + $0x1d8] sm:$0xff] }
 0xad3   :  { %v4338_v23 = vadd.f32 %v4337_v60, %v4316_v12  ;;  %v4356_v54 = vmul.f32 %v5068_v42, %v4355_v32 }
 0xad5   :  { %v4339_v44 = vadd.f32 %v4338_v23, %v4318_v34  ;;  %v4360_v21 = vsel %vm4359_vm14, %v5068_v42, %v4356_v54 }
 0xad6   :  { %v4376_v19 = vmul.f32 %v4372_v0, %v4360_v21  ;;  %v4526_v0 = vld [vmem:[%s7746_s27 + $0xf8] sm:$0xff]  ;;  %v4509_v21 = vld [vmem:[%s7746_s27 + $0x70] sm:$0xff] }
 0xad7   :  { %v4340_v51 = vadd.f32 %v4339_v44, %v4320_v16  ;;  %v4558_v16 = vld [vmem:[%s7746_s27 + $0x1f8] sm:$0xff] }
 0xad8   :  { %v4396_v47 = vmul.f32 %v4376_v19, %v7458_v46  ;;  %v4378_v31 = vperm.slane %v4376_v19, 0  ;;  %4655 = vmatpush.msra.mxu3 %v4558_v16  ;;  %v4524_v19 = vld [vmem:[%s7746_s27 + $0xe8] sm:$0xff]  ;;  %v4517_v16 = vld [vmem:[%s7746_s27 + $0xb0] sm:$0xff] }
 0xad9   :  { %v4341_v14 = vrot.slane %v4340_v51, 4 }
 0xada   :  { %v4394_v18 = vmul.f32 %v4378_v31, %v7430_v41  ;;  %v4392_v60 = vmul.f32 %v4378_v31, %v7417_v28  ;;  %v4390_v41 = vmul.f32 %v4378_v31, %v7408_v35  ;;  %v4388_v44 = vmul.f32 %v4378_v31, %v7403_v39 }
 0xadb   :  { %v4342_v7 = vadd.f32 %v4341_v14, %v4340_v51  ;;  %v4557_v51 = vld [vmem:[%s7746_s27 + $0x1f0] sm:$0xff]  ;;  %v4386_v14 = vmul.f32 %v4378_v31, %v7398_v1 }
 0xadc   :  { %4656 = vmatpush.msra.mxu3 %v4557_v51  ;;  %v4514_v51 = vld [vmem:[%s7746_s27 + $0x98] sm:$0xff] }
 0xadd   :  { %v4343_v29 = vrot.slane %v4342_v7, 2 }
 0xadf   :  { %v4344_v9 = vadd.f32 %v4343_v29, %v4342_v7  ;;  %v4541_v29 = vld [vmem:[%s7746_s27 + $0x170] sm:$0xff] }
 0xae0   :  { %4636 = vmatpush.msrb.mxu1 %v4541_v29  ;;  %v4495_v29 = vld [vmem:[%s7746_s27] sm:$0xff] }
 0xae1   :  { %v4345_v49 = vrot.slane %v4344_v9, 1 }
 0xae3   :  { %v4346_v25 = vadd.f32 %v4345_v49, %v4344_v9  ;;  %v4556_v9 = vld [vmem:[%s7746_s27 + $0x1e8] sm:$0xff] }
 0xae4   :  { %4657 = vmatpush.msra.mxu3 %v4556_v9  ;;  %v4511_v9 = vld [vmem:[%s7746_s27 + $0x80] sm:$0xff] }
 0xae5   :  { %v4348_v45 = vmul.f32 0.020833334, %v4346_v25  ;;  %v4540_v25 = vld [vmem:[%s7746_s27 + $0x168] sm:$0xff] }
 0xae6   :  { %4637 = vmatpush.msrb.mxu1 %v4540_v25  ;;  %4658 = vmatpush.msra.mxu3 %v4555_v40  ;;  %v4572_v25 = vld [vmem:[%s7746_s27 + $0x268] sm:$0xff]  ;;  %v4571_v40 = vld [vmem:[%s7746_s27 + $0x260] sm:$0xff] }
 0xae7   :  { %v4350_v63 = vadd.f32 1e-05, %v4348_v45 }
 0xae8   :  { %4638 = vmatpush.msrb.mxu1 %v4539_v13  ;;  %4659 = vmatpush.msra.mxu3 %v4554_v56  ;;  %v4567_v13 = vld [vmem:[%s7746_s27 + $0x240] sm:$0xff] }
 0xae9   :  { %5069 = vrsqrt.f32 %v4350_v63  ;;  %vm4367_vm15 = vweird.f32 %v4350_v63  ;;  %v4587_v56 = vld [vmem:[%s7746_s27 + $0x2e0] sm:$0xff] }
 0xaef   :  { %v5070_v27 = vpop.eup %5069 }
 0xaf0   :  { %v4362_v17 = vmul.f32 %v5070_v27, %v4350_v63  ;;  %vm4368_vm13 = vweird.f32 %v5070_v27 }
 0xaf1   :  { %vm4369_vm1 = vmor %vm4367_vm15, %vm4368_vm13 }
 0xaf2   :  { %v4363_v8 = vmul.f32 %v5070_v27, %v4362_v17  ;;  %v4538_v17 = vld [vmem:[%s7746_s27 + $0x158] sm:$0xff] }
 0xaf3   :  { %4639 = vmatpush.msrb.mxu1 %v4538_v17  ;;  %v4547_v17 = vld [vmem:[%s7746_s27 + $0x1a0] sm:$0xff] }
 0xaf4   :  { %v4364_v61 = vmul.f32 0.5, %v4363_v8  ;;  %v4553_v8 = vld [vmem:[%s7746_s27 + $0x1d0] sm:$0xff] }
 0xaf5   :  { %4660 = vmatpush.msra.mxu3 %v4553_v8  ;;  %v4565_v8 = vld [vmem:[%s7746_s27 + $0x230] sm:$0xff] }
 0xaf6   :  { %v4365_v50 = vsub.f32 1.5, %v4364_v61  ;;  %v4425_v61 = vld [vmem:[%s7748_s4] sm:$0xff] }
 0xaf8   :  { %v4366_v20 = vmul.f32 %v5070_v27, %v4365_v50  ;;  %v4510_v50 = vld [vmem:[%s7746_s27 + $0x78] sm:$0xff] }
 0xafa   :  { %v4370_v33 = vsel %vm4369_vm1, %v5070_v27, %v4366_v20  ;;  %v4525_v20 = vld [vmem:[%s7746_s27 + $0xf0] sm:$0xff] }
 0xafb   :  { %v4377_v62 = vmul.f32 %v4373_v3, %v4370_v33  ;;  %v4552_v3 = vld [vmem:[%s7746_s27 + $0x1c8] sm:$0xff] }
 0xafc   :  { %v4508_v33 = vld [vmem:[%s7746_s27 + $0x68] sm:$0xff]  ;;  %4661 = vmatpush.msra.mxu3 %v4552_v3  ;;  %v4583_v3 = vld [vmem:[%s7746_s27 + $0x2c0] sm:$0xff] }
 0xafd   :  { %v4397_v38 = vmul.f32 %v4377_v62, %v7527_v2  ;;  %v7557_v5 = vperm.slane %v4377_v62, 0  ;;  %v4536_v62 = vld [vmem:[%s7746_s27 + $0x148] sm:$0xff] }
 0xaff   :  { %v4400_v6 = vrot.slane %v4397_v38, 7  ;;  %v4395_v15 = vmul.f32 %v7557_v5, %v7523_v4  ;;  %v4393_v26 = vmul.f32 %v7557_v5, %v7513_v59  ;;  %v4391_v23 = vmul.f32 %v7557_v5, %v7509_v58  ;;  %v4551_v38 = vld [vmem:[%s7746_s27 + $0x1c0] sm:$0xff] }
 0xb00   :  { %v4389_v59 = vmul.f32 %v7557_v5, %v7502_v53  ;;  %v4387_v7 = vmul.f32 %v7557_v5, %v7496_v48  ;;  %v4384_v53 = vmul.f32 %v4378_v31, %v7392_v36  ;;  %v4385_v49 = vmul.f32 %v7557_v5, %v7488_v22  ;;  %v7747_v22 = vld [vmem:[#allocation20_spill] sm:$0xff]  ;;  %4662 = vmatpush.msra.mxu3 %v4551_v38  ;;  %v4529_v38 = vld [vmem:[%s7746_s27 + $0x110] sm:$0xff] }
 0xb01   :  { %v4401_v52 = vsel %vm3222_vm12, %v4396_v47, %v4400_v6  ;;  %v4382_v48 = vmul.f32 %v4378_v31, %v7383_v11  ;;  %v4383_v63 = vmul.f32 %v7557_v5, %v7482_v10  ;;  %v4380_v27 = vmul.f32 %v4378_v31, %v7747_v22  ;;  %v4507_v47 = vld [vmem:[%s7746_s27 + $0x60] sm:$0xff]  ;;  %v4426_v6 = vld [vmem:[%s7748_s4 + $0x8] sm:$0xff]  ;;  %v4506_v31 = vld [vmem:[%s7746_s27 + $0x58] sm:$0xff] }
 0xb02   :  { %v4403_v37 = vsub.f32 %v4180_v43, %v4401_v52  ;;  %v4381_v10 = vmul.f32 %v7557_v5, %v7486_v57  ;;  %v4537_v57 = vld [vmem:[%s7746_s27 + $0x150] sm:$0xff]  ;;  %v4523_v43 = vld [vmem:[%s7746_s27 + $0xe0] sm:$0xff]  ;;  %v4522_v5 = vld [vmem:[%s7746_s27 + $0xd8] sm:$0xff] }
 0xb03   :  { %4640 = vmatpush.msrb.mxu1 %v4537_v57  ;;  %v4535_v52 = vld [vmem:[%s7746_s27 + $0x140] sm:$0xff]  ;;  %v4533_v22 = vld [vmem:[%s7746_s27 + $0x130] sm:$0xff] }
 0xb04   :  { %v7563_v55 = vperm.slane %v4403_v37, 0  ;;  %v7565_v12 = vperm.slane %v4403_v37, 1  ;;  %v4550_v37 = vld [vmem:[%s7746_s27 + $0x1b8] sm:$0xff]  ;;  %v4563_v57 = vld [vmem:[%s7746_s27 + $0x220] sm:$0xff] }
 0xb05   :  { %4641 = vmatpush.msrb.mxu1 %v4536_v62  ;;  %4663 = vmatpush.msra.mxu3 %v4550_v37  ;;  %v4544_v62 = vld [vmem:[%s7746_s27 + $0x188] sm:$0xff] }
 0xb06   :  { %v4424_v46 = vadd.f32 %v7565_v12, %v4395_v15  ;;  %v4423_v2 = vadd.f32 %v7563_v55, %v4394_v18  ;;  %v4421_v4 = vadd.f32 %v7563_v55, %v4392_v60  ;;  %v4422_v34 = vadd.f32 %v7565_v12, %v4393_v26  ;;  %v4505_v18 = vld [vmem:[%s7746_s27 + $0x50] sm:$0xff]  ;;  %v4503_v60 = vld [vmem:[%s7746_s27 + $0x40] sm:$0xff]  ;;  %v4580_v37 = vld [vmem:[%s7746_s27 + $0x2a8] sm:$0xff] }
 0xb07   :  { %v4419_v28 = vadd.f32 %v7563_v55, %v4390_v41  ;;  %v4420_v35 = vadd.f32 %v7565_v12, %v4391_v23  ;;  %v4417_v39 = vadd.f32 %v7563_v55, %v4388_v44  ;;  %v4418_v58 = vadd.f32 %v7565_v12, %v4389_v59  ;;  %v4521_v15 = vld [vmem:[%s7746_s27 + $0xd0] sm:$0xff]  ;;  %4642 = vmatpush.msrb.mxu1 %v4535_v52  ;;  %v4519_v26 = vld [vmem:[%s7746_s27 + $0xc0] sm:$0xff]  ;;  %v4500_v44 = vld [vmem:[%s7746_s27 + $0x28] sm:$0xff] }
 0xb08   :  { %4445 = vmatpush.msrb.mxu2 %v4423_v2  ;;  %4471 = vmatpush.msrb.mxu0 %v4424_v46  ;;  %v4415_v1 = vadd.f32 %v7563_v55, %v4386_v14  ;;  %v4416_v42 = vadd.f32 %v7565_v12, %v4387_v7  ;;  %v4413_v36 = vadd.f32 %v7563_v55, %v4384_v53  ;;  %v4534_v46 = vld [vmem:[%s7746_s27 + $0x138] sm:$0xff]  ;;  %v4549_v2 = vld [vmem:[%s7746_s27 + $0x1b0] sm:$0xff]  ;;  %v4515_v59 = vld [vmem:[%s7746_s27 + $0xa0] sm:$0xff] }
 0xb09   :  { %v4414_v45 = vadd.f32 %v7565_v12, %v4385_v49  ;;  %v4411_v11 = vadd.f32 %v7563_v55, %v4382_v48  ;;  %v4412_v32 = vadd.f32 %v7565_v12, %v4383_v63  ;;  %v4409_v24 = vadd.f32 %v7563_v55, %v4380_v27  ;;  %v4504_v55 = vld [vmem:[%s7746_s27 + $0x48] sm:$0xff]  ;;  %4643 = vmatpush.msrb.mxu1 %v4534_v46  ;;  %v4427_v41 = vld [vmem:[%s7748_s4 + $0x10] sm:$0xff]  ;;  %v4574_v53 = vld [vmem:[%s7746_s27 + $0x278] sm:$0xff] }
 0xb0a   :  { %4446 = vmatpush.msrb.mxu2 %v4421_v4  ;;  %4472 = vmatpush.msrb.mxu0 %v4422_v34  ;;  %v4410_v54 = vadd.f32 %v7565_v12, %v4381_v10  ;;  %v4520_v12 = vld [vmem:[%s7746_s27 + $0xc8] sm:$0xff]  ;;  %v4502_v4 = vld [vmem:[%s7746_s27 + $0x38] sm:$0xff]  ;;  %v4501_v23 = vld [vmem:[%s7746_s27 + $0x30] sm:$0xff] }
 0xb0b   :  { %4664 = vmatpush.msra.mxu3 %v4549_v2  ;;  %v4518_v34 = vld [vmem:[%s7746_s27 + $0xb8] sm:$0xff]  ;;  %v4497_v14 = vld [vmem:[%s7746_s27 + $0x10] sm:$0xff]  ;;  %v4512_v7 = vld [vmem:[%s7746_s27 + $0x88] sm:$0xff]  ;;  %4644 = vmatpush.msrb.mxu1 %v4533_v22 }
 0xb0c   :  { %4447 = vmatpush.msrb.mxu2 %v4419_v28  ;;  %4473 = vmatpush.msrb.mxu0 %v4420_v35  ;;  %v4516_v28 = vld [vmem:[%s7746_s27 + $0xa8] sm:$0xff]  ;;  %v4499_v35 = vld [vmem:[%s7746_s27 + $0x20] sm:$0xff]  ;;  %v4589_v49 = vld [vmem:[%s7746_s27 + $0x2f0] sm:$0xff] }
 0xb0d   :  { %v4570_v48 = vld [vmem:[%s7746_s27 + $0x258] sm:$0xff]  ;;  %v4588_v63 = vld [vmem:[%s7746_s27 + $0x2e8] sm:$0xff]  ;;  %v4575_v2 = vld [vmem:[%s7746_s27 + $0x280] sm:$0xff] }
 0xb0e   :  { %4448 = vmatpush.msrb.mxu2 %v4417_v39  ;;  %4474 = vmatpush.msrb.mxu0 %v4418_v58  ;;  %v4513_v39 = vld [vmem:[%s7746_s27 + $0x90] sm:$0xff]  ;;  %v4496_v58 = vld [vmem:[%s7746_s27 + $0x8] sm:$0xff] }
 0xb0f   :  { %v4548_v27 = vld [vmem:[%s7746_s27 + $0x1a8] sm:$0xff] }
 0xb10   :  { %4449 = vmatpush.msrb.mxu2 %v4415_v1  ;;  %4475 = vmatpush.msrb.mxu0 %v4416_v42  ;;  %v4590_v1 = vld [vmem:[%s7746_s27 + $0x2f8] sm:$0xff]  ;;  %v4573_v42 = vld [vmem:[%s7746_s27 + $0x270] sm:$0xff]  ;;  %v4532_v10 = vld [vmem:[%s7746_s27 + $0x128] sm:$0xff] }
 0xb11   :  { %4665 = vmatpush.msra.mxu3 %v4548_v27  ;;  %4645 = vmatpush.msrb.mxu1 %v4532_v10  ;;  %v4560_v52 = vld [vmem:[%s7746_s27 + $0x208] sm:$0xff] }
 0xb12   :  { %4450 = vmatpush.msrb.mxu2 %v4413_v36  ;;  %4476 = vmatpush.msrb.mxu0 %v4414_v45  ;;  %v4569_v36 = vld [vmem:[%s7746_s27 + $0x250] sm:$0xff]  ;;  %v4568_v45 = vld [vmem:[%s7746_s27 + $0x248] sm:$0xff] }
 0xb13   :  { %4666 = vmatpush.msra.mxu3 %v4547_v17  ;;  %v4576_v46 = vld [vmem:[%s7746_s27 + $0x288] sm:$0xff] }
 0xb14   :  { %4451 = vmatpush.msrb.mxu2 %v4411_v11  ;;  %4477 = vmatpush.msrb.mxu0 %v4412_v32  ;;  %v4566_v11 = vld [vmem:[%s7746_s27 + $0x238] sm:$0xff] }
 0xb15   :  { %v4586_v32 = vld [vmem:[%s7746_s27 + $0x2d8] sm:$0xff] }
 0xb16   :  { %4452 = vmatpush.msrb.mxu2 %v4409_v24  ;;  %4478 = vmatpush.msrb.mxu0 %v4410_v54  ;;  %v4585_v24 = vld [vmem:[%s7746_s27 + $0x2d0] sm:$0xff]  ;;  %v4546_v54 = vld [vmem:[%s7746_s27 + $0x198] sm:$0xff] }
 0xb17   :  { %4865 = vmatmul.msk.f32.vlgmr.msrb.gmra.mxu2 %vm1227_vm10, %v4425_v61  ;;  %4868 = vmatmul.msk.f32.vlgmr.msrb.gmra.mxu0 %vm1227_vm10, %v4425_v61  ;;  %v4531_v61 = vld [vmem:[%s7746_s27 + $0x120] sm:$0xff] }
 0xb18   :  { %4595 = vmatpush.msra.mxu2 %v4510_v50  ;;  %4615 = vmatpush.msra.mxu0 %v4526_v0  ;;  %v4564_v50 = vld [vmem:[%s7746_s27 + $0x228] sm:$0xff] }
 0xb19   :  { %v4584_v0 = vld [vmem:[%s7746_s27 + $0x2c8] sm:$0xff]  ;;  %4667 = vmatpush.msra.mxu3 %v4546_v54  ;;  %4646 = vmatpush.msrb.mxu1 %v4531_v61 }
 0xb1a   :  { %4596 = vmatpush.msra.mxu2 %v4509_v21  ;;  %4616 = vmatpush.msra.mxu0 %v4525_v20  ;;  %v4545_v21 = vld [vmem:[%s7746_s27 + $0x190] sm:$0xff]  ;;  %v4562_v20 = vld [vmem:[%s7746_s27 + $0x218] sm:$0xff] }
 0xb1b   :  { %4668 = vmatpush.msra.mxu3 %v4545_v21 }
 0xb1c   :  { %4597 = vmatpush.msra.mxu2 %v4508_v33  ;;  %4617 = vmatpush.msra.mxu0 %v4524_v19  ;;  %v4582_v33 = vld [vmem:[%s7746_s27 + $0x2b8] sm:$0xff] }
 0xb1d   :  { %v4530_v19 = vld [vmem:[%s7746_s27 + $0x118] sm:$0xff]  ;;  %4669 = vmatpush.msra.mxu3 %v4544_v62 }
 0xb1e   :  { %4598 = vmatpush.msra.mxu2 %v4507_v47  ;;  %4618 = vmatpush.msra.mxu0 %v4523_v43  ;;  %v4561_v47 = vld [vmem:[%s7746_s27 + $0x210] sm:$0xff] }
 0xb1f   :  { %4866 = vmatmul.msk.f32.gmra.mxu2 %vm1227_vm10, %v4426_v6  ;;  %4869 = vmatmul.msk.f32.gmra.mxu0 %vm1227_vm10, %v4426_v6  ;;  %v4581_v43 = vld [vmem:[%s7746_s27 + $0x2b0] sm:$0xff]  ;;  %v4543_v6 = vld [vmem:[%s7746_s27 + $0x180] sm:$0xff] }
 0xb20   :  { %4599 = vmatpush.msra.mxu2 %v4506_v31  ;;  %4619 = vmatpush.msra.mxu0 %v4522_v5  ;;  %v4528_v31 = vld [vmem:[%s7746_s27 + $0x108] sm:$0xff]  ;;  %v4527_v5 = vld [vmem:[%s7746_s27 + $0x100] sm:$0xff] }
 0xb21   :  { %4647 = vmatpush.msrb.mxu1 %v4530_v19  ;;  %4670 = vmatpush.msra.mxu3 %v4543_v6 }
 0xb22   :  { %4600 = vmatpush.msra.mxu2 %v4505_v18  ;;  %4620 = vmatpush.msra.mxu0 %v4521_v15  ;;  %v4559_v18 = vld [vmem:[%s7746_s27 + $0x200] sm:$0xff] }
 0xb23   :  { %4648 = vmatpush.msrb.mxu1 %v4529_v38  ;;  %v4579_v15 = vld [vmem:[%s7746_s27 + $0x2a0] sm:$0xff] }
 0xb24   :  { %4601 = vmatpush.msra.mxu2 %v4504_v55  ;;  %4621 = vmatpush.msra.mxu0 %v4520_v12  ;;  %v4578_v55 = vld [vmem:[%s7746_s27 + $0x298] sm:$0xff]  ;;  %v4577_v12 = vld [vmem:[%s7746_s27 + $0x290] sm:$0xff] }
 0xb25   :  { %4649 = vmatpush.msrb.mxu1 %v4528_v31 }
 0xb26   :  { %4602 = vmatpush.msra.mxu2 %v4503_v60  ;;  %4622 = vmatpush.msra.mxu0 %v4519_v26 }
 0xb27   :  { %4867 = vmatmul.msk.f32.gmra.mxu2 %vm1227_vm10, %v4427_v41  ;;  %4870 = vmatmul.msk.f32.gmra.mxu0 %vm1227_vm10, %v4427_v41  ;;  %vm4715_vm10 = vcmask 31744  }
 0xb28   :  { %4603 = vmatpush.msra.mxu2 %v4502_v4  ;;  %4623 = vmatpush.msra.mxu0 %v4518_v34 }
 0xb29   :  { %4650 = vmatpush.msrb.mxu1 %v4527_v5 }
 0xb2a   :  { %4604 = vmatpush.msra.mxu2 %v4501_v23  ;;  %4624 = vmatpush.msra.mxu0 %v4517_v16 }
 0xb2c   :  { %4605 = vmatpush.msra.mxu2 %v4500_v44  ;;  %4625 = vmatpush.msra.mxu0 %v4516_v28 }
 0xb2e   :  { %4606 = vmatpush.msra.mxu2 %v4499_v35  ;;  %4626 = vmatpush.msra.mxu0 %v4515_v59 }
 0xb30   :  { %4607 = vmatpush.msra.mxu2 %v4498_v30  ;;  %4627 = vmatpush.msra.mxu0 %v4514_v51  ;;  %v5056_v51 = vld [vmem:[%s7749_s16] ss:$0 sm:$0xff] }
 0xb32   :  { %4608 = vmatpush.msra.mxu2 %v4497_v14  ;;  %4628 = vmatpush.msra.mxu0 %v4513_v39 }
 0xb34   :  { %4609 = vmatpush.msra.mxu2 %v4496_v58  ;;  %4629 = vmatpush.msra.mxu0 %v4512_v7 }
 0xb36   :  { %4610 = vmatpush.msra.mxu2 %v4495_v29  ;;  %4630 = vmatpush.msra.mxu0 %v4511_v9 }
 0xb38   :  { %4675 = vmatpush.msrb.mxu2 %v4574_v53  ;;  %4695 = vmatpush.msrb.mxu0 %v4590_v1 }
 0xb3a   :  { %4676 = vmatpush.msrb.mxu2 %v4573_v42  ;;  %4696 = vmatpush.msrb.mxu0 %v4589_v49 }
 0xb3c   :  { %4677 = vmatpush.msrb.mxu2 %v4572_v25  ;;  %4697 = vmatpush.msrb.mxu0 %v4588_v63 }
 0xb3e   :  { %4678 = vmatpush.msrb.mxu2 %v4571_v40  ;;  %4698 = vmatpush.msrb.mxu0 %v4587_v56 }
 0xb40   :  { %4679 = vmatpush.msrb.mxu2 %v4570_v48  ;;  %4699 = vmatpush.msrb.mxu0 %v4586_v32 }
 0xb42   :  { %4680 = vmatpush.msrb.mxu2 %v4569_v36  ;;  %4700 = vmatpush.msrb.mxu0 %v4585_v24 }
 0xb44   :  { %4681 = vmatpush.msrb.mxu2 %v4568_v45  ;;  %4701 = vmatpush.msrb.mxu0 %v4584_v0 }
 0xb46   :  { %4682 = vmatpush.msrb.mxu2 %v4567_v13  ;;  %4702 = vmatpush.msrb.mxu0 %v4583_v3 }
 0xb48   :  { %4683 = vmatpush.msrb.mxu2 %v4566_v11  ;;  %4703 = vmatpush.msrb.mxu0 %v4582_v33 }
 0xb4a   :  { %4684 = vmatpush.msrb.mxu2 %v4565_v8  ;;  %4704 = vmatpush.msrb.mxu0 %v4581_v43 }
 0xb4c   :  { %4685 = vmatpush.msrb.mxu2 %v4564_v50  ;;  %4705 = vmatpush.msrb.mxu0 %v4580_v37 }
 0xb4e   :  { %4686 = vmatpush.msrb.mxu2 %v4563_v57  ;;  %4706 = vmatpush.msrb.mxu0 %v4579_v15 }
 0xb50   :  { %4687 = vmatpush.msrb.mxu2 %v4562_v20  ;;  %4707 = vmatpush.msrb.mxu0 %v4578_v55 }
 0xb52   :  { %4688 = vmatpush.msrb.mxu2 %v4561_v47  ;;  %4708 = vmatpush.msrb.mxu0 %v4577_v12 }
 0xb54   :  { %4689 = vmatpush.msrb.mxu2 %v4560_v52  ;;  %4709 = vmatpush.msrb.mxu0 %v4576_v46 }
 0xb56   :  { %4690 = vmatpush.msrb.mxu2 %v4559_v18  ;;  %4710 = vmatpush.msrb.mxu0 %v4575_v2 }
 0xb94   :  { %v4480_v60 = vpop.f32.mrf.mxu0 }
 0xb95   :  { %v4490_v26 = vmax.f32 %v4480_v60, 0.0 }
 0xb97   :  { %4631 = vmatmul.f32.vlgmr.msra.gmra.mxu0 %v4490_v26 }
 0xb9a   :  { %v4454_v41 = vpop.f32.mrf.mxu2 }
 0xb9b   :  { %v4489_v4 = vmax.f32 %v4454_v41, 0.0 }
 0xb9c   :  { %v4483_v34 = vpop.f32.mrf.mxu0 }
 0xb9d   :  { %4611 = vmatmul.f32.vlgmr.msra.gmra.mxu2 %v4489_v4  ;;  %v4492_v23 = vmax.f32 %v4483_v34, 0.0 }
 0xb9f   :  { %4671 = vmatmul.f32.vlgmr.msra.gmra.mxu3 %v4492_v23 }
 0xba2   :  { %v4457_v16 = vpop.f32.mrf.mxu2 }
 0xba3   :  { %v4491_v44 = vmax.f32 %v4457_v16, 0.0 }
 0xba4   :  { %v4486_v28 = vpop.f32.mrf.mxu0 }
 0xba5   :  { %4651 = vmatmul.f32.vlgmr.msrb.gmra.mxu1 %v4491_v44  ;;  %v4494_v35 = vmax.f32 %v4486_v28, 0.0 }
 0xba7   :  { %4711 = vmatmul.f32.vlgmr.msrb.gmra.mxu0 %v4494_v35 }
 0xbaa   :  { %v4460_v59 = vpop.f32.mrf.mxu2 }
 0xbab   :  { %v4493_v30 = vmax.f32 %v4460_v59, 0.0 }
 0xbad   :  { %4691 = vmatmul.f32.vlgmr.msrb.gmra.mxu2 %v4493_v30 }
 0xc14   :  { %v4632_v58 = vpop.f32.mrf.mxu0 }
 0xc20   :  { %v4612_v14 = vpop.f32.mrf.mxu2 }
 0xc21   :  { %v4613_v39 = vadd.f32 %v5056_v51, %v4612_v14 }
 0xc22   :  { %v4652_v29 = vpop.f32.mrf.mxu1  ;;  %v4672_v53 = vpop.f32.mrf.mxu3 }
 0xc23   :  { %v4633_v7 = vadd.f32 %v4632_v58, %v4613_v39 }
 0xc24   :  { %v4712_v49 = vpop.f32.mrf.mxu0 }
 0xc25   :  { %v4653_v9 = vadd.f32 %v4652_v29, %v4633_v7 }
 0xc27   :  { %v4673_v1 = vadd.f32 %v4672_v53, %v4653_v9 }
 0xc30   :  { %v4692_v42 = vpop.f32.mrf.mxu2 }
 0xc31   :  { %v4693_v25 = vadd.f32 %v4692_v42, %v4673_v1 }
 0xc33   :  { %v4713_v40 = vadd.f32 %v4712_v49, %v4693_v25 }
 0xc35   :  { %4716 = vst.msk [vmem:[%s5305_s19] sm:$0xff] %vm4715_vm10, %v4713_v40 }
 0xc36   :  { %4721 = vsyncpa [#allocation3], 1 }

</bundles_post_ra>
